<compile_context>
chip_gen: v5e
topology: v5e:2x2
jax: 0.10.0
libtpu: 0.0.40
codegen_flags: <defaults>
</compile_context>

<pallas_src>
import jax
import jax.numpy as jnp
import numpy as np
from jax.experimental import pallas as pl
from jax.experimental.pallas import tpu as pltpu


def _round_up(x, m):
    return ((x + m - 1) // m) * m


def decoder_recurrence_kernel(gix_ref, encw_whh_ref, encfw_ref, bias_ref, keep_ref,
                              h0_ref, bhh_ref, hseq_ref, h_scratch):
    """grid = (batch_tiles, time_chunks); one grid step = TT decoder timesteps."""
    g = pl.program_id(1)

    @pl.when(g == 0)
    def _():
        h_scratch[...] = h0_ref[...]

    encw_whh = encw_whh_ref[0]     # (Hp, BSp + 3Hp) bf16 : [ (enc@W_attn)^T | W_hh^T ]
    encfw = encw = encfw_ref[0]    # (BSp, 3Hp)      bf16 : enc_flat @ W_ih[:, E:]^T
    bias = bias_ref[0]             # (Bt, BSp)       f32  : 0 / -1e16 / -1e30
    keep = keep_ref[0]             # (Bt, BSp)       f32  : 1 on own unmasked columns
    bhh = bhh_ref[...]             # (1, 3Hp)        f32

    TT = gix_ref.shape[1]
    Hp = h_scratch.shape[1]
    BSp = bias.shape[1]

    h = h_scratch[...]             # (Bt, Hp) f32 carried state
    # Static unroll: TT=8 and the per-step live set is a handful of vregs.
    # TODO(synk): switch to lax.fori_loop(..., unroll=2) once TT/Hp grow enough
    # for the unrolled live ranges to spill.
    for i in range(TT):
        # One fused h-matmul: attention logits and the hidden-side GRU gates.
        ag = jnp.dot(h.astype(jnp.bfloat16), encw_whh,
                     preferred_element_type=jnp.float32)          # (Bt, BSp+3Hp)
        att = ag[:, :BSp] * keep + bias       # masked -> -1e16, off-block/pad -> -1e30
        gh = ag[:, BSp:] + bhh                # (Bt, 3Hp)

        m = jnp.max(att, axis=-1, keepdims=True)
        e = jnp.exp(att - m)                  # off-block / pad columns are exactly 0
        denom = jnp.sum(e, axis=-1, keepdims=True)
        # Unnormalized context folded directly into the input gates:
        #   c @ W_ih[:,E:]^T == (softmax(att) @ enc) @ wic == (e @ encfw) / denom
        ctx_g = jnp.dot(e.astype(jnp.bfloat16), encfw,
                        preferred_element_type=jnp.float32)       # (Bt, 3Hp)
        gi = (gix_ref[:, i, :].astype(jnp.float32)
              + ctx_g * pl.reciprocal(denom, approx=True))

        # GRUCell, PyTorch gate order (r, z, n); gate slices are 128-lane aligned.
        r = jax.nn.sigmoid(gi[:, 0:Hp] + gh[:, 0:Hp])
        z = jax.nn.sigmoid(gi[:, Hp:2 * Hp] + gh[:, Hp:2 * Hp])
        n = jnp.tanh(gi[:, 2 * Hp:3 * Hp] + r * gh[:, 2 * Hp:3 * Hp])
        h = (1.0 - z) * n + z * h

        hseq_ref[:, i, :] = h

    h_scratch[...] = h


@jax.jit
def decoder_forward(params, batch_trans_in, encoder_output, hidden, encoder_mask):
    emb_table = params["embedding"]          # (V, E)
    W_attn = params["W_attn"]                # (H, H)
    W_ih = params["W_ih"]                    # (3H, E+H)
    W_hh = params["W_hh"]                    # (3H, H)
    b_ih = params["b_ih"]                    # (3H,)
    b_hh = params["b_hh"]                    # (3H,)
    W_out = params["W_out"]                  # (V, H)
    b_out = params["b_out"]                  # (V,)

    B, T = batch_trans_in.shape
    _, S, H = encoder_output.shape
    V, E = emb_table.shape

    f32, bf16 = jnp.float32, jnp.bfloat16

    # ---- padded / tiled sizes ----
    Hp = _round_up(H, 128)            # lane-aligned hidden width
    Bt = 8                            # batch tile (sublane aligned, megacore-sharded)
    Bp = _round_up(B, Bt)
    Bb = Bp // Bt
    TT = 8                            # timesteps per grid step
    Tp = _round_up(T, TT)
    BSp = _round_up(Bt * S, 128)      # lane-aligned per-tile attention width

    def pad_gates(x):
        """Last dim 3H -> 3Hp: each H-wide gate placed at a 128-aligned offset."""
        parts = []
        for gidx in range(3):
            p = x[..., gidx * H:(gidx + 1) * H]
            parts.append(jnp.pad(p, [(0, 0)] * (x.ndim - 1) + [(0, Hp - H)]))
        return jnp.concatenate(parts, axis=-1)

    # ---- hoisted, recurrence-independent work (plain XLA) ----
    embedded = emb_table[batch_trans_in]                              # (B, T, E)
    gi_x = jnp.einsum("bte,ke->btk", embedded, W_ih[:, :E]) + b_ih    # (B, T, 3H)
    gi_x = pad_gates(gi_x.astype(f32))                                # (B, T, 3Hp)
    gi_x = jnp.pad(gi_x, ((0, Bp - B), (0, Tp - T), (0, 0))).astype(bf16)

    enc = jnp.pad(encoder_output.astype(f32),
                  ((0, Bp - B), (0, 0), (0, Hp - H)))                 # (Bp, S, Hp)
    W_attn_p = jnp.pad(W_attn.astype(f32), ((0, Hp - H), (0, Hp - H)))
    encw = jnp.einsum("bsk,kj->bsj", enc, W_attn_p)                   # (Bp, S, Hp)

    # Per-batch-tile fused operand [ (enc@W_attn)^T | W_hh^T ].
    encw_t = jnp.swapaxes(encw.reshape(Bb, Bt * S, Hp), 1, 2)         # (Bb, Hp, Bt*S)
    encw_t = jnp.pad(encw_t, ((0, 0), (0, 0), (0, BSp - Bt * S)))     # (Bb, Hp, BSp)
    whh_t = jnp.pad(pad_gates(W_hh.astype(f32).T), ((0, Hp - H), (0, 0)))   # (Hp, 3Hp)
    encw_whh = jnp.concatenate(
        [encw_t, jnp.broadcast_to(whh_t[None], (Bb, Hp, 3 * Hp))], axis=-1
    ).astype(bf16)                                                    # (Bb, Hp, BSp+3Hp)

    # Context-gate operand: enc_flat @ W_ih[:, E:]^T (context never materializes).
    wic_t = jnp.pad(pad_gates(W_ih[:, E:].astype(f32).T), ((0, Hp - H), (0, 0)))
    encfw = jnp.einsum("bsk,kj->bsj", enc.reshape(Bb, Bt * S, Hp), wic_t)
    encfw = jnp.pad(encfw, ((0, 0), (0, BSp - Bt * S), (0, 0))).astype(bf16)  # (Bb, BSp, 3Hp)

    # Attention mask / block-diagonal bias + keep multiplier (per batch tile).
    mask = jnp.pad(encoder_mask > 0, ((0, Bp - B), (0, 0)))           # (Bp, S) bool
    mask = jnp.pad(mask.reshape(Bb, Bt * S), ((0, 0), (0, BSp - Bt * S)))   # (Bb, BSp)
    col_owner = jnp.arange(BSp, dtype=jnp.int32) // S                 # (BSp,)
    same = col_owner[None, :] == jnp.arange(Bt, dtype=jnp.int32)[:, None]   # (Bt, BSp)
    keep = jnp.where(same[None] & ~mask[:, None, :], 1.0, 0.0).astype(f32)  # (Bb, Bt, BSp)
    bias = jnp.where(same[None],
                     jnp.where(mask[:, None, :], -1e16, 0.0),
                     -1e30).astype(f32)                               # (Bb, Bt, BSp)

    h0 = jnp.pad(hidden.astype(f32), ((0, Bp - B), (0, Hp - H)))      # (Bp, Hp)
    bhh = pad_gates(b_hh.astype(f32))[None, :]                        # (1, 3Hp)

    # VMEM footprint (double-buffered blocks + scratch) -> compiler limit.
    def nbytes(shape, dt):
        return int(np.prod(shape)) * jnp.dtype(dt).itemsize
    footprint = 2 * (nbytes((Bt, TT, 3 * Hp), bf16)
                     + nbytes((1, Hp, BSp + 3 * Hp), bf16)
                     + nbytes((1, BSp, 3 * Hp), bf16)
                     + 2 * nbytes((1, Bt, BSp), f32)
                     + nbytes((Bt, Hp), f32)
                     + nbytes((1, 3 * Hp), f32)
                     + nbytes((Bt, TT, Hp), f32)) + nbytes((Bt, Hp), f32)
    vmem_limit = int(min(100 * 2 ** 20, max(8 * 2 ** 20, 2 * footprint)))

    hseq = pl.pallas_call(
        decoder_recurrence_kernel,
        out_shape=jax.ShapeDtypeStruct((Bp, Tp, Hp), f32),
        grid_spec=pltpu.PrefetchScalarGridSpec(
            num_scalar_prefetch=0,
            grid=(Bb, Tp // TT),
            in_specs=[
                pl.BlockSpec((Bt, TT, 3 * Hp), lambda b, g: (b, g, 0)),       # gi_x
                # TODO(synk): pipeline_mode=pl.Buffered(1) on the grid-invariant
                # operands below would halve their VMEM residency (v7x headroom).
                pl.BlockSpec((1, Hp, BSp + 3 * Hp), lambda b, g: (b, 0, 0)),  # [encw^T|W_hh^T]
                pl.BlockSpec((1, BSp, 3 * Hp), lambda b, g: (b, 0, 0)),       # enc @ wic^T
                pl.BlockSpec((1, Bt, BSp), lambda b, g: (b, 0, 0)),           # bias
                pl.BlockSpec((1, Bt, BSp), lambda b, g: (b, 0, 0)),           # keep
                pl.BlockSpec((Bt, Hp), lambda b, g: (b, 0)),                  # h0
                pl.BlockSpec((1, 3 * Hp), lambda b, g: (0, 0)),               # b_hh
            ],
            out_specs=pl.BlockSpec((Bt, TT, Hp), lambda b, g: (b, g, 0)),     # hidden states
            scratch_shapes=[pltpu.VMEM((Bt, Hp), f32)],
        ),
        compiler_params=pltpu.CompilerParams(
            dimension_semantics=("parallel", "arbitrary"),  # batch tiles || , time sequential
            vmem_limit_bytes=vmem_limit,
        ),
    )(gi_x, encw_whh, encfw, bias, keep, h0, bhh)

    # ---- hoisted output projection: one lane-dense (B*T, Hp) @ (Hp, V) matmul ----
    hseq = hseq[:B, :T]                                               # (B, T, Hp)
    W_out_p = jnp.pad(W_out.astype(f32), ((0, 0), (0, Hp - H)))       # (V, Hp)
    logits = jnp.dot(hseq.reshape(B * T, Hp).astype(bf16),
                     W_out_p.T.astype(bf16),
                     preferred_element_type=f32) + b_out              # (B*T, V)
    h_final = hseq[:, T - 1, :H].astype(hidden.dtype)                 # (B, H)
    return logits, h_final


def decoder_reference(params, batch_trans_in, encoder_output, hidden, encoder_mask):
    """Pure-JAX float32 reference mirroring the PyTorch forward."""
    emb_table = params["embedding"]
    W_attn, W_ih, W_hh = params["W_attn"], params["W_ih"], params["W_hh"]
    b_ih, b_hh = params["b_ih"], params["b_hh"]
    W_out, b_out = params["W_out"], params["b_out"]
    B, T = batch_trans_in.shape
    V, E = emb_table.shape
    H = hidden.shape[1]
    hp_prec = jax.lax.Precision.HIGHEST

    embedded = emb_table[batch_trans_in]
    outs = []
    h = hidden
    for t in range(T):
        x = embedded[:, t]
        hp = jnp.dot(h, W_attn.T, precision=hp_prec)
        alphas = jnp.sum(encoder_output * hp[:, None, :], axis=-1)
        alphas = jnp.where(encoder_mask > 0, -1e16, alphas)
        scores = jax.nn.softmax(alphas, axis=1)
        c = jnp.sum(scores[:, :, None] * encoder_output, axis=1)
        inp = jnp.concatenate([x, c], axis=1)
        gi = jnp.dot(inp, W_ih.T, precision=hp_prec) + b_ih
        gh = jnp.dot(h, W_hh.T, precision=hp_prec) + b_hh
        r = jax.nn.sigmoid(gi[:, :H] + gh[:, :H])
        z = jax.nn.sigmoid(gi[:, H:2 * H] + gh[:, H:2 * H])
        n = jnp.tanh(gi[:, 2 * H:] + r * gh[:, 2 * H:])
        h = (1.0 - z) * n + z * h
        outs.append(h)
    output = jnp.stack(outs, axis=1)                      # (B, T, H)
    logits = jnp.dot(output, W_out.T, precision=hp_prec) + b_out
    return logits.reshape(-1, V), h


if __name__ == "__main__":
    # Small shapes consistent with the module.
    B, T, S = 2, 4, 8            # batch, target_len, source_len
    E, H, V = 16, 32, 64         # emb_size, hidden_size, vocab_size
    padding_idx = 0

    key = jax.random.PRNGKey(0)
    ks = jax.random.split(key, 12)

    emb = 0.1 * jax.random.normal(ks[0], (V, E), jnp.float32)
    emb = emb.at[padding_idx].set(0.0)                     # padding_idx row zeroed
    params = {
        "embedding": emb,
        "W_attn": 0.1 * jax.random.normal(ks[1], (H, H), jnp.float32),
        "W_ih": 0.1 * jax.random.normal(ks[2], (3 * H, E + H), jnp.float32),
        "W_hh": 0.1 * jax.random.normal(ks[3], (3 * H, H), jnp.float32),
        "b_ih": 0.1 * jax.random.normal(ks[4], (3 * H,), jnp.float32),
        "b_hh": 0.1 * jax.random.normal(ks[5], (3 * H,), jnp.float32),
        "W_out": 0.1 * jax.random.normal(ks[6], (V, H), jnp.float32),
        "b_out": 0.1 * jax.random.normal(ks[7], (V,), jnp.float32),
    }

    batch_trans_in = jax.random.randint(ks[8], (B, T), 0, V, jnp.int32)
    encoder_output = jax.random.normal(ks[9], (B, S, H), jnp.float32)
    hidden0 = jax.random.normal(ks[10], (B, H), jnp.float32)
    # mask: mark the last two source positions of batch element 1 as padding
    encoder_mask = jnp.zeros((B, S), jnp.int32).at[1, S - 2:].set(1)

    logits, h_final = decoder_forward(params, batch_trans_in, encoder_output,
                                      hidden0, encoder_mask)
    jax.block_until_ready((logits, h_final))

    ref_logits, ref_h = decoder_reference(params, batch_trans_in, encoder_output,
                                          hidden0, encoder_mask)
    assert logits.shape == (B * T, V) and h_final.shape == (B, H)
    # Tolerance reflects bf16 MXU operands + the approximate EUP reciprocal vs.
    # a float32/HIGHEST reference; structural bugs produce O(0.1-1) mismatches.
    np.testing.assert_allclose(np.asarray(logits), np.asarray(ref_logits),
                               rtol=5e-2, atol=5e-2)
    np.testing.assert_allclose(np.asarray(h_final), np.asarray(ref_h),
                               rtol=5e-2, atol=5e-2)

    print("KERNEL_OK")
</pallas_src>

<mosaic_0001>
module attributes {stable_mosaic.version = 11 : i64} {
  func.func @decoder_recurrence_kernel(%arg0: i32, %arg1: i32, %arg2: memref<8x8x384xbf16, #tpu.memory_space<vmem>>, %arg3: memref<1x128x512xbf16, #tpu.memory_space<vmem>>, %arg4: memref<1x128x384xbf16, #tpu.memory_space<vmem>>, %arg5: memref<1x8x128xf32, #tpu.memory_space<vmem>>, %arg6: memref<1x8x128xf32, #tpu.memory_space<vmem>>, %arg7: memref<8x128xf32, #tpu.memory_space<vmem>>, %arg8: memref<1x384xf32, #tpu.memory_space<vmem>>, %arg9: memref<8x8x128xf32, #tpu.memory_space<vmem>>, %arg10: memref<8x128xf32, #tpu.memory_space<vmem>>) attributes {dimension_semantics = [#tpu.dimension_semantics<parallel>, #tpu.dimension_semantics<arbitrary>], iteration_bounds = array<i64: 1, 1>, scalar_prefetch = 0 : i64, scratch_operands = 1 : i64, tpu.core_type = #tpu.core_type<tc>, window_params = [{transform_indices = @transform_0, window_bounds = array<i64: 8, 8, 384>}, {transform_indices = @transform_1, window_bounds = array<i64: 1, 128, 512>}, {transform_indices = @transform_2, window_bounds = array<i64: 1, 128, 384>}, {transform_indices = @transform_3, window_bounds = array<i64: 1, 8, 128>}, {transform_indices = @transform_4, window_bounds = array<i64: 1, 8, 128>}, {transform_indices = @transform_5, window_bounds = array<i64: 8, 128>}, {pipeline_mode = #tpu.pipeline_mode<synchronous>, transform_indices = @transform_6, window_bounds = array<i64: 1, 384>}, {transform_indices = @transform_7, window_bounds = array<i64: 8, 8, 128>}]} {
    %c0_i32 = arith.constant 0 : i32
    %0 = arith.cmpi eq, %arg1, %c0_i32 : i32
    %1 = arith.extui %0 : i1 to i32
    %c0_i32_0 = arith.constant 0 : i32
    %2 = arith.cmpi ne, %1, %c0_i32_0 : i32
    scf.if %2 {
      %c0_114 = arith.constant 0 : index
      %c0_115 = arith.constant 0 : index
      %438 = vector.load %arg7[%c0_114, %c0_115] : memref<8x128xf32, #tpu.memory_space<vmem>>, vector<8x128xf32>
      %c0_116 = arith.constant 0 : index
      %c0_117 = arith.constant 0 : index
      %439 = vector.load %arg10[%c0_116, %c0_117] : memref<8x128xf32, #tpu.memory_space<vmem>>, vector<8x128xf32>
      tpu.vector_store %arg10[%c0_116, %c0_117], %438 {strides = array<i32>} : memref<8x128xf32, #tpu.memory_space<vmem>>, vector<8x128xf32>,
    } else {
    }
    %c0 = arith.constant 0 : index
    %c0_1 = arith.constant 0 : index
    %c0_2 = arith.constant 0 : index
    %3 = vector.load %arg3[%c0, %c0_1, %c0_2] : memref<1x128x512xbf16, #tpu.memory_space<vmem>>, vector<1x128x512xbf16>
    %4 = vector.shape_cast %3 : vector<1x128x512xbf16> to vector<128x512xbf16>
    %c0_3 = arith.constant 0 : index
    %c0_4 = arith.constant 0 : index
    %c0_5 = arith.constant 0 : index
    %5 = vector.load %arg4[%c0_3, %c0_4, %c0_5] : memref<1x128x384xbf16, #tpu.memory_space<vmem>>, vector<1x128x384xbf16>
    %6 = vector.shape_cast %5 : vector<1x128x384xbf16> to vector<128x384xbf16>
    %c0_6 = arith.constant 0 : index
    %c0_7 = arith.constant 0 : index
    %c0_8 = arith.constant 0 : index
    %7 = vector.load %arg5[%c0_6, %c0_7, %c0_8] : memref<1x8x128xf32, #tpu.memory_space<vmem>>, vector<1x8x128xf32>
    %8 = vector.shape_cast %7 : vector<1x8x128xf32> to vector<8x128xf32>
    %c0_9 = arith.constant 0 : index
    %c0_10 = arith.constant 0 : index
    %c0_11 = arith.constant 0 : index
    %9 = vector.load %arg6[%c0_9, %c0_10, %c0_11] : memref<1x8x128xf32, #tpu.memory_space<vmem>>, vector<1x8x128xf32>
    %10 = vector.shape_cast %9 : vector<1x8x128xf32> to vector<8x128xf32>
    %c0_12 = arith.constant 0 : index
    %c0_13 = arith.constant 0 : index
    %11 = vector.load %arg8[%c0_12, %c0_13] : memref<1x384xf32, #tpu.memory_space<vmem>>, vector<1x384xf32>
    %c0_14 = arith.constant 0 : index
    %c0_15 = arith.constant 0 : index
    %12 = vector.load %arg10[%c0_14, %c0_15] : memref<8x128xf32, #tpu.memory_space<vmem>>, vector<8x128xf32>
    %13 = arith.truncf %12 : vector<8x128xf32> to vector<8x128xbf16>
    %cst = arith.constant dense<0.000000e+00> : vector<8x512xf32>
    %14 = tpu.matmul %13, %4, %cst {dimension_numbers = #tpu.dot_dimension_numbers<[1], [0], [0], [1], [0, 0, 1, 1], [], []>} : vector<8x128xbf16>, vector<128x512xbf16>, vector<8x512xf32> -> vector<8x512xf32>
    %15 = vector.extract_strided_slice %14 {offsets = [0, 0], sizes = [8, 128], strides = [1, 1]} : vector<8x512xf32> to vector<8x128xf32>
    %16 = arith.mulf %15, %10 : vector<8x128xf32>
    %17 = arith.addf %16, %8 : vector<8x128xf32>
    %18 = vector.extract_strided_slice %14 {offsets = [0, 128], sizes = [8, 384], strides = [1, 1]} : vector<8x512xf32> to vector<8x384xf32>
    %19 = vector.broadcast %11 : vector<1x384xf32> to vector<8x384xf32>
    %20 = arith.addf %18, %19 : vector<8x384xf32>
    %cst_16 = arith.constant dense<0xFF800000> : vector<8xf32>
    %21 = vector.multi_reduction <maximumf>, %17, %cst_16 [1] : vector<8x128xf32> to vector<8xf32>
    %22 = vector.shape_cast %21 : vector<8xf32> to vector<8x1xf32>
    %23 = vector.broadcast %22 : vector<8x1xf32> to vector<8x128xf32>
    %24 = arith.subf %17, %23 : vector<8x128xf32>
    %25 = math.exp %24 : vector<8x128xf32>
    %cst_17 = arith.constant dense<0.000000e+00> : vector<8xf32>
    %26 = vector.multi_reduction <add>, %25, %cst_17 [1] : vector<8x128xf32> to vector<8xf32>
    %27 = vector.shape_cast %26 : vector<8xf32> to vector<8x1xf32>
    %28 = arith.truncf %25 : vector<8x128xf32> to vector<8x128xbf16>
    %cst_18 = arith.constant dense<0.000000e+00> : vector<8x384xf32>
    %29 = tpu.matmul %28, %6, %cst_18 {dimension_numbers = #tpu.dot_dimension_numbers<[1], [0], [0], [1], [0, 0, 1, 1], [], []>} : vector<8x128xbf16>, vector<128x384xbf16>, vector<8x384xf32> -> vector<8x384xf32>
    %c0_19 = arith.constant 0 : index
    %c0_20 = arith.constant 0 : index
    %c0_21 = arith.constant 0 : index
    %30 = vector.load %arg2[%c0_19, %c0_20, %c0_21] : memref<8x8x384xbf16, #tpu.memory_space<vmem>>, vector<8x1x384xbf16>
    %31 = vector.shape_cast %30 : vector<8x1x384xbf16> to vector<8x384xbf16>
    %32 = arith.extf %31 : vector<8x384xbf16> to vector<8x384xf32>
    %33 = tpu.reciprocal %27 {approx = true} : vector<8x1xf32> -> vector<8x1xf32>
    %34 = vector.broadcast %33 : vector<8x1xf32> to vector<8x384xf32>
    %35 = arith.mulf %29, %34 : vector<8x384xf32>
    %36 = arith.addf %32, %35 : vector<8x384xf32>
    %37 = vector.extract_strided_slice %36 {offsets = [0, 0], sizes = [8, 128], strides = [1, 1]} : vector<8x384xf32> to vector<8x128xf32>
    %38 = vector.extract_strided_slice %20 {offsets = [0, 0], sizes = [8, 128], strides = [1, 1]} : vector<8x384xf32> to vector<8x128xf32>
    %39 = arith.addf %37, %38 : vector<8x128xf32>
    %40 = arith.negf %39 : vector<8x128xf32>
    %41 = math.exp %40 : vector<8x128xf32>
    %cst_22 = arith.constant 1.000000e+00 : f32
    %42 = vector.broadcast %cst_22 : f32 to vector<8x128xf32>
    %43 = arith.addf %42, %41 : vector<8x128xf32>
    %44 = arith.divf %42, %43 : vector<8x128xf32>
    %45 = vector.extract_strided_slice %36 {offsets = [0, 128], sizes = [8, 128], strides = [1, 1]} : vector<8x384xf32> to vector<8x128xf32>
    %46 = vector.extract_strided_slice %20 {offsets = [0, 128], sizes = [8, 128], strides = [1, 1]} : vector<8x384xf32> to vector<8x128xf32>
    %47 = arith.addf %45, %46 : vector<8x128xf32>
    %48 = arith.negf %47 : vector<8x128xf32>
    %49 = math.exp %48 : vector<8x128xf32>
    %cst_23 = arith.constant 1.000000e+00 : f32
    %50 = vector.broadcast %cst_23 : f32 to vector<8x128xf32>
    %51 = arith.addf %50, %49 : vector<8x128xf32>
    %52 = arith.divf %50, %51 : vector<8x128xf32>
    %53 = vector.extract_strided_slice %36 {offsets = [0, 256], sizes = [8, 128], strides = [1, 1]} : vector<8x384xf32> to vector<8x128xf32>
    %54 = vector.extract_strided_slice %20 {offsets = [0, 256], sizes = [8, 128], strides = [1, 1]} : vector<8x384xf32> to vector<8x128xf32>
    %55 = arith.mulf %44, %54 : vector<8x128xf32>
    %56 = arith.addf %53, %55 : vector<8x128xf32>
    %57 = math.tanh %56 : vector<8x128xf32>
    %cst_24 = arith.constant 1.000000e+00 : f32
    %58 = vector.broadcast %cst_24 : f32 to vector<8x128xf32>
    %59 = arith.subf %58, %52 : vector<8x128xf32>
    %60 = arith.mulf %59, %57 : vector<8x128xf32>
    %61 = arith.mulf %52, %12 : vector<8x128xf32>
    %62 = arith.addf %60, %61 : vector<8x128xf32>
    %c0_25 = arith.constant 0 : index
    %c0_26 = arith.constant 0 : index
    %c0_27 = arith.constant 0 : index
    %63 = vector.load %arg9[%c0_25, %c0_26, %c0_27] : memref<8x8x128xf32, #tpu.memory_space<vmem>>, vector<8x1x128xf32>
    %64 = vector.shape_cast %63 : vector<8x1x128xf32> to vector<8x128xf32>
    %65 = vector.shape_cast %62 : vector<8x128xf32> to vector<8x1x128xf32>
    tpu.vector_store %arg9[%c0_25, %c0_26, %c0_27], %65 {strides = array<i32>} : memref<8x8x128xf32, #tpu.memory_space<vmem>>, vector<8x1x128xf32>,
    %66 = arith.truncf %62 : vector<8x128xf32> to vector<8x128xbf16>
    %cst_28 = arith.constant dense<0.000000e+00> : vector<8x512xf32>
    %67 = tpu.matmul %66, %4, %cst_28 {dimension_numbers = #tpu.dot_dimension_numbers<[1], [0], [0], [1], [0, 0, 1, 1], [], []>} : vector<8x128xbf16>, vector<128x512xbf16>, vector<8x512xf32> -> vector<8x512xf32>
    %68 = vector.extract_strided_slice %67 {offsets = [0, 0], sizes = [8, 128], strides = [1, 1]} : vector<8x512xf32> to vector<8x128xf32>
    %69 = arith.mulf %68, %10 : vector<8x128xf32>
    %70 = arith.addf %69, %8 : vector<8x128xf32>
    %71 = vector.extract_strided_slice %67 {offsets = [0, 128], sizes = [8, 384], strides = [1, 1]} : vector<8x512xf32> to vector<8x384xf32>
    %72 = vector.broadcast %11 : vector<1x384xf32> to vector<8x384xf32>
    %73 = arith.addf %71, %72 : vector<8x384xf32>
    %cst_29 = arith.constant dense<0xFF800000> : vector<8xf32>
    %74 = vector.multi_reduction <maximumf>, %70, %cst_29 [1] : vector<8x128xf32> to vector<8xf32>
    %75 = vector.shape_cast %74 : vector<8xf32> to vector<8x1xf32>
    %76 = vector.broadcast %75 : vector<8x1xf32> to vector<8x128xf32>
    %77 = arith.subf %70, %76 : vector<8x128xf32>
    %78 = math.exp %77 : vector<8x128xf32>
    %cst_30 = arith.constant dense<0.000000e+00> : vector<8xf32>
    %79 = vector.multi_reduction <add>, %78, %cst_30 [1] : vector<8x128xf32> to vector<8xf32>
    %80 = vector.shape_cast %79 : vector<8xf32> to vector<8x1xf32>
    %81 = arith.truncf %78 : vector<8x128xf32> to vector<8x128xbf16>
    %cst_31 = arith.constant dense<0.000000e+00> : vector<8x384xf32>
    %82 = tpu.matmul %81, %6, %cst_31 {dimension_numbers = #tpu.dot_dimension_numbers<[1], [0], [0], [1], [0, 0, 1, 1], [], []>} : vector<8x128xbf16>, vector<128x384xbf16>, vector<8x384xf32> -> vector<8x384xf32>
    %c0_32 = arith.constant 0 : index
    %c1 = arith.constant 1 : index
    %c0_33 = arith.constant 0 : index
    %83 = vector.load %arg2[%c0_32, %c1, %c0_33] : memref<8x8x384xbf16, #tpu.memory_space<vmem>>, vector<8x1x384xbf16>
    %84 = vector.shape_cast %83 : vector<8x1x384xbf16> to vector<8x384xbf16>
    %85 = arith.extf %84 : vector<8x384xbf16> to vector<8x384xf32>
    %86 = tpu.reciprocal %80 {approx = true} : vector<8x1xf32> -> vector<8x1xf32>
    %87 = vector.broadcast %86 : vector<8x1xf32> to vector<8x384xf32>
    %88 = arith.mulf %82, %87 : vector<8x384xf32>
    %89 = arith.addf %85, %88 : vector<8x384xf32>
    %90 = vector.extract_strided_slice %89 {offsets = [0, 0], sizes = [8, 128], strides = [1, 1]} : vector<8x384xf32> to vector<8x128xf32>
    %91 = vector.extract_strided_slice %73 {offsets = [0, 0], sizes = [8, 128], strides = [1, 1]} : vector<8x384xf32> to vector<8x128xf32>
    %92 = arith.addf %90, %91 : vector<8x128xf32>
    %93 = arith.negf %92 : vector<8x128xf32>
    %94 = math.exp %93 : vector<8x128xf32>
    %cst_34 = arith.constant 1.000000e+00 : f32
    %95 = vector.broadcast %cst_34 : f32 to vector<8x128xf32>
    %96 = arith.addf %95, %94 : vector<8x128xf32>
    %97 = arith.divf %95, %96 : vector<8x128xf32>
    %98 = vector.extract_strided_slice %89 {offsets = [0, 128], sizes = [8, 128], strides = [1, 1]} : vector<8x384xf32> to vector<8x128xf32>
    %99 = vector.extract_strided_slice %73 {offsets = [0, 128], sizes = [8, 128], strides = [1, 1]} : vector<8x384xf32> to vector<8x128xf32>
    %100 = arith.addf %98, %99 : vector<8x128xf32>
    %101 = arith.negf %100 : vector<8x128xf32>
    %102 = math.exp %101 : vector<8x128xf32>
    %cst_35 = arith.constant 1.000000e+00 : f32
    %103 = vector.broadcast %cst_35 : f32 to vector<8x128xf32>
    %104 = arith.addf %103, %102 : vector<8x128xf32>
    %105 = arith.divf %103, %104 : vector<8x128xf32>
    %106 = vector.extract_strided_slice %89 {offsets = [0, 256], sizes = [8, 128], strides = [1, 1]} : vector<8x384xf32> to vector<8x128xf32>
    %107 = vector.extract_strided_slice %73 {offsets = [0, 256], sizes = [8, 128], strides = [1, 1]} : vector<8x384xf32> to vector<8x128xf32>
    %108 = arith.mulf %97, %107 : vector<8x128xf32>
    %109 = arith.addf %106, %108 : vector<8x128xf32>
    %110 = math.tanh %109 : vector<8x128xf32>
    %cst_36 = arith.constant 1.000000e+00 : f32
    %111 = vector.broadcast %cst_36 : f32 to vector<8x128xf32>
    %112 = arith.subf %111, %105 : vector<8x128xf32>
    %113 = arith.mulf %112, %110 : vector<8x128xf32>
    %114 = arith.mulf %105, %62 : vector<8x128xf32>
    %115 = arith.addf %113, %114 : vector<8x128xf32>
    %c0_37 = arith.constant 0 : index
    %c1_38 = arith.constant 1 : index
    %c0_39 = arith.constant 0 : index
    %116 = vector.load %arg9[%c0_37, %c1_38, %c0_39] : memref<8x8x128xf32, #tpu.memory_space<vmem>>, vector<8x1x128xf32>
    %117 = vector.shape_cast %116 : vector<8x1x128xf32> to vector<8x128xf32>
    %118 = vector.shape_cast %115 : vector<8x128xf32> to vector<8x1x128xf32>
    tpu.vector_store %arg9[%c0_37, %c1_38, %c0_39], %118 {strides = array<i32>} : memref<8x8x128xf32, #tpu.memory_space<vmem>>, vector<8x1x128xf32>,
    %119 = arith.truncf %115 : vector<8x128xf32> to vector<8x128xbf16>
    %cst_40 = arith.constant dense<0.000000e+00> : vector<8x512xf32>
    %120 = tpu.matmul %119, %4, %cst_40 {dimension_numbers = #tpu.dot_dimension_numbers<[1], [0], [0], [1], [0, 0, 1, 1], [], []>} : vector<8x128xbf16>, vector<128x512xbf16>, vector<8x512xf32> -> vector<8x512xf32>
    %121 = vector.extract_strided_slice %120 {offsets = [0, 0], sizes = [8, 128], strides = [1, 1]} : vector<8x512xf32> to vector<8x128xf32>
    %122 = arith.mulf %121, %10 : vector<8x128xf32>
    %123 = arith.addf %122, %8 : vector<8x128xf32>
    %124 = vector.extract_strided_slice %120 {offsets = [0, 128], sizes = [8, 384], strides = [1, 1]} : vector<8x512xf32> to vector<8x384xf32>
    %125 = vector.broadcast %11 : vector<1x384xf32> to vector<8x384xf32>
    %126 = arith.addf %124, %125 : vector<8x384xf32>
    %cst_41 = arith.constant dense<0xFF800000> : vector<8xf32>
    %127 = vector.multi_reduction <maximumf>, %123, %cst_41 [1] : vector<8x128xf32> to vector<8xf32>
    %128 = vector.shape_cast %127 : vector<8xf32> to vector<8x1xf32>
    %129 = vector.broadcast %128 : vector<8x1xf32> to vector<8x128xf32>
    %130 = arith.subf %123, %129 : vector<8x128xf32>
    %131 = math.exp %130 : vector<8x128xf32>
    %cst_42 = arith.constant dense<0.000000e+00> : vector<8xf32>
    %132 = vector.multi_reduction <add>, %131, %cst_42 [1] : vector<8x128xf32> to vector<8xf32>
    %133 = vector.shape_cast %132 : vector<8xf32> to vector<8x1xf32>
    %134 = arith.truncf %131 : vector<8x128xf32> to vector<8x128xbf16>
    %cst_43 = arith.constant dense<0.000000e+00> : vector<8x384xf32>
    %135 = tpu.matmul %134, %6, %cst_43 {dimension_numbers = #tpu.dot_dimension_numbers<[1], [0], [0], [1], [0, 0, 1, 1], [], []>} : vector<8x128xbf16>, vector<128x384xbf16>, vector<8x384xf32> -> vector<8x384xf32>
    %c0_44 = arith.constant 0 : index
    %c2 = arith.constant 2 : index
    %c0_45 = arith.constant 0 : index
    %136 = vector.load %arg2[%c0_44, %c2, %c0_45] : memref<8x8x384xbf16, #tpu.memory_space<vmem>>, vector<8x1x384xbf16>
    %137 = vector.shape_cast %136 : vector<8x1x384xbf16> to vector<8x384xbf16>
    %138 = arith.extf %137 : vector<8x384xbf16> to vector<8x384xf32>
    %139 = tpu.reciprocal %133 {approx = true} : vector<8x1xf32> -> vector<8x1xf32>
    %140 = vector.broadcast %139 : vector<8x1xf32> to vector<8x384xf32>
    %141 = arith.mulf %135, %140 : vector<8x384xf32>
    %142 = arith.addf %138, %141 : vector<8x384xf32>
    %143 = vector.extract_strided_slice %142 {offsets = [0, 0], sizes = [8, 128], strides = [1, 1]} : vector<8x384xf32> to vector<8x128xf32>
    %144 = vector.extract_strided_slice %126 {offsets = [0, 0], sizes = [8, 128], strides = [1, 1]} : vector<8x384xf32> to vector<8x128xf32>
    %145 = arith.addf %143, %144 : vector<8x128xf32>
    %146 = arith.negf %145 : vector<8x128xf32>
    %147 = math.exp %146 : vector<8x128xf32>
    %cst_46 = arith.constant 1.000000e+00 : f32
    %148 = vector.broadcast %cst_46 : f32 to vector<8x128xf32>
    %149 = arith.addf %148, %147 : vector<8x128xf32>
    %150 = arith.divf %148, %149 : vector<8x128xf32>
    %151 = vector.extract_strided_slice %142 {offsets = [0, 128], sizes = [8, 128], strides = [1, 1]} : vector<8x384xf32> to vector<8x128xf32>
    %152 = vector.extract_strided_slice %126 {offsets = [0, 128], sizes = [8, 128], strides = [1, 1]} : vector<8x384xf32> to vector<8x128xf32>
    %153 = arith.addf %151, %152 : vector<8x128xf32>
    %154 = arith.negf %153 : vector<8x128xf32>
    %155 = math.exp %154 : vector<8x128xf32>
    %cst_47 = arith.constant 1.000000e+00 : f32
    %156 = vector.broadcast %cst_47 : f32 to vector<8x128xf32>
    %157 = arith.addf %156, %155 : vector<8x128xf32>
    %158 = arith.divf %156, %157 : vector<8x128xf32>
    %159 = vector.extract_strided_slice %142 {offsets = [0, 256], sizes = [8, 128], strides = [1, 1]} : vector<8x384xf32> to vector<8x128xf32>
    %160 = vector.extract_strided_slice %126 {offsets = [0, 256], sizes = [8, 128], strides = [1, 1]} : vector<8x384xf32> to vector<8x128xf32>
    %161 = arith.mulf %150, %160 : vector<8x128xf32>
    %162 = arith.addf %159, %161 : vector<8x128xf32>
    %163 = math.tanh %162 : vector<8x128xf32>
    %cst_48 = arith.constant 1.000000e+00 : f32
    %164 = vector.broadcast %cst_48 : f32 to vector<8x128xf32>
    %165 = arith.subf %164, %158 : vector<8x128xf32>
    %166 = arith.mulf %165, %163 : vector<8x128xf32>
    %167 = arith.mulf %158, %115 : vector<8x128xf32>
    %168 = arith.addf %166, %167 : vector<8x128xf32>
    %c0_49 = arith.constant 0 : index
    %c2_50 = arith.constant 2 : index
    %c0_51 = arith.constant 0 : index
    %169 = vector.load %arg9[%c0_49, %c2_50, %c0_51] : memref<8x8x128xf32, #tpu.memory_space<vmem>>, vector<8x1x128xf32>
    %170 = vector.shape_cast %169 : vector<8x1x128xf32> to vector<8x128xf32>
    %171 = vector.shape_cast %168 : vector<8x128xf32> to vector<8x1x128xf32>
    tpu.vector_store %arg9[%c0_49, %c2_50, %c0_51], %171 {strides = array<i32>} : memref<8x8x128xf32, #tpu.memory_space<vmem>>, vector<8x1x128xf32>,
    %172 = arith.truncf %168 : vector<8x128xf32> to vector<8x128xbf16>
    %cst_52 = arith.constant dense<0.000000e+00> : vector<8x512xf32>
    %173 = tpu.matmul %172, %4, %cst_52 {dimension_numbers = #tpu.dot_dimension_numbers<[1], [0], [0], [1], [0, 0, 1, 1], [], []>} : vector<8x128xbf16>, vector<128x512xbf16>, vector<8x512xf32> -> vector<8x512xf32>
    %174 = vector.extract_strided_slice %173 {offsets = [0, 0], sizes = [8, 128], strides = [1, 1]} : vector<8x512xf32> to vector<8x128xf32>
    %175 = arith.mulf %174, %10 : vector<8x128xf32>
    %176 = arith.addf %175, %8 : vector<8x128xf32>
    %177 = vector.extract_strided_slice %173 {offsets = [0, 128], sizes = [8, 384], strides = [1, 1]} : vector<8x512xf32> to vector<8x384xf32>
    %178 = vector.broadcast %11 : vector<1x384xf32> to vector<8x384xf32>
    %179 = arith.addf %177, %178 : vector<8x384xf32>
    %cst_53 = arith.constant dense<0xFF800000> : vector<8xf32>
    %180 = vector.multi_reduction <maximumf>, %176, %cst_53 [1] : vector<8x128xf32> to vector<8xf32>
    %181 = vector.shape_cast %180 : vector<8xf32> to vector<8x1xf32>
    %182 = vector.broadcast %181 : vector<8x1xf32> to vector<8x128xf32>
    %183 = arith.subf %176, %182 : vector<8x128xf32>
    %184 = math.exp %183 : vector<8x128xf32>
    %cst_54 = arith.constant dense<0.000000e+00> : vector<8xf32>
    %185 = vector.multi_reduction <add>, %184, %cst_54 [1] : vector<8x128xf32> to vector<8xf32>
    %186 = vector.shape_cast %185 : vector<8xf32> to vector<8x1xf32>
    %187 = arith.truncf %184 : vector<8x128xf32> to vector<8x128xbf16>
    %cst_55 = arith.constant dense<0.000000e+00> : vector<8x384xf32>
    %188 = tpu.matmul %187, %6, %cst_55 {dimension_numbers = #tpu.dot_dimension_numbers<[1], [0], [0], [1], [0, 0, 1, 1], [], []>} : vector<8x128xbf16>, vector<128x384xbf16>, vector<8x384xf32> -> vector<8x384xf32>
    %c0_56 = arith.constant 0 : index
    %c3 = arith.constant 3 : index
    %c0_57 = arith.constant 0 : index
    %189 = vector.load %arg2[%c0_56, %c3, %c0_57] : memref<8x8x384xbf16, #tpu.memory_space<vmem>>, vector<8x1x384xbf16>
    %190 = vector.shape_cast %189 : vector<8x1x384xbf16> to vector<8x384xbf16>
    %191 = arith.extf %190 : vector<8x384xbf16> to vector<8x384xf32>
    %192 = tpu.reciprocal %186 {approx = true} : vector<8x1xf32> -> vector<8x1xf32>
    %193 = vector.broadcast %192 : vector<8x1xf32> to vector<8x384xf32>
    %194 = arith.mulf %188, %193 : vector<8x384xf32>
    %195 = arith.addf %191, %194 : vector<8x384xf32>
    %196 = vector.extract_strided_slice %195 {offsets = [0, 0], sizes = [8, 128], strides = [1, 1]} : vector<8x384xf32> to vector<8x128xf32>
    %197 = vector.extract_strided_slice %179 {offsets = [0, 0], sizes = [8, 128], strides = [1, 1]} : vector<8x384xf32> to vector<8x128xf32>
    %198 = arith.addf %196, %197 : vector<8x128xf32>
    %199 = arith.negf %198 : vector<8x128xf32>
    %200 = math.exp %199 : vector<8x128xf32>
    %cst_58 = arith.constant 1.000000e+00 : f32
    %201 = vector.broadcast %cst_58 : f32 to vector<8x128xf32>
    %202 = arith.addf %201, %200 : vector<8x128xf32>
    %203 = arith.divf %201, %202 : vector<8x128xf32>
    %204 = vector.extract_strided_slice %195 {offsets = [0, 128], sizes = [8, 128], strides = [1, 1]} : vector<8x384xf32> to vector<8x128xf32>
    %205 = vector.extract_strided_slice %179 {offsets = [0, 128], sizes = [8, 128], strides = [1, 1]} : vector<8x384xf32> to vector<8x128xf32>
    %206 = arith.addf %204, %205 : vector<8x128xf32>
    %207 = arith.negf %206 : vector<8x128xf32>
    %208 = math.exp %207 : vector<8x128xf32>
    %cst_59 = arith.constant 1.000000e+00 : f32
    %209 = vector.broadcast %cst_59 : f32 to vector<8x128xf32>
    %210 = arith.addf %209, %208 : vector<8x128xf32>
    %211 = arith.divf %209, %210 : vector<8x128xf32>
    %212 = vector.extract_strided_slice %195 {offsets = [0, 256], sizes = [8, 128], strides = [1, 1]} : vector<8x384xf32> to vector<8x128xf32>
    %213 = vector.extract_strided_slice %179 {offsets = [0, 256], sizes = [8, 128], strides = [1, 1]} : vector<8x384xf32> to vector<8x128xf32>
    %214 = arith.mulf %203, %213 : vector<8x128xf32>
    %215 = arith.addf %212, %214 : vector<8x128xf32>
    %216 = math.tanh %215 : vector<8x128xf32>
    %cst_60 = arith.constant 1.000000e+00 : f32
    %217 = vector.broadcast %cst_60 : f32 to vector<8x128xf32>
    %218 = arith.subf %217, %211 : vector<8x128xf32>
    %219 = arith.mulf %218, %216 : vector<8x128xf32>
    %220 = arith.mulf %211, %168 : vector<8x128xf32>
    %221 = arith.addf %219, %220 : vector<8x128xf32>
    %c0_61 = arith.constant 0 : index
    %c3_62 = arith.constant 3 : index
    %c0_63 = arith.constant 0 : index
    %222 = vector.load %arg9[%c0_61, %c3_62, %c0_63] : memref<8x8x128xf32, #tpu.memory_space<vmem>>, vector<8x1x128xf32>
    %223 = vector.shape_cast %222 : vector<8x1x128xf32> to vector<8x128xf32>
    %224 = vector.shape_cast %221 : vector<8x128xf32> to vector<8x1x128xf32>
    tpu.vector_store %arg9[%c0_61, %c3_62, %c0_63], %224 {strides = array<i32>} : memref<8x8x128xf32, #tpu.memory_space<vmem>>, vector<8x1x128xf32>,
    %225 = arith.truncf %221 : vector<8x128xf32> to vector<8x128xbf16>
    %cst_64 = arith.constant dense<0.000000e+00> : vector<8x512xf32>
    %226 = tpu.matmul %225, %4, %cst_64 {dimension_numbers = #tpu.dot_dimension_numbers<[1], [0], [0], [1], [0, 0, 1, 1], [], []>} : vector<8x128xbf16>, vector<128x512xbf16>, vector<8x512xf32> -> vector<8x512xf32>
    %227 = vector.extract_strided_slice %226 {offsets = [0, 0], sizes = [8, 128], strides = [1, 1]} : vector<8x512xf32> to vector<8x128xf32>
    %228 = arith.mulf %227, %10 : vector<8x128xf32>
    %229 = arith.addf %228, %8 : vector<8x128xf32>
    %230 = vector.extract_strided_slice %226 {offsets = [0, 128], sizes = [8, 384], strides = [1, 1]} : vector<8x512xf32> to vector<8x384xf32>
    %231 = vector.broadcast %11 : vector<1x384xf32> to vector<8x384xf32>
    %232 = arith.addf %230, %231 : vector<8x384xf32>
    %cst_65 = arith.constant dense<0xFF800000> : vector<8xf32>
    %233 = vector.multi_reduction <maximumf>, %229, %cst_65 [1] : vector<8x128xf32> to vector<8xf32>
    %234 = vector.shape_cast %233 : vector<8xf32> to vector<8x1xf32>
    %235 = vector.broadcast %234 : vector<8x1xf32> to vector<8x128xf32>
    %236 = arith.subf %229, %235 : vector<8x128xf32>
    %237 = math.exp %236 : vector<8x128xf32>
    %cst_66 = arith.constant dense<0.000000e+00> : vector<8xf32>
    %238 = vector.multi_reduction <add>, %237, %cst_66 [1] : vector<8x128xf32> to vector<8xf32>
    %239 = vector.shape_cast %238 : vector<8xf32> to vector<8x1xf32>
    %240 = arith.truncf %237 : vector<8x128xf32> to vector<8x128xbf16>
    %cst_67 = arith.constant dense<0.000000e+00> : vector<8x384xf32>
    %241 = tpu.matmul %240, %6, %cst_67 {dimension_numbers = #tpu.dot_dimension_numbers<[1], [0], [0], [1], [0, 0, 1, 1], [], []>} : vector<8x128xbf16>, vector<128x384xbf16>, vector<8x384xf32> -> vector<8x384xf32>
    %c0_68 = arith.constant 0 : index
    %c4 = arith.constant 4 : index
    %c0_69 = arith.constant 0 : index
    %242 = vector.load %arg2[%c0_68, %c4, %c0_69] : memref<8x8x384xbf16, #tpu.memory_space<vmem>>, vector<8x1x384xbf16>
    %243 = vector.shape_cast %242 : vector<8x1x384xbf16> to vector<8x384xbf16>
    %244 = arith.extf %243 : vector<8x384xbf16> to vector<8x384xf32>
    %245 = tpu.reciprocal %239 {approx = true} : vector<8x1xf32> -> vector<8x1xf32>
    %246 = vector.broadcast %245 : vector<8x1xf32> to vector<8x384xf32>
    %247 = arith.mulf %241, %246 : vector<8x384xf32>
    %248 = arith.addf %244, %247 : vector<8x384xf32>
    %249 = vector.extract_strided_slice %248 {offsets = [0, 0], sizes = [8, 128], strides = [1, 1]} : vector<8x384xf32> to vector<8x128xf32>
    %250 = vector.extract_strided_slice %232 {offsets = [0, 0], sizes = [8, 128], strides = [1, 1]} : vector<8x384xf32> to vector<8x128xf32>
    %251 = arith.addf %249, %250 : vector<8x128xf32>
    %252 = arith.negf %251 : vector<8x128xf32>
    %253 = math.exp %252 : vector<8x128xf32>
    %cst_70 = arith.constant 1.000000e+00 : f32
    %254 = vector.broadcast %cst_70 : f32 to vector<8x128xf32>
    %255 = arith.addf %254, %253 : vector<8x128xf32>
    %256 = arith.divf %254, %255 : vector<8x128xf32>
    %257 = vector.extract_strided_slice %248 {offsets = [0, 128], sizes = [8, 128], strides = [1, 1]} : vector<8x384xf32> to vector<8x128xf32>
    %258 = vector.extract_strided_slice %232 {offsets = [0, 128], sizes = [8, 128], strides = [1, 1]} : vector<8x384xf32> to vector<8x128xf32>
    %259 = arith.addf %257, %258 : vector<8x128xf32>
    %260 = arith.negf %259 : vector<8x128xf32>
    %261 = math.exp %260 : vector<8x128xf32>
    %cst_71 = arith.constant 1.000000e+00 : f32
    %262 = vector.broadcast %cst_71 : f32 to vector<8x128xf32>
    %263 = arith.addf %262, %261 : vector<8x128xf32>
    %264 = arith.divf %262, %263 : vector<8x128xf32>
    %265 = vector.extract_strided_slice %248 {offsets = [0, 256], sizes = [8, 128], strides = [1, 1]} : vector<8x384xf32> to vector<8x128xf32>
    %266 = vector.extract_strided_slice %232 {offsets = [0, 256], sizes = [8, 128], strides = [1, 1]} : vector<8x384xf32> to vector<8x128xf32>
    %267 = arith.mulf %256, %266 : vector<8x128xf32>
    %268 = arith.addf %265, %267 : vector<8x128xf32>
    %269 = math.tanh %268 : vector<8x128xf32>
    %cst_72 = arith.constant 1.000000e+00 : f32
    %270 = vector.broadcast %cst_72 : f32 to vector<8x128xf32>
    %271 = arith.subf %270, %264 : vector<8x128xf32>
    %272 = arith.mulf %271, %269 : vector<8x128xf32>
    %273 = arith.mulf %264, %221 : vector<8x128xf32>
    %274 = arith.addf %272, %273 : vector<8x128xf32>
    %c0_73 = arith.constant 0 : index
    %c4_74 = arith.constant 4 : index
    %c0_75 = arith.constant 0 : index
    %275 = vector.load %arg9[%c0_73, %c4_74, %c0_75] : memref<8x8x128xf32, #tpu.memory_space<vmem>>, vector<8x1x128xf32>
    %276 = vector.shape_cast %275 : vector<8x1x128xf32> to vector<8x128xf32>
    %277 = vector.shape_cast %274 : vector<8x128xf32> to vector<8x1x128xf32>
    tpu.vector_store %arg9[%c0_73, %c4_74, %c0_75], %277 {strides = array<i32>} : memref<8x8x128xf32, #tpu.memory_space<vmem>>, vector<8x1x128xf32>,
    %278 = arith.truncf %274 : vector<8x128xf32> to vector<8x128xbf16>
    %cst_76 = arith.constant dense<0.000000e+00> : vector<8x512xf32>
    %279 = tpu.matmul %278, %4, %cst_76 {dimension_numbers = #tpu.dot_dimension_numbers<[1], [0], [0], [1], [0, 0, 1, 1], [], []>} : vector<8x128xbf16>, vector<128x512xbf16>, vector<8x512xf32> -> vector<8x512xf32>
    %280 = vector.extract_strided_slice %279 {offsets = [0, 0], sizes = [8, 128], strides = [1, 1]} : vector<8x512xf32> to vector<8x128xf32>
    %281 = arith.mulf %280, %10 : vector<8x128xf32>
    %282 = arith.addf %281, %8 : vector<8x128xf32>
    %283 = vector.extract_strided_slice %279 {offsets = [0, 128], sizes = [8, 384], strides = [1, 1]} : vector<8x512xf32> to vector<8x384xf32>
    %284 = vector.broadcast %11 : vector<1x384xf32> to vector<8x384xf32>
    %285 = arith.addf %283, %284 : vector<8x384xf32>
    %cst_77 = arith.constant dense<0xFF800000> : vector<8xf32>
    %286 = vector.multi_reduction <maximumf>, %282, %cst_77 [1] : vector<8x128xf32> to vector<8xf32>
    %287 = vector.shape_cast %286 : vector<8xf32> to vector<8x1xf32>
    %288 = vector.broadcast %287 : vector<8x1xf32> to vector<8x128xf32>
    %289 = arith.subf %282, %288 : vector<8x128xf32>
    %290 = math.exp %289 : vector<8x128xf32>
    %cst_78 = arith.constant dense<0.000000e+00> : vector<8xf32>
    %291 = vector.multi_reduction <add>, %290, %cst_78 [1] : vector<8x128xf32> to vector<8xf32>
    %292 = vector.shape_cast %291 : vector<8xf32> to vector<8x1xf32>
    %293 = arith.truncf %290 : vector<8x128xf32> to vector<8x128xbf16>
    %cst_79 = arith.constant dense<0.000000e+00> : vector<8x384xf32>
    %294 = tpu.matmul %293, %6, %cst_79 {dimension_numbers = #tpu.dot_dimension_numbers<[1], [0], [0], [1], [0, 0, 1, 1], [], []>} : vector<8x128xbf16>, vector<128x384xbf16>, vector<8x384xf32> -> vector<8x384xf32>
    %c0_80 = arith.constant 0 : index
    %c5 = arith.constant 5 : index
    %c0_81 = arith.constant 0 : index
    %295 = vector.load %arg2[%c0_80, %c5, %c0_81] : memref<8x8x384xbf16, #tpu.memory_space<vmem>>, vector<8x1x384xbf16>
    %296 = vector.shape_cast %295 : vector<8x1x384xbf16> to vector<8x384xbf16>
    %297 = arith.extf %296 : vector<8x384xbf16> to vector<8x384xf32>
    %298 = tpu.reciprocal %292 {approx = true} : vector<8x1xf32> -> vector<8x1xf32>
    %299 = vector.broadcast %298 : vector<8x1xf32> to vector<8x384xf32>
    %300 = arith.mulf %294, %299 : vector<8x384xf32>
    %301 = arith.addf %297, %300 : vector<8x384xf32>
    %302 = vector.extract_strided_slice %301 {offsets = [0, 0], sizes = [8, 128], strides = [1, 1]} : vector<8x384xf32> to vector<8x128xf32>
    %303 = vector.extract_strided_slice %285 {offsets = [0, 0], sizes = [8, 128], strides = [1, 1]} : vector<8x384xf32> to vector<8x128xf32>
    %304 = arith.addf %302, %303 : vector<8x128xf32>
    %305 = arith.negf %304 : vector<8x128xf32>
    %306 = math.exp %305 : vector<8x128xf32>
    %cst_82 = arith.constant 1.000000e+00 : f32
    %307 = vector.broadcast %cst_82 : f32 to vector<8x128xf32>
    %308 = arith.addf %307, %306 : vector<8x128xf32>
    %309 = arith.divf %307, %308 : vector<8x128xf32>
    %310 = vector.extract_strided_slice %301 {offsets = [0, 128], sizes = [8, 128], strides = [1, 1]} : vector<8x384xf32> to vector<8x128xf32>
    %311 = vector.extract_strided_slice %285 {offsets = [0, 128], sizes = [8, 128], strides = [1, 1]} : vector<8x384xf32> to vector<8x128xf32>
    %312 = arith.addf %310, %311 : vector<8x128xf32>
    %313 = arith.negf %312 : vector<8x128xf32>
    %314 = math.exp %313 : vector<8x128xf32>
    %cst_83 = arith.constant 1.000000e+00 : f32
    %315 = vector.broadcast %cst_83 : f32 to vector<8x128xf32>
    %316 = arith.addf %315, %314 : vector<8x128xf32>
    %317 = arith.divf %315, %316 : vector<8x128xf32>
    %318 = vector.extract_strided_slice %301 {offsets = [0, 256], sizes = [8, 128], strides = [1, 1]} : vector<8x384xf32> to vector<8x128xf32>
    %319 = vector.extract_strided_slice %285 {offsets = [0, 256], sizes = [8, 128], strides = [1, 1]} : vector<8x384xf32> to vector<8x128xf32>
    %320 = arith.mulf %309, %319 : vector<8x128xf32>
    %321 = arith.addf %318, %320 : vector<8x128xf32>
    %322 = math.tanh %321 : vector<8x128xf32>
    %cst_84 = arith.constant 1.000000e+00 : f32
    %323 = vector.broadcast %cst_84 : f32 to vector<8x128xf32>
    %324 = arith.subf %323, %317 : vector<8x128xf32>
    %325 = arith.mulf %324, %322 : vector<8x128xf32>
    %326 = arith.mulf %317, %274 : vector<8x128xf32>
    %327 = arith.addf %325, %326 : vector<8x128xf32>
    %c0_85 = arith.constant 0 : index
    %c5_86 = arith.constant 5 : index
    %c0_87 = arith.constant 0 : index
    %328 = vector.load %arg9[%c0_85, %c5_86, %c0_87] : memref<8x8x128xf32, #tpu.memory_space<vmem>>, vector<8x1x128xf32>
    %329 = vector.shape_cast %328 : vector<8x1x128xf32> to vector<8x128xf32>
    %330 = vector.shape_cast %327 : vector<8x128xf32> to vector<8x1x128xf32>
    tpu.vector_store %arg9[%c0_85, %c5_86, %c0_87], %330 {strides = array<i32>} : memref<8x8x128xf32, #tpu.memory_space<vmem>>, vector<8x1x128xf32>,
    %331 = arith.truncf %327 : vector<8x128xf32> to vector<8x128xbf16>
    %cst_88 = arith.constant dense<0.000000e+00> : vector<8x512xf32>
    %332 = tpu.matmul %331, %4, %cst_88 {dimension_numbers = #tpu.dot_dimension_numbers<[1], [0], [0], [1], [0, 0, 1, 1], [], []>} : vector<8x128xbf16>, vector<128x512xbf16>, vector<8x512xf32> -> vector<8x512xf32>
    %333 = vector.extract_strided_slice %332 {offsets = [0, 0], sizes = [8, 128], strides = [1, 1]} : vector<8x512xf32> to vector<8x128xf32>
    %334 = arith.mulf %333, %10 : vector<8x128xf32>
    %335 = arith.addf %334, %8 : vector<8x128xf32>
    %336 = vector.extract_strided_slice %332 {offsets = [0, 128], sizes = [8, 384], strides = [1, 1]} : vector<8x512xf32> to vector<8x384xf32>
    %337 = vector.broadcast %11 : vector<1x384xf32> to vector<8x384xf32>
    %338 = arith.addf %336, %337 : vector<8x384xf32>
    %cst_89 = arith.constant dense<0xFF800000> : vector<8xf32>
    %339 = vector.multi_reduction <maximumf>, %335, %cst_89 [1] : vector<8x128xf32> to vector<8xf32>
    %340 = vector.shape_cast %339 : vector<8xf32> to vector<8x1xf32>
    %341 = vector.broadcast %340 : vector<8x1xf32> to vector<8x128xf32>
    %342 = arith.subf %335, %341 : vector<8x128xf32>
    %343 = math.exp %342 : vector<8x128xf32>
    %cst_90 = arith.constant dense<0.000000e+00> : vector<8xf32>
    %344 = vector.multi_reduction <add>, %343, %cst_90 [1] : vector<8x128xf32> to vector<8xf32>
    %345 = vector.shape_cast %344 : vector<8xf32> to vector<8x1xf32>
    %346 = arith.truncf %343 : vector<8x128xf32> to vector<8x128xbf16>
    %cst_91 = arith.constant dense<0.000000e+00> : vector<8x384xf32>
    %347 = tpu.matmul %346, %6, %cst_91 {dimension_numbers = #tpu.dot_dimension_numbers<[1], [0], [0], [1], [0, 0, 1, 1], [], []>} : vector<8x128xbf16>, vector<128x384xbf16>, vector<8x384xf32> -> vector<8x384xf32>
    %c0_92 = arith.constant 0 : index
    %c6 = arith.constant 6 : index
    %c0_93 = arith.constant 0 : index
    %348 = vector.load %arg2[%c0_92, %c6, %c0_93] : memref<8x8x384xbf16, #tpu.memory_space<vmem>>, vector<8x1x384xbf16>
    %349 = vector.shape_cast %348 : vector<8x1x384xbf16> to vector<8x384xbf16>
    %350 = arith.extf %349 : vector<8x384xbf16> to vector<8x384xf32>
    %351 = tpu.reciprocal %345 {approx = true} : vector<8x1xf32> -> vector<8x1xf32>
    %352 = vector.broadcast %351 : vector<8x1xf32> to vector<8x384xf32>
    %353 = arith.mulf %347, %352 : vector<8x384xf32>
    %354 = arith.addf %350, %353 : vector<8x384xf32>
    %355 = vector.extract_strided_slice %354 {offsets = [0, 0], sizes = [8, 128], strides = [1, 1]} : vector<8x384xf32> to vector<8x128xf32>
    %356 = vector.extract_strided_slice %338 {offsets = [0, 0], sizes = [8, 128], strides = [1, 1]} : vector<8x384xf32> to vector<8x128xf32>
    %357 = arith.addf %355, %356 : vector<8x128xf32>
    %358 = arith.negf %357 : vector<8x128xf32>
    %359 = math.exp %358 : vector<8x128xf32>
    %cst_94 = arith.constant 1.000000e+00 : f32
    %360 = vector.broadcast %cst_94 : f32 to vector<8x128xf32>
    %361 = arith.addf %360, %359 : vector<8x128xf32>
    %362 = arith.divf %360, %361 : vector<8x128xf32>
    %363 = vector.extract_strided_slice %354 {offsets = [0, 128], sizes = [8, 128], strides = [1, 1]} : vector<8x384xf32> to vector<8x128xf32>
    %364 = vector.extract_strided_slice %338 {offsets = [0, 128], sizes = [8, 128], strides = [1, 1]} : vector<8x384xf32> to vector<8x128xf32>
    %365 = arith.addf %363, %364 : vector<8x128xf32>
    %366 = arith.negf %365 : vector<8x128xf32>
    %367 = math.exp %366 : vector<8x128xf32>
    %cst_95 = arith.constant 1.000000e+00 : f32
    %368 = vector.broadcast %cst_95 : f32 to vector<8x128xf32>
    %369 = arith.addf %368, %367 : vector<8x128xf32>
    %370 = arith.divf %368, %369 : vector<8x128xf32>
    %371 = vector.extract_strided_slice %354 {offsets = [0, 256], sizes = [8, 128], strides = [1, 1]} : vector<8x384xf32> to vector<8x128xf32>
    %372 = vector.extract_strided_slice %338 {offsets = [0, 256], sizes = [8, 128], strides = [1, 1]} : vector<8x384xf32> to vector<8x128xf32>
    %373 = arith.mulf %362, %372 : vector<8x128xf32>
    %374 = arith.addf %371, %373 : vector<8x128xf32>
    %375 = math.tanh %374 : vector<8x128xf32>
    %cst_96 = arith.constant 1.000000e+00 : f32
    %376 = vector.broadcast %cst_96 : f32 to vector<8x128xf32>
    %377 = arith.subf %376, %370 : vector<8x128xf32>
    %378 = arith.mulf %377, %375 : vector<8x128xf32>
    %379 = arith.mulf %370, %327 : vector<8x128xf32>
    %380 = arith.addf %378, %379 : vector<8x128xf32>
    %c0_97 = arith.constant 0 : index
    %c6_98 = arith.constant 6 : index
    %c0_99 = arith.constant 0 : index
    %381 = vector.load %arg9[%c0_97, %c6_98, %c0_99] : memref<8x8x128xf32, #tpu.memory_space<vmem>>, vector<8x1x128xf32>
    %382 = vector.shape_cast %381 : vector<8x1x128xf32> to vector<8x128xf32>
    %383 = vector.shape_cast %380 : vector<8x128xf32> to vector<8x1x128xf32>
    tpu.vector_store %arg9[%c0_97, %c6_98, %c0_99], %383 {strides = array<i32>} : memref<8x8x128xf32, #tpu.memory_space<vmem>>, vector<8x1x128xf32>,
    %384 = arith.truncf %380 : vector<8x128xf32> to vector<8x128xbf16>
    %cst_100 = arith.constant dense<0.000000e+00> : vector<8x512xf32>
    %385 = tpu.matmul %384, %4, %cst_100 {dimension_numbers = #tpu.dot_dimension_numbers<[1], [0], [0], [1], [0, 0, 1, 1], [], []>} : vector<8x128xbf16>, vector<128x512xbf16>, vector<8x512xf32> -> vector<8x512xf32>
    %386 = vector.extract_strided_slice %385 {offsets = [0, 0], sizes = [8, 128], strides = [1, 1]} : vector<8x512xf32> to vector<8x128xf32>
    %387 = arith.mulf %386, %10 : vector<8x128xf32>
    %388 = arith.addf %387, %8 : vector<8x128xf32>
    %389 = vector.extract_strided_slice %385 {offsets = [0, 128], sizes = [8, 384], strides = [1, 1]} : vector<8x512xf32> to vector<8x384xf32>
    %390 = vector.broadcast %11 : vector<1x384xf32> to vector<8x384xf32>
    %391 = arith.addf %389, %390 : vector<8x384xf32>
    %cst_101 = arith.constant dense<0xFF800000> : vector<8xf32>
    %392 = vector.multi_reduction <maximumf>, %388, %cst_101 [1] : vector<8x128xf32> to vector<8xf32>
    %393 = vector.shape_cast %392 : vector<8xf32> to vector<8x1xf32>
    %394 = vector.broadcast %393 : vector<8x1xf32> to vector<8x128xf32>
    %395 = arith.subf %388, %394 : vector<8x128xf32>
    %396 = math.exp %395 : vector<8x128xf32>
    %cst_102 = arith.constant dense<0.000000e+00> : vector<8xf32>
    %397 = vector.multi_reduction <add>, %396, %cst_102 [1] : vector<8x128xf32> to vector<8xf32>
    %398 = vector.shape_cast %397 : vector<8xf32> to vector<8x1xf32>
    %399 = arith.truncf %396 : vector<8x128xf32> to vector<8x128xbf16>
    %cst_103 = arith.constant dense<0.000000e+00> : vector<8x384xf32>
    %400 = tpu.matmul %399, %6, %cst_103 {dimension_numbers = #tpu.dot_dimension_numbers<[1], [0], [0], [1], [0, 0, 1, 1], [], []>} : vector<8x128xbf16>, vector<128x384xbf16>, vector<8x384xf32> -> vector<8x384xf32>
    %c0_104 = arith.constant 0 : index
    %c7 = arith.constant 7 : index
    %c0_105 = arith.constant 0 : index
    %401 = vector.load %arg2[%c0_104, %c7, %c0_105] : memref<8x8x384xbf16, #tpu.memory_space<vmem>>, vector<8x1x384xbf16>
    %402 = vector.shape_cast %401 : vector<8x1x384xbf16> to vector<8x384xbf16>
    %403 = arith.extf %402 : vector<8x384xbf16> to vector<8x384xf32>
    %404 = tpu.reciprocal %398 {approx = true} : vector<8x1xf32> -> vector<8x1xf32>
    %405 = vector.broadcast %404 : vector<8x1xf32> to vector<8x384xf32>
    %406 = arith.mulf %400, %405 : vector<8x384xf32>
    %407 = arith.addf %403, %406 : vector<8x384xf32>
    %408 = vector.extract_strided_slice %407 {offsets = [0, 0], sizes = [8, 128], strides = [1, 1]} : vector<8x384xf32> to vector<8x128xf32>
    %409 = vector.extract_strided_slice %391 {offsets = [0, 0], sizes = [8, 128], strides = [1, 1]} : vector<8x384xf32> to vector<8x128xf32>
    %410 = arith.addf %408, %409 : vector<8x128xf32>
    %411 = arith.negf %410 : vector<8x128xf32>
    %412 = math.exp %411 : vector<8x128xf32>
    %cst_106 = arith.constant 1.000000e+00 : f32
    %413 = vector.broadcast %cst_106 : f32 to vector<8x128xf32>
    %414 = arith.addf %413, %412 : vector<8x128xf32>
    %415 = arith.divf %413, %414 : vector<8x128xf32>
    %416 = vector.extract_strided_slice %407 {offsets = [0, 128], sizes = [8, 128], strides = [1, 1]} : vector<8x384xf32> to vector<8x128xf32>
    %417 = vector.extract_strided_slice %391 {offsets = [0, 128], sizes = [8, 128], strides = [1, 1]} : vector<8x384xf32> to vector<8x128xf32>
    %418 = arith.addf %416, %417 : vector<8x128xf32>
    %419 = arith.negf %418 : vector<8x128xf32>
    %420 = math.exp %419 : vector<8x128xf32>
    %cst_107 = arith.constant 1.000000e+00 : f32
    %421 = vector.broadcast %cst_107 : f32 to vector<8x128xf32>
    %422 = arith.addf %421, %420 : vector<8x128xf32>
    %423 = arith.divf %421, %422 : vector<8x128xf32>
    %424 = vector.extract_strided_slice %407 {offsets = [0, 256], sizes = [8, 128], strides = [1, 1]} : vector<8x384xf32> to vector<8x128xf32>
    %425 = vector.extract_strided_slice %391 {offsets = [0, 256], sizes = [8, 128], strides = [1, 1]} : vector<8x384xf32> to vector<8x128xf32>
    %426 = arith.mulf %415, %425 : vector<8x128xf32>
    %427 = arith.addf %424, %426 : vector<8x128xf32>
    %428 = math.tanh %427 : vector<8x128xf32>
    %cst_108 = arith.constant 1.000000e+00 : f32
    %429 = vector.broadcast %cst_108 : f32 to vector<8x128xf32>
    %430 = arith.subf %429, %423 : vector<8x128xf32>
    %431 = arith.mulf %430, %428 : vector<8x128xf32>
    %432 = arith.mulf %423, %380 : vector<8x128xf32>
    %433 = arith.addf %431, %432 : vector<8x128xf32>
    %c0_109 = arith.constant 0 : index
    %c7_110 = arith.constant 7 : index
    %c0_111 = arith.constant 0 : index
    %434 = vector.load %arg9[%c0_109, %c7_110, %c0_111] : memref<8x8x128xf32, #tpu.memory_space<vmem>>, vector<8x1x128xf32>
    %435 = vector.shape_cast %434 : vector<8x1x128xf32> to vector<8x128xf32>
    %436 = vector.shape_cast %433 : vector<8x128xf32> to vector<8x1x128xf32>
    tpu.vector_store %arg9[%c0_109, %c7_110, %c0_111], %436 {strides = array<i32>} : memref<8x8x128xf32, #tpu.memory_space<vmem>>, vector<8x1x128xf32>,
    %c0_112 = arith.constant 0 : index
    %c0_113 = arith.constant 0 : index
    %437 = vector.load %arg10[%c0_112, %c0_113] : memref<8x128xf32, #tpu.memory_space<vmem>>, vector<8x128xf32>
    tpu.vector_store %arg10[%c0_112, %c0_113], %433 {strides = array<i32>} : memref<8x128xf32, #tpu.memory_space<vmem>>, vector<8x128xf32>,
    return
  }
  func.func @transform_0(%arg0: i32, %arg1: i32) -> (i32, i32, i32) {
    %c0_i32 = arith.constant 0 : i32
    %c0_i32_0 = arith.constant 0 : i32
    return %arg0, %arg1, %c0_i32 : i32, i32, i32
  }
  func.func @transform_1(%arg0: i32, %arg1: i32) -> (i32, i32, i32) {
    %c0_i32 = arith.constant 0 : i32
    %c0_i32_0 = arith.constant 0 : i32
    %c0_i32_1 = arith.constant 0 : i32
    return %arg0, %c0_i32, %c0_i32_0 : i32, i32, i32
  }
  func.func @transform_2(%arg0: i32, %arg1: i32) -> (i32, i32, i32) {
    %c0_i32 = arith.constant 0 : i32
    %c0_i32_0 = arith.constant 0 : i32
    %c0_i32_1 = arith.constant 0 : i32
    return %arg0, %c0_i32, %c0_i32_0 : i32, i32, i32
  }
  func.func @transform_3(%arg0: i32, %arg1: i32) -> (i32, i32, i32) {
    %c0_i32 = arith.constant 0 : i32
    %c0_i32_0 = arith.constant 0 : i32
    %c0_i32_1 = arith.constant 0 : i32
    return %arg0, %c0_i32, %c0_i32_0 : i32, i32, i32
  }
  func.func @transform_4(%arg0: i32, %arg1: i32) -> (i32, i32, i32) {
    %c0_i32 = arith.constant 0 : i32
    %c0_i32_0 = arith.constant 0 : i32
    %c0_i32_1 = arith.constant 0 : i32
    return %arg0, %c0_i32, %c0_i32_0 : i32, i32, i32
  }
  func.func @transform_5(%arg0: i32, %arg1: i32) -> (i32, i32) {
    %c0_i32 = arith.constant 0 : i32
    %c0_i32_0 = arith.constant 0 : i32
    return %arg0, %c0_i32 : i32, i32
  }
  func.func @transform_6(%arg0: i32, %arg1: i32) -> (i32, i32) {
    %c0_i32 = arith.constant 0 : i32
    %c0_i32_0 = arith.constant 0 : i32
    %c0_i32_1 = arith.constant 0 : i32
    return %c0_i32, %c0_i32_0 : i32, i32
  }
  func.func @transform_7(%arg0: i32, %arg1: i32) -> (i32, i32, i32) {
    %c0_i32 = arith.constant 0 : i32
    %c0_i32_0 = arith.constant 0 : i32
    return %arg0, %arg1, %c0_i32 : i32, i32, i32
  }
}

</mosaic_0001>

<bundles_post_ra>
// kernel: decoder_forward.1
= control target key start
LH: loop header
LB: loop body
LE: loop exit
PB: predicated region body
PF: predicated region fallthrough
CT: control target
= control target key end

     0   :  { %s14422_s1 = inlined_call_operand.vmem [shape: bf16[1,128,512], index: 1, kind: input, shape index: {}]   ;;  %s14423_s5 = inlined_call_operand.vmem [shape: f32[8,128], index: 5, kind: input, shape index: {}]   ;;  %s14424_s2 = inlined_call_operand.vmem [shape: bf16[1,128,384], index: 2, kind: input, shape index: {}]   ;;  %s14425_s4 = inlined_call_operand.vmem [shape: f32[1,8,128], index: 4, kind: input, shape index: {}]   ;;  %s14426_s3 = inlined_call_operand.vmem [shape: f32[1,8,128], index: 3, kind: input, shape index: {}]   ;;  %s14427_s6 = inlined_call_operand.vmem [shape: f32[1,384], index: 6, kind: input, shape index: {}]   ;;  %s14428_s0 = inlined_call_operand.vmem [shape: bf16[8,8,384], index: 0, kind: input, shape index: {}]   ;;  %s14429_s7 = inlined_call_operand.vmem [shape: f32[8,8,128], index: 7, kind: output, shape index: {}]  }
   0x1   :  { %v6226_v0 = vld [vmem:[%s14422_s1 + $0xe0] sm:$0xf]  ;;  %v6494_v1 = vld [vmem:[%s14422_s1 + $0xec] sm:$0xf0]  ;;  %v6492_v26 = vld [vmem:[%s14422_s1 + $0xe4] sm:$0xf] }
   0x2   :  { %v6210_v2 = vld [vmem:[%s14422_s1 + $0xc0] sm:$0xf]  ;;  %v7256_v3 = vor.u32 %v6494_v1, %v6226_v0  ;;  %v6490_v4 = vld [vmem:[%s14422_s1 + $0xcc] sm:$0xf0]  ;;  %v6228_v27 = vld [vmem:[%s14422_s1 + $0xf0] sm:$0xf0] }
   0x3   :  { %v7262_v5 = vor.u32 %v6490_v4, %v6210_v2  ;;  %v6194_v6 = vld [vmem:[%s14422_s1 + $0xa0] sm:$0xf]  ;;  %v6486_v7 = vld [vmem:[%s14422_s1 + $0xac] sm:$0xf0]  ;;  %v6234_v28 = vld [vmem:[%s14422_s1 + $0xe8] sm:$0xf]  ;;  %v7334_v29 = vor.u32 %v6492_v26, %v6228_v27 }
   0x4   :  { %14588 = vst [vmem:[#allocation3_spill] sm:$0xff] %v7256_v3  ;;  %261 = vmatpush.bf16.msra.mxu0 %v7256_v3  ;;  %v30_v8 = vld [vmem:[%s14423_s5] sm:$0xff]  ;;  %v7274_v9 = vor.u32 %v6486_v7, %v6194_v6  ;;  %v6482_v11 = vld [vmem:[%s14422_s1 + $0x8c] sm:$0xf0]  ;;  %v6495_v30 = vld [vmem:[%s14422_s1 + $0xf4] sm:$0xf0] }
   0x5   :  { %14589 = vst [vmem:[#allocation4_spill] sm:$0xff] %v7262_v5  ;;  %v6178_v10 = vld [vmem:[%s14422_s1 + $0x80] sm:$0xf]  ;;  %v6478_v14 = vld [vmem:[%s14422_s1 + $0x6c] sm:$0xf0]  ;;  %v7321_v25 = vpack.c.bf16 %v30_v8, %v30_v8  ;;  %v7345_v33 = vor.u32 %v6495_v30, %v6234_v28  ;;  %274 = vmatpush.bf16.msra.mxu1 %v7334_v29 }
   0x6   :  { %31 = vst [vmem:[#allocation2] sm:$0xff] %v30_v8  ;;  %v7283_v12 = vor.u32 %v6482_v11, %v6178_v10  ;;  %v6162_v13 = vld [vmem:[%s14422_s1 + $0x60] sm:$0xf]  ;;  %v6474_v17 = vld [vmem:[%s14422_s1 + $0x4c] sm:$0xf0] }
   0x7   :  { %14590 = vst [vmem:[#allocation5_spill] sm:$0xff] %v7274_v9  ;;  %v7292_v15 = vor.u32 %v6478_v14, %v6162_v13  ;;  %v6146_v16 = vld [vmem:[%s14422_s1 + $0x40] sm:$0xf]  ;;  %v6470_v20 = vld [vmem:[%s14422_s1 + $0x2c] sm:$0xf0]  ;;  %287 = vmatpush.bf16.msra.mxu2 %v7345_v33 }
   0x8   :  { %262 = vmatpush.bf16.msra.mxu0 %v7262_v5  ;;  %14591 = vst [vmem:[#allocation6_spill] sm:$0xff] %v7283_v12  ;;  %v7301_v18 = vor.u32 %v6474_v17, %v6146_v16  ;;  %v6130_v19 = vld [vmem:[%s14422_s1 + $0x20] sm:$0xf]  ;;  %v6466_v23 = vld [vmem:[%s14422_s1 + $0xc] sm:$0xf0] }
   0x9   :  { %14592 = vst [vmem:[#allocation7_spill] sm:$0xff] %v7292_v15  ;;  %v7310_v21 = vor.u32 %v6470_v20, %v6130_v19  ;;  %v6114_v22 = vld [vmem:[%s14422_s1] sm:$0xf]  ;;  %v6488_v31 = vld [vmem:[%s14422_s1 + $0xc4] sm:$0xf] }
   0xa   :  { %14593 = vst [vmem:[#allocation8_spill] sm:$0xff] %v7301_v18  ;;  %v7319_v24 = vor.u32 %v6466_v23, %v6114_v22  ;;  %v6212_v32 = vld [vmem:[%s14422_s1 + $0xd0] sm:$0xf0]  ;;  %v6218_v34 = vld [vmem:[%s14422_s1 + $0xc8] sm:$0xf]  ;;  %v97_v19 = vld [vmem:[%s14425_s4] sm:$0xff] }
   0xb   :  { %14594 = vst [vmem:[#allocation9_spill] sm:$0xff] %v7310_v21  ;;  %v6491_v35 = vld [vmem:[%s14422_s1 + $0xd4] sm:$0xf0]  ;;  %v7354_v36 = vor.u32 %v6488_v31, %v6212_v32  ;;  %v6484_v38 = vld [vmem:[%s14422_s1 + $0xa4] sm:$0xf] }
   0xc   :  { %263 = vmatpush.bf16.msra.mxu0 %v7274_v9  ;;  %14595 = vst [vmem:[#allocation10_spill] sm:$0xff] %v7319_v24  ;;  %v7357_v37 = vor.u32 %v6491_v35, %v6218_v34  ;;  %v6196_v39 = vld [vmem:[%s14422_s1 + $0xb0] sm:$0xf0]  ;;  %v6202_v40 = vld [vmem:[%s14422_s1 + $0xa8] sm:$0xf]  ;;  %v96_v22 = vld [vmem:[%s14426_s3] sm:$0xff] }
   0xd   :  { %14596 = vst [vmem:[#allocation11_spill] sm:$0xff] %v7334_v29  ;;  %v6487_v41 = vld [vmem:[%s14422_s1 + $0xb4] sm:$0xf0]  ;;  %275 = vmatpush.bf16.msra.mxu1 %v7354_v36  ;;  %v7372_v42 = vor.u32 %v6484_v38, %v6196_v39  ;;  %v6480_v44 = vld [vmem:[%s14422_s1 + $0x84] sm:$0xf] }
   0xe   :  { %14597 = vst [vmem:[#allocation12_spill] sm:$0xff] %v7345_v33  ;;  %288 = vmatpush.bf16.msra.mxu2 %v7357_v37  ;;  %v7375_v43 = vor.u32 %v6487_v41, %v6202_v40  ;;  %v6180_v45 = vld [vmem:[%s14422_s1 + $0x90] sm:$0xf0]  ;;  %v6186_v46 = vld [vmem:[%s14422_s1 + $0x88] sm:$0xf] }
   0xf   :  { %14598 = vst [vmem:[#allocation13_spill] sm:$0xff] %v7354_v36  ;;  %v6483_v47 = vld [vmem:[%s14422_s1 + $0x94] sm:$0xf0]  ;;  %v6326_v48 = vld [vmem:[%s14424_s2 + $0xa8] sm:$0xf]  ;;  %v7393_v49 = vor.u32 %v6480_v44, %v6180_v45 }
  0x10   :  { %264 = vmatpush.bf16.msra.mxu0 %v7283_v12  ;;  %14599 = vst [vmem:[#allocation14_spill] sm:$0xff] %v7357_v37  ;;  %v6518_v50 = vld [vmem:[%s14424_s2 + $0xb0] sm:$0xf0]  ;;  %v7399_v51 = vor.u32 %v6483_v47, %v6186_v46  ;;  %v6476_v52 = vld [vmem:[%s14422_s1 + $0x64] sm:$0xf] }
  0x11   :  { %14600 = vst [vmem:[#allocation15_spill] sm:$0xff] %v7372_v42  ;;  %276 = vmatpush.bf16.msra.mxu1 %v7372_v42  ;;  %v6164_v53 = vld [vmem:[%s14422_s1 + $0x70] sm:$0xf0]  ;;  %v7407_v54 = vor.u32 %v6518_v50, %v6326_v48  ;;  %v6314_v55 = vld [vmem:[%s14424_s2 + $0x90] sm:$0xf] }
  0x12   :  { %14601 = vst [vmem:[#allocation16_spill] sm:$0xff] %v7375_v43  ;;  %289 = vmatpush.bf16.msra.mxu2 %v7375_v43  ;;  %v6170_v56 = vld [vmem:[%s14422_s1 + $0x68] sm:$0xf]  ;;  %v6479_v57 = vld [vmem:[%s14422_s1 + $0x74] sm:$0xf0]  ;;  %v7425_v60 = vor.u32 %v6476_v52, %v6164_v53 }
  0x13   :  { %14602 = vst [vmem:[#allocation17_spill] sm:$0xff] %v7393_v49  ;;  %v6515_v58 = vld [vmem:[%s14424_s2 + $0x98] sm:$0xf0]  ;;  %v6302_v61 = vld [vmem:[%s14424_s2 + $0x78] sm:$0xf]  ;;  %v7434_v63 = vor.u32 %v6479_v57, %v6170_v56 }
  0x14   :  { %265 = vmatpush.bf16.msra.mxu0 %v7292_v15  ;;  %14603 = vst [vmem:[#allocation18_spill] sm:$0xff] %v7399_v51  ;;  %v7422_v59 = vor.u32 %v6515_v58, %v6314_v55  ;;  %v6512_v62 = vld [vmem:[%s14424_s2 + $0x80] sm:$0xf0]  ;;  %v6148_v1 = vld [vmem:[%s14422_s1 + $0x50] sm:$0xf0] }
  0x15   :  { %14604 = vst [vmem:[#allocation19_spill] sm:$0xff] %v7407_v54  ;;  %277 = vmatpush.bf16.msra.mxu1 %v7393_v49  ;;  %v6472_v0 = vld [vmem:[%s14422_s1 + $0x44] sm:$0xf]  ;;  %v6154_v2 = vld [vmem:[%s14422_s1 + $0x48] sm:$0xf]  ;;  %v7449_v6 = vor.u32 %v6512_v62, %v6302_v61 }
  0x16   :  { %14605 = vst [vmem:[#allocation20_spill] sm:$0xff] %v7422_v59  ;;  %290 = vmatpush.bf16.msra.mxu2 %v7399_v51  ;;  %v6475_v4 = vld [vmem:[%s14422_s1 + $0x54] sm:$0xf0]  ;;  %v7452_v7 = vor.u32 %v6472_v0, %v6148_v1  ;;  %v6290_v8 = vld [vmem:[%s14424_s2 + $0x60] sm:$0xf] }
  0x17   :  { %14606 = vst [vmem:[#allocation21_spill] sm:$0xff] %v7425_v60  ;;  %v6509_v10 = vld [vmem:[%s14424_s2 + $0x68] sm:$0xf0]  ;;  %v7461_v11 = vor.u32 %v6475_v4, %v6154_v2  ;;  %v6468_v13 = vld [vmem:[%s14422_s1 + $0x24] sm:$0xf] }
  0x18   :  { %266 = vmatpush.bf16.msra.mxu0 %v7301_v18  ;;  %14607 = vst [vmem:[#allocation22_spill] sm:$0xff] %v7434_v63  ;;  %v6132_v14 = vld [vmem:[%s14422_s1 + $0x30] sm:$0xf0]  ;;  %v6138_v16 = vld [vmem:[%s14422_s1 + $0x28] sm:$0xf]  ;;  %v7479_v20 = vor.u32 %v6509_v10, %v6290_v8 }
  0x19   :  { %14608 = vst [vmem:[#allocation23_spill] sm:$0xff] %v7449_v6  ;;  %278 = vmatpush.bf16.msra.mxu1 %v7425_v60  ;;  %v6471_v17 = vld [vmem:[%s14422_s1 + $0x34] sm:$0xf0]  ;;  %v7485_v23 = vor.u32 %v6468_v13, %v6132_v14  ;;  %v6278_v26 = vld [vmem:[%s14424_s2 + $0x48] sm:$0xf] }
  0x1a   :  { %14609 = vst [vmem:[#allocation24_spill] sm:$0xff] %v7452_v7  ;;  %291 = vmatpush.bf16.msra.mxu2 %v7434_v63  ;;  %v6506_v27 = vld [vmem:[%s14424_s2 + $0x50] sm:$0xf0]  ;;  %v7494_v30 = vor.u32 %v6471_v17, %v6138_v16  ;;  %v6464_v31 = vld [vmem:[%s14422_s1 + $0x4] sm:$0xf] }
  0x1b   :  { %14610 = vst [vmem:[#allocation25_spill] sm:$0xff] %v7461_v11  ;;  %v6116_v32 = vld [vmem:[%s14422_s1 + $0x10] sm:$0xf0]  ;;  %v6122_v34 = vld [vmem:[%s14422_s1 + $0x8] sm:$0xf]  ;;  %v7521_v45 = vor.u32 %v6506_v27, %v6278_v26 }
  0x1c   :  { %267 = vmatpush.bf16.msra.mxu0 %v7310_v21  ;;  %14611 = vst [vmem:[#allocation26_spill] sm:$0xff] %v7479_v20  ;;  %v6467_v38 = vld [vmem:[%s14422_s1 + $0x14] sm:$0xf0]  ;;  %v6517_v39 = vld [vmem:[%s14424_s2 + $0xac] sm:$0xf]  ;;  %v7526_v47 = vor.u32 %v6464_v31, %v6116_v32 }
  0x1d   :  { %279 = vmatpush.bf16.msra.mxu1 %v7452_v7  ;;  %14612 = vst [vmem:[#allocation27_spill] sm:$0xff] %v7485_v23  ;;  %v6328_v40 = vld [vmem:[%s14424_s2 + $0xb4] sm:$0xf0]  ;;  %v6334_v41 = vld [vmem:[%s14424_s2 + $0xb0] sm:$0xf]  ;;  %v7529_v48 = vor.u32 %v6467_v38, %v6122_v34 }
  0x1e   :  { %292 = vmatpush.bf16.msra.mxu2 %v7461_v11  ;;  %14613 = vst [vmem:[#allocation28_spill] sm:$0xff] %v7494_v30  ;;  %v6519_v44 = vld [vmem:[%s14424_s2 + $0xb8] sm:$0xf0]  ;;  %v7531_v50 = vor.u32 %v6517_v39, %v6328_v40  ;;  %v6514_v53 = vld [vmem:[%s14424_s2 + $0x94] sm:$0xf] }
  0x1f   :  { %14614 = vst [vmem:[#allocation29_spill] sm:$0xff] %v7521_v45  ;;  %v7534_v52 = vor.u32 %v6519_v44, %v6334_v41  ;;  %v6316_v55 = vld [vmem:[%s14424_s2 + $0x9c] sm:$0xf0]  ;;  %v6322_v56 = vld [vmem:[%s14424_s2 + $0x98] sm:$0xf] }
  0x20   :  { %268 = vmatpush.bf16.msra.mxu0 %v7319_v24  ;;  %14615 = vst [vmem:[#allocation30_spill] sm:$0xff] %v7526_v47  ;;  %v6516_v57 = vld [vmem:[%s14424_s2 + $0xa0] sm:$0xf0]  ;;  %v7552_v61 = vor.u32 %v6514_v53, %v6316_v55  ;;  %v6511_v0 = vld [vmem:[%s14424_s2 + $0x7c] sm:$0xf] }
  0x21   :  { %280 = vmatpush.bf16.msra.mxu1 %v7485_v23  ;;  %14616 = vst [vmem:[#allocation31_spill] sm:$0xff] %v7529_v48  ;;  %v7555_v62 = vor.u32 %v6516_v57, %v6322_v56  ;;  %v6304_v1 = vld [vmem:[%s14424_s2 + $0x84] sm:$0xf0]  ;;  %v6310_v2 = vld [vmem:[%s14424_s2 + $0x80] sm:$0xf] }
  0x22   :  { %293 = vmatpush.bf16.msra.mxu2 %v7494_v30  ;;  %14617 = vst [vmem:[#allocation32_spill] sm:$0xff] %v7531_v50  ;;  %v6513_v4 = vld [vmem:[%s14424_s2 + $0x88] sm:$0xf0]  ;;  %v7572_v8 = vor.u32 %v6511_v0, %v6304_v1  ;;  %v6508_v13 = vld [vmem:[%s14424_s2 + $0x64] sm:$0xf] }
  0x23   :  { %269 = vmatmul.bf16.vlgmr.msra.gmra.mxu0 %v7321_v25  ;;  %14618 = vst [vmem:[#allocation33_spill] sm:$0xff] %v7534_v52  ;;  %v7575_v10 = vor.u32 %v6513_v4, %v6310_v2  ;;  %v6292_v14 = vld [vmem:[%s14424_s2 + $0x6c] sm:$0xf0]  ;;  %v6298_v16 = vld [vmem:[%s14424_s2 + $0x68] sm:$0xf] }
  0x24   :  { %461 = vmatpush.bf16.msrb.mxu0 %v7407_v54  ;;  %14619 = vst [vmem:[#allocation34_spill] sm:$0xff] %v7552_v61  ;;  %v6510_v17 = vld [vmem:[%s14424_s2 + $0x70] sm:$0xf0]  ;;  %v6505_v26 = vld [vmem:[%s14424_s2 + $0x4c] sm:$0xf] }
  0x25   :  { %281 = vmatpush.bf16.msra.mxu1 %v7526_v47  ;;  %14620 = vst [vmem:[#allocation35_spill] sm:$0xff] %v7555_v62  ;;  %v6280_v27 = vld [vmem:[%s14424_s2 + $0x54] sm:$0xf0]  ;;  %v6507_v31 = vld [vmem:[%s14424_s2 + $0x58] sm:$0xf0] }
  0x26   :  { %294 = vmatpush.bf16.msra.mxu2 %v7529_v48  ;;  %14621 = vst [vmem:[#allocation36_spill] sm:$0xff] %v7572_v8  ;;  %v7608_v32 = vor.u32 %v6505_v26, %v6280_v27  ;;  %v6236_v38 = vld [vmem:[%s14422_s1 + $0xf8] sm:$0xf0]  ;;  %v6266_v40 = vld [vmem:[%s14424_s2 + $0x30] sm:$0xf] }
  0x27   :  { %14622 = vst [vmem:[#allocation37_spill] sm:$0xff] %v7575_v10  ;;  %v6503_v41 = vld [vmem:[%s14424_s2 + $0x38] sm:$0xf0]  ;;  %v6502_v44 = vld [vmem:[%s14424_s2 + $0x34] sm:$0xf] }
  0x28   :  { %462 = vmatpush.bf16.msrb.mxu0 %v7422_v59  ;;  %282 = vmatmul.bf16.vlgmr.msra.gmra.mxu1 %v7321_v25  ;;  %14625 = vst [vmem:[#allocation40_spill] sm:$0xff] %v7608_v32  ;;  %v7633_v53 = vor.u32 %v6503_v41, %v6266_v40  ;;  %v6268_v55 = vld [vmem:[%s14424_s2 + $0x3c] sm:$0xf0]  ;;  %v6274_v56 = vld [vmem:[%s14424_s2 + $0x38] sm:$0xf] }
  0x29   :  { %474 = vmatpush.bf16.msrb.mxu1 %v7531_v50  ;;  %295 = vmatmul.bf16.vlgmr.msra.gmra.mxu2 %v7321_v25  ;;  %v6504_v57 = vld [vmem:[%s14424_s2 + $0x40] sm:$0xf0]  ;;  %v6489_v1 = vld [vmem:[%s14422_s1 + $0xcc] sm:$0xf]  ;;  %v6220_v2 = vld [vmem:[%s14422_s1 + $0xd8] sm:$0xf0] }
  0x2a   :  { %487 = vmatpush.bf16.msrb.mxu2 %v7534_v52  ;;  %14628 = vst [vmem:[#allocation43_spill] sm:$0xff] %v7633_v53  ;;  %v7646_v0 = vor.u32 %v6504_v57, %v6274_v56  ;;  %v7655_v4 = vor.u32 %v6489_v1, %v6220_v2  ;;  %v6256_v26 = vld [vmem:[%s14424_s2 + $0x24] sm:$0xf0]  ;;  %v6262_v27 = vld [vmem:[%s14424_s2 + $0x20] sm:$0xf] }
  0x2b   :  { %v6204_v40 = vld [vmem:[%s14422_s1 + $0xb8] sm:$0xf0]  ;;  %v6242_v41 = vld [vmem:[%s14424_s2] sm:$0xf]  ;;  %v6496_v56 = vld [vmem:[%s14424_s2 + $0x4] sm:$0xf] }
  0x2c   :  { %463 = vmatpush.bf16.msrb.mxu0 %v7449_v6  ;;  %14630 = vst [vmem:[#allocation45_spill] sm:$0xff] %v7646_v0  ;;  %v6244_v57 = vld [vmem:[%s14424_s2 + $0xc] sm:$0xf0] }
  0x2d   :  { %475 = vmatpush.bf16.msrb.mxu1 %v7552_v61  ;;  %14631 = vst [vmem:[#allocation46_spill] sm:$0xff] %v7655_v4  ;;  %v7709_v2 = vor.u32 %v6496_v56, %v6244_v57  ;;  %v6156_v56 = vld [vmem:[%s14422_s1 + $0x58] sm:$0xf0] }
  0x2e   :  { %488 = vmatpush.bf16.msrb.mxu2 %v7555_v62 }
  0x2f   :  { %14637 = vst [vmem:[#allocation52_spill] sm:$0xff] %v7709_v2 }
  0x30   :  { %464 = vmatpush.bf16.msrb.mxu0 %v7479_v20 }
  0x31   :  { %476 = vmatpush.bf16.msrb.mxu1 %v7572_v8 }
  0x32   :  { %489 = vmatpush.bf16.msrb.mxu2 %v7575_v10 }
  0x34   :  { %465 = vmatpush.bf16.msrb.mxu0 %v7521_v45 }
  0x38   :  { %466 = vmatpush.bf16.msrb.mxu0 %v7633_v53 }
  0xa0   :  { %v270_v28 = vpop.f32.mrf.mxu0 }
  0xa1   :  { %v313_v35 = vmul.f32 %v270_v28, %v97_v19  ;;  %v7590_v19 = vor.u32 %v6508_v13, %v6292_v14  ;;  %v6286_v28 = vld [vmem:[%s14424_s2 + $0x50] sm:$0xf]  ;;  %v6254_v13 = vld [vmem:[%s14424_s2 + $0x18] sm:$0xf]  ;;  %v6500_v14 = vld [vmem:[%s14424_s2 + $0x20] sm:$0xf0] }
  0xa2   :  { %v7611_v34 = vor.u32 %v6507_v31, %v6286_v28  ;;  %v6501_v28 = vld [vmem:[%s14424_s2 + $0x28] sm:$0xf0] }
  0xa3   :  { %v7523_v46 = vadd.f32 %v313_v35, %v96_v22  ;;  %14623 = vst [vmem:[#allocation38_spill] sm:$0xff] %v7590_v19  ;;  %v7593_v22 = vor.u32 %v6510_v17, %v6298_v16  ;;  %477 = vmatpush.bf16.msrb.mxu1 %v7590_v19  ;;  %v6493_v35 = vld [vmem:[%s14422_s1 + $0xec] sm:$0xf]  ;;  %v6499_v16 = vld [vmem:[%s14424_s2 + $0x1c] sm:$0xf]  ;;  %v7669_v17 = vor.u32 %v6500_v14, %v6254_v13 }
  0xa4   :  { %14626 = vst [vmem:[#allocation41_spill] sm:$0xff] %v7611_v34  ;;  %v7621_v39 = vor.u32 %v6493_v35, %v6236_v38  ;;  %v7680_v31 = vor.u32 %v6499_v16, %v6256_v26  ;;  %v7682_v35 = vor.u32 %v6501_v28, %v6262_v27  ;;  %v6485_v38 = vld [vmem:[%s14422_s1 + $0xac] sm:$0xf]  ;;  %v6250_v13 = vld [vmem:[%s14424_s2 + $0x8] sm:$0xf] }
  0xa5   :  { %325 = vmax.xlane.f32.xlu0 %v7523_v46  ;;  %14624 = vst [vmem:[#allocation39_spill] sm:$0xff] %v7593_v22  ;;  %490 = vmatpush.bf16.msrb.mxu2 %v7593_v22  ;;  %v6498_v14 = vld [vmem:[%s14424_s2 + $0x10] sm:$0xf0]  ;;  %v6481_v26 = vld [vmem:[%s14422_s1 + $0x8c] sm:$0xf] }
  0xa6   :  { %14627 = vst [vmem:[#allocation42_spill] sm:$0xff] %v7621_v39  ;;  %300 = vmatpush.bf16.msra.mxu3 %v7621_v39  ;;  %467 = vmatpush.bf16.msrb.mxu0 %v7669_v17  ;;  %v7718_v16 = vor.u32 %v6498_v14, %v6250_v13  ;;  %v6188_v27 = vld [vmem:[%s14422_s1 + $0x98] sm:$0xf0]  ;;  %v6469_v13 = vld [vmem:[%s14422_s1 + $0x2c] sm:$0xf] }
  0xa7   :  { %478 = vmatpush.bf16.msrb.mxu1 %v7608_v32  ;;  %14632 = vst [vmem:[#allocation47_spill] sm:$0xff] %v7669_v17  ;;  %v7727_v28 = vor.u32 %v6481_v26, %v6188_v27  ;;  %v6140_v14 = vld [vmem:[%s14422_s1 + $0x38] sm:$0xf0]  ;;  %v6465_v27 = vld [vmem:[%s14422_s1 + $0xc] sm:$0xf] }
  0xa8   :  { %v272_v58 = vpop.f32.mrf.mxu0  ;;  %14633 = vst [vmem:[#allocation48_spill] sm:$0xff] %v7680_v31  ;;  %v7763_v26 = vor.u32 %v6469_v13, %v6140_v14  ;;  %v283_v14 = vpop.f32.mrf.mxu1 }
  0xa9   :  { %491 = vmatpush.bf16.msrb.mxu2 %v7611_v34  ;;  %v7644_v58 = vor.u32 %v6502_v44, %v6268_v55  ;;  %14634 = vst [vmem:[#allocation49_spill] sm:$0xff] %v7682_v35  ;;  %v7694_v44 = vor.u32 %v6485_v38, %v6204_v40  ;;  %v6497_v55 = vld [vmem:[%s14424_s2 + $0x8] sm:$0xf0]  ;;  %v6172_v40 = vld [vmem:[%s14422_s1 + $0x78] sm:$0xf0] }
  0xaa   :  { %301 = vmatpush.bf16.msra.mxu3 %v7655_v4  ;;  %v7707_v1 = vor.u32 %v6497_v55, %v6242_v41  ;;  %14638 = vst [vmem:[#allocation53_spill] sm:$0xff] %v7718_v16  ;;  %v6477_v38 = vld [vmem:[%s14422_s1 + $0x6c] sm:$0xf] }
  0xab   :  { %14629 = vst [vmem:[#allocation44_spill] sm:$0xff] %v7644_v58  ;;  %479 = vmatpush.bf16.msrb.mxu1 %v7644_v58  ;;  %v6473_v41 = vld [vmem:[%s14422_s1 + $0x4c] sm:$0xf]  ;;  %v7744_v55 = vor.u32 %v6477_v38, %v6172_v40  ;;  %v6124_v38 = vld [vmem:[%s14422_s1 + $0x18] sm:$0xf0] }
  0xac   :  { %14635 = vst [vmem:[#allocation50_spill] sm:$0xff] %v7694_v44  ;;  %468 = vmatpush.bf16.msrb.mxu0 %v7707_v1  ;;  %v7751_v57 = vor.u32 %v6473_v41, %v6156_v56  ;;  %v7775_v40 = vor.u32 %v6465_v27, %v6124_v38  ;;  %v296_v38 = vpop.f32.mrf.mxu2 }
  0xad   :  { %492 = vmatpush.bf16.msrb.mxu2 %v7646_v0  ;;  %14636 = vst [vmem:[#allocation51_spill] sm:$0xff] %v7707_v1 }
  0xae   :  { %302 = vmatpush.bf16.msra.mxu3 %v7694_v44  ;;  %14639 = vst [vmem:[#allocation54_spill] sm:$0xff] %v7727_v28 }
  0xaf   :  { %480 = vmatpush.bf16.msrb.mxu1 %v7680_v31  ;;  %14640 = vst [vmem:[#allocation55_spill] sm:$0xff] %v7744_v55 }
  0xb0   :  { %1124 = vmatpush.bf16.msra.mxu0 %v7334_v29  ;;  %14641 = vst [vmem:[#allocation56_spill] sm:$0xff] %v7751_v57  ;;  %v285_v27 = vpop.f32.mrf.mxu1 }
  0xb1   :  { %493 = vmatpush.bf16.msrb.mxu2 %v7682_v35  ;;  %14642 = vst [vmem:[#allocation57_spill] sm:$0xff] %v7763_v26 }
  0xb2   :  { %303 = vmatpush.bf16.msra.mxu3 %v7727_v28  ;;  %14643 = vst [vmem:[#allocation58_spill] sm:$0xff] %v7775_v40 }
  0xb3   :  { %481 = vmatpush.bf16.msrb.mxu1 %v7709_v2 }
  0xb4   :  { %1125 = vmatpush.bf16.msra.mxu0 %v7354_v36 }
  0xb5   :  { %494 = vmatpush.bf16.msrb.mxu2 %v7718_v16 }
  0xb6   :  { %304 = vmatpush.bf16.msra.mxu3 %v7744_v55 }
  0xb7   :  { %1137 = vmatpush.bf16.msra.mxu1 %v7345_v33 }
  0xb8   :  { %1126 = vmatpush.bf16.msra.mxu0 %v7372_v42 }
  0xb9   :  { %1150 = vmatpush.bf16.msra.mxu2 %v7621_v39 }
  0xba   :  { %305 = vmatpush.bf16.msra.mxu3 %v7751_v57 }
  0xbb   :  { %1138 = vmatpush.bf16.msra.mxu1 %v7357_v37 }
  0xbc   :  { %1127 = vmatpush.bf16.msra.mxu0 %v7393_v49 }
  0xbd   :  { %1151 = vmatpush.bf16.msra.mxu2 %v7655_v4 }
  0xbe   :  { %306 = vmatpush.bf16.msra.mxu3 %v7763_v26 }
  0xbf   :  { %1139 = vmatpush.bf16.msra.mxu1 %v7375_v43 }
  0xc0   :  { %1128 = vmatpush.bf16.msra.mxu0 %v7425_v60 }
  0xc1   :  { %1152 = vmatpush.bf16.msra.mxu2 %v7694_v44 }
  0xc2   :  { %307 = vmatpush.bf16.msra.mxu3 %v7775_v40 }
  0xc3   :  { %1140 = vmatpush.bf16.msra.mxu1 %v7399_v51 }
  0xc4   :  { %1129 = vmatpush.bf16.msra.mxu0 %v7452_v7 }
  0xc5   :  { %1153 = vmatpush.bf16.msra.mxu2 %v7727_v28  ;;  %308 = vmatmul.bf16.vlgmr.msra.gmra.mxu3 %v7321_v25 }
  0xc6   :  { %1111 = vmatpush.bf16.msrb.mxu3 %v7256_v3 }
  0xc7   :  { %1141 = vmatpush.bf16.msra.mxu1 %v7434_v63 }
  0xc8   :  { %1130 = vmatpush.bf16.msra.mxu0 %v7485_v23 }
  0xc9   :  { %1154 = vmatpush.bf16.msra.mxu2 %v7744_v55 }
  0xca   :  { %1112 = vmatpush.bf16.msrb.mxu3 %v7262_v5 }
  0xcb   :  { %1142 = vmatpush.bf16.msra.mxu1 %v7461_v11 }
  0xcc   :  { %1131 = vmatpush.bf16.msra.mxu0 %v7526_v47 }
  0xcd   :  { %1155 = vmatpush.bf16.msra.mxu2 %v7751_v57 }
  0xce   :  { %1113 = vmatpush.bf16.msrb.mxu3 %v7274_v9 }
  0xcf   :  { %1143 = vmatpush.bf16.msra.mxu1 %v7494_v30 }
  0xd1   :  { %1156 = vmatpush.bf16.msra.mxu2 %v7763_v26 }
  0xd2   :  { %1114 = vmatpush.bf16.msrb.mxu3 %v7283_v12 }
  0xd3   :  { %1144 = vmatpush.bf16.msra.mxu1 %v7529_v48 }
  0xd5   :  { %1157 = vmatpush.bf16.msra.mxu2 %v7775_v40 }
  0xd6   :  { %1115 = vmatpush.bf16.msrb.mxu3 %v7292_v15 }
  0xda   :  { %1116 = vmatpush.bf16.msrb.mxu3 %v7301_v18 }
  0xde   :  { %1117 = vmatpush.bf16.msrb.mxu3 %v7310_v21 }
  0xe2   :  { %1118 = vmatpush.bf16.msrb.mxu3 %v7319_v24 }
  0xe6   :  { %1176 = vmatpush.bf16.msra.mxu3 %v7407_v54 }
  0xea   :  { %1177 = vmatpush.bf16.msra.mxu3 %v7422_v59 }
  0xee   :  { %1178 = vmatpush.bf16.msra.mxu3 %v7449_v6 }
  0xf2   :  { %1179 = vmatpush.bf16.msra.mxu3 %v7479_v20 }
  0xf6   :  { %1180 = vmatpush.bf16.msra.mxu3 %v7521_v45 }
  0xfa   :  { %1181 = vmatpush.bf16.msra.mxu3 %v7633_v53 }
  0xfe   :  { %1182 = vmatpush.bf16.msra.mxu3 %v7669_v17 }
 0x102   :  { %1183 = vmatpush.bf16.msra.mxu3 %v7707_v1 }
 0x118   :  { %v326_v41 = vpop.xlane.xlu0 %325 }
 0x119   :  { %v327_v56 = vsub.f32 %v7523_v46, %v326_v41  ;;  %v298_v41 = vpop.f32.mrf.mxu2 }
 0x11a   :  { %v7864_v41 = vld [vmem:[%s14428_s0] sm:$0x11] }
 0x11b   :  { %v328_v13 = vmul.f32 1.442695, %v327_v56  ;;  %v7837_v56 = vld [vmem:[%s14427_s6] sm:$0x7] }
 0x11d   :  { %6520 = vpow2.f32 %v328_v13  ;;  %v7840_v13 = vperm.slane %v7837_v56, 0 }
 0x11f   :  { %14644 = vst [vmem:[#allocation59_spill] sm:$0xff] %v7840_v13 }
 0x123   :  { %v6521_v25 = vpop.eup %6520 }
 0x124   :  { %330 = vadd.xlane.f32.xlu0 %v6521_v25  ;;  %v332_v46 = vpack.c.bf16 %v6521_v25, %v6521_v25  ;;  %v7843_v25 = vperm.slane %v7837_v56, 1 }
 0x126   :  { %469 = vmatmul.bf16.vlgmr.msrb.gmra.mxu0 %v332_v46  ;;  %482 = vmatmul.bf16.vlgmr.msrb.gmra.mxu1 %v332_v46  ;;  %14645 = vst [vmem:[#allocation60_spill] sm:$0xff] %v7843_v25  ;;  %v7849_v27 = vadd.f32 %v7843_v25, %v296_v38  ;;  %v7879_v25 = vld [vmem:[%s14428_s0 + $0x24] sm:$0x11]  ;;  %v7889_v38 = vld [vmem:[%s14428_s0 + $0x3c] sm:$0x11] }
 0x127   :  { %495 = vmatmul.bf16.vlgmr.msrb.gmra.mxu2 %v332_v46  ;;  %1189 = vmatpush.bf16.msrb.mxu0 %v7531_v50  ;;  %v7846_v46 = vadd.f32 %v7840_v13, %v283_v14 }
 0x128   :  { %1202 = vmatpush.bf16.msrb.mxu1 %v7534_v52  ;;  %1827 = vmatpush.bf16.msrb.mxu2 %v7256_v3 }
 0x129   :  { %v14647_v45 = vrot.slane %v7846_v46, 2  ;;  %v14648_v63 = vrot.slane %v7846_v46, 3 }
 0x12b   :  { %1190 = vmatpush.bf16.msrb.mxu0 %v7552_v61 }
 0x12c   :  { %1203 = vmatpush.bf16.msrb.mxu1 %v7555_v62  ;;  %1828 = vmatpush.bf16.msrb.mxu2 %v7262_v5 }
 0x12f   :  { %1191 = vmatpush.bf16.msrb.mxu0 %v7572_v8 }
 0x130   :  { %1204 = vmatpush.bf16.msrb.mxu1 %v7575_v10  ;;  %1829 = vmatpush.bf16.msrb.mxu2 %v7274_v9  ;;  %v7928_v9 = vld [vmem:[%s14428_s0 + $0x20] sm:$0x1]  ;;  %v7933_v10 = vld [vmem:[%s14428_s0 + $0x2c] sm:$0x1] }
 0x133   :  { %1192 = vmatpush.bf16.msrb.mxu0 %v7590_v19  ;;  %v7923_v19 = vld [vmem:[%s14428_s0 + $0x14] sm:$0x1] }
 0x134   :  { %1205 = vmatpush.bf16.msrb.mxu1 %v7593_v22  ;;  %1830 = vmatpush.bf16.msrb.mxu2 %v7283_v12  ;;  %v517_v12 = vunpack.c.h.bf16 %v7864_v41  ;;  %v14646_v22 = vrot.slane %v7846_v46, 1 }
 0x137   :  { %1193 = vmatpush.bf16.msrb.mxu0 %v7608_v32  ;;  %v7914_v32 = vld [vmem:[%s14428_s0 + $0x8] sm:$0x1] }
 0x138   :  { %1206 = vmatpush.bf16.msrb.mxu1 %v7611_v34  ;;  %1831 = vmatpush.bf16.msrb.mxu2 %v7292_v15  ;;  %v531_v34 = vunpack.c.l.bf16 %v7889_v38 }
 0x13b   :  { %1194 = vmatpush.bf16.msrb.mxu0 %v7644_v58  ;;  %v525_v58 = vunpack.c.l.bf16 %v7879_v25 }
 0x13c   :  { %1207 = vmatpush.bf16.msrb.mxu1 %v7646_v0  ;;  %1832 = vmatpush.bf16.msrb.mxu2 %v7301_v18  ;;  %v7874_v18 = vld [vmem:[%s14428_s0 + $0x18] sm:$0x11]  ;;  %v516_v0 = vunpack.c.l.bf16 %v7864_v41 }
 0x13f   :  { %1195 = vmatpush.bf16.msrb.mxu0 %v7680_v31  ;;  %v522_v31 = vunpack.c.l.bf16 %v7874_v18 }
 0x140   :  { %1208 = vmatpush.bf16.msrb.mxu1 %v7682_v35  ;;  %1833 = vmatpush.bf16.msrb.mxu2 %v7310_v21  ;;  %v7869_v35 = vld [vmem:[%s14428_s0 + $0xc] sm:$0x11] }
 0x141   :  { %v7896_v21 = vld [vmem:[%s14428_s0 + $0x48] sm:$0x11]  ;;  %v519_v14 = vunpack.c.l.bf16 %v7869_v35 }
 0x143   :  { %1196 = vmatpush.bf16.msrb.mxu0 %v7709_v2  ;;  %v7901_v2 = vld [vmem:[%s14428_s0 + $0x54] sm:$0x11] }
 0x144   :  { %1209 = vmatpush.bf16.msrb.mxu1 %v7718_v16  ;;  %1834 = vmatpush.bf16.msrb.mxu2 %v7319_v24  ;;  %v534_v24 = vunpack.c.l.bf16 %v7896_v21  ;;  %v537_v13 = vunpack.c.l.bf16 %v7901_v2 }
 0x197   :  { %v331_v16 = vpop.xlane.xlu0 %330 }
 0x198   :  { %6522 = vrcp.f32 %v331_v16  ;;  %v7884_v16 = vld [vmem:[%s14428_s0 + $0x30] sm:$0x11] }
 0x199   :  { %v528_v15 = vunpack.c.l.bf16 %v7884_v16 }
 0x19e   :  { %v7935_v8 = vpop.eup %6522 }
 0x1a3   :  { %v470_v41 = vpop.f32.mrf.mxu0  ;;  %v483_v5 = vpop.f32.mrf.mxu1 }
 0x1a4   :  { %v541_v52 = vmul.f32 %v7935_v8, %v470_v41  ;;  %v7946_v48 = vmul.f32 %v7935_v8, %v483_v5 }
 0x1a6   :  { %v547_v61 = vrot.slane %v541_v52, 1  ;;  %v550_v17 = vrot.slane %v541_v52, 2  ;;  %v553_v3 = vrot.slane %v541_v52, 3  ;;  %v556_v26 = vrot.slane %v541_v52, 4 }
 0x1a7   :  { %v559_v41 = vrot.slane %v541_v52, 5  ;;  %v562_v30 = vrot.slane %v541_v52, 6  ;;  %v565_v50 = vrot.slane %v541_v52, 7  ;;  %v592_v23 = vadd.f32 %v541_v52, %v516_v0 }
 0x1a8   :  { %v595_v1 = vadd.f32 %v547_v61, %v519_v14  ;;  %v598_v53 = vadd.f32 %v550_v17, %v522_v31  ;;  %v601_v40 = vadd.f32 %v553_v3, %v525_v58  ;;  %v604_v57 = vadd.f32 %v556_v26, %v528_v15  ;;  %v7969_v31 = vpop.f32.mrf.mxu3 }
 0x1a9   :  { %v607_v5 = vadd.f32 %v559_v41, %v531_v34  ;;  %v610_v11 = vadd.f32 %v562_v30, %v534_v24  ;;  %v613_v7 = vadd.f32 %v565_v50, %v537_v13  ;;  %v632_v47 = vadd.f32 %v592_v23, %v7846_v46 }
 0x1aa   :  { %v633_v62 = vadd.f32 %v14646_v22, %v595_v1  ;;  %v634_v55 = vadd.f32 %v14647_v45, %v598_v53  ;;  %v635_v60 = vadd.f32 %v14648_v63, %v601_v40  ;;  %v14649_v52 = vrot.slane %v7846_v46, 4  ;;  %v7960_v0 = vpop.f32.mrf.mxu2 }
 0x1ab   :  { %v14650_v3 = vrot.slane %v7846_v46, 5  ;;  %v14651_v24 = vrot.slane %v7846_v46, 6  ;;  %v14652_v30 = vrot.slane %v7846_v46, 7  ;;  %v6336_v22 = vmul.f32 -1.442695, %v632_v47  ;;  %v472_v34 = vpop.f32.mrf.mxu0  ;;  %v485_v45 = vpop.f32.mrf.mxu1 }
 0x1ac   :  { %v636_v61 = vadd.f32 %v14649_v52, %v604_v57  ;;  %v6337_v53 = vmul.f32 -1.442695, %v633_v62  ;;  %v6338_v58 = vmul.f32 -1.442695, %v634_v55  ;;  %v6339_v63 = vmul.f32 -1.442695, %v635_v60 }
 0x1ad   :  { %v637_v15 = vadd.f32 %v14650_v3, %v607_v5  ;;  %v638_v23 = vadd.f32 %v14651_v24, %v610_v11  ;;  %v639_v50 = vadd.f32 %v14652_v30, %v613_v7  ;;  %v593_v17 = vadd.f32 %v7946_v48, %v517_v12  ;;  %v7976_v47 = vld [vmem:[%s14428_s0 + $0x38] sm:$0x1]  ;;  %v7984_v55 = vld [vmem:[%s14428_s0 + $0x44] sm:$0x1]  ;;  %v7993_v5 = vld [vmem:[%s14428_s0 + $0x50] sm:$0x1] }
 0x1ae   :  { %6524 = vpow2.f32 %v6336_v22  ;;  %v6340_v1 = vmul.f32 -1.442695, %v636_v61  ;;  %v548_v11 = vrot.slane %v7946_v48, 1  ;;  %v551_v7 = vrot.slane %v7946_v48, 2  ;;  %v8007_v22 = vld [vmem:[%s14428_s0 + $0x5c] sm:$0x1] }
 0x1af   :  { %v6341_v57 = vmul.f32 -1.442695, %v637_v15  ;;  %v6342_v26 = vmul.f32 -1.442695, %v638_v23  ;;  %6526 = vpow2.f32 %v6337_v53  ;;  %v6343_v40 = vmul.f32 -1.442695, %v639_v50 }
 0x1b0   :  { %6528 = vpow2.f32 %v6338_v58  ;;  %v554_v12 = vrot.slane %v7946_v48, 3  ;;  %v557_v60 = vrot.slane %v7946_v48, 4  ;;  %v560_v62 = vrot.slane %v7946_v48, 5 }
 0x1b1   :  { %6530 = vpow2.f32 %v6339_v63  ;;  %v563_v13 = vrot.slane %v7946_v48, 6  ;;  %v566_v46 = vrot.slane %v7946_v48, 7  ;;  %v14653_v14 = vunpack.c.h.bf16 %v7869_v35 }
 0x1b2   :  { %6532 = vpow2.f32 %v6340_v1  ;;  %v14654_v52 = vunpack.c.h.bf16 %v7874_v18  ;;  %v14655_v3 = vunpack.c.h.bf16 %v7879_v25  ;;  %v530_v24 = vunpack.c.l.bf16 %v7976_v47  ;;  %v498_v50 = vpop.f32.mrf.mxu2 }
 0x1b3   :  { %v596_v41 = vadd.f32 %v548_v11, %v14653_v14  ;;  %6534 = vpow2.f32 %v6341_v57  ;;  %v14656_v48 = vunpack.c.h.bf16 %v7884_v16  ;;  %v14657_v35 = vunpack.c.h.bf16 %v7889_v38 }
 0x1b4   :  { %v599_v61 = vadd.f32 %v551_v7, %v14654_v52  ;;  %v602_v15 = vadd.f32 %v554_v12, %v14655_v3  ;;  %v6525_v34 = vpop.eup %6524  ;;  %6536 = vpow2.f32 %v6342_v26  ;;  %v14658_v25 = vunpack.c.h.bf16 %v7896_v21  ;;  %v311_v7 = vpop.f32.mrf.mxu3 }
 0x1b5   :  { %v605_v23 = vadd.f32 %v557_v60, %v14656_v48  ;;  %v608_v30 = vadd.f32 %v560_v62, %v14657_v35  ;;  %v14659_v53 = vunpack.c.h.bf16 %v7901_v2  ;;  %v6527_v38 = vpop.eup %6526  ;;  %6538 = vpow2.f32 %v6343_v40 }
 0x1b6   :  { %v611_v45 = vadd.f32 %v563_v13, %v14658_v25  ;;  %v8015_v63 = vadd.f32 1.0, %v6525_v34  ;;  %v808_v1 = vadd.f32 %v593_v17, %v7849_v27  ;;  %v14660_v57 = vrot.slane %v7849_v27, 1  ;;  %v6529_v12 = vpop.eup %6528 }
 0x1b7   :  { %v614_v16 = vadd.f32 %v566_v46, %v14659_v53  ;;  %v8020_v26 = vadd.f32 1.0, %v6527_v38  ;;  %v14661_v21 = vrot.slane %v7849_v27, 2  ;;  %v14662_v2 = vrot.slane %v7849_v27, 3  ;;  %v6531_v40 = vpop.eup %6530 }
 0x1b8   :  { %v809_v11 = vadd.f32 %v14660_v57, %v596_v41  ;;  %v8027_v46 = vadd.f32 1.0, %v6529_v12  ;;  %6540 = vrcp.f32 %v8015_v63  ;;  %v14663_v17 = vrot.slane %v7849_v27, 4  ;;  %v6533_v3 = vpop.eup %6532 }
 0x1b9   :  { %v810_v60 = vadd.f32 %v14661_v21, %v599_v61  ;;  %v811_v62 = vadd.f32 %v14662_v2, %v602_v15  ;;  %v14664_v41 = vrot.slane %v7849_v27, 5  ;;  %v8034_v48 = vadd.f32 1.0, %v6531_v40  ;;  %v6535_v34 = vpop.eup %6534 }
 0x1ba   :  { %v812_v14 = vadd.f32 %v14663_v17, %v605_v23  ;;  %6542 = vrcp.f32 %v8020_v26  ;;  %v14665_v61 = vrot.slane %v7849_v27, 6  ;;  %v14666_v35 = vrot.slane %v7849_v27, 7  ;;  %v6537_v38 = vpop.eup %6536 }
 0x1bb   :  { %v813_v52 = vadd.f32 %v14664_v41, %v608_v30  ;;  %v8041_v25 = vadd.f32 1.0, %v6533_v3  ;;  %6544 = vrcp.f32 %v8027_v46  ;;  %v6344_v23 = vmul.f32 -1.442695, %v808_v1  ;;  %v6539_v12 = vpop.eup %6538 }
 0x1bc   :  { %v814_v15 = vadd.f32 %v14665_v61, %v611_v45  ;;  %v815_v50 = vadd.f32 %v14666_v35, %v614_v16  ;;  %v6345_v53 = vmul.f32 -1.442695, %v809_v11  ;;  %v8044_v30 = vadd.f32 1.0, %v6535_v34 }
 0x1bd   :  { %6546 = vrcp.f32 %v8034_v48  ;;  %v6346_v57 = vmul.f32 -1.442695, %v810_v60  ;;  %v6347_v7 = vmul.f32 -1.442695, %v811_v62  ;;  %v8047_v21 = vadd.f32 1.0, %v6537_v38 }
 0x1be   :  { %6548 = vrcp.f32 %v8041_v25  ;;  %v6348_v27 = vmul.f32 -1.442695, %v812_v14  ;;  %v8052_v45 = vmul.f32 %v7935_v8, %v7960_v0  ;;  %v8054_v16 = vadd.f32 1.0, %v6539_v12  ;;  %v8057_v2 = vpop.eup %6540 }
 0x1bf   :  { %6550 = vrcp.f32 %v8044_v30  ;;  %v6349_v1 = vmul.f32 -1.442695, %v813_v52  ;;  %v6350_v11 = vmul.f32 -1.442695, %v814_v15  ;;  %v6351_v8 = vmul.f32 -1.442695, %v815_v50 }
 0x1c0   :  { %6552 = vrcp.f32 %v8047_v21  ;;  %v549_v60 = vrot.slane %v8052_v45, 1  ;;  %v552_v62 = vrot.slane %v8052_v45, 2  ;;  %v555_v40 = vrot.slane %v8052_v45, 3  ;;  %v8063_v17 = vpop.eup %6542 }
 0x1c1   :  { %6554 = vrcp.f32 %v8054_v16  ;;  %v558_v0 = vrot.slane %v8052_v45, 4  ;;  %v8068_v14 = vperm.slane %v7837_v56, 2  ;;  %v8070_v41 = vpop.eup %6544  ;;  %vm677_vm0 = vweird.f32 %v8015_v63 }
 0x1c2   :  { %6556 = vpow2.f32 %v6344_v23  ;;  %v681_v3 = vand.u32 2147483647, %v8015_v63  ;;  %v14668_v35 = vunpack.c.l.bf16 %v7914_v32  ;;  %v14669_v56 = vunpack.c.l.bf16 %v7923_v19 }
 0x1c3   :  { %14667 = vst [vmem:[#allocation61_spill] sm:$0xff] %v8068_v14  ;;  %v8075_v61 = vpop.eup %6546  ;;  %6558 = vpow2.f32 %v6345_v53  ;;  %v14670_v38 = vunpack.c.l.bf16 %v7928_v9  ;;  %v14671_v53 = vunpack.c.l.bf16 %v7933_v10  ;;  %v673_v32 = vmul.f32 %v8057_v2, %v8015_v63 }
 0x1c4   :  { %v8081_v50 = vadd.f32 %v8052_v45, %v14668_v35  ;;  %v8085_v34 = vadd.f32 %v549_v60, %v14669_v56  ;;  %v8087_v23 = vpop.eup %6548  ;;  %6560 = vpow2.f32 %v6346_v57  ;;  %v8103_v19 = vadd.f32 %v558_v0, %v530_v24 }
 0x1c5   :  { %v8091_v12 = vadd.f32 %v552_v62, %v14670_v38  ;;  %v8095_v13 = vadd.f32 %v555_v40, %v14671_v53  ;;  %v8099_v35 = vpop.eup %6550  ;;  %6562 = vpow2.f32 %v6347_v7  ;;  %v683_v57 = vand.u32 2147483648, %v8015_v63 }
 0x1c6   :  { %v688_v9 = vmul.f32 %v8063_v17, %v8020_v26  ;;  %v8108_v60 = vpop.eup %6552  ;;  %6564 = vpow2.f32 %v6348_v27  ;;  %v674_v10 = vsub.f32 1.0, %v673_v32  ;;  %vm678_vm1 = vweird.f32 %v8057_v2 }
 0x1c7   :  { %v696_v62 = vand.u32 2147483647, %v8020_v26  ;;  %v8112_v40 = vpop.eup %6554  ;;  %6566 = vpow2.f32 %v6349_v1  ;;  %vm8114_vm2 = vcmp.eq.f32.partialorder %v681_v3, 8.507059e+37  ;;  %v698_v7 = vand.u32 2147483648, %v8020_v26  ;;  %vm8140_vm6 = vmor %vm677_vm0, %vm678_vm1 }
 0x1c8   :  { %v689_v24 = vsub.f32 1.0, %v688_v9  ;;  %v6557_v0 = vpop.eup %6556  ;;  %v675_v56 = vmul.f32 %v8057_v2, %v674_v10  ;;  %vm692_vm3 = vweird.f32 %v8020_v26  ;;  %vm693_vm4 = vweird.f32 %v8063_v17 }
 0x1c9   :  { %v703_v27 = vmul.f32 %v8070_v41, %v8027_v46  ;;  %v6559_v38 = vpop.eup %6558  ;;  %6568 = vpow2.f32 %v6350_v11  ;;  %v8124_v1 = vadd.f32 1.0, %v6557_v0  ;;  %v684_v3 = vor.u32 1.1754944e-38, %v683_v57  ;;  %vm8152_vm7 = vmor %vm692_vm3, %vm693_vm4 }
 0x1ca   :  { %v690_v53 = vmul.f32 %v8063_v17, %v689_v24  ;;  %v6561_v32 = vpop.eup %6560  ;;  %v8127_v9 = vadd.f32 1.0, %v6559_v38  ;;  %v676_v15 = vadd.f32 %v8057_v2, %v675_v56  ;;  %vm8130_vm5 = vcmp.eq.f32.partialorder %v696_v62, 8.507059e+37 }
 0x1cb   :  { %v704_v58 = vsub.f32 1.0, %v703_v27  ;;  %v6563_v52 = vpop.eup %6562  ;;  %6570 = vpow2.f32 %v6351_v8  ;;  %v8134_v18 = vadd.f32 1.0, %v6561_v32  ;;  %v699_v24 = vor.u32 1.1754944e-38, %v698_v7 }
 0x1cc   :  { %v691_v57 = vadd.f32 %v8063_v17, %v690_v53  ;;  %v6565_v62 = vpop.eup %6564  ;;  %v8145_v0 = vadd.f32 1.0, %v6563_v52  ;;  %6572 = vrcp.f32 %v8124_v1  ;;  %vm708_vm8 = vweird.f32 %v8070_v41 }
 0x1cd   :  { %v705_v63 = vmul.f32 %v8070_v41, %v704_v58  ;;  %v6567_v56 = vpop.eup %6566  ;;  %v8158_v27 = vadd.f32 1.0, %v6565_v62  ;;  %6574 = vrcp.f32 %v8127_v9  ;;  %v680_v52 = vsel %vm8140_vm6, %v8057_v2, %v676_v15 }
 0x1ce   :  { %v695_v26 = vsel %vm8152_vm7, %v8063_v17, %v691_v57  ;;  %v8167_v7 = vadd.f32 1.0, %v6567_v56  ;;  %6576 = vrcp.f32 %v8134_v18  ;;  %vm707_vm9 = vweird.f32 %v8027_v46 }
 0x1cf   :  { %v706_v58 = vadd.f32 %v8070_v41, %v705_v63  ;;  %v8172_v38 = vpop.eup %6568  ;;  %6578 = vrcp.f32 %v8145_v0  ;;  %v711_v53 = vand.u32 2147483647, %v8027_v46  ;;  %v713_v2 = vand.u32 2147483648, %v8027_v46  ;;  %vm8190_vm10 = vmor %vm707_vm9, %vm708_vm8 }
 0x1d0   :  { %v718_v15 = vmul.f32 %v8075_v61, %v8034_v48  ;;  %6580 = vrcp.f32 %v8158_v27  ;;  %v8182_v17 = vadd.f32 %v8068_v14, %v7969_v31  ;;  %v685_v32 = vsel %vm8114_vm2, %v684_v3, %v680_v52 }
 0x1d1   :  { %v700_v11 = vsel %vm8130_vm5, %v699_v24, %v695_v26  ;;  %v8194_v46 = vpop.eup %6570  ;;  %6582 = vrcp.f32 %v8167_v7  ;;  %v710_v31 = vsel %vm8190_vm10, %v8070_v41, %v706_v58  ;;  %vm722_vm11 = vweird.f32 %v8034_v48 }
 0x1d2   :  { %v719_v62 = vsub.f32 1.0, %v718_v15  ;;  %v8201_v47 = vpop.eup %6572  ;;  %v714_v3 = vor.u32 1.1754944e-38, %v713_v2  ;;  %v726_v10 = vand.u32 2147483647, %v8034_v48  ;;  %v728_v24 = vand.u32 2147483648, %v8034_v48 }
 0x1d3   :  { %v733_v8 = vmul.f32 %v8087_v23, %v8041_v25  ;;  %v8207_v63 = vpop.eup %6574  ;;  %vm712_vm12 = vcmp.eq.f32.partialorder %v711_v53, 8.507059e+37  ;;  %vm723_vm13 = vweird.f32 %v8075_v61  ;;  %vm737_vm14 = vweird.f32 %v8041_v25 }
 0x1d4   :  { %v720_v56 = vmul.f32 %v8075_v61, %v719_v62  ;;  %v8212_v41 = vpop.eup %6576  ;;  %v715_v52 = vsel %vm712_vm12, %v714_v3, %v710_v31  ;;  %vm738_vm15 = vweird.f32 %v8087_v23  ;;  %v969_v58 = vrot.slane %v8182_v17, 1  ;;  %vm724_vm0 = vmor %vm722_vm11, %vm723_vm13 }
 0x1d5   :  { %v734_v26 = vsub.f32 1.0, %v733_v8  ;;  %v8216_v2 = vpop.eup %6578  ;;  %v743_v53 = vand.u32 2147483648, %v8041_v25  ;;  %v970_v57 = vrot.slane %v8182_v17, 2  ;;  %v971_v62 = vrot.slane %v8182_v17, 3  ;;  %vm739_vm2 = vmor %vm737_vm14, %vm738_vm15 }
 0x1d6   :  { %v721_v15 = vadd.f32 %v8075_v61, %v720_v56  ;;  %v8222_v14 = vpop.eup %6580  ;;  %vm727_vm1 = vcmp.eq.f32.partialorder %v726_v10, 8.507059e+37  ;;  %v729_v31 = vor.u32 1.1754944e-38, %v728_v24  ;;  %v741_v8 = vand.u32 2147483647, %v8041_v25 }
 0x1d7   :  { %v735_v3 = vmul.f32 %v8087_v23, %v734_v26  ;;  %v8228_v20 = vpop.eup %6582  ;;  %v972_v28 = vrot.slane %v8182_v17, 4  ;;  %v984_v51 = vmul.f32 %v685_v32, %v8182_v17  ;;  %v985_v49 = vmul.f32 %v969_v58, %v700_v11 }
 0x1d8   :  { %v725_v56 = vsel %vm724_vm0, %v8075_v61, %v721_v15  ;;  %v986_v48 = vmul.f32 %v970_v57, %v715_v52  ;;  %v567_v10 = vrot.slane %v8052_v45, 7  ;;  %v744_v24 = vor.u32 1.1754944e-38, %v743_v53 }
 0x1d9   :  { %v730_v6 = vsel %vm727_vm1, %v729_v31, %v725_v56  ;;  %v736_v44 = vadd.f32 %v8087_v23, %v735_v3  ;;  %v992_v61 = vadd.f32 %v984_v51, %v8081_v50  ;;  %v993_v15 = vadd.f32 %v985_v49, %v8085_v34 }
 0x1da   :  { %v8239_v26 = vmul.f32 %v971_v62, %v730_v6  ;;  %vm742_vm3 = vcmp.eq.f32.partialorder %v741_v8, 8.507059e+37  ;;  %v973_v11 = vrot.slane %v8182_v17, 5  ;;  %v994_v52 = vadd.f32 %v986_v48, %v8091_v12 }
 0x1db   :  { %v740_v32 = vsel %vm739_vm2, %v8087_v23, %v736_v44  ;;  %v974_v57 = vrot.slane %v8182_v17, 6  ;;  %v14682_v25 = vunpack.c.l.bf16 %v7984_v55  ;;  %v14683_v53 = vrot.slane %v8052_v45, 5 }
 0x1dc   :  { %v745_v58 = vsel %vm742_vm3, %v744_v24, %v740_v32  ;;  %v748_v51 = vmul.f32 %v8099_v35, %v8044_v30  ;;  %v14684_v44 = vunpack.c.l.bf16 %v7993_v5  ;;  %v14685_v50 = vrot.slane %v8052_v45, 6 }
 0x1dd   :  { %v8251_v6 = vadd.f32 %v14683_v53, %v14682_v25  ;;  %v8255_v49 = vmul.f32 %v972_v28, %v745_v58  ;;  %v14686_v23 = vunpack.c.l.bf16 %v8007_v22  ;;  %v756_v55 = vand.u32 2147483647, %v8044_v30 }
 0x1de   :  { %v8261_v34 = vadd.f32 %v14685_v50, %v14684_v44  ;;  %6584 = vtanh.f32 %v992_v61  ;;  %v749_v62 = vsub.f32 1.0, %v748_v51  ;;  %v758_v31 = vand.u32 2147483648, %v8044_v30 }
 0x1df   :  { %v8265_v12 = vadd.f32 %v567_v10, %v14686_v23  ;;  %v763_v28 = vmul.f32 %v8108_v60, %v8047_v21  ;;  %6586 = vtanh.f32 %v993_v15  ;;  %vm752_vm4 = vweird.f32 %v8044_v30 }
 0x1e0   :  { %vm753_vm5 = vweird.f32 %v8099_v35  ;;  %v771_v5 = vand.u32 2147483647, %v8047_v21  ;;  %6588 = vtanh.f32 %v994_v52  ;;  %v750_v22 = vmul.f32 %v8099_v35, %v749_v62 }
 0x1e1   :  { %vm8275_vm6 = vcmp.eq.f32.partialorder %v756_v55, 8.507059e+37  ;;  %v764_v3 = vsub.f32 1.0, %v763_v28  ;;  %vm767_vm7 = vweird.f32 %v8047_v21  ;;  %vm768_vm8 = vweird.f32 %v8108_v60  ;;  %vm8289_vm9 = vmor %vm752_vm4, %vm753_vm5 }
 0x1e2   :  { %v773_v8 = vand.u32 2147483648, %v8047_v21  ;;  %v778_v56 = vmul.f32 %v8112_v40, %v8054_v16  ;;  %v751_v48 = vadd.f32 %v8099_v35, %v750_v22  ;;  %v759_v10 = vor.u32 1.1754944e-38, %v758_v31  ;;  %vm8314_vm13 = vmor %vm767_vm7, %vm768_vm8 }
 0x1e3   :  { %v765_v24 = vmul.f32 %v8108_v60, %v764_v3  ;;  %v786_v61 = vand.u32 2147483647, %v8054_v16  ;;  %vm8293_vm10 = vcmp.eq.f32.partialorder %v771_v5, 8.507059e+37  ;;  %vm782_vm11 = vweird.f32 %v8054_v16 }
 0x1e4   :  { %v779_v52 = vsub.f32 1.0, %v778_v56  ;;  %vm783_vm12 = vweird.f32 %v8112_v40  ;;  %v8299_v58 = vpop.eup %6584  ;;  %v755_v25 = vsel %vm8289_vm9, %v8099_v35, %v751_v48  ;;  %v788_v53 = vand.u32 2147483648, %v8054_v16 }
 0x1e5   :  { %v766_v30 = vadd.f32 %v8108_v60, %v765_v24  ;;  %v849_v51 = vmul.f32 %v8201_v47, %v8124_v1  ;;  %v8308_v44 = vpop.eup %6586  ;;  %v774_v23 = vor.u32 1.1754944e-38, %v773_v8  ;;  %v8320_v55 = vadd.f32 1.0, %v8172_v38  ;;  %vm8347_vm15 = vmor %vm782_vm11, %vm783_vm12 }
 0x1e6   :  { %v780_v35 = vmul.f32 %v8112_v40, %v779_v52  ;;  %v8323_v62 = vadd.f32 1.0, %v8194_v46  ;;  %v8325_v31 = vpop.eup %6588  ;;  %vm8330_vm14 = vcmp.eq.f32.partialorder %v786_v61, 8.507059e+37  ;;  %v857_v22 = vand.u32 2147483647, %v8124_v1 }
 0x1e7   :  { %v770_v28 = vsel %vm8314_vm13, %v8108_v60, %v766_v30  ;;  %v850_v5 = vsub.f32 1.0, %v849_v51  ;;  %v8337_v38 = vsel %vm8275_vm6, %v759_v10, %v755_v25  ;;  %v859_v3 = vand.u32 2147483648, %v8124_v1 }
 0x1e8   :  { %v781_v46 = vadd.f32 %v8112_v40, %v780_v35  ;;  %v864_v8 = vmul.f32 %v8207_v63, %v8127_v9  ;;  %v789_v56 = vor.u32 1.1754944e-38, %v788_v53  ;;  %vm853_vm0 = vweird.f32 %v8124_v1 }
 0x1e9   :  { %v851_v45 = vmul.f32 %v8201_v47, %v850_v5  ;;  %vm854_vm1 = vweird.f32 %v8201_v47  ;;  %v8356_v48 = vsel %vm8293_vm10, %v774_v23, %v770_v28  ;;  %v872_v24 = vand.u32 2147483647, %v8127_v9 }
 0x1ea   :  { %v785_v10 = vsel %vm8347_vm15, %v8112_v40, %v781_v46  ;;  %v865_v16 = vsub.f32 1.0, %v864_v8  ;;  %vm8363_vm2 = vcmp.eq.f32.partialorder %v857_v22, 8.507059e+37  ;;  %v874_v1 = vand.u32 2147483648, %v8127_v9  ;;  %vm8370_vm3 = vmor %vm853_vm0, %vm854_vm1 }
 0x1eb   :  { %v852_v61 = vadd.f32 %v8201_v47, %v851_v45  ;;  %v879_v32 = vmul.f32 %v8212_v41, %v8134_v18  ;;  %v860_v25 = vor.u32 1.1754944e-38, %v859_v3  ;;  %vm868_vm4 = vweird.f32 %v8127_v9 }
 0x1ec   :  { %v866_v40 = vmul.f32 %v8207_v63, %v865_v16  ;;  %vm869_vm5 = vweird.f32 %v8207_v63  ;;  %v8379_v30 = vsel %vm8330_vm14, %v789_v56, %v785_v10  ;;  %v887_v50 = vand.u32 2147483647, %v8134_v18 }
 0x1ed   :  { %v856_v53 = vsel %vm8370_vm3, %v8201_v47, %v852_v61  ;;  %v880_v51 = vsub.f32 1.0, %v879_v32  ;;  %vm8386_vm6 = vcmp.eq.f32.partialorder %v872_v24, 8.507059e+37  ;;  %v889_v9 = vand.u32 2147483648, %v8134_v18  ;;  %vm8393_vm7 = vmor %vm868_vm4, %vm869_vm5 }
 0x1ee   :  { %v867_v23 = vadd.f32 %v8207_v63, %v866_v40  ;;  %v894_v28 = vmul.f32 %v8216_v2, %v8145_v0  ;;  %v875_v5 = vor.u32 1.1754944e-38, %v874_v1  ;;  %vm883_vm8 = vweird.f32 %v8134_v18 }
 0x1ef   :  { %v881_v47 = vmul.f32 %v8212_v41, %v880_v51  ;;  %vm884_vm9 = vweird.f32 %v8212_v41  ;;  %v8402_v22 = vsel %vm8363_vm2, %v860_v25, %v856_v53  ;;  %v902_v8 = vand.u32 2147483647, %v8145_v0 }
 0x1f0   :  { %v871_v46 = vsel %vm8393_vm7, %v8207_v63, %v867_v23  ;;  %v895_v3 = vsub.f32 1.0, %v894_v28  ;;  %vm8409_vm10 = vcmp.eq.f32.partialorder %v887_v50, 8.507059e+37  ;;  %v904_v18 = vand.u32 2147483648, %v8145_v0  ;;  %vm8416_vm11 = vmor %vm883_vm8, %vm884_vm9  ;;  %v7192_v28 = vld [vmem:[#allocation2] sm:$0xff] }
 0x1f1   :  { %v882_v60 = vadd.f32 %v8212_v41, %v881_v47  ;;  %v909_v45 = vmul.f32 %v8222_v14, %v8158_v27  ;;  %v890_v16 = vor.u32 1.1754944e-38, %v889_v9  ;;  %vm898_vm12 = vweird.f32 %v8145_v0 }
 0x1f2   :  { %v896_v63 = vmul.f32 %v8216_v2, %v895_v3  ;;  %vm899_vm13 = vweird.f32 %v8216_v2  ;;  %v8425_v24 = vsel %vm8386_vm6, %v875_v5, %v871_v46  ;;  %v917_v1 = vand.u32 2147483647, %v8158_v27 }
 0x1f3   :  { %v886_v61 = vsel %vm8416_vm11, %v8212_v41, %v882_v60  ;;  %v910_v15 = vsub.f32 1.0, %v909_v45  ;;  %vm8432_vm14 = vcmp.eq.f32.partialorder %v902_v8, 8.507059e+37  ;;  %v919_v0 = vand.u32 2147483648, %v8158_v27  ;;  %vm8439_vm15 = vmor %vm898_vm12, %vm899_vm13 }
 0x1f4   :  { %v897_v32 = vadd.f32 %v8216_v2, %v896_v63  ;;  %v924_v25 = vmul.f32 %v8228_v20, %v8167_v7  ;;  %v905_v53 = vor.u32 1.1754944e-38, %v904_v18  ;;  %vm913_vm0 = vweird.f32 %v8158_v27 }
 0x1f5   :  { %v911_v41 = vmul.f32 %v8222_v14, %v910_v15  ;;  %vm914_vm1 = vweird.f32 %v8222_v14  ;;  %v8448_v51 = vsel %vm8409_vm10, %v890_v16, %v886_v61  ;;  %v932_v35 = vand.u32 2147483647, %v8167_v7 }
 0x1f6   :  { %v901_v50 = vsel %vm8439_vm15, %v8216_v2, %v897_v32  ;;  %v925_v23 = vsub.f32 1.0, %v924_v25  ;;  %vm8455_vm2 = vcmp.eq.f32.partialorder %v917_v1, 8.507059e+37  ;;  %v934_v27 = vand.u32 2147483648, %v8167_v7  ;;  %vm915_vm3 = vmor %vm913_vm0, %vm914_vm1 }
 0x1f7   :  { %v912_v9 = vadd.f32 %v8222_v14, %v911_v41  ;;  %6590 = vrcp.f32 %v8320_v55  ;;  %v920_v21 = vor.u32 1.1754944e-38, %v919_v0  ;;  %vm928_vm4 = vweird.f32 %v8167_v7 }
 0x1f8   :  { %v926_v5 = vmul.f32 %v8228_v20, %v925_v23  ;;  %vm929_vm5 = vweird.f32 %v8228_v20  ;;  %v8466_v2 = vsel %vm8432_vm14, %v905_v53, %v901_v50  ;;  %v949_v46 = vand.u32 2147483648, %v8320_v55 }
 0x1f9   :  { %v916_v47 = vsel %vm915_vm3, %v8222_v14, %v912_v9  ;;  %6592 = vrcp.f32 %v8323_v62  ;;  %vm933_vm6 = vcmp.eq.f32.partialorder %v932_v35, 8.507059e+37  ;;  %v935_v8 = vor.u32 1.1754944e-38, %v934_v27  ;;  %vm930_vm7 = vmor %vm928_vm4, %vm929_vm5 }
 0x1fa   :  { %v927_v3 = vadd.f32 %v8228_v20, %v926_v5  ;;  %v947_v60 = vand.u32 2147483647, %v8320_v55  ;;  %v8475_v7 = vsel %vm8455_vm2, %v920_v21, %v916_v47  ;;  %v962_v56 = vand.u32 2147483647, %v8323_v62 }
 0x1fb   :  { %v964_v18 = vand.u32 2147483648, %v8323_v62  ;;  %v975_v14 = vrot.slane %v8182_v17, 7  ;;  %vm943_vm8 = vweird.f32 %v8320_v55  ;;  %v989_v10 = vmul.f32 %v973_v11, %v8337_v38 }
 0x1fc   :  { %v931_v45 = vsel %vm930_vm7, %v8228_v20, %v927_v3  ;;  %v990_v16 = vmul.f32 %v974_v57, %v8356_v48  ;;  %v995_v63 = vadd.f32 %v8239_v26, %v8095_v13  ;;  %v950_v1 = vor.u32 1.1754944e-38, %v949_v46 }
 0x1fd   :  { %v6591_v61 = vpop.eup %6590  ;;  %v8490_v15 = vsel %vm933_vm6, %v935_v8, %v931_v45  ;;  %v965_v32 = vor.u32 1.1754944e-38, %v964_v18  ;;  %v991_v20 = vmul.f32 %v975_v14, %v8379_v30  ;;  %vm8494_vm10 = vcmp.eq.f32.partialorder %v947_v60, 8.507059e+37 }
 0x1fe   :  { %v939_v52 = vmul.f32 %v6591_v61, %v8320_v55  ;;  %vm944_vm9 = vweird.f32 %v6591_v61  ;;  %vm958_vm11 = vweird.f32 %v8323_v62  ;;  %v996_v17 = vadd.f32 %v8255_v49, %v8103_v19 }
 0x1ff   :  { %v997_v13 = vadd.f32 %v989_v10, %v8251_v6  ;;  %v6593_v26 = vpop.eup %6592  ;;  %v998_v11 = vadd.f32 %v990_v16, %v8261_v34  ;;  %v999_v57 = vadd.f32 %v991_v20, %v8265_v12  ;;  %6594 = vtanh.f32 %v995_v63  ;;  %vm945_vm14 = vmor %vm943_vm8, %vm944_vm9 }
 0x200   :  { %v1008_v38 = vsub.f32 1.0, %v8402_v22  ;;  %v940_v48 = vsub.f32 1.0, %v939_v52  ;;  %v954_v30 = vmul.f32 %v6593_v26, %v8323_v62  ;;  %vm959_vm12 = vweird.f32 %v6593_v26 }
 0x201   :  { %vm8506_vm13 = vcmp.eq.f32.partialorder %v962_v56, 8.507059e+37  ;;  %6596 = vtanh.f32 %v996_v17  ;;  %v1009_v19 = vsub.f32 1.0, %v8425_v24  ;;  %v1010_v6 = vsub.f32 1.0, %v8448_v51  ;;  %vm960_vm15 = vmor %vm958_vm11, %vm959_vm12 }
 0x202   :  { %6598 = vtanh.f32 %v997_v13  ;;  %v1011_v49 = vsub.f32 1.0, %v8466_v2  ;;  %v941_v34 = vmul.f32 %v6591_v61, %v940_v48  ;;  %v955_v12 = vsub.f32 1.0, %v954_v30 }
 0x203   :  { %6600 = vtanh.f32 %v998_v11  ;;  %v1012_v40 = vsub.f32 1.0, %v8475_v7  ;;  %v1013_v53 = vsub.f32 1.0, %v8490_v15  ;;  %v1016_v41 = vmul.f32 %v8299_v58, %v1008_v38 }
 0x204   :  { %6602 = vtanh.f32 %v999_v57  ;;  %v1017_v50 = vmul.f32 %v8308_v44, %v1009_v19  ;;  %v942_v23 = vadd.f32 %v6591_v61, %v941_v34  ;;  %v956_v35 = vmul.f32 %v6593_v26, %v955_v12 }
 0x205   :  { %v1018_v9 = vmul.f32 %v8325_v31, %v1010_v6  ;;  %v1025_v27 = vrot.slane %v7192_v28, 1  ;;  %v6595_v21 = vpop.eup %6594  ;;  %v1026_v5 = vrot.slane %v7192_v28, 2  ;;  %v1027_v47 = vrot.slane %v7192_v28, 3 }
 0x206   :  { %v1028_v46 = vrot.slane %v7192_v28, 4  ;;  %v1029_v3 = vrot.slane %v7192_v28, 5  ;;  %v946_v60 = vsel %vm945_vm14, %v6591_v61, %v942_v23  ;;  %v957_v58 = vadd.f32 %v6593_v26, %v956_v35 }
 0x207   :  { %v6597_v8 = vpop.eup %6596  ;;  %v1019_v56 = vmul.f32 %v6595_v21, %v1011_v49  ;;  %v1030_v44 = vrot.slane %v7192_v28, 6  ;;  %v951_v31 = vsel %vm8494_vm10, %v950_v1, %v946_v60  ;;  %v1031_v55 = vrot.slane %v7192_v28, 7 }
 0x208   :  { %v6599_v18 = vpop.eup %6598  ;;  %v1020_v14 = vmul.f32 %v6597_v8, %v1012_v40  ;;  %v1040_v45 = vmul.f32 %v7192_v28, %v8402_v22  ;;  %v961_v16 = vsel %vm960_vm15, %v6593_v26, %v957_v58  ;;  %v1014_v63 = vsub.f32 1.0, %v951_v31 }
 0x209   :  { %v6601_v10 = vpop.eup %6600  ;;  %v1021_v20 = vmul.f32 %v6599_v18, %v1013_v53  ;;  %v1041_v61 = vmul.f32 %v1025_v27, %v8425_v24  ;;  %v966_v17 = vsel %vm8506_vm13, %v965_v32, %v961_v16  ;;  %v1042_v1 = vmul.f32 %v1026_v5, %v8448_v51  ;;  %v14729_v16 = vld [vmem:[#allocation50_spill] sm:$0xff] }
 0x20a   :  { %v6603_v52 = vpop.eup %6602  ;;  %v1043_v0 = vmul.f32 %v1027_v47, %v8466_v2  ;;  %v1044_v62 = vmul.f32 %v1028_v46, %v8475_v7  ;;  %v1015_v13 = vsub.f32 1.0, %v966_v17  ;;  %v1022_v11 = vmul.f32 %v6601_v10, %v1014_v63  ;;  %v14730_v63 = vld [vmem:[#allocation23_spill] sm:$0xff] }
 0x20b   :  { %v1045_v22 = vmul.f32 %v1029_v3, %v8490_v15  ;;  %v1046_v57 = vmul.f32 %v1030_v44, %v951_v31  ;;  %v1047_v26 = vmul.f32 %v1031_v55, %v966_v17  ;;  %v8534_v38 = vadd.f32 %v1040_v45, %v1016_v41  ;;  %v14734_v17 = vld [vmem:[#allocation26_spill] sm:$0xff] }
 0x20c   :  { %v8536_v48 = vadd.f32 %v1041_v61, %v1017_v50  ;;  %v8538_v24 = vadd.f32 %v1042_v1, %v1018_v9  ;;  %v1023_v30 = vmul.f32 %v6603_v52, %v1015_v13  ;;  %v8540_v32 = vadd.f32 %v1043_v0, %v1019_v56  ;;  %v14732_v61 = vld [vmem:[#allocation18_spill] sm:$0xff]  ;;  %v14735_v1 = vld [vmem:[#allocation21_spill] sm:$0xff] }
 0x20d   :  { %14721 = vst [vmem:[#allocation62_spill] sm:$0xff] %v8534_v38  ;;  %v8542_v51 = vadd.f32 %v1044_v62, %v1020_v14  ;;  %v8544_v2 = vadd.f32 %v1045_v22, %v1021_v20  ;;  %v8546_v7 = vadd.f32 %v1046_v57, %v1022_v11  ;;  %v1064_v15 = vpack.c.bf16 %v8534_v38, %v8534_v38  ;;  %v14731_v20 = vld [vmem:[#allocation17_spill] sm:$0xff]  ;;  %v14733_v52 = vld [vmem:[#allocation54_spill] sm:$0xff]  ;;  %v14737_v62 = vld [vmem:[#allocation55_spill] sm:$0xff] }
 0x20e   :  { %14722 = vst [vmem:[#allocation63_spill] sm:$0xff] %v8536_v48  ;;  %v1065_v25 = vpack.c.bf16 %v8536_v48, %v8536_v48  ;;  %v1066_v19 = vpack.c.bf16 %v8538_v24, %v8538_v24  ;;  %v8558_v6 = vadd.f32 %v1047_v26, %v1023_v30  ;;  %v1067_v49 = vpack.c.bf16 %v8540_v32, %v8540_v32  ;;  %v14736_v0 = vld [vmem:[#allocation22_spill] sm:$0xff]  ;;  %v14738_v13 = vld [vmem:[#allocation29_spill] sm:$0xff]  ;;  %v14739_v11 = vld [vmem:[#allocation24_spill] sm:$0xff] }
 0x20f   :  { %14723 = vst [vmem:[#allocation64_spill] sm:$0xff] %v8538_v24  ;;  %v1068_v34 = vpack.c.bf16 %v8542_v51, %v8542_v51  ;;  %v1069_v12 = vpack.c.bf16 %v8544_v2, %v8544_v2  ;;  %v1070_v40 = vpack.c.bf16 %v8546_v7, %v8546_v7  ;;  %v1080_v23 = vunpack.c.l.b16 %v1064_v15  ;;  %v14740_v22 = vld [vmem:[#allocation25_spill] sm:$0xff]  ;;  %v14741_v57 = vld [vmem:[#allocation56_spill] sm:$0xff]  ;;  %v14742_v26 = vld [vmem:[#allocation43_spill] sm:$0xff] }
 0x210   :  { %14724 = vst [vmem:[#allocation65_spill] sm:$0xff] %v8540_v32  ;;  %v1081_v53 = vunpack.c.l.b16 %v1065_v25  ;;  %v1082_v41 = vunpack.c.l.b16 %v1066_v19  ;;  %v1071_v50 = vpack.c.bf16 %v8558_v6, %v8558_v6  ;;  %v1083_v35 = vunpack.c.l.b16 %v1067_v49  ;;  %v14743_v30 = vld [vmem:[#allocation27_spill] sm:$0xff]  ;;  %v14744_v15 = vld [vmem:[#allocation28_spill] sm:$0xff]  ;;  %v14745_v25 = vld [vmem:[#allocation57_spill] sm:$0xff] }
 0x211   :  { %14725 = vst [vmem:[#allocation66_spill] sm:$0xff] %v8542_v51  ;;  %v1084_v9 = vunpack.c.l.b16 %v1068_v34  ;;  %v1085_v28 = vunpack.c.l.b16 %v1069_v12  ;;  %vm14562_vm0 = vcmask 1041409   ;;  %v1086_v5 = vunpack.c.l.b16 %v1070_v40  ;;  %v14746_v19 = vld [vmem:[#allocation47_spill] sm:$0xff]  ;;  %v14747_v49 = vld [vmem:[#allocation30_spill] sm:$0xff] }
 0x212   :  { %14726 = vst [vmem:[#allocation67_spill] sm:$0xff] %v8544_v2  ;;  %v1088_v27 = vrot.slane %v1081_v53, 7  ;;  %v1091_v21 = vrot.slane %v1082_v41, 6  ;;  %vm14560_vm1 = vcmask 1042434   ;;  %vm14558_vm2 = vcmask 1043459   ;;  %v14748_v34 = vld [vmem:[#allocation31_spill] sm:$0xff] }
 0x213   :  { %14727 = vst [vmem:[#allocation68_spill] sm:$0xff] %v8546_v7  ;;  %v1087_v47 = vunpack.c.l.b16 %v1071_v50  ;;  %v1094_v3 = vrot.slane %v1083_v35, 5  ;;  %vm14557_vm3 = vcmask 1044484   ;;  %v1097_v60 = vrot.slane %v1084_v9, 4  ;;  %v14749_v12 = vld [vmem:[#allocation58_spill] sm:$0xff]  ;;  %v14750_v40 = vld [vmem:[#allocation51_spill] sm:$0xff] }
 0x214   :  { %1056 = vst [vmem:[%s14429_s7] sm:$0x1] %v8534_v38  ;;  %v1090_v46 = vsel %vm14562_vm0, %v1088_v27, %v1080_v23  ;;  %vm14556_vm4 = vcmask 1045509   ;;  %v1100_v56 = vrot.slane %v1085_v28, 3  ;;  %vm14553_vm5 = vcmask 1046534   ;;  %v7193_v23 = vld [vmem:[%s14425_s4] sm:$0xff] }
 0x215   :  { %14728 = vst [vmem:[#allocation69_spill] sm:$0xff] %v8558_v6  ;;  %v1093_v8 = vsel %vm14560_vm1, %v1091_v21, %v1090_v46  ;;  %v1103_v18 = vrot.slane %v1086_v5, 2  ;;  %vm14551_vm6 = vcmask 1047559   ;;  %v1106_v14 = vrot.slane %v1087_v47, 1  ;;  %v7194_v21 = vld [vmem:[%s14426_s3] sm:$0xff] }
 0x216   :  { %1057 = vst [vmem:[%s14429_s7 + $0x8] sm:$0x1] %v8536_v48  ;;  %v1096_v58 = vsel %vm14558_vm2, %v1094_v3, %v1093_v8 }
 0x217   :  { %1058 = vst [vmem:[%s14429_s7 + $0x10] sm:$0x1] %v8538_v24  ;;  %v1099_v44 = vsel %vm14557_vm3, %v1097_v60, %v1096_v58 }
 0x218   :  { %1059 = vst [vmem:[%s14429_s7 + $0x18] sm:$0x1] %v8540_v32  ;;  %v1102_v31 = vsel %vm14556_vm4, %v1100_v56, %v1099_v44  ;;  %v14751_v44 = vld [vmem:[#allocation32_spill] sm:$0xff] }
 0x219   :  { %1060 = vst [vmem:[%s14429_s7 + $0x20] sm:$0x1] %v8542_v51  ;;  %v1105_v55 = vsel %vm14553_vm5, %v1103_v18, %v1102_v31  ;;  %v14752_v18 = vld [vmem:[#allocation33_spill] sm:$0xff]  ;;  %v14753_v31 = vld [vmem:[#allocation3_spill] sm:$0xff] }
 0x21a   :  { %1061 = vst [vmem:[%s14429_s7 + $0x28] sm:$0x1] %v8544_v2  ;;  %v1108_v45 = vsel %vm14551_vm6, %v1106_v14, %v1105_v55  ;;  %v14754_v14 = vld [vmem:[#allocation34_spill] sm:$0xff]  ;;  %v14755_v55 = vld [vmem:[#allocation35_spill] sm:$0xff] }
 0x21b   :  { %1062 = vst [vmem:[%s14429_s7 + $0x30] sm:$0x1] %v8546_v7  ;;  %v1109_v10 = vpack.c.b16 %v1108_v45, %v1108_v45  ;;  %v14756_v45 = vld [vmem:[#allocation4_spill] sm:$0xff] }
 0x21c   :  { %1063 = vst [vmem:[%s14429_s7 + $0x38] sm:$0x1] %v8558_v6 }
 0x21d   :  { %1119 = vmatmul.bf16.vlgmr.msrb.gmra.mxu3 %v1109_v10  ;;  %1132 = vmatmul.bf16.vlgmr.msra.gmra.mxu0 %v1109_v10 }
 0x21e   :  { %1145 = vmatmul.bf16.vlgmr.msra.gmra.mxu1 %v1109_v10  ;;  %1158 = vmatmul.bf16.vlgmr.msra.gmra.mxu2 %v1109_v10  ;;  %v14757_v10 = vld [vmem:[#allocation36_spill] sm:$0xff] }
 0x21f   :  { %1840 = vmatpush.bf16.msrb.mxu3 %v7334_v29  ;;  %1853 = vmatpush.bf16.msra.mxu0 %v7345_v33 }
 0x220   :  { %1866 = vmatpush.bf16.msra.mxu1 %v7621_v39  ;;  %1892 = vmatpush.bf16.msra.mxu2 %v7407_v54 }
 0x223   :  { %1841 = vmatpush.bf16.msrb.mxu3 %v7354_v36  ;;  %1854 = vmatpush.bf16.msra.mxu0 %v7357_v37 }
 0x224   :  { %1867 = vmatpush.bf16.msra.mxu1 %v7655_v4  ;;  %1893 = vmatpush.bf16.msra.mxu2 %v7422_v59 }
 0x227   :  { %1842 = vmatpush.bf16.msrb.mxu3 %v7372_v42  ;;  %1855 = vmatpush.bf16.msra.mxu0 %v7375_v43 }
 0x228   :  { %1868 = vmatpush.bf16.msra.mxu1 %v14729_v16  ;;  %1894 = vmatpush.bf16.msra.mxu2 %v14730_v63 }
 0x22b   :  { %1843 = vmatpush.bf16.msrb.mxu3 %v14731_v20  ;;  %1856 = vmatpush.bf16.msra.mxu0 %v14732_v61 }
 0x22c   :  { %1869 = vmatpush.bf16.msra.mxu1 %v14733_v52  ;;  %1895 = vmatpush.bf16.msra.mxu2 %v14734_v17  ;;  %v8761_v52 = vld [vmem:[%s14428_s0 + $0x8] sm:$0x1] }
 0x22f   :  { %1844 = vmatpush.bf16.msrb.mxu3 %v14735_v1  ;;  %1857 = vmatpush.bf16.msra.mxu0 %v14736_v0 }
 0x230   :  { %1870 = vmatpush.bf16.msra.mxu1 %v14737_v62  ;;  %1896 = vmatpush.bf16.msra.mxu2 %v14738_v13 }
 0x233   :  { %1845 = vmatpush.bf16.msrb.mxu3 %v14739_v11  ;;  %1858 = vmatpush.bf16.msra.mxu0 %v14740_v22 }
 0x234   :  { %1871 = vmatpush.bf16.msra.mxu1 %v14741_v57  ;;  %1897 = vmatpush.bf16.msra.mxu2 %v14742_v26 }
 0x237   :  { %1846 = vmatpush.bf16.msrb.mxu3 %v14743_v30  ;;  %1859 = vmatpush.bf16.msra.mxu0 %v14744_v15 }
 0x238   :  { %1872 = vmatpush.bf16.msra.mxu1 %v14745_v25  ;;  %1898 = vmatpush.bf16.msra.mxu2 %v14746_v19  ;;  %v8766_v25 = vld [vmem:[%s14428_s0 + $0x14] sm:$0x1] }
 0x23b   :  { %1847 = vmatpush.bf16.msrb.mxu3 %v14747_v49  ;;  %1860 = vmatpush.bf16.msra.mxu0 %v14748_v34 }
 0x23c   :  { %1873 = vmatpush.bf16.msra.mxu1 %v14749_v12  ;;  %1899 = vmatpush.bf16.msra.mxu2 %v14750_v40 }
 0x29a   :  { %v1133_v53 = vpop.f32.mrf.mxu0 }
 0x29b   :  { %v1146_v41 = vpop.f32.mrf.mxu1 }
 0x2a0   :  { %v1120_v50 = vpop.f32.mrf.mxu3 }
 0x2a1   :  { %v1163_v35 = vmul.f32 %v7193_v23, %v1120_v50  ;;  %v1159_v9 = vpop.f32.mrf.mxu2  ;;  %v14758_v50 = vld [vmem:[#allocation37_spill] sm:$0xff] }
 0x2a2   :  { %v1135_v28 = vpop.f32.mrf.mxu0  ;;  %v14759_v23 = vld [vmem:[#allocation5_spill] sm:$0xff] }
 0x2a3   :  { %v1148_v27 = vpop.f32.mrf.mxu1  ;;  %v1164_v5 = vadd.f32 %v7194_v21, %v1163_v35  ;;  %v14760_v35 = vld [vmem:[#allocation38_spill] sm:$0xff]  ;;  %v14761_v28 = vld [vmem:[#allocation39_spill] sm:$0xff]  ;;  %v14763_v21 = vld [vmem:[#allocation40_spill] sm:$0xff] }
 0x2a4   :  { %v14762_v27 = vld [vmem:[#allocation6_spill] sm:$0xff] }
 0x2a5   :  { %1168 = vmax.xlane.f32.xlu1 %v1164_v5 }
 0x2a8   :  { %v1122_v47 = vpop.f32.mrf.mxu3 }
 0x2a9   :  { %v1161_v46 = vpop.f32.mrf.mxu2  ;;  %v14765_v47 = vld [vmem:[#allocation7_spill] sm:$0xff] }
 0x2aa   :  { %v14766_v46 = vld [vmem:[#allocation44_spill] sm:$0xff] }
 0x318   :  { %v1169_v3 = vpop.xlane.xlu1 %1168 }
 0x319   :  { %v1170_v8 = vsub.f32 %v1164_v5, %v1169_v3  ;;  %v14764_v5 = vld [vmem:[#allocation41_spill] sm:$0xff] }
 0x31a   :  { %v14767_v3 = vld [vmem:[#allocation45_spill] sm:$0xff] }
 0x31b   :  { %v1171_v60 = vmul.f32 1.442695, %v1170_v8  ;;  %v14768_v8 = vld [vmem:[#allocation8_spill] sm:$0xff] }
 0x31d   :  { %6604 = vpow2.f32 %v1171_v60  ;;  %v14769_v60 = vld [vmem:[#allocation48_spill] sm:$0xff] }
 0x323   :  { %v6605_v58 = vpop.eup %6604 }
 0x324   :  { %1173 = vadd.xlane.f32.xlu1 %v6605_v58  ;;  %v1175_v56 = vpack.c.bf16 %v6605_v58, %v6605_v58  ;;  %v14770_v58 = vld [vmem:[#allocation49_spill] sm:$0xff] }
 0x326   :  { %1184 = vmatmul.bf16.vlgmr.msra.gmra.mxu3 %v1175_v56  ;;  %1197 = vmatmul.bf16.vlgmr.msrb.gmra.mxu0 %v1175_v56 }
 0x327   :  { %1210 = vmatmul.bf16.vlgmr.msrb.gmra.mxu1 %v1175_v56  ;;  %1905 = vmatpush.bf16.msra.mxu3 %v14751_v44  ;;  %v14771_v56 = vld [vmem:[#allocation9_spill] sm:$0xff] }
 0x328   :  { %1918 = vmatpush.bf16.msrb.mxu0 %v14752_v18  ;;  %2543 = vmatpush.bf16.msrb.mxu1 %v14753_v31 }
 0x32b   :  { %1906 = vmatpush.bf16.msra.mxu3 %v14754_v14 }
 0x32c   :  { %1919 = vmatpush.bf16.msrb.mxu0 %v14755_v55  ;;  %2544 = vmatpush.bf16.msrb.mxu1 %v14756_v45 }
 0x32f   :  { %1907 = vmatpush.bf16.msra.mxu3 %v14757_v10 }
 0x330   :  { %1920 = vmatpush.bf16.msrb.mxu0 %v14758_v50  ;;  %2545 = vmatpush.bf16.msrb.mxu1 %v14759_v23  ;;  %v8710_v23 = vld [vmem:[%s14428_s0 + $0xc] sm:$0x11]  ;;  %v8740_v50 = vld [vmem:[%s14428_s0 + $0x54] sm:$0x11] }
 0x331   :  { %v1235_v18 = vunpack.c.h.bf16 %v8710_v23  ;;  %v1253_v55 = vunpack.c.h.bf16 %v8740_v50 }
 0x333   :  { %1908 = vmatpush.bf16.msra.mxu3 %v14760_v35 }
 0x334   :  { %1921 = vmatpush.bf16.msrb.mxu0 %v14761_v28  ;;  %2546 = vmatpush.bf16.msrb.mxu1 %v14762_v27  ;;  %v14772_v28 = vld [vmem:[#allocation52_spill] sm:$0xff]  ;;  %v14773_v27 = vld [vmem:[#allocation53_spill] sm:$0xff] }
 0x337   :  { %1909 = vmatpush.bf16.msra.mxu3 %v14763_v21  ;;  %v14774_v21 = vld [vmem:[#allocation10_spill] sm:$0xff] }
 0x338   :  { %1922 = vmatpush.bf16.msrb.mxu0 %v14764_v5  ;;  %2547 = vmatpush.bf16.msrb.mxu1 %v14765_v47  ;;  %v14775_v5 = vld [vmem:[#allocation59_spill] sm:$0xff] }
 0x339   :  { %v8668_v47 = vadd.f32 %v1133_v53, %v14775_v5  ;;  %v14777_v53 = vld [vmem:[#allocation61_spill] sm:$0xff] }
 0x33a   :  { %v8681_v5 = vadd.f32 %v1159_v9, %v14777_v53  ;;  %v8705_v53 = vld [vmem:[%s14428_s0] sm:$0x11] }
 0x33b   :  { %1910 = vmatpush.bf16.msra.mxu3 %v14766_v46  ;;  %v14776_v46 = vld [vmem:[#allocation60_spill] sm:$0xff]  ;;  %v1232_v31 = vunpack.c.h.bf16 %v8705_v53 }
 0x33c   :  { %1923 = vmatpush.bf16.msrb.mxu0 %v14767_v3  ;;  %2548 = vmatpush.bf16.msrb.mxu1 %v14768_v8  ;;  %v8671_v35 = vadd.f32 %v1146_v41, %v14776_v46 }
 0x33e   :  { %v1509_v9 = vrot.slane %v8671_v35, 1  ;;  %v1510_v41 = vrot.slane %v8671_v35, 2  ;;  %v1511_v8 = vrot.slane %v8671_v35, 3  ;;  %v1513_v46 = vrot.slane %v8671_v35, 5 }
 0x33f   :  { %1911 = vmatpush.bf16.msra.mxu3 %v14769_v60  ;;  %v1512_v60 = vrot.slane %v8671_v35, 4 }
 0x340   :  { %1924 = vmatpush.bf16.msrb.mxu0 %v14770_v58  ;;  %2549 = vmatpush.bf16.msrb.mxu1 %v14771_v56  ;;  %v8715_v56 = vld [vmem:[%s14428_s0 + $0x18] sm:$0x11]  ;;  %v8735_v58 = vld [vmem:[%s14428_s0 + $0x48] sm:$0x11] }
 0x341   :  { %v1238_v44 = vunpack.c.h.bf16 %v8715_v56  ;;  %v1250_v45 = vunpack.c.h.bf16 %v8735_v58 }
 0x343   :  { %1912 = vmatpush.bf16.msra.mxu3 %v14772_v28  ;;  %v8730_v28 = vld [vmem:[%s14428_s0 + $0x3c] sm:$0x11] }
 0x344   :  { %1925 = vmatpush.bf16.msrb.mxu0 %v14773_v27  ;;  %2550 = vmatpush.bf16.msrb.mxu1 %v14774_v21  ;;  %v1508_v21 = vrot.slane %v8671_v35, 7  ;;  %v8720_v27 = vld [vmem:[%s14428_s0 + $0x24] sm:$0x11]  ;;  %v1247_v19 = vunpack.c.h.bf16 %v8730_v28 }
 0x345   :  { %v1241_v40 = vunpack.c.h.bf16 %v8720_v27 }
 0x397   :  { %v1174_v3 = vpop.xlane.xlu1 %1173 }
 0x398   :  { %6606 = vrcp.f32 %v1174_v3  ;;  %v8725_v3 = vld [vmem:[%s14428_s0 + $0x30] sm:$0x11] }
 0x399   :  { %v1244_v12 = vunpack.c.h.bf16 %v8725_v3 }
 0x39e   :  { %v8742_v10 = vpop.eup %6606 }
 0x3a3   :  { %v1198_v14 = vpop.f32.mrf.mxu0 }
 0x3a4   :  { %v1257_v34 = vmul.f32 %v8742_v10, %v1198_v14  ;;  %v8752_v49 = vpop.f32.mrf.mxu1 }
 0x3a6   :  { %v1263_v15 = vrot.slane %v1257_v34, 7  ;;  %v1266_v30 = vrot.slane %v1257_v34, 1  ;;  %v1269_v26 = vrot.slane %v1257_v34, 2  ;;  %v1272_v57 = vrot.slane %v1257_v34, 3 }
 0x3a7   :  { %v1275_v22 = vrot.slane %v1257_v34, 4  ;;  %v1278_v11 = vrot.slane %v1257_v34, 5  ;;  %v1281_v13 = vrot.slane %v1257_v34, 6  ;;  %v1311_v62 = vadd.f32 %v1257_v34, %v1235_v18 }
 0x3a8   :  { %v1308_v0 = vadd.f32 %v1263_v15, %v1232_v31  ;;  %v1314_v14 = vadd.f32 %v1266_v30, %v1238_v44  ;;  %v1317_v1 = vadd.f32 %v1269_v26, %v1241_v40  ;;  %v1320_v17 = vadd.f32 %v1272_v57, %v1244_v12  ;;  %v8772_v12 = vld [vmem:[%s14428_s0 + $0x20] sm:$0x1]  ;;  %v8777_v40 = vld [vmem:[%s14428_s0 + $0x2c] sm:$0x1] }
 0x3a9   :  { %v1323_v61 = vadd.f32 %v1275_v22, %v1247_v19  ;;  %v1326_v20 = vadd.f32 %v1278_v11, %v1250_v45  ;;  %v1329_v63 = vadd.f32 %v1281_v13, %v1253_v55  ;;  %v1524_v16 = vadd.f32 %v1311_v62, %v8671_v35  ;;  %v1185_v34 = vpop.f32.mrf.mxu3  ;;  %v8782_v62 = vld [vmem:[%s14428_s0 + $0x38] sm:$0x1]  ;;  %v8789_v13 = vld [vmem:[%s14428_s0 + $0x44] sm:$0x1] }
 0x3aa   :  { %v1523_v15 = vadd.f32 %v1508_v21, %v1308_v0  ;;  %v1525_v30 = vadd.f32 %v1509_v9, %v1314_v14  ;;  %v1526_v26 = vadd.f32 %v1510_v41, %v1317_v1  ;;  %v1527_v57 = vadd.f32 %v1511_v8, %v1320_v17 }
 0x3ab   :  { %v1528_v22 = vadd.f32 %v1512_v60, %v1323_v61  ;;  %v6361_v11 = vmul.f32 -1.442695, %v1524_v16  ;;  %v1233_v1 = vunpack.c.l.bf16 %v8761_v52  ;;  %v1236_v17 = vunpack.c.l.bf16 %v8766_v25  ;;  %v1200_v0 = vpop.f32.mrf.mxu0 }
 0x3ac   :  { %v1529_v19 = vadd.f32 %v1513_v46, %v1326_v20  ;;  %v6360_v44 = vmul.f32 -1.442695, %v1523_v15  ;;  %v6362_v18 = vmul.f32 -1.442695, %v1525_v30  ;;  %v6363_v61 = vmul.f32 -1.442695, %v1526_v26  ;;  %v1213_v16 = vpop.f32.mrf.mxu1 }
 0x3ad   :  { %6608 = vpow2.f32 %v6361_v11  ;;  %v6364_v31 = vmul.f32 -1.442695, %v1527_v57  ;;  %v1239_v55 = vunpack.c.l.bf16 %v8772_v12  ;;  %v1242_v45 = vunpack.c.l.bf16 %v8777_v40 }
 0x3ae   :  { %v14778_v21 = vrot.slane %v8671_v35, 6  ;;  %6610 = vpow2.f32 %v6360_v44  ;;  %v6365_v60 = vmul.f32 -1.442695, %v1528_v22  ;;  %v1231_v20 = vunpack.c.l.bf16 %v8705_v53 }
 0x3af   :  { %6612 = vpow2.f32 %v6362_v18  ;;  %v1234_v46 = vunpack.c.l.bf16 %v8710_v23  ;;  %v6366_v14 = vmul.f32 -1.442695, %v1529_v19  ;;  %v1237_v15 = vunpack.c.l.bf16 %v8715_v56 }
 0x3b0   :  { %v1530_v8 = vadd.f32 %v14778_v21, %v1329_v63  ;;  %6614 = vpow2.f32 %v6363_v61  ;;  %v1240_v30 = vunpack.c.l.bf16 %v8720_v27  ;;  %v1243_v63 = vunpack.c.l.bf16 %v8725_v3 }
 0x3b1   :  { %6616 = vpow2.f32 %v6364_v31  ;;  %v1246_v35 = vunpack.c.l.bf16 %v8730_v28  ;;  %v1256_v26 = vmul.f32 %v8742_v10, %v1185_v34  ;;  %v1187_v57 = vpop.f32.mrf.mxu3  ;;  %v1249_v23 = vunpack.c.l.bf16 %v8735_v58 }
 0x3b2   :  { %6618 = vpow2.f32 %v6365_v60  ;;  %v6367_v53 = vmul.f32 -1.442695, %v1530_v8  ;;  %v1252_v22 = vunpack.c.l.bf16 %v8740_v50  ;;  %v8808_v56 = vmul.f32 %v8742_v10, %v8752_v49 }
 0x3b3   :  { %v6609_v11 = vpop.eup %6608  ;;  %v1262_v27 = vrot.slane %v1256_v26, 7  ;;  %v1265_v0 = vrot.slane %v1256_v26, 1  ;;  %v1268_v19 = vrot.slane %v1256_v26, 2  ;;  %6620 = vpow2.f32 %v6366_v14 }
 0x3b4   :  { %v6611_v3 = vpop.eup %6610  ;;  %v8810_v28 = vadd.f32 1.0, %v6609_v11  ;;  %v1271_v34 = vrot.slane %v1256_v26, 3  ;;  %v1274_v44 = vrot.slane %v1256_v26, 4  ;;  %v1277_v58 = vrot.slane %v1256_v26, 5 }
 0x3b5   :  { %v6613_v18 = vpop.eup %6612  ;;  %v8812_v61 = vadd.f32 1.0, %v6611_v3  ;;  %v1280_v16 = vrot.slane %v1256_v26, 6  ;;  %v1307_v50 = vadd.f32 %v1262_v27, %v1231_v20  ;;  %6622 = vpow2.f32 %v6367_v53  ;;  %v1228_v53 = vld [vmem:[%s14428_s0 + $0x50] sm:$0x1] }
 0x3b6   :  { %v6615_v31 = vpop.eup %6614  ;;  %v8814_v21 = vadd.f32 1.0, %v6613_v18  ;;  %v1310_v49 = vadd.f32 %v1256_v26, %v1234_v46  ;;  %v1313_v10 = vadd.f32 %v1265_v0, %v1237_v15  ;;  %6624 = vrcp.f32 %v8810_v28 }
 0x3b7   :  { %v6617_v8 = vpop.eup %6616  ;;  %v8816_v60 = vadd.f32 1.0, %v6615_v31  ;;  %v1316_v14 = vadd.f32 %v1268_v19, %v1240_v30  ;;  %v1319_v57 = vadd.f32 %v1271_v34, %v1243_v63  ;;  %6626 = vrcp.f32 %v8812_v61 }
 0x3b8   :  { %v6619_v11 = vpop.eup %6618  ;;  %v8819_v9 = vadd.f32 1.0, %v6617_v8  ;;  %v1322_v3 = vadd.f32 %v1274_v44, %v1246_v35  ;;  %v1325_v20 = vadd.f32 %v1277_v58, %v1249_v23  ;;  %6628 = vrcp.f32 %v8814_v21 }
 0x3b9   :  { %v8825_v46 = vadd.f32 1.0, %v6619_v11  ;;  %v1328_v15 = vadd.f32 %v1280_v16, %v1252_v22  ;;  %v14779_v26 = vrot.slane %v8668_v47, 7  ;;  %v6621_v63 = vpop.eup %6620  ;;  %6630 = vrcp.f32 %v8816_v60 }
 0x3ba   :  { %v1348_v27 = vadd.f32 %v1310_v49, %v8668_v47  ;;  %v14780_v35 = vrot.slane %v8668_v47, 1  ;;  %v14781_v0 = vrot.slane %v8668_v47, 2  ;;  %6632 = vrcp.f32 %v8819_v9 }
 0x3bb   :  { %v1347_v30 = vadd.f32 %v14779_v26, %v1307_v50  ;;  %v14782_v34 = vrot.slane %v8668_v47, 3  ;;  %v14783_v22 = vrot.slane %v8668_v47, 4  ;;  %v1251_v58 = vunpack.c.l.bf16 %v1228_v53  ;;  %v6623_v16 = vpop.eup %6622 }
 0x3bc   :  { %v1349_v23 = vadd.f32 %v14780_v35, %v1313_v10  ;;  %v1350_v19 = vadd.f32 %v14781_v0, %v1316_v14  ;;  %v14784_v50 = vrot.slane %v8668_v47, 5  ;;  %v6353_v8 = vmul.f32 -1.442695, %v1348_v27  ;;  %v8843_v10 = vpop.eup %6624 }
 0x3bd   :  { %v1351_v44 = vadd.f32 %v14782_v34, %v1319_v57  ;;  %v1352_v18 = vadd.f32 %v14783_v22, %v1322_v3  ;;  %v6352_v49 = vmul.f32 -1.442695, %v1347_v30  ;;  %6634 = vrcp.f32 %v8825_v46  ;;  %v8849_v0 = vpop.eup %6626  ;;  %v1230_v30 = vld [vmem:[%s14428_s0 + $0x5c] sm:$0x1] }
 0x3be   :  { %v1353_v31 = vadd.f32 %v14784_v50, %v1325_v20  ;;  %v6354_v11 = vmul.f32 -1.442695, %v1349_v23  ;;  %v1264_v14 = vrot.slane %v8808_v56, 7  ;;  %v14785_v26 = vrot.slane %v8668_v47, 6  ;;  %v8856_v27 = vpop.eup %6628 }
 0x3bf   :  { %v6355_v35 = vmul.f32 -1.442695, %v1350_v19  ;;  %v1267_v3 = vrot.slane %v8808_v56, 1  ;;  %v1270_v53 = vrot.slane %v8808_v56, 2  ;;  %6636 = vpow2.f32 %v6352_v49  ;;  %v8860_v19 = vpop.eup %6630 }
 0x3c0   :  { %v1354_v57 = vadd.f32 %v14785_v26, %v1328_v15  ;;  %v6356_v20 = vmul.f32 -1.442695, %v1351_v44  ;;  %v1273_v23 = vrot.slane %v8808_v56, 3  ;;  %v1276_v47 = vrot.slane %v8808_v56, 4  ;;  %v8865_v50 = vpop.eup %6632 }
 0x3c1   :  { %6638 = vpow2.f32 %v6353_v8  ;;  %v6357_v15 = vmul.f32 -1.442695, %v1352_v18  ;;  %v1279_v34 = vrot.slane %v8808_v56, 5  ;;  %v6358_v22 = vmul.f32 -1.442695, %v1353_v31 }
 0x3c2   :  { %6640 = vpow2.f32 %v6354_v11  ;;  %v1579_v44 = vmul.f32 %v8843_v10, %v8810_v28  ;;  %v6359_v49 = vmul.f32 -1.442695, %v1354_v57  ;;  %v1254_v26 = vunpack.c.l.bf16 %v1230_v30 }
 0x3c3   :  { %6642 = vpow2.f32 %v6355_v35  ;;  %v1282_v41 = vrot.slane %v8808_v56, 6  ;;  %v8870_v8 = vadd.f32 %v1264_v14, %v1233_v1  ;;  %v8875_v18 = vadd.f32 %v8808_v56, %v1236_v17  ;;  %v8881_v11 = vpop.eup %6634 }
 0x3c4   :  { %v8879_v31 = vadd.f32 %v1267_v3, %v1239_v55  ;;  %6644 = vpow2.f32 %v6356_v20  ;;  %v8885_v57 = vadd.f32 %v1270_v53, %v1242_v45  ;;  %v1564_v52 = vmul.f32 %v8849_v0, %v8812_v61 }
 0x3c5   :  { %6646 = vpow2.f32 %v6357_v15  ;;  %v1580_v1 = vsub.f32 1.0, %v1579_v44  ;;  %v6637_v25 = vpop.eup %6636  ;;  %v14786_v17 = vunpack.c.l.bf16 %v8782_v62  ;;  %v14787_v12 = vunpack.c.l.bf16 %v8789_v13 }
 0x3c6   :  { %6648 = vpow2.f32 %v6358_v22  ;;  %v8897_v14 = vadd.f32 %v1279_v34, %v1251_v58  ;;  %v8899_v45 = vadd.f32 1.0, %v6637_v25  ;;  %v8901_v35 = vadd.f32 %v1282_v41, %v1254_v26 }
 0x3c7   :  { %v8891_v56 = vadd.f32 %v1273_v23, %v14786_v17  ;;  %v8895_v55 = vadd.f32 %v1276_v47, %v14787_v12  ;;  %v6639_v40 = vpop.eup %6638  ;;  %6650 = vpow2.f32 %v6359_v49  ;;  %v1574_v3 = vand.u32 2147483648, %v8812_v61 }
 0x3c8   :  { %14788 = vst [vmem:[#allocation70_spill] sm:$0xff] %v8901_v35  ;;  %v6641_v53 = vpop.eup %6640  ;;  %v8904_v20 = vadd.f32 1.0, %v6639_v40  ;;  %v8906_v62 = vadd.f32 1.0, %v6621_v63  ;;  %v8908_v30 = vadd.f32 1.0, %v6623_v16  ;;  %6652 = vrcp.f32 %v8899_v45 }
 0x3c9   :  { %v6643_v23 = vpop.eup %6642  ;;  %v8911_v58 = vadd.f32 1.0, %v6641_v53  ;;  %v1565_v47 = vsub.f32 1.0, %v1564_v52  ;;  %v1581_v41 = vmul.f32 %v8843_v10, %v1580_v1  ;;  %v1589_v63 = vand.u32 2147483648, %v8810_v28 }
 0x3ca   :  { %v6645_v15 = vpop.eup %6644  ;;  %v8915_v34 = vadd.f32 1.0, %v6643_v23  ;;  %6654 = vrcp.f32 %v8904_v20  ;;  %v8921_v16 = vmul.f32 %v8856_v27, %v8814_v21  ;;  %v8926_v49 = vor.u32 1.1754944e-38, %v1574_v3 }
 0x3cb   :  { %v6647_v22 = vpop.eup %6646  ;;  %v8923_v44 = vadd.f32 1.0, %v6645_v15  ;;  %6656 = vrcp.f32 %v8911_v58  ;;  %v1398_v25 = vand.u32 2147483648, %v8899_v45  ;;  %v1413_v17 = vand.u32 2147483648, %v8904_v20 }
 0x3cc   :  { %v6649_v52 = vpop.eup %6648  ;;  %v8929_v1 = vadd.f32 1.0, %v6647_v22  ;;  %6658 = vrcp.f32 %v8915_v34  ;;  %v8938_v53 = vmul.f32 %v8849_v0, %v1565_v47  ;;  %v8941_v3 = vadd.f32 %v8843_v10, %v1581_v41 }
 0x3cd   :  { %v6651_v12 = vpop.eup %6650  ;;  %v8934_v40 = vadd.f32 1.0, %v6649_v52  ;;  %6660 = vrcp.f32 %v8923_v44  ;;  %vm1392_vm7 = vweird.f32 %v8899_v45  ;;  %v8945_v23 = vor.u32 1.1754944e-38, %v1589_v63 }
 0x3ce   :  { %6662 = vrcp.f32 %v8929_v1  ;;  %v8948_v22 = vpop.eup %6652  ;;  %v8950_v52 = vadd.f32 1.0, %v6651_v12  ;;  %v1396_v13 = vand.u32 2147483647, %v8899_v45  ;;  %vm1407_vm8 = vweird.f32 %v8904_v20 }
 0x3cf   :  { %v1411_v47 = vand.u32 2147483647, %v8904_v20  ;;  %v1388_v26 = vmul.f32 %v8948_v22, %v8899_v45  ;;  %v8959_v43 = vor.u32 1.1754944e-38, %v1398_v25  ;;  %v8961_v63 = vor.u32 1.1754944e-38, %v1413_v17 }
 0x3d0   :  { %v8955_v41 = vpop.eup %6654  ;;  %vm1422_vm9 = vweird.f32 %v8911_v58  ;;  %6664 = vrcp.f32 %v8934_v40  ;;  %v1426_v42 = vand.u32 2147483647, %v8911_v58  ;;  %v1428_v59 = vand.u32 2147483648, %v8911_v58 }
 0x3d1   :  { %v8964_v15 = vpop.eup %6656  ;;  %v1403_v12 = vmul.f32 %v8955_v41, %v8904_v20  ;;  %v1389_v37 = vsub.f32 1.0, %v1388_v26  ;;  %vm1437_vm10 = vweird.f32 %v8915_v34  ;;  %v1441_v17 = vand.u32 2147483647, %v8915_v34 }
 0x3d2   :  { %v8971_v4 = vpop.eup %6658  ;;  %v1418_v25 = vmul.f32 %v8964_v15, %v8911_v58  ;;  %6666 = vrcp.f32 %v8950_v52  ;;  %vm1393_vm11 = vweird.f32 %v8948_v22  ;;  %vm1408_vm12 = vweird.f32 %v8955_v41 }
 0x3d3   :  { %v8977_v36 = vpop.eup %6660  ;;  %v1404_v54 = vsub.f32 1.0, %v1403_v12  ;;  %v1433_v39 = vmul.f32 %v8971_v4, %v8915_v34  ;;  %v1390_v26 = vmul.f32 %v8948_v22, %v1389_v37  ;;  %vm8989_vm13 = vcmp.eq.f32.partialorder %v1396_v13, 8.507059e+37  ;;  %vm9014_vm4 = vmor %vm1392_vm7, %vm1393_vm11 }
 0x3d4   :  { %v8983_v33 = vpop.eup %6662  ;;  %v1419_v29 = vsub.f32 1.0, %v1418_v25  ;;  %v1448_v6 = vmul.f32 %v8977_v36, %v8923_v44  ;;  %vm8994_vm14 = vcmp.eq.f32.partialorder %v1411_v47, 8.507059e+37  ;;  %vm1423_vm15 = vweird.f32 %v8964_v15  ;;  %vm9027_vm2 = vmor %vm1407_vm8, %vm1408_vm12 }
 0x3d5   :  { %v1405_v12 = vmul.f32 %v8955_v41, %v1404_v54  ;;  %vm8999_vm6 = vcmp.eq.f32.partialorder %v1426_v42, 8.507059e+37  ;;  %v1434_v25 = vsub.f32 1.0, %v1433_v39  ;;  %v1443_v51 = vand.u32 2147483648, %v8915_v34  ;;  %vm9041_vm1 = vmor %vm1422_vm9, %vm1423_vm15 }
 0x3d6   :  { %v1420_v13 = vmul.f32 %v8964_v15, %v1419_v29  ;;  %vm1438_vm5 = vweird.f32 %v8971_v4  ;;  %v1449_v32 = vsub.f32 1.0, %v1448_v6  ;;  %v1456_v54 = vand.u32 2147483647, %v8923_v44  ;;  %v9007_v47 = vpop.eup %6664 }
 0x3d7   :  { %v1391_v24 = vadd.f32 %v8948_v22, %v1390_v26  ;;  %v1406_v39 = vadd.f32 %v8955_v41, %v1405_v12  ;;  %v1435_v29 = vmul.f32 %v8971_v4, %v1434_v25  ;;  %v1463_v6 = vmul.f32 %v8983_v33, %v8929_v1  ;;  %vm9056_vm0 = vmor %vm1437_vm10, %vm1438_vm5 }
 0x3d8   :  { %vm1569_vm3 = vweird.f32 %v8849_v0  ;;  %v1421_v45 = vadd.f32 %v8964_v15, %v1420_v13  ;;  %v1429_v48 = vor.u32 1.1754944e-38, %v1428_v59  ;;  %v1450_v12 = vmul.f32 %v8977_v36, %v1449_v32  ;;  %v9035_v25 = vpop.eup %6666 }
 0x3d9   :  { %vm1453_vm7 = vweird.f32 %v8977_v36  ;;  %v1436_v38 = vadd.f32 %v8971_v4, %v1435_v29  ;;  %vm9046_vm8 = vcmp.eq.f32.partialorder %v1441_v17, 8.507059e+37  ;;  %v1458_v32 = vand.u32 2147483648, %v8923_v44 }
 0x3da   :  { %v1464_v13 = vsub.f32 1.0, %v1463_v6  ;;  %vm1568_vm12 = vweird.f32 %v8812_v61  ;;  %v1444_v35 = vor.u32 1.1754944e-38, %v1443_v51  ;;  %v1451_v29 = vadd.f32 %v8977_v36, %v1450_v12 }
 0x3db   :  { %vm1452_vm9 = vweird.f32 %v8923_v44  ;;  %vm9062_vm15 = vcmp.eq.f32.partialorder %v1456_v54, 8.507059e+37  ;;  %vm1583_vm11 = vweird.f32 %v8810_v28  ;;  %v1395_v6 = vsel %vm9014_vm4, %v8948_v22, %v1391_v24 }
 0x3dc   :  { %v1410_v34 = vsel %vm9027_vm2, %v8955_v41, %v1406_v39  ;;  %v1425_v51 = vsel %vm9041_vm1, %v8964_v15, %v1421_v45  ;;  %vm9078_vm5 = vmor %vm1452_vm9, %vm1453_vm7  ;;  %v1465_v54 = vmul.f32 %v8983_v33, %v1464_v13  ;;  %v1440_v24 = vsel %vm9056_vm0, %v8971_v4, %v1436_v38 }
 0x3dd   :  { %v1455_v22 = vsel %vm9078_vm5, %v8977_v36, %v1451_v29  ;;  %v1471_v41 = vand.u32 2147483647, %v8929_v1  ;;  %v1473_v15 = vand.u32 2147483648, %v8929_v1  ;;  %v1459_v42 = vor.u32 1.1754944e-38, %v1458_v32  ;;  %vm9156_vm9 = vmor %vm1568_vm12, %vm1569_vm3 }
 0x3de   :  { %v1466_v39 = vadd.f32 %v8983_v33, %v1465_v54  ;;  %vm1468_vm1 = vweird.f32 %v8983_v33  ;;  %v1478_v26 = vmul.f32 %v9007_v47, %v8934_v40  ;;  %v9098_v4 = vsel %vm8989_vm13, %v8959_v43, %v1395_v6 }
 0x3df   :  { %v9103_v36 = vsel %vm8994_vm14, %v8961_v63, %v1410_v34  ;;  %v9107_v38 = vsel %vm8999_vm6, %v1429_v48, %v1425_v51  ;;  %vm1467_vm0 = vweird.f32 %v8929_v1  ;;  %v14809_v45 = vand.u32 2147483647, %v8810_v28 }
 0x3e0   :  { %v9118_v43 = vsel %vm9046_vm8, %v1444_v35, %v1440_v24  ;;  %v9122_v2 = vsel %vm9062_vm15, %v1459_v42, %v1455_v22  ;;  %v1479_v7 = vsub.f32 1.0, %v1478_v26  ;;  %v1493_v48 = vmul.f32 %v9035_v25, %v8950_v52  ;;  %vm9133_vm10 = vmor %vm1467_vm0, %vm1468_vm1 }
 0x3e1   :  { %vm9112_vm2 = vcmp.eq.f32.partialorder %v14809_v45, 8.507059e+37  ;;  %v14812_v1 = vand.u32 2147483647, %v8812_v61  ;;  %vm1598_vm6 = vweird.f32 %v8814_v21  ;;  %vm9137_vm13 = vcmp.eq.f32.partialorder %v1471_v41, 8.507059e+37 }
 0x3e2   :  { %v1474_v20 = vor.u32 1.1754944e-38, %v1473_v15  ;;  %vm1482_vm14 = vweird.f32 %v8934_v40  ;;  %vm1483_vm7 = vweird.f32 %v9007_v47  ;;  %v1470_v59 = vsel %vm9133_vm10, %v8983_v33, %v1466_v39 }
 0x3e3   :  { %vm9128_vm4 = vcmp.eq.f32.partialorder %v14812_v1, 8.507059e+37  ;;  %v1480_v32 = vmul.f32 %v9007_v47, %v1479_v7  ;;  %v1486_v13 = vand.u32 2147483647, %v8934_v40  ;;  %v1494_v58 = vsub.f32 1.0, %v1493_v48  ;;  %vm9179_vm12 = vmor %vm1482_vm14, %vm1483_vm7 }
 0x3e4   :  { %v1488_v29 = vand.u32 2147483648, %v8934_v40  ;;  %vm1497_vm8 = vweird.f32 %v8950_v52  ;;  %v1567_v17 = vadd.f32 %v8849_v0, %v8938_v53  ;;  %v14821_v33 = vsub.f32 1.0, %v8921_v16 }
 0x3e5   :  { %v1481_v51 = vadd.f32 %v9007_v47, %v1480_v32  ;;  %v1495_v44 = vmul.f32 %v9035_v25, %v1494_v58  ;;  %vm1498_vm15 = vweird.f32 %v9035_v25  ;;  %v1501_v53 = vand.u32 2147483647, %v8950_v52 }
 0x3e6   :  { %v1596_v34 = vmul.f32 %v8856_v27, %v14821_v33  ;;  %vm14822_vm5 = vweird.f32 %v8843_v10  ;;  %v1503_v54 = vand.u32 2147483648, %v8950_v52  ;;  %v1571_v24 = vsel %vm9156_vm9, %v8849_v0, %v1567_v17  ;;  %vm9206_vm0 = vmor %vm1497_vm8, %vm1498_vm15  ;;  %v14848_v17 = vld [vmem:[#allocation70_spill] sm:$0xff] }
 0x3e7   :  { %vm9171_vm3 = vmor %vm1583_vm11, %vm14822_vm5  ;;  %v1485_v40 = vsel %vm9179_vm12, %v9007_v47, %v1481_v51  ;;  %v1496_v41 = vadd.f32 %v9035_v25, %v1495_v44  ;;  %vm1599_vm11 = vweird.f32 %v8856_v27  ;;  %v1602_v15 = vand.u32 2147483647, %v8814_v21 }
 0x3e8   :  { %v1586_v28 = vsel %vm9171_vm3, %v8843_v10, %v8941_v3  ;;  %v1597_v22 = vadd.f32 %v8856_v27, %v1596_v34  ;;  %v9200_v0 = vsel %vm9137_vm13, %v1474_v20, %v1470_v59  ;;  %vm1487_vm1 = vcmp.eq.f32.partialorder %v1486_v13, 8.507059e+37  ;;  %vm9230_vm13 = vmor %vm1598_vm6, %vm1599_vm11 }
 0x3e9   :  { %v1489_v42 = vor.u32 1.1754944e-38, %v1488_v29  ;;  %v1609_v3 = vmul.f32 %v8860_v19, %v8816_v60  ;;  %v1500_v47 = vsel %vm9206_vm0, %v9035_v25, %v1496_v41  ;;  %vm1502_vm10 = vcmp.eq.f32.partialorder %v1501_v53, 8.507059e+37 }
 0x3ea   :  { %v9218_v39 = vsel %vm9112_vm2, %v8945_v23, %v1586_v28  ;;  %v1604_v26 = vand.u32 2147483648, %v8814_v21  ;;  %v1504_v45 = vor.u32 1.1754944e-38, %v1503_v54  ;;  %v9226_v7 = vsel %vm9128_vm4, %v8926_v49, %v1571_v24 }
 0x3eb   :  { %v9221_v52 = vsel %vm1487_vm1, %v1489_v42, %v1485_v40  ;;  %v1610_v48 = vsub.f32 1.0, %v1609_v3  ;;  %v1601_v23 = vsel %vm9230_vm13, %v8856_v27, %v1597_v22  ;;  %vm1603_vm2 = vcmp.eq.f32.partialorder %v1602_v15, 8.507059e+37 }
 0x3ec   :  { %vm1613_vm14 = vweird.f32 %v8816_v60  ;;  %v1624_v12 = vmul.f32 %v8865_v50, %v8819_v9  ;;  %v1505_v1 = vsel %vm1502_vm10, %v1504_v45, %v1500_v47  ;;  %vm1614_vm4 = vweird.f32 %v8860_v19 }
 0x3ed   :  { %v1611_v49 = vmul.f32 %v8860_v19, %v1610_v48  ;;  %v1617_v21 = vand.u32 2147483647, %v8816_v60  ;;  %v1605_v63 = vor.u32 1.1754944e-38, %v1604_v26  ;;  %v1619_v37 = vand.u32 2147483648, %v8816_v60  ;;  %vm9256_vm8 = vmor %vm1613_vm14, %vm1614_vm4 }
 0x3ee   :  { %v1625_v35 = vsub.f32 1.0, %v1624_v12  ;;  %v1639_v27 = vmul.f32 %v8881_v11, %v8825_v46  ;;  %vm1628_vm6 = vweird.f32 %v8819_v9  ;;  %vm1629_vm7 = vweird.f32 %v8865_v50 }
 0x3ef   :  { %v1612_v20 = vadd.f32 %v8860_v19, %v1611_v49  ;;  %v1632_v59 = vand.u32 2147483647, %v8819_v9  ;;  %v9250_v32 = vsel %vm1603_vm2, %v1605_v63, %v1601_v23  ;;  %v1634_v58 = vand.u32 2147483648, %v8819_v9  ;;  %vm1630_vm15 = vmor %vm1628_vm6, %vm1629_vm7 }
 0x3f0   :  { %v1626_v13 = vmul.f32 %v8865_v50, %v1625_v35  ;;  %v1640_v29 = vsub.f32 1.0, %v1639_v27  ;;  %vm9260_vm9 = vcmp.eq.f32.partialorder %v1617_v21, 8.507059e+37  ;;  %v1647_v33 = vand.u32 2147483647, %v8825_v46 }
 0x3f1   :  { %v1649_v34 = vand.u32 2147483648, %v8825_v46  ;;  %6668 = vrcp.f32 %v8906_v62  ;;  %v1616_v51 = vsel %vm9256_vm8, %v8860_v19, %v1612_v20  ;;  %v1620_v44 = vor.u32 1.1754944e-38, %v1619_v37 }
 0x3f2   :  { %v1627_v60 = vadd.f32 %v8865_v50, %v1626_v13  ;;  %v1641_v53 = vmul.f32 %v8881_v11, %v1640_v29  ;;  %vm1633_vm5 = vcmp.eq.f32.partialorder %v1632_v59, 8.507059e+37  ;;  %vm1644_vm3 = vweird.f32 %v8881_v11 }
 0x3f3   :  { %v1664_v61 = vand.u32 2147483648, %v8906_v62  ;;  %6670 = vrcp.f32 %v8908_v30  ;;  %v1635_v19 = vor.u32 1.1754944e-38, %v1634_v58  ;;  %v1662_v24 = vand.u32 2147483647, %v8906_v62 }
 0x3f4   :  { %v1631_v16 = vsel %vm1630_vm15, %v8865_v50, %v1627_v60  ;;  %v1642_v54 = vadd.f32 %v8881_v11, %v1641_v53  ;;  %v9284_v28 = vsel %vm9260_vm9, %v1620_v44, %v1616_v51  ;;  %vm1643_vm12 = vweird.f32 %v8825_v46  ;;  %v14853_v53 = vld [vmem:[#allocation63_spill] sm:$0xff] }
 0x3f5   :  { %vm9287_vm11 = vcmp.eq.f32.partialorder %v1647_v33, 8.507059e+37  ;;  %v1650_v22 = vor.u32 1.1754944e-38, %v1649_v34  ;;  %v9291_v40 = vsel %vm1633_vm5, %v1635_v19, %v1631_v16  ;;  %vm1658_vm1 = vweird.f32 %v8906_v62  ;;  %vm9302_vm0 = vmor %vm1643_vm12, %vm1644_vm3  ;;  %v14851_v33 = vld [vmem:[#allocation62_spill] sm:$0xff]  ;;  %v14855_v19 = vld [vmem:[#allocation64_spill] sm:$0xff] }
 0x3f6   :  { %v1677_v50 = vand.u32 2147483647, %v8908_v30  ;;  %v14837_v41 = vrot.slane %v8681_v5, 7  ;;  %v1700_v42 = vmul.f32 %v9103_v36, %v8681_v5  ;;  %v1665_v3 = vor.u32 1.1754944e-38, %v1664_v61 }
 0x3f7   :  { %v6669_v10 = vpop.eup %6668  ;;  %v1679_v47 = vand.u32 2147483648, %v8908_v30  ;;  %v14840_v26 = vrot.slane %v8681_v5, 1  ;;  %v1646_v36 = vsel %vm9302_vm0, %v8881_v11, %v1642_v54  ;;  %vm9317_vm10 = vcmp.eq.f32.partialorder %v1662_v24, 8.507059e+37 }
 0x3f8   :  { %v1699_v15 = vmul.f32 %v14837_v41, %v9098_v4  ;;  %v14841_v4 = vrot.slane %v8681_v5, 2  ;;  %v1654_v48 = vmul.f32 %v6669_v10, %v8906_v62  ;;  %vm1673_vm13 = vweird.f32 %v8908_v30 }
 0x3f9   :  { %v1701_v45 = vmul.f32 %v14840_v26, %v9107_v38  ;;  %v14844_v12 = vrot.slane %v8681_v5, 3  ;;  %v14845_v49 = vrot.slane %v8681_v5, 4  ;;  %v6671_v21 = vpop.eup %6670  ;;  %v14846_v11 = vrot.slane %v8681_v5, 5 }
 0x3fa   :  { %v1702_v25 = vmul.f32 %v14841_v4, %v9118_v43  ;;  %v14847_v37 = vrot.slane %v8681_v5, 6  ;;  %v1707_v27 = vadd.f32 %v1699_v15, %v8870_v8  ;;  %v1708_v20 = vadd.f32 %v1700_v42, %v8875_v18  ;;  %v14859_v15 = vld [vmem:[#allocation66_spill] sm:$0xff] }
 0x3fb   :  { %v1703_v38 = vmul.f32 %v14844_v12, %v9122_v2  ;;  %v1704_v43 = vmul.f32 %v14845_v49, %v9200_v0  ;;  %v1705_v63 = vmul.f32 %v14846_v11, %v9221_v52  ;;  %v1655_v59 = vsub.f32 1.0, %v1654_v48  ;;  %v14863_v48 = vld [vmem:[#allocation68_spill] sm:$0xff]  ;;  %v14865_v12 = vld [vmem:[#allocation69_spill] sm:$0xff] }
 0x3fc   :  { %v1706_v35 = vmul.f32 %v14847_v37, %v1505_v1  ;;  %vm1659_vm2 = vweird.f32 %v6669_v10  ;;  %v1669_v2 = vmul.f32 %v6671_v21, %v8908_v30  ;;  %v1709_v13 = vadd.f32 %v1701_v45, %v8879_v31 }
 0x3fd   :  { %v1710_v0 = vadd.f32 %v1702_v25, %v8885_v57  ;;  %v1711_v58 = vadd.f32 %v1703_v38, %v8891_v56  ;;  %v1712_v29 = vadd.f32 %v1704_v43, %v8895_v55  ;;  %v1713_v52 = vadd.f32 %v1705_v63, %v8897_v14  ;;  %vm1660_vm6 = vmor %vm1658_vm1, %vm1659_vm2 }
 0x3fe   :  { %v1656_v5 = vmul.f32 %v6669_v10, %v1655_v59  ;;  %v1670_v1 = vsub.f32 1.0, %v1669_v2  ;;  %v1714_v8 = vadd.f32 %v1706_v35, %v14848_v17  ;;  %6672 = vtanh.f32 %v1707_v27 }
 0x3ff   :  { %v1651_v18 = vsel %vm9287_vm11, %v1650_v22, %v1646_v36  ;;  %vm9344_vm14 = vcmp.eq.f32.partialorder %v1677_v50, 8.507059e+37  ;;  %v1680_v31 = vor.u32 1.1754944e-38, %v1679_v47  ;;  %6674 = vtanh.f32 %v1708_v20  ;;  %v14861_v47 = vld [vmem:[#allocation67_spill] sm:$0xff] }
 0x400   :  { %v1657_v57 = vadd.f32 %v6669_v10, %v1656_v5  ;;  %v1671_v56 = vmul.f32 %v6671_v21, %v1670_v1  ;;  %vm1674_vm4 = vweird.f32 %v6671_v21  ;;  %6676 = vtanh.f32 %v1709_v13 }
 0x401   :  { %6678 = vtanh.f32 %v1710_v0  ;;  %v1723_v55 = vsub.f32 1.0, %v9226_v7  ;;  %v1724_v14 = vsub.f32 1.0, %v9218_v39  ;;  %v14852_v34 = vrot.slane %v14851_v33, 7  ;;  %vm1675_vm7 = vmor %vm1673_vm13, %vm1674_vm4 }
 0x402   :  { %v1661_v44 = vsel %vm1660_vm6, %v6669_v10, %v1657_v57  ;;  %v1672_v60 = vadd.f32 %v6671_v21, %v1671_v56  ;;  %6680 = vtanh.f32 %v1711_v58  ;;  %v14854_v61 = vrot.slane %v14853_v53, 7 }
 0x403   :  { %v1763_v51 = vmul.f32 %v14852_v34, %v9226_v7  ;;  %v1666_v62 = vsel %vm9317_vm10, %v1665_v3, %v1661_v44  ;;  %6682 = vtanh.f32 %v1712_v29  ;;  %v14856_v54 = vrot.slane %v14855_v19, 7  ;;  %v14857_v7 = vld [vmem:[#allocation65_spill] sm:$0xff] }
 0x404   :  { %v1764_v16 = vmul.f32 %v14854_v61, %v9218_v39  ;;  %v14858_v9 = vrot.slane %v14857_v7, 7  ;;  %v6673_v50 = vpop.eup %6672  ;;  %v1676_v41 = vsel %vm1675_vm7, %v6671_v21, %v1672_v60  ;;  %6684 = vtanh.f32 %v1713_v52 }
 0x405   :  { %v1765_v24 = vmul.f32 %v14856_v54, %v9250_v32  ;;  %v1725_v39 = vsub.f32 1.0, %v9250_v32  ;;  %v14860_v42 = vrot.slane %v14859_v15, 7  ;;  %v6675_v30 = vpop.eup %6674  ;;  %v1681_v46 = vsel %vm9344_vm14, %v1680_v31, %v1676_v41 }
 0x406   :  { %v1766_v22 = vmul.f32 %v14858_v9, %v9284_v28  ;;  %6686 = vtanh.f32 %v1714_v8  ;;  %v1731_v3 = vmul.f32 %v6673_v50, %v1723_v55  ;;  %v14862_v26 = vrot.slane %v14861_v47, 7  ;;  %v6677_v4 = vpop.eup %6676 }
 0x407   :  { %v1767_v10 = vmul.f32 %v14860_v42, %v9291_v40  ;;  %v1726_v25 = vsub.f32 1.0, %v9284_v28  ;;  %v1732_v36 = vmul.f32 %v6675_v30, %v1724_v14  ;;  %v14864_v23 = vrot.slane %v14863_v48, 7  ;;  %v6679_v43 = vpop.eup %6678  ;;  %v14879_v48 = vld [vmem:[#allocation13_spill] sm:$0xff] }
 0x408   :  { %v1768_v45 = vmul.f32 %v14862_v26, %v1651_v18  ;;  %v14866_v38 = vrot.slane %v14865_v12, 7  ;;  %v1727_v21 = vsub.f32 1.0, %v9291_v40  ;;  %v1733_v11 = vmul.f32 %v6677_v4, %v1725_v39  ;;  %v6681_v37 = vpop.eup %6680  ;;  %v14876_v4 = vld [vmem:[#allocation12_spill] sm:$0xff] }
 0x409   :  { %v1769_v32 = vmul.f32 %v14864_v23, %v1666_v62  ;;  %v9383_v63 = vadd.f32 %v1763_v51, %v1731_v3  ;;  %v1728_v35 = vsub.f32 1.0, %v1651_v18  ;;  %v1734_v27 = vmul.f32 %v6679_v43, %v1726_v25  ;;  %v6683_v59 = vpop.eup %6682  ;;  %v14877_v25 = vld [vmem:[#allocation42_spill] sm:$0xff]  ;;  %v14882_v12 = vld [vmem:[#allocation20_spill] sm:$0xff] }
 0x40a   :  { %v1770_v49 = vmul.f32 %v14866_v38, %v1681_v46  ;;  %v9385_v20 = vadd.f32 %v1764_v16, %v1732_v36  ;;  %v1729_v28 = vsub.f32 1.0, %v1666_v62  ;;  %v1735_v2 = vmul.f32 %v6681_v37, %v1727_v21  ;;  %v6685_v0 = vpop.eup %6684  ;;  %v14878_v36 = vld [vmem:[#allocation19_spill] sm:$0xff]  ;;  %v14880_v23 = vld [vmem:[#allocation14_spill] sm:$0xff] }
 0x40b   :  { %v9387_v13 = vadd.f32 %v1765_v24, %v1733_v11  ;;  %1779 = vst [vmem:[%s14429_s7] sm:$0x2] %v9383_v63  ;;  %v1787_v40 = vpack.c.bf16 %v9383_v63, %v9383_v63  ;;  %v1730_v58 = vsub.f32 1.0, %v1681_v46  ;;  %v1736_v29 = vmul.f32 %v6683_v59, %v1728_v35  ;;  %v14883_v38 = vld [vmem:[#allocation15_spill] sm:$0xff]  ;;  %v14885_v43 = vld [vmem:[#allocation50_spill] sm:$0xff]  ;;  %v14887_v11 = vld [vmem:[#allocation17_spill] sm:$0xff] }
 0x40c   :  { %v9395_v52 = vadd.f32 %v1766_v22, %v1734_v27  ;;  %1780 = vst [vmem:[%s14429_s7 + $0x8] sm:$0x2] %v9385_v20  ;;  %v1788_v5 = vpack.c.bf16 %v9385_v20, %v9385_v20  ;;  %v6687_v1 = vpop.eup %6686  ;;  %v1737_v17 = vmul.f32 %v6685_v0, %v1729_v28  ;;  %v9403_v8 = vadd.f32 %v1767_v10, %v1735_v2  ;;  %v14886_v21 = vld [vmem:[#allocation23_spill] sm:$0xff]  ;;  %v14888_v37 = vld [vmem:[#allocation18_spill] sm:$0xff]  ;;  %v14891_v59 = vld [vmem:[#allocation21_spill] sm:$0xff] }
 0x40d   :  { %1781 = vst [vmem:[%s14429_s7 + $0x10] sm:$0x2] %v9387_v13  ;;  %v1789_v18 = vpack.c.bf16 %v9387_v13, %v9387_v13  ;;  %v1803_v6 = vunpack.c.l.b16 %v1787_v40  ;;  %v1738_v31 = vmul.f32 %v6687_v1, %v1730_v58  ;;  %v9411_v57 = vadd.f32 %v1768_v45, %v1736_v29  ;;  %v14875_v45 = vld [vmem:[#allocation11_spill] sm:$0xff]  ;;  %v14889_v35 = vld [vmem:[#allocation54_spill] sm:$0xff]  ;;  %v14894_v40 = vld [vmem:[#allocation29_spill] sm:$0xff] }
 0x40e   :  { %1782 = vst [vmem:[%s14429_s7 + $0x18] sm:$0x2] %v9395_v52  ;;  %v1790_v56 = vpack.c.bf16 %v9395_v52, %v9395_v52  ;;  %v1804_v55 = vunpack.c.l.b16 %v1788_v5  ;;  %v9419_v14 = vadd.f32 %v1769_v32, %v1737_v17  ;;  %v1791_v33 = vpack.c.bf16 %v9403_v8, %v9403_v8  ;;  %v14881_v32 = vld [vmem:[#allocation46_spill] sm:$0xff]  ;;  %v14893_v2 = vld [vmem:[#allocation55_spill] sm:$0xff]  ;;  %v14895_v0 = vld [vmem:[#allocation24_spill] sm:$0xff] }
 0x40f   :  { %1783 = vst [vmem:[%s14429_s7 + $0x20] sm:$0x2] %v9403_v8  ;;  %v1805_v34 = vunpack.c.l.b16 %v1789_v18  ;;  %v1811_v51 = vrot.slane %v1803_v6, 1  ;;  %v9427_v44 = vadd.f32 %v1770_v49, %v1738_v31  ;;  %v1792_v60 = vpack.c.bf16 %v9411_v57, %v9411_v57  ;;  %v14884_v49 = vld [vmem:[#allocation16_spill] sm:$0xff]  ;;  %v14890_v27 = vld [vmem:[#allocation26_spill] sm:$0xff]  ;;  %v14896_v58 = vld [vmem:[#allocation25_spill] sm:$0xff] }
 0x410   :  { %1784 = vst [vmem:[%s14429_s7 + $0x28] sm:$0x2] %v9411_v57  ;;  %v1806_v53 = vunpack.c.l.b16 %v1790_v56  ;;  %v1793_v61 = vpack.c.bf16 %v9419_v14, %v9419_v14  ;;  %v1807_v16 = vunpack.c.l.b16 %v1791_v33  ;;  %vm14868_vm8 = vcmask 1041409   ;;  %v14892_v28 = vld [vmem:[#allocation22_spill] sm:$0xff]  ;;  %v14897_v29 = vld [vmem:[#allocation56_spill] sm:$0xff]  ;;  %v14898_v5 = vld [vmem:[#allocation43_spill] sm:$0xff] }
 0x411   :  { %14867 = vst [vmem:[#allocation70_spill] sm:$0xff] %v9427_v44  ;;  %v1812_v62 = vsel %vm14868_vm8, %v1804_v55, %v1811_v51  ;;  %v1813_v19 = vrot.slane %v1805_v34, 7  ;;  %v1794_v54 = vpack.c.bf16 %v9427_v44, %v9427_v44  ;;  %v1808_v24 = vunpack.c.l.b16 %v1792_v60  ;;  %v14899_v1 = vld [vmem:[#allocation27_spill] sm:$0xff]  ;;  %v14900_v17 = vld [vmem:[#allocation28_spill] sm:$0xff]  ;;  %v14901_v18 = vld [vmem:[#allocation57_spill] sm:$0xff] }
 0x412   :  { %1785 = vst [vmem:[%s14429_s7 + $0x30] sm:$0x2] %v9419_v14  ;;  %v1815_v7 = vrot.slane %v1806_v53, 6  ;;  %v1809_v9 = vunpack.c.l.b16 %v1793_v61  ;;  %vm14869_vm9 = vcmask 1042434   ;;  %v1817_v50 = vrot.slane %v1807_v16, 5  ;;  %v14902_v6 = vld [vmem:[#allocation47_spill] sm:$0xff] }
 0x413   :  { %1786 = vst [vmem:[%s14429_s7 + $0x38] sm:$0x2] %v9427_v44  ;;  %v1814_v22 = vsel %vm14869_vm9, %v1813_v19, %v1812_v62  ;;  %v1810_v41 = vunpack.c.l.b16 %v1794_v54  ;;  %vm14870_vm15 = vcmask 1043459   ;;  %v1819_v15 = vrot.slane %v1808_v24, 4  ;;  %v14903_v31 = vld [vmem:[#allocation30_spill] sm:$0xff]  ;;  %v14904_v56 = vld [vmem:[#allocation31_spill] sm:$0xff] }
 0x414   :  { %v1816_v39 = vsel %vm14870_vm15, %v1815_v7, %v1814_v22  ;;  %vm14871_vm5 = vcmask 1044484   ;;  %v1821_v10 = vrot.slane %v1809_v9, 3  ;;  %vm14872_vm3 = vcmask 1045509   ;;  %v14905_v55 = vld [vmem:[#allocation58_spill] sm:$0xff]  ;;  %v14906_v33 = vld [vmem:[#allocation51_spill] sm:$0xff] }
 0x415   :  { %v1818_v42 = vsel %vm14871_vm5, %v1817_v50, %v1816_v39  ;;  %v1823_v46 = vrot.slane %v1810_v41, 2  ;;  %vm14873_vm12 = vcmask 1046534   ;;  %vm14874_vm11 = vcmask 1047559   ;;  %v7195_v61 = vld [vmem:[%s14425_s4] sm:$0xff] }
 0x416   :  { %v1820_v30 = vsel %vm14872_vm3, %v1819_v15, %v1818_v42  ;;  %v7196_v54 = vld [vmem:[%s14426_s3] sm:$0xff]  ;;  %v14907_v42 = vld [vmem:[#allocation32_spill] sm:$0xff] }
 0x417   :  { %v1822_v3 = vsel %vm14873_vm12, %v1821_v10, %v1820_v30  ;;  %v14908_v10 = vld [vmem:[#allocation33_spill] sm:$0xff]  ;;  %v14909_v30 = vld [vmem:[#allocation3_spill] sm:$0xff] }
 0x418   :  { %v1824_v47 = vsel %vm14874_vm11, %v1823_v46, %v1822_v3  ;;  %v14910_v46 = vld [vmem:[#allocation34_spill] sm:$0xff]  ;;  %v14911_v3 = vld [vmem:[#allocation35_spill] sm:$0xff] }
 0x419   :  { %v1825_v26 = vpack.c.b16 %v1824_v47, %v1824_v47  ;;  %v14912_v47 = vld [vmem:[#allocation4_spill] sm:$0xff] }
 0x41b   :  { %1835 = vmatmul.bf16.vlgmr.msrb.gmra.mxu2 %v1825_v26  ;;  %1848 = vmatmul.bf16.vlgmr.msrb.gmra.mxu3 %v1825_v26 }
 0x41c   :  { %1861 = vmatmul.bf16.vlgmr.msra.gmra.mxu0 %v1825_v26  ;;  %1874 = vmatmul.bf16.vlgmr.msra.gmra.mxu1 %v1825_v26  ;;  %v14913_v26 = vld [vmem:[#allocation36_spill] sm:$0xff] }
 0x41d   :  { %2556 = vmatpush.bf16.msrb.mxu2 %v14875_v45  ;;  %2569 = vmatpush.bf16.msrb.mxu3 %v14876_v4 }
 0x41e   :  { %2582 = vmatpush.bf16.msra.mxu0 %v14877_v25  ;;  %2608 = vmatpush.bf16.msra.mxu1 %v14878_v36 }
 0x421   :  { %2557 = vmatpush.bf16.msrb.mxu2 %v14879_v48  ;;  %2570 = vmatpush.bf16.msrb.mxu3 %v14880_v23 }
 0x422   :  { %2583 = vmatpush.bf16.msra.mxu0 %v14881_v32  ;;  %2609 = vmatpush.bf16.msra.mxu1 %v14882_v12 }
 0x425   :  { %2558 = vmatpush.bf16.msrb.mxu2 %v14883_v38  ;;  %2571 = vmatpush.bf16.msrb.mxu3 %v14884_v49 }
 0x426   :  { %2584 = vmatpush.bf16.msra.mxu0 %v14885_v43  ;;  %2610 = vmatpush.bf16.msra.mxu1 %v14886_v21 }
 0x429   :  { %2559 = vmatpush.bf16.msrb.mxu2 %v14887_v11  ;;  %2572 = vmatpush.bf16.msrb.mxu3 %v14888_v37 }
 0x42a   :  { %2585 = vmatpush.bf16.msra.mxu0 %v14889_v35  ;;  %2611 = vmatpush.bf16.msra.mxu1 %v14890_v27 }
 0x42d   :  { %2560 = vmatpush.bf16.msrb.mxu2 %v14891_v59  ;;  %2573 = vmatpush.bf16.msrb.mxu3 %v14892_v28 }
 0x42e   :  { %2586 = vmatpush.bf16.msra.mxu0 %v14893_v2  ;;  %2612 = vmatpush.bf16.msra.mxu1 %v14894_v40 }
 0x431   :  { %2561 = vmatpush.bf16.msrb.mxu2 %v14895_v0  ;;  %2574 = vmatpush.bf16.msrb.mxu3 %v14896_v58 }
 0x432   :  { %2587 = vmatpush.bf16.msra.mxu0 %v14897_v29  ;;  %2613 = vmatpush.bf16.msra.mxu1 %v14898_v5 }
 0x435   :  { %2562 = vmatpush.bf16.msrb.mxu2 %v14899_v1  ;;  %2575 = vmatpush.bf16.msrb.mxu3 %v14900_v17 }
 0x436   :  { %2588 = vmatpush.bf16.msra.mxu0 %v14901_v18  ;;  %2614 = vmatpush.bf16.msra.mxu1 %v14902_v6 }
 0x439   :  { %2563 = vmatpush.bf16.msrb.mxu2 %v14903_v31  ;;  %2576 = vmatpush.bf16.msrb.mxu3 %v14904_v56 }
 0x43a   :  { %2589 = vmatpush.bf16.msra.mxu0 %v14905_v55  ;;  %2615 = vmatpush.bf16.msra.mxu1 %v14906_v33  ;;  %v9641_v33 = vld [vmem:[%s14428_s0 + $0x5c] sm:$0x2] }
 0x499   :  { %v1862_v34 = vpop.f32.mrf.mxu0  ;;  %v1875_v51 = vpop.f32.mrf.mxu1 }
 0x49e   :  { %v1836_v60 = vpop.f32.mrf.mxu2  ;;  %v1849_v53 = vpop.f32.mrf.mxu3 }
 0x49f   :  { %v1879_v16 = vmul.f32 %v7195_v61, %v1836_v60  ;;  %v14914_v60 = vld [vmem:[#allocation37_spill] sm:$0xff] }
 0x4a0   :  { %v14915_v61 = vld [vmem:[#allocation5_spill] sm:$0xff] }
 0x4a1   :  { %v1864_v62 = vpop.f32.mrf.mxu0  ;;  %v1877_v19 = vpop.f32.mrf.mxu1  ;;  %v1880_v24 = vadd.f32 %v7196_v54, %v1879_v16  ;;  %v14916_v16 = vld [vmem:[#allocation38_spill] sm:$0xff]  ;;  %v14919_v54 = vld [vmem:[#allocation40_spill] sm:$0xff] }
 0x4a2   :  { %v14917_v62 = vld [vmem:[#allocation39_spill] sm:$0xff]  ;;  %v14918_v19 = vld [vmem:[#allocation6_spill] sm:$0xff] }
 0x4a3   :  { %1884 = vmax.xlane.f32.xlu2 %v1880_v24 }
 0x4a6   :  { %v1838_v7 = vpop.f32.mrf.mxu2  ;;  %v1851_v9 = vpop.f32.mrf.mxu3 }
 0x4a7   :  { %v14921_v7 = vld [vmem:[#allocation7_spill] sm:$0xff]  ;;  %v14922_v9 = vld [vmem:[#allocation44_spill] sm:$0xff] }
 0x516   :  { %v1885_v22 = vpop.xlane.xlu2 %1884 }
 0x517   :  { %v1886_v50 = vsub.f32 %v1880_v24, %v1885_v22  ;;  %v14920_v24 = vld [vmem:[#allocation41_spill] sm:$0xff] }
 0x518   :  { %v14923_v22 = vld [vmem:[#allocation45_spill] sm:$0xff] }
 0x519   :  { %v1887_v41 = vmul.f32 1.442695, %v1886_v50  ;;  %v14924_v50 = vld [vmem:[#allocation8_spill] sm:$0xff] }
 0x51b   :  { %6688 = vpow2.f32 %v1887_v41  ;;  %v14925_v41 = vld [vmem:[#allocation48_spill] sm:$0xff] }
 0x521   :  { %v6689_v39 = vpop.eup %6688 }
 0x522   :  { %1889 = vadd.xlane.f32.xlu2 %v6689_v39  ;;  %v1891_v15 = vpack.c.bf16 %v6689_v39, %v6689_v39  ;;  %v14926_v39 = vld [vmem:[#allocation49_spill] sm:$0xff] }
 0x524   :  { %1900 = vmatmul.bf16.vlgmr.msra.gmra.mxu2 %v1891_v15  ;;  %1913 = vmatmul.bf16.vlgmr.msra.gmra.mxu3 %v1891_v15 }
 0x525   :  { %1926 = vmatmul.bf16.vlgmr.msrb.gmra.mxu0 %v1891_v15  ;;  %2621 = vmatpush.bf16.msra.mxu2 %v14907_v42  ;;  %v14927_v15 = vld [vmem:[#allocation9_spill] sm:$0xff] }
 0x526   :  { %2634 = vmatpush.bf16.msra.mxu3 %v14908_v10  ;;  %3259 = vmatpush.bf16.msrb.mxu0 %v14909_v30  ;;  %v9627_v30 = vld [vmem:[%s14428_s0 + $0x44] sm:$0x2] }
 0x529   :  { %2622 = vmatpush.bf16.msra.mxu2 %v14910_v46  ;;  %v9622_v46 = vld [vmem:[%s14428_s0 + $0x54] sm:$0x22] }
 0x52a   :  { %2635 = vmatpush.bf16.msra.mxu3 %v14911_v3  ;;  %3260 = vmatpush.bf16.msrb.mxu0 %v14912_v47  ;;  %v1968_v18 = vunpack.c.l.bf16 %v9622_v46 }
 0x52d   :  { %2623 = vmatpush.bf16.msra.mxu2 %v14913_v26  ;;  %v9632_v26 = vld [vmem:[%s14428_s0 + $0x50] sm:$0x2] }
 0x52e   :  { %2636 = vmatpush.bf16.msra.mxu3 %v14914_v60  ;;  %3261 = vmatpush.bf16.msrb.mxu0 %v14915_v61  ;;  %v9613_v61 = vld [vmem:[%s14428_s0 + $0x48] sm:$0x22] }
 0x52f   :  { %v1965_v6 = vunpack.c.l.bf16 %v9613_v61 }
 0x531   :  { %2624 = vmatpush.bf16.msra.mxu2 %v14916_v16 }
 0x532   :  { %2637 = vmatpush.bf16.msra.mxu3 %v14917_v62  ;;  %3262 = vmatpush.bf16.msrb.mxu0 %v14918_v19  ;;  %v14928_v62 = vld [vmem:[#allocation52_spill] sm:$0xff]  ;;  %v14929_v19 = vld [vmem:[#allocation53_spill] sm:$0xff] }
 0x535   :  { %2625 = vmatpush.bf16.msra.mxu2 %v14919_v54  ;;  %v14930_v54 = vld [vmem:[#allocation10_spill] sm:$0xff] }
 0x536   :  { %2638 = vmatpush.bf16.msra.mxu3 %v14920_v24  ;;  %3263 = vmatpush.bf16.msrb.mxu0 %v14921_v7  ;;  %v14931_v24 = vld [vmem:[#allocation60_spill] sm:$0xff] }
 0x537   :  { %v9517_v7 = vadd.f32 %v1862_v34, %v14931_v24  ;;  %v9577_v24 = vld [vmem:[%s14428_s0 + $0x38] sm:$0x2]  ;;  %v9587_v34 = vld [vmem:[%s14428_s0 + $0xc] sm:$0x22] }
 0x538   :  { %v1950_v3 = vunpack.c.l.bf16 %v9587_v34 }
 0x539   :  { %2626 = vmatpush.bf16.msra.mxu2 %v14922_v9  ;;  %v14932_v9 = vld [vmem:[#allocation61_spill] sm:$0xff] }
 0x53a   :  { %2639 = vmatpush.bf16.msra.mxu3 %v14923_v22  ;;  %3264 = vmatpush.bf16.msrb.mxu0 %v14924_v50  ;;  %v9520_v16 = vadd.f32 %v1875_v51, %v14932_v9  ;;  %v14933_v22 = vld [vmem:[#allocation59_spill] sm:$0xff]  ;;  %v9562_v50 = vld [vmem:[%s14428_s0 + $0x14] sm:$0x2]  ;;  %v9582_v51 = vld [vmem:[%s14428_s0] sm:$0x22] }
 0x53b   :  { %v9608_v9 = vld [vmem:[%s14428_s0 + $0x3c] sm:$0x22]  ;;  %v1947_v47 = vunpack.c.l.bf16 %v9582_v51 }
 0x53c   :  { %v1962_v31 = vunpack.c.l.bf16 %v9608_v9 }
 0x53d   :  { %2627 = vmatpush.bf16.msra.mxu2 %v14925_v41  ;;  %v9557_v41 = vld [vmem:[%s14428_s0 + $0x8] sm:$0x2] }
 0x53e   :  { %2640 = vmatpush.bf16.msra.mxu3 %v14926_v39  ;;  %3265 = vmatpush.bf16.msrb.mxu0 %v14927_v15  ;;  %v9526_v15 = vadd.f32 %v1849_v53, %v14933_v22  ;;  %v9603_v39 = vld [vmem:[%s14428_s0 + $0x30] sm:$0x22] }
 0x53f   :  { %v1959_v56 = vunpack.c.l.bf16 %v9603_v39 }
 0x540   :  { %v14935_v4 = vrot.slane %v9526_v15, 7 }
 0x541   :  { %2628 = vmatpush.bf16.msra.mxu2 %v14928_v62  ;;  %v9597_v62 = vld [vmem:[%s14428_s0 + $0x24] sm:$0x22] }
 0x542   :  { %2641 = vmatpush.bf16.msra.mxu3 %v14929_v19  ;;  %3266 = vmatpush.bf16.msrb.mxu0 %v14930_v54  ;;  %v9567_v54 = vld [vmem:[%s14428_s0 + $0x20] sm:$0x2]  ;;  %v9592_v19 = vld [vmem:[%s14428_s0 + $0x18] sm:$0x22]  ;;  %v1956_v42 = vunpack.c.l.bf16 %v9597_v62 }
 0x543   :  { %v1955_v53 = vunpack.c.l.bf16 %v9567_v54  ;;  %v1953_v10 = vunpack.c.l.bf16 %v9592_v19 }
 0x595   :  { %v1890_v22 = vpop.xlane.xlu2 %1889 }
 0x596   :  { %6690 = vrcp.f32 %v1890_v22  ;;  %v9572_v22 = vld [vmem:[%s14428_s0 + $0x2c] sm:$0x2] }
 0x59c   :  { %v6691_v54 = vpop.eup %6690 }
 0x5a2   :  { %v1927_v60 = vpop.f32.mrf.mxu0 }
 0x5a3   :  { %v9643_v55 = vmul.f32 %v6691_v54, %v1927_v60 }
 0x5a5   :  { %v1980_v5 = vrot.slane %v9643_v55, 6  ;;  %v1983_v29 = vrot.slane %v9643_v55, 7  ;;  %v1986_v58 = vrot.slane %v9643_v55, 1  ;;  %v1989_v60 = vrot.slane %v9643_v55, 2 }
 0x5a6   :  { %v1992_v0 = vrot.slane %v9643_v55, 3 }
 0x5a7   :  { %v1901_v40 = vpop.f32.mrf.mxu2  ;;  %v1914_v2 = vpop.f32.mrf.mxu3 }
 0x5a8   :  { %v1972_v27 = vmul.f32 %v6691_v54, %v1901_v40  ;;  %v9666_v28 = vmul.f32 %v6691_v54, %v1914_v2  ;;  %v14934_v2 = vrot.slane %v9526_v15, 6 }
 0x5aa   :  { %v1978_v59 = vrot.slane %v1972_v27, 6  ;;  %v1981_v37 = vrot.slane %v1972_v27, 7  ;;  %v1984_v17 = vrot.slane %v1972_v27, 1  ;;  %v1987_v11 = vrot.slane %v1972_v27, 2  ;;  %v1929_v1 = vpop.f32.mrf.mxu0 }
 0x5ab   :  { %v1990_v21 = vrot.slane %v1972_v27, 3  ;;  %v1993_v43 = vrot.slane %v1972_v27, 4  ;;  %v1996_v49 = vrot.slane %v1972_v27, 5  ;;  %v2029_v38 = vadd.f32 %v1972_v27, %v1953_v10 }
 0x5ac   :  { %v2023_v12 = vadd.f32 %v1978_v59, %v1947_v47  ;;  %v2026_v32 = vadd.f32 %v1981_v37, %v1950_v3  ;;  %v2032_v40 = vadd.f32 %v1984_v17, %v1956_v42  ;;  %v2035_v23 = vadd.f32 %v1987_v11, %v1959_v56 }
 0x5ad   :  { %v2038_v48 = vadd.f32 %v1990_v21, %v1962_v31  ;;  %v2041_v36 = vadd.f32 %v1993_v43, %v1965_v6  ;;  %v2044_v25 = vadd.f32 %v1996_v49, %v1968_v18  ;;  %v2065_v35 = vadd.f32 %v2029_v38, %v9526_v15 }
 0x5ae   :  { %v2063_v54 = vadd.f32 %v14934_v2, %v2023_v12  ;;  %v2064_v45 = vadd.f32 %v14935_v4, %v2026_v32  ;;  %v14936_v1 = vrot.slane %v9526_v15, 1  ;;  %v14937_v27 = vrot.slane %v9526_v15, 2 }
 0x5af   :  { %v9678_v37 = vadd.f32 %v9643_v55, %v1955_v53  ;;  %v14938_v43 = vrot.slane %v9526_v15, 3  ;;  %v14939_v38 = vrot.slane %v9526_v15, 4  ;;  %v6370_v11 = vmul.f32 -1.442695, %v2065_v35  ;;  %v1903_v12 = vpop.f32.mrf.mxu2  ;;  %v1916_v17 = vpop.f32.mrf.mxu3 }
 0x5b0   :  { %v2066_v44 = vadd.f32 %v14936_v1, %v2032_v40  ;;  %v2067_v59 = vadd.f32 %v14937_v27, %v2035_v23  ;;  %v14940_v4 = vrot.slane %v9526_v15, 5  ;;  %v6368_v18 = vmul.f32 -1.442695, %v2063_v54 }
 0x5b1   :  { %v2068_v49 = vadd.f32 %v14938_v43, %v2038_v48  ;;  %v2069_v21 = vadd.f32 %v14939_v38, %v2041_v36  ;;  %v6369_v6 = vmul.f32 -1.442695, %v2064_v45  ;;  %v14941_v23 = vunpack.c.l.bf16 %v9557_v41 }
 0x5b2   :  { %v2070_v32 = vadd.f32 %v14940_v4, %v2044_v25  ;;  %v6371_v31 = vmul.f32 -1.442695, %v2066_v44  ;;  %6692 = vpow2.f32 %v6370_v11  ;;  %v6372_v42 = vmul.f32 -1.442695, %v2067_v59 }
 0x5b3   :  { %v9688_v56 = vadd.f32 %v1980_v5, %v14941_v23  ;;  %v1998_v48 = vrot.slane %v9643_v55, 5  ;;  %6694 = vpow2.f32 %v6368_v18  ;;  %v6373_v10 = vmul.f32 -1.442695, %v2068_v49 }
 0x5b4   :  { %v1979_v36 = vrot.slane %v9666_v28, 6  ;;  %v1982_v35 = vrot.slane %v9666_v28, 7  ;;  %v14942_v3 = vunpack.c.l.bf16 %v9562_v50  ;;  %6696 = vpow2.f32 %v6369_v6 }
 0x5b5   :  { %v6374_v44 = vmul.f32 -1.442695, %v2069_v21  ;;  %v1985_v45 = vrot.slane %v9666_v28, 1  ;;  %6698 = vpow2.f32 %v6371_v31  ;;  %v6375_v5 = vmul.f32 -1.442695, %v2070_v32 }
 0x5b6   :  { %v9695_v25 = vadd.f32 %v1983_v29, %v14942_v3  ;;  %v1988_v47 = vrot.slane %v9666_v28, 2  ;;  %v1991_v41 = vrot.slane %v9666_v28, 3  ;;  %v14943_v15 = vunpack.c.l.bf16 %v9572_v22 }
 0x5b7   :  { %6700 = vpow2.f32 %v6372_v42  ;;  %v1994_v40 = vrot.slane %v9666_v28, 4  ;;  %v1997_v29 = vrot.slane %v9666_v28, 5  ;;  %v14944_v50 = vunpack.c.l.bf16 %v9577_v24 }
 0x5b8   :  { %v9702_v53 = vadd.f32 %v1986_v58, %v14943_v15  ;;  %6702 = vpow2.f32 %v6373_v10  ;;  %v14945_v54 = vunpack.c.h.bf16 %v9582_v51  ;;  %v14946_v27 = vunpack.c.h.bf16 %v9587_v34  ;;  %v6693_v43 = vpop.eup %6692 }
 0x5b9   :  { %v9708_v2 = vadd.f32 %v1989_v60, %v14944_v50  ;;  %6704 = vpow2.f32 %v6374_v44  ;;  %v14947_v58 = vunpack.c.h.bf16 %v9592_v19  ;;  %v14948_v49 = vunpack.c.h.bf16 %v9597_v62  ;;  %v6695_v21 = vpop.eup %6694 }
 0x5ba   :  { %v2024_v1 = vadd.f32 %v1979_v36, %v14945_v54  ;;  %v2027_v59 = vadd.f32 %v1982_v35, %v14946_v27  ;;  %v14949_v24 = vunpack.c.l.bf16 %v9627_v30  ;;  %6706 = vpow2.f32 %v6375_v5  ;;  %v6697_v19 = vpop.eup %6696 }
 0x5bb   :  { %v2030_v22 = vadd.f32 %v9666_v28, %v14947_v58  ;;  %v2033_v38 = vadd.f32 %v1985_v45, %v14948_v49  ;;  %v9723_v51 = vadd.f32 1.0, %v6693_v43  ;;  %v14950_v34 = vunpack.c.h.bf16 %v9603_v39  ;;  %v6699_v39 = vpop.eup %6698 }
 0x5bc   :  { %v9721_v60 = vadd.f32 %v1992_v0, %v14949_v24  ;;  %v14951_v12 = vunpack.c.h.bf16 %v9608_v9  ;;  %v9729_v4 = vadd.f32 1.0, %v6695_v21  ;;  %v14952_v28 = vunpack.c.h.bf16 %v9613_v61 }
 0x5bd   :  { %v2036_v11 = vadd.f32 %v1988_v47, %v14950_v34  ;;  %v14953_v30 = vunpack.c.h.bf16 %v9622_v46  ;;  %v14954_v32 = vunpack.c.l.bf16 %v9632_v26  ;;  %v14955_v18 = vrot.slane %v9643_v55, 4  ;;  %v6701_v10 = vpop.eup %6700 }
 0x5be   :  { %v2039_v17 = vadd.f32 %v1991_v41, %v14951_v12  ;;  %v2042_v62 = vadd.f32 %v1994_v40, %v14952_v28  ;;  %v9741_v31 = vadd.f32 1.0, %v6697_v19  ;;  %6708 = vrcp.f32 %v9723_v51  ;;  %v6703_v35 = vpop.eup %6702 }
 0x5bf   :  { %v2045_v0 = vadd.f32 %v1997_v29, %v14953_v30  ;;  %v9739_v6 = vadd.f32 %v14955_v18, %v14954_v32  ;;  %v14956_v9 = vrot.slane %v9517_v7, 6  ;;  %v14957_v61 = vrot.slane %v9517_v7, 7  ;;  %v6705_v41 = vpop.eup %6704 }
 0x5c0   :  { %v9748_v46 = vadd.f32 1.0, %v6699_v39  ;;  %6710 = vrcp.f32 %v9729_v4  ;;  %v2241_v55 = vadd.f32 %v2030_v22, %v9517_v7  ;;  %v14958_v26 = vrot.slane %v9517_v7, 1 }
 0x5c1   :  { %v2239_v23 = vadd.f32 %v14956_v9, %v2024_v1  ;;  %v2240_v42 = vadd.f32 %v14957_v61, %v2027_v59  ;;  %v9754_v3 = vadd.f32 1.0, %v6701_v10  ;;  %6712 = vrcp.f32 %v9741_v31  ;;  %v6707_v1 = vpop.eup %6706 }
 0x5c2   :  { %v2242_v36 = vadd.f32 %v14958_v26, %v2033_v38  ;;  %v14959_v44 = vrot.slane %v9517_v7, 2  ;;  %v14960_v5 = vrot.slane %v9517_v7, 3  ;;  %v9761_v15 = vadd.f32 1.0, %v6703_v35 }
 0x5c3   :  { %6714 = vrcp.f32 %v9748_v46  ;;  %v14961_v40 = vrot.slane %v9517_v7, 4  ;;  %v14962_v50 = vrot.slane %v9517_v7, 5  ;;  %v9768_v27 = vadd.f32 1.0, %v6705_v41 }
 0x5c4   :  { %v2243_v45 = vadd.f32 %v14959_v44, %v2036_v11  ;;  %v2244_v47 = vadd.f32 %v14960_v5, %v2039_v17  ;;  %6716 = vrcp.f32 %v9754_v3  ;;  %v6376_v59 = vmul.f32 -1.442695, %v2239_v23  ;;  %v9778_v24 = vpop.eup %6708 }
 0x5c5   :  { %v2245_v29 = vadd.f32 %v14961_v40, %v2042_v62  ;;  %v2246_v54 = vadd.f32 %v14962_v50, %v2045_v0  ;;  %v14963_v43 = vunpack.c.l.bf16 %v9641_v33  ;;  %v9775_v22 = vadd.f32 1.0, %v6707_v1 }
 0x5c6   :  { %6718 = vrcp.f32 %v9761_v15  ;;  %v6377_v49 = vmul.f32 -1.442695, %v2240_v42  ;;  %v6378_v38 = vmul.f32 -1.442695, %v2241_v55  ;;  %v6379_v7 = vmul.f32 -1.442695, %v2242_v36  ;;  %v9781_v11 = vpop.eup %6710 }
 0x5c7   :  { %v9773_v58 = vadd.f32 %v1998_v48, %v14963_v43  ;;  %6720 = vrcp.f32 %v9768_v27  ;;  %v6380_v21 = vmul.f32 -1.442695, %v2243_v45  ;;  %v6381_v34 = vmul.f32 -1.442695, %v2244_v47  ;;  %v9786_v17 = vpop.eup %6712 }
 0x5c8   :  { %v2134_v33 = vmul.f32 %v9778_v24, %v9723_v51  ;;  %6722 = vrcp.f32 %v9775_v22  ;;  %v6382_v48 = vmul.f32 -1.442695, %v2245_v29  ;;  %v6383_v12 = vmul.f32 -1.442695, %v2246_v54 }
 0x5c9   :  { %v2104_v19 = vmul.f32 %v9781_v11, %v9729_v4  ;;  %6724 = vpow2.f32 %v6376_v59  ;;  %vm2108_vm1 = vweird.f32 %v9729_v4  ;;  %v2114_v28 = vand.u32 2147483648, %v9729_v4  ;;  %v9792_v62 = vpop.eup %6714 }
 0x5ca   :  { %v2119_v30 = vmul.f32 %v9786_v17, %v9741_v31  ;;  %v2135_v0 = vsub.f32 1.0, %v2134_v33  ;;  %6726 = vpow2.f32 %v6377_v49  ;;  %v2112_v32 = vand.u32 2147483647, %v9729_v4  ;;  %v9797_v18 = vpop.eup %6716 }
 0x5cb   :  { %v2105_v39 = vsub.f32 1.0, %v2104_v19  ;;  %6728 = vpow2.f32 %v6378_v38  ;;  %vm2123_vm0 = vweird.f32 %v9741_v31  ;;  %v2127_v9 = vand.u32 2147483647, %v9741_v31 }
 0x5cc   :  { %v9801_v23 = vpop.eup %6718  ;;  %v2120_v61 = vsub.f32 1.0, %v2119_v30  ;;  %6730 = vpow2.f32 %v6379_v7  ;;  %v2129_v42 = vand.u32 2147483648, %v9741_v31  ;;  %v2136_v10 = vmul.f32 %v9778_v24, %v2135_v0 }
 0x5cd   :  { %v9805_v55 = vpop.eup %6720  ;;  %6732 = vpow2.f32 %v6380_v21  ;;  %v2106_v26 = vmul.f32 %v9781_v11, %v2105_v39  ;;  %v2115_v36 = vor.u32 1.1754944e-38, %v2114_v28  ;;  %v2149_v35 = vmul.f32 %v9792_v62, %v9748_v46 }
 0x5ce   :  { %v9810_v44 = vpop.eup %6722  ;;  %6734 = vpow2.f32 %v6381_v34  ;;  %vm2109_vm10 = vweird.f32 %v9781_v11  ;;  %vm9813_vm13 = vcmp.eq.f32.partialorder %v2112_v32, 8.507059e+37  ;;  %v2121_v5 = vmul.f32 %v9786_v17, %v2120_v61 }
 0x5cf   :  { %v2142_v47 = vand.u32 2147483647, %v9723_v51  ;;  %v6725_v41 = vpop.eup %6724  ;;  %v2137_v40 = vadd.f32 %v9778_v24, %v2136_v10  ;;  %vm2139_vm2 = vweird.f32 %v9778_v24  ;;  %v2144_v29 = vand.u32 2147483648, %v9723_v51  ;;  %vm9833_vm4 = vmor %vm2108_vm1, %vm2109_vm10 }
 0x5d0   :  { %v2150_v50 = vsub.f32 1.0, %v2149_v35  ;;  %v6727_v54 = vpop.eup %6726  ;;  %v9822_v1 = vadd.f32 1.0, %v6725_v41  ;;  %v2107_v59 = vadd.f32 %v9781_v11, %v2106_v26  ;;  %v2122_v43 = vadd.f32 %v9786_v17, %v2121_v5 }
 0x5d1   :  { %vm2124_vm14 = vweird.f32 %v9786_v17  ;;  %v6729_v49 = vpop.eup %6728  ;;  %v9827_v38 = vadd.f32 1.0, %v6727_v54  ;;  %vm9837_vm6 = vcmp.eq.f32.partialorder %v2127_v9, 8.507059e+37  ;;  %vm2138_vm7 = vweird.f32 %v9723_v51 }
 0x5d2   :  { %v2151_v34 = vmul.f32 %v9792_v62, %v2150_v50  ;;  %v6731_v33 = vpop.eup %6730  ;;  %6736 = vpow2.f32 %v6382_v48  ;;  %v9843_v19 = vadd.f32 1.0, %v6729_v49  ;;  %v2130_v28 = vor.u32 1.1754944e-38, %v2129_v42  ;;  %vm9847_vm8 = vmor %vm2138_vm7, %vm2139_vm2 }
 0x5d3   :  { %vm9851_vm9 = vcmp.eq.f32.partialorder %v2142_v47, 8.507059e+37  ;;  %v6733_v0 = vpop.eup %6732  ;;  %6738 = vpow2.f32 %v6383_v12  ;;  %v9855_v51 = vadd.f32 1.0, %v6731_v33  ;;  %vm9861_vm15 = vmor %vm2123_vm0, %vm2124_vm14  ;;  %v2141_v32 = vsel %vm9847_vm8, %v9778_v24, %v2137_v40 }
 0x5d4   :  { %v2145_v39 = vor.u32 1.1754944e-38, %v2144_v29  ;;  %v6735_v9 = vpop.eup %6734  ;;  %v9868_v61 = vadd.f32 1.0, %v6733_v0  ;;  %6740 = vrcp.f32 %v9822_v1  ;;  %v2111_v12 = vsel %vm9833_vm4, %v9781_v11, %v2107_v59 }
 0x5d5   :  { %v2126_v31 = vsel %vm9861_vm15, %v9786_v17, %v2122_v43  ;;  %v9877_v42 = vadd.f32 1.0, %v6735_v9  ;;  %6742 = vrcp.f32 %v9827_v38  ;;  %v2152_v24 = vadd.f32 %v9792_v62, %v2151_v34 }
 0x5d6   :  { %vm2154_vm5 = vweird.f32 %v9792_v62  ;;  %6744 = vrcp.f32 %v9843_v19  ;;  %v9885_v10 = vsel %vm9851_vm9, %v2145_v39, %v2141_v32  ;;  %v2159_v11 = vand.u32 2147483648, %v9748_v46 }
 0x5d7   :  { %v2164_v26 = vmul.f32 %v9797_v18, %v9754_v3  ;;  %6746 = vrcp.f32 %v9855_v51  ;;  %v9893_v17 = vsel %vm9813_vm13, %v2115_v36, %v2111_v12  ;;  %vm2153_vm3 = vweird.f32 %v9748_v46 }
 0x5d8   :  { %v2157_v35 = vand.u32 2147483647, %v9748_v46  ;;  %v6737_v5 = vpop.eup %6736  ;;  %6748 = vrcp.f32 %v9868_v61  ;;  %v9900_v47 = vsel %vm9837_vm6, %v2130_v28, %v2126_v31  ;;  %vm9902_vm12 = vmor %vm2153_vm3, %vm2154_vm5  ;;  %v2179_v36 = vmul.f32 %v9801_v23, %v9761_v15 }
 0x5d9   :  { %v2165_v40 = vsub.f32 1.0, %v2164_v26  ;;  %v6739_v45 = vpop.eup %6738  ;;  %6750 = vrcp.f32 %v9877_v42  ;;  %v2156_v46 = vsel %vm9902_vm12, %v9792_v62, %v2152_v24  ;;  %vm2168_vm11 = vweird.f32 %v9754_v3 }
 0x5da   :  { %v2172_v29 = vand.u32 2147483647, %v9754_v3  ;;  %v9914_v50 = vpop.eup %6740  ;;  %v2160_v54 = vor.u32 1.1754944e-38, %v2159_v11  ;;  %v2174_v43 = vand.u32 2147483648, %v9754_v3  ;;  %v2180_v49 = vsub.f32 1.0, %v2179_v36 }
 0x5db   :  { %v2166_v59 = vmul.f32 %v9797_v18, %v2165_v40  ;;  %v9918_v7 = vpop.eup %6742  ;;  %vm2158_vm1 = vcmp.eq.f32.partialorder %v2157_v35, 8.507059e+37  ;;  %vm2169_vm0 = vweird.f32 %v9797_v18  ;;  %v2187_v21 = vand.u32 2147483647, %v9761_v15 }
 0x5dc   :  { %v2194_v62 = vmul.f32 %v9805_v55, %v9768_v27  ;;  %v9924_v34 = vpop.eup %6744  ;;  %v9926_v33 = vsel %vm2158_vm1, %v2160_v54, %v2156_v46  ;;  %v2181_v4 = vmul.f32 %v9801_v23, %v2180_v49  ;;  %vm2183_vm10 = vweird.f32 %v9761_v15  ;;  %vm9951_vm14 = vmor %vm2168_vm11, %vm2169_vm0 }
 0x5dd   :  { %v2167_v28 = vadd.f32 %v9797_v18, %v2166_v59  ;;  %v9931_v30 = vpop.eup %6746  ;;  %vm9933_vm13 = vcmp.eq.f32.partialorder %v2172_v29, 8.507059e+37  ;;  %vm2184_vm2 = vweird.f32 %v9801_v23  ;;  %v2209_v32 = vmul.f32 %v9810_v44, %v9775_v22 }
 0x5de   :  { %v2195_v48 = vsub.f32 1.0, %v2194_v62  ;;  %v9940_v39 = vpop.eup %6748  ;;  %v2175_v9 = vor.u32 1.1754944e-38, %v2174_v43  ;;  %v2182_v12 = vadd.f32 %v9801_v23, %v2181_v4  ;;  %v2189_v31 = vand.u32 2147483648, %v9761_v15  ;;  %vm9968_vm6 = vmor %vm2183_vm10, %vm2184_vm2 }
 0x5df   :  { %v2202_v24 = vand.u32 2147483647, %v9768_v27  ;;  %v9945_v11 = vpop.eup %6750  ;;  %vm9955_vm4 = vcmp.eq.f32.partialorder %v2187_v21, 8.507059e+37  ;;  %v2204_v40 = vand.u32 2147483648, %v9768_v27  ;;  %v2210_v36 = vsub.f32 1.0, %v2209_v32 }
 0x5e0   :  { %v2196_v41 = vmul.f32 %v9805_v55, %v2195_v48  ;;  %v2171_v46 = vsel %vm9951_vm14, %v9797_v18, %v2167_v28  ;;  %vm2198_vm7 = vweird.f32 %v9768_v27  ;;  %vm2199_vm8 = vweird.f32 %v9805_v55 }
 0x5e1   :  { %v2217_v29 = vand.u32 2147483647, %v9775_v22  ;;  %v2186_v54 = vsel %vm9968_vm6, %v9801_v23, %v2182_v12  ;;  %v2211_v59 = vmul.f32 %v9810_v44, %v2210_v36  ;;  %v2219_v15 = vand.u32 2147483648, %v9775_v22  ;;  %vm10002_vm3 = vmor %vm2198_vm7, %vm2199_vm8 }
 0x5e2   :  { %v2197_v18 = vadd.f32 %v9805_v55, %v2196_v41  ;;  %v2190_v43 = vor.u32 1.1754944e-38, %v2189_v31  ;;  %vm9981_vm9 = vcmp.eq.f32.partialorder %v2202_v24, 8.507059e+37  ;;  %vm2214_vm15 = vweird.f32 %v9810_v44 }
 0x5e3   :  { %v2280_v21 = vmul.f32 %v9914_v50, %v9822_v1  ;;  %v9990_v62 = vsel %vm9933_vm13, %v2175_v9, %v2171_v46  ;;  %v2205_v23 = vor.u32 1.1754944e-38, %v2204_v40  ;;  %v2212_v28 = vadd.f32 %v9810_v44, %v2211_v59 }
 0x5e4   :  { %vm2213_vm5 = vweird.f32 %v9775_v22  ;;  %v9996_v4 = vsel %vm9955_vm4, %v2190_v43, %v2186_v54  ;;  %vm10006_vm12 = vcmp.eq.f32.partialorder %v2217_v29, 8.507059e+37  ;;  %v10010_v32 = vadd.f32 1.0, %v6737_v5 }
 0x5e5   :  { %v2281_v9 = vsub.f32 1.0, %v2280_v21  ;;  %v2201_v22 = vsel %vm10002_vm3, %v9805_v55, %v2197_v18  ;;  %vm10015_vm11 = vmor %vm2213_vm5, %vm2214_vm15  ;;  %v2220_v27 = vor.u32 1.1754944e-38, %v2219_v15  ;;  %v10019_v31 = vadd.f32 1.0, %v6739_v45 }
 0x5e6   :  { %v2295_v24 = vmul.f32 %v9918_v7, %v9827_v38  ;;  %v2216_v5 = vsel %vm10015_vm11, %v9810_v44, %v2212_v28  ;;  %v2288_v35 = vand.u32 2147483647, %v9822_v1  ;;  %v2290_v55 = vand.u32 2147483648, %v9822_v1 }
 0x5e7   :  { %v2282_v26 = vmul.f32 %v9914_v50, %v2281_v9  ;;  %vm2284_vm1 = vweird.f32 %v9822_v1  ;;  %vm2285_vm0 = vweird.f32 %v9914_v50  ;;  %v2310_v45 = vmul.f32 %v9924_v34, %v9843_v19 }
 0x5e8   :  { %v2296_v41 = vsub.f32 1.0, %v2295_v24  ;;  %v10035_v40 = vsel %vm9981_vm9, %v2205_v23, %v2201_v22  ;;  %vm2299_vm10 = vweird.f32 %v9827_v38  ;;  %vm2300_vm13 = vweird.f32 %v9918_v7  ;;  %vm10057_vm14 = vmor %vm2284_vm1, %vm2285_vm0 }
 0x5e9   :  { %v2283_v44 = vadd.f32 %v9914_v50, %v2282_v26  ;;  %v10042_v36 = vsel %vm10006_vm12, %v2220_v27, %v2216_v5  ;;  %v2303_v3 = vand.u32 2147483647, %v9827_v38  ;;  %v2311_v29 = vsub.f32 1.0, %v2310_v45  ;;  %vm10072_vm6 = vmor %vm2299_vm10, %vm2300_vm13 }
 0x5ea   :  { %v2297_v46 = vmul.f32 %v9918_v7, %v2296_v41  ;;  %vm10046_vm2 = vcmp.eq.f32.partialorder %v2288_v35, 8.507059e+37  ;;  %v2291_v18 = vor.u32 1.1754944e-38, %v2290_v55  ;;  %v2305_v59 = vand.u32 2147483648, %v9827_v38 }
 0x5eb   :  { %v2325_v15 = vmul.f32 %v9931_v30, %v9855_v51  ;;  %v2312_v21 = vmul.f32 %v9924_v34, %v2311_v29  ;;  %vm2314_vm4 = vweird.f32 %v9843_v19  ;;  %v2318_v23 = vand.u32 2147483647, %v9843_v19 }
 0x5ec   :  { %v2298_v49 = vadd.f32 %v9918_v7, %v2297_v46  ;;  %v2287_v28 = vsel %vm10057_vm14, %v9914_v50, %v2283_v44  ;;  %vm2315_vm7 = vweird.f32 %v9924_v34  ;;  %v2320_v48 = vand.u32 2147483648, %v9843_v19 }
 0x5ed   :  { %v2326_v0 = vsub.f32 1.0, %v2325_v15  ;;  %vm2304_vm8 = vcmp.eq.f32.partialorder %v2303_v3, 8.507059e+37  ;;  %v2313_v50 = vadd.f32 %v9924_v34, %v2312_v21  ;;  %v2340_v22 = vmul.f32 %v9940_v39, %v9868_v61  ;;  %vm10102_vm3 = vmor %vm2314_vm4, %vm2315_vm7 }
 0x5ee   :  { %v2302_v9 = vsel %vm10072_vm6, %v9918_v7, %v2298_v49  ;;  %v2306_v38 = vor.u32 1.1754944e-38, %v2305_v59  ;;  %vm2330_vm9 = vweird.f32 %v9931_v30  ;;  %v2333_v27 = vand.u32 2147483647, %v9855_v51 }
 0x5ef   :  { %v2327_v12 = vmul.f32 %v9931_v30, %v2326_v0  ;;  %v10089_v24 = vsel %vm10046_vm2, %v2291_v18, %v2287_v28  ;;  %vm10091_vm15 = vcmp.eq.f32.partialorder %v2318_v23, 8.507059e+37  ;;  %vm2329_vm5 = vweird.f32 %v9855_v51 }
 0x5f0   :  { %v2341_v7 = vsub.f32 1.0, %v2340_v22  ;;  %v10096_v26 = vsel %vm2304_vm8, %v2306_v38, %v2302_v9  ;;  %v2321_v55 = vor.u32 1.1754944e-38, %v2320_v48  ;;  %v2335_v45 = vand.u32 2147483648, %v9855_v51  ;;  %vm10111_vm12 = vmor %vm2329_vm5, %vm2330_vm9 }
 0x5f1   :  { %v2328_v41 = vadd.f32 %v9931_v30, %v2327_v12  ;;  %v2317_v44 = vsel %vm10102_vm3, %v9924_v34, %v2313_v50  ;;  %v2348_v19 = vand.u32 2147483647, %v9868_v61  ;;  %v2355_v29 = vmul.f32 %v9945_v11, %v9877_v42 }
 0x5f2   :  { %v2342_v3 = vmul.f32 %v9940_v39, %v2341_v7  ;;  %vm10122_vm11 = vcmp.eq.f32.partialorder %v2333_v27, 8.507059e+37  ;;  %vm2345_vm1 = vweird.f32 %v9940_v39  ;;  %v2350_v34 = vand.u32 2147483648, %v9868_v61 }
 0x5f3   :  { %v2332_v54 = vsel %vm10111_vm12, %v9931_v30, %v2328_v41  ;;  %v2356_v59 = vsub.f32 1.0, %v2355_v29  ;;  %v2363_v15 = vand.u32 2147483647, %v9877_v42  ;;  %v2365_v43 = vand.u32 2147483648, %v9877_v42 }
 0x5f4   :  { %v2343_v18 = vadd.f32 %v9940_v39, %v2342_v3  ;;  %v10133_v49 = vsel %vm10091_vm15, %v2321_v55, %v2317_v44  ;;  %v2336_v30 = vor.u32 1.1754944e-38, %v2335_v45  ;;  %vm2344_vm0 = vweird.f32 %v9868_v61 }
 0x5f5   :  { %6752 = vrcp.f32 %v10010_v32  ;;  %vm10137_vm10 = vmor %vm2344_vm0, %vm2345_vm1  ;;  %vm10141_vm13 = vcmp.eq.f32.partialorder %v2348_v19, 8.507059e+37  ;;  %v2357_v28 = vmul.f32 %v9945_v11, %v2356_v59  ;;  %vm2359_vm2 = vweird.f32 %v9877_v42 }
 0x5f6   :  { %vm2360_vm14 = vweird.f32 %v9945_v11  ;;  %v10150_v1 = vsel %vm10122_vm11, %v2336_v30, %v2332_v54  ;;  %v2347_v61 = vsel %vm10137_vm10, %v9940_v39, %v2343_v18  ;;  %v2351_v48 = vor.u32 1.1754944e-38, %v2350_v34 }
 0x5f7   :  { %6754 = vrcp.f32 %v10019_v31  ;;  %vm10156_vm4 = vcmp.eq.f32.partialorder %v2363_v15, 8.507059e+37  ;;  %v2366_v9 = vor.u32 1.1754944e-38, %v2365_v43  ;;  %v2378_v50 = vand.u32 2147483647, %v10010_v32  ;;  %vm10205_vm9 = vmor %vm2359_vm2, %vm2360_vm14 }
 0x5f8   :  { %v2380_v22 = vand.u32 2147483648, %v10010_v32  ;;  %v15014_v38 = vrot.slane %v9520_v16, 6  ;;  %v15015_v27 = vrot.slane %v9520_v16, 7  ;;  %v2417_v5 = vmul.f32 %v9885_v10, %v9520_v16 }
 0x5f9   :  { %v15016_v7 = vrot.slane %v9520_v16, 1  ;;  %v10175_v55 = vsel %vm10141_vm13, %v2351_v48, %v2347_v61  ;;  %v2358_v41 = vadd.f32 %v9945_v11, %v2357_v28  ;;  %vm2374_vm6 = vweird.f32 %v10010_v32 }
 0x5fa   :  { %v2415_v12 = vmul.f32 %v15014_v38, %v9893_v17  ;;  %v2416_v39 = vmul.f32 %v15015_v27, %v9900_v47  ;;  %v2393_v17 = vand.u32 2147483647, %v10019_v31  ;;  %v15017_v47 = vrot.slane %v9520_v16, 2 }
 0x5fb   :  { %v2418_v35 = vmul.f32 %v15016_v7, %v9926_v33  ;;  %v6753_v44 = vpop.eup %6752  ;;  %v2395_v10 = vand.u32 2147483648, %v10019_v31  ;;  %v15018_v33 = vrot.slane %v9520_v16, 3  ;;  %v15019_v3 = vrot.slane %v9520_v16, 4 }
 0x5fc   :  { %v2419_v45 = vmul.f32 %v15017_v47, %v9990_v62  ;;  %v15020_v29 = vrot.slane %v9520_v16, 5  ;;  %v2370_v51 = vmul.f32 %v6753_v44, %v10010_v32  ;;  %vm10194_vm7 = vcmp.eq.f32.partialorder %v2378_v50, 8.507059e+37 }
 0x5fd   :  { %v2420_v46 = vmul.f32 %v15018_v33, %v9996_v4  ;;  %v2421_v19 = vmul.f32 %v15019_v3, %v10035_v40  ;;  %v2381_v62 = vor.u32 1.1754944e-38, %v2380_v22  ;;  %vm2389_vm8 = vweird.f32 %v10019_v31  ;;  %v6755_v59 = vpop.eup %6754  ;;  %v15034_v33 = vld [vmem:[#allocation70_spill] sm:$0xff] }
 0x5fe   :  { %v2422_v54 = vmul.f32 %v15020_v29, %v10042_v36  ;;  %v2423_v18 = vadd.f32 %v2415_v12, %v9688_v56  ;;  %v2424_v4 = vadd.f32 %v2416_v39, %v9695_v25  ;;  %v2425_v40 = vadd.f32 %v2417_v5, %v9678_v37 }
 0x5ff   :  { %v2426_v36 = vadd.f32 %v2418_v35, %v9702_v53  ;;  %v2427_v15 = vadd.f32 %v2419_v45, %v9708_v2  ;;  %v2428_v43 = vadd.f32 %v2420_v46, %v9721_v60  ;;  %v2362_v56 = vsel %vm10205_vm9, %v9945_v11, %v2358_v41 }
 0x600   :  { %v2371_v25 = vsub.f32 1.0, %v2370_v51  ;;  %v2385_v30 = vmul.f32 %v6755_v59, %v10019_v31  ;;  %v2429_v42 = vadd.f32 %v2421_v19, %v9739_v6  ;;  %vm10218_vm15 = vcmp.eq.f32.partialorder %v2393_v17, 8.507059e+37 }
 0x601   :  { %v2396_v37 = vor.u32 1.1754944e-38, %v2395_v10  ;;  %v2430_v53 = vadd.f32 %v2422_v54, %v9773_v58  ;;  %6756 = vtanh.f32 %v2423_v18  ;;  %vm2375_vm5 = vweird.f32 %v6753_v44 }
 0x602   :  { %v2372_v2 = vmul.f32 %v6753_v44, %v2371_v25  ;;  %v2386_v60 = vsub.f32 1.0, %v2385_v30  ;;  %6758 = vtanh.f32 %v2424_v4  ;;  %v2367_v11 = vsel %vm10156_vm4, %v2366_v9, %v2362_v56  ;;  %vm2376_vm12 = vmor %vm2374_vm6, %vm2375_vm5 }
 0x603   :  { %vm2390_vm3 = vweird.f32 %v6755_v59  ;;  %6760 = vtanh.f32 %v2425_v40  ;;  %v2439_v23 = vsub.f32 1.0, %v10089_v24  ;;  %v15027_v61 = vrot.slane %v9383_v63, 7 }
 0x604   :  { %v2373_v6 = vadd.f32 %v6753_v44, %v2372_v2  ;;  %v2387_v28 = vmul.f32 %v6755_v59, %v2386_v60  ;;  %6762 = vtanh.f32 %v2426_v36  ;;  %v15028_v58 = vrot.slane %v9385_v20, 7  ;;  %vm2391_vm11 = vmor %vm2389_vm8, %vm2390_vm3 }
 0x605   :  { %v2479_v48 = vmul.f32 %v15027_v61, %v10089_v24  ;;  %6764 = vtanh.f32 %v2427_v15  ;;  %v15029_v9 = vrot.slane %v9387_v13, 7  ;;  %v15030_v22 = vrot.slane %v9395_v52, 7 }
 0x606   :  { %v2480_v0 = vmul.f32 %v15028_v58, %v10096_v26  ;;  %v2377_v12 = vsel %vm2376_vm12, %v6753_v44, %v2373_v6  ;;  %v2388_v27 = vadd.f32 %v6755_v59, %v2387_v28  ;;  %6766 = vtanh.f32 %v2428_v43 }
 0x607   :  { %v2481_v50 = vmul.f32 %v15029_v9, %v10133_v49  ;;  %v2482_v38 = vmul.f32 %v15030_v22, %v10150_v1  ;;  %v15031_v63 = vrot.slane %v9403_v8, 7  ;;  %v6757_v24 = vpop.eup %6756  ;;  %v2382_v20 = vsel %vm10194_vm7, %v2381_v62, %v2377_v12 }
 0x608   :  { %6768 = vtanh.f32 %v2429_v42  ;;  %v2440_v13 = vsub.f32 1.0, %v10096_v26  ;;  %v15032_v52 = vrot.slane %v9411_v57, 7  ;;  %v6759_v5 = vpop.eup %6758  ;;  %v2392_v7 = vsel %vm2391_vm11, %v6755_v59, %v2388_v27 }
 0x609   :  { %v2483_v32 = vmul.f32 %v15031_v63, %v10175_v55  ;;  %6770 = vtanh.f32 %v2430_v53  ;;  %v2441_v8 = vsub.f32 1.0, %v10133_v49  ;;  %v2447_v35 = vmul.f32 %v6757_v24, %v2439_v23  ;;  %v6761_v41 = vpop.eup %6760 }
 0x60a   :  { %v2484_v39 = vmul.f32 %v15032_v52, %v2367_v11  ;;  %v2397_v17 = vsel %vm10218_vm15, %v2396_v37, %v2392_v7  ;;  %v2442_v47 = vsub.f32 1.0, %v10150_v1  ;;  %v2448_v31 = vmul.f32 %v6759_v5, %v2440_v13  ;;  %v6763_v26 = vpop.eup %6762 }
 0x60b   :  { %v15033_v45 = vrot.slane %v9419_v14, 7  ;;  %v2443_v57 = vsub.f32 1.0, %v10175_v55  ;;  %v2449_v10 = vmul.f32 %v6761_v41, %v2441_v8  ;;  %v15035_v46 = vrot.slane %v15034_v33, 7  ;;  %v6765_v49 = vpop.eup %6764  ;;  %v15044_v41 = vld [vmem:[#allocation12_spill] sm:$0xff]  ;;  %v15053_v33 = vld [vmem:[#allocation50_spill] sm:$0xff] }
 0x60c   :  { %v10260_v19 = vadd.f32 %v2479_v48, %v2447_v35  ;;  %v2444_v29 = vsub.f32 1.0, %v2367_v11  ;;  %v2450_v54 = vmul.f32 %v6763_v26, %v2442_v47  ;;  %v10262_v51 = vadd.f32 %v2480_v0, %v2448_v31  ;;  %v6767_v34 = vpop.eup %6766  ;;  %v15043_v35 = vld [vmem:[#allocation11_spill] sm:$0xff]  ;;  %v15047_v31 = vld [vmem:[#allocation13_spill] sm:$0xff]  ;;  %v15050_v26 = vld [vmem:[#allocation20_spill] sm:$0xff] }
 0x60d   :  { %v2485_v44 = vmul.f32 %v15033_v45, %v2382_v20  ;;  %v2486_v3 = vmul.f32 %v15035_v46, %v2397_v17  ;;  %v2445_v1 = vsub.f32 1.0, %v2382_v20  ;;  %v2451_v62 = vmul.f32 %v6765_v49, %v2443_v57  ;;  %v15046_v47 = vld [vmem:[#allocation19_spill] sm:$0xff]  ;;  %v15048_v45 = vld [vmem:[#allocation14_spill] sm:$0xff] }
 0x60e   :  { %v10264_v18 = vadd.f32 %v2481_v50, %v2449_v10  ;;  %2495 = vst [vmem:[%s14429_s7] sm:$0x4] %v10260_v19  ;;  %v2503_v14 = vpack.c.bf16 %v10260_v19, %v10260_v19  ;;  %v6769_v55 = vpop.eup %6768  ;;  %v2446_v4 = vsub.f32 1.0, %v2397_v17  ;;  %v2452_v59 = vmul.f32 %v6767_v34, %v2444_v29  ;;  %v15045_v17 = vld [vmem:[#allocation42_spill] sm:$0xff]  ;;  %v15051_v57 = vld [vmem:[#allocation15_spill] sm:$0xff]  ;;  %v15052_v10 = vld [vmem:[#allocation16_spill] sm:$0xff] }
 0x60f   :  { %v10272_v16 = vadd.f32 %v2482_v38, %v2450_v54  ;;  %2496 = vst [vmem:[%s14429_s7 + $0x8] sm:$0x4] %v10262_v51  ;;  %v2504_v40 = vpack.c.bf16 %v10262_v51, %v10262_v51  ;;  %v6771_v36 = vpop.eup %6770  ;;  %v2453_v15 = vmul.f32 %v6769_v55, %v2445_v1  ;;  %v10280_v43 = vadd.f32 %v2483_v32, %v2451_v62  ;;  %v15054_v46 = vld [vmem:[#allocation23_spill] sm:$0xff]  ;;  %v15056_v49 = vld [vmem:[#allocation18_spill] sm:$0xff]  ;;  %v15059_v34 = vld [vmem:[#allocation21_spill] sm:$0xff] }
 0x610   :  { %2497 = vst [vmem:[%s14429_s7 + $0x10] sm:$0x4] %v10264_v18  ;;  %v2505_v56 = vpack.c.bf16 %v10264_v18, %v10264_v18  ;;  %v2519_v25 = vunpack.c.l.b16 %v2503_v14  ;;  %v2454_v30 = vmul.f32 %v6771_v36, %v2446_v4  ;;  %v10288_v42 = vadd.f32 %v2484_v39, %v2452_v59  ;;  %v15057_v29 = vld [vmem:[#allocation54_spill] sm:$0xff]  ;;  %v15061_v62 = vld [vmem:[#allocation55_spill] sm:$0xff]  ;;  %v15062_v14 = vld [vmem:[#allocation29_spill] sm:$0xff] }
 0x611   :  { %2498 = vst [vmem:[%s14429_s7 + $0x18] sm:$0x4] %v10272_v16  ;;  %v2506_v21 = vpack.c.bf16 %v10272_v16, %v10272_v16  ;;  %v2520_v37 = vunpack.c.l.b16 %v2504_v40  ;;  %v10296_v53 = vadd.f32 %v2485_v44, %v2453_v15  ;;  %v2507_v2 = vpack.c.bf16 %v10280_v43, %v10280_v43  ;;  %v15049_v44 = vld [vmem:[#allocation46_spill] sm:$0xff]  ;;  %v15063_v55 = vld [vmem:[#allocation24_spill] sm:$0xff]  ;;  %v15064_v4 = vld [vmem:[#allocation25_spill] sm:$0xff] }
 0x612   :  { %2499 = vst [vmem:[%s14429_s7 + $0x20] sm:$0x4] %v10280_v43  ;;  %v2527_v60 = vrot.slane %v2519_v25, 2  ;;  %v10304_v11 = vadd.f32 %v2486_v3, %v2454_v30  ;;  %v2508_v23 = vpack.c.bf16 %v10288_v42, %v10288_v42  ;;  %v2521_v48 = vunpack.c.l.b16 %v2505_v56  ;;  %v15055_v3 = vld [vmem:[#allocation17_spill] sm:$0xff]  ;;  %v15058_v54 = vld [vmem:[#allocation26_spill] sm:$0xff]  ;;  %v15065_v59 = vld [vmem:[#allocation56_spill] sm:$0xff] }
 0x613   :  { %2500 = vst [vmem:[%s14429_s7 + $0x28] sm:$0x4] %v10288_v42  ;;  %v2522_v6 = vunpack.c.l.b16 %v2506_v21  ;;  %v2528_v28 = vrot.slane %v2520_v37, 1  ;;  %v2509_v61 = vpack.c.bf16 %v10296_v53, %v10296_v53  ;;  %v2523_v58 = vunpack.c.l.b16 %v2507_v2  ;;  %v15060_v1 = vld [vmem:[#allocation22_spill] sm:$0xff]  ;;  %v15066_v40 = vld [vmem:[#allocation43_spill] sm:$0xff]  ;;  %v15068_v15 = vld [vmem:[#allocation28_spill] sm:$0xff] }
 0x614   :  { %2501 = vst [vmem:[%s14429_s7 + $0x30] sm:$0x4] %v10296_v53  ;;  %v2510_v0 = vpack.c.bf16 %v10304_v11, %v10304_v11  ;;  %v2524_v9 = vunpack.c.l.b16 %v2508_v23  ;;  %vm15036_vm1 = vcmask 1041409   ;;  %vm15037_vm0 = vcmask 1042434   ;;  %v15067_v36 = vld [vmem:[#allocation27_spill] sm:$0xff]  ;;  %v15069_v56 = vld [vmem:[#allocation57_spill] sm:$0xff] }
 0x615   :  { %2502 = vst [vmem:[%s14429_s7 + $0x38] sm:$0x4] %v10304_v11  ;;  %v2529_v50 = vsel %vm15036_vm1, %v2528_v28, %v2527_v60  ;;  %v2531_v22 = vrot.slane %v2522_v6, 7  ;;  %v2525_v38 = vunpack.c.l.b16 %v2509_v61  ;;  %v2533_v27 = vrot.slane %v2523_v58, 6  ;;  %v15070_v25 = vld [vmem:[#allocation47_spill] sm:$0xff]  ;;  %v15071_v30 = vld [vmem:[#allocation30_spill] sm:$0xff] }
 0x616   :  { %v2530_v12 = vsel %vm15037_vm0, %v2521_v48, %v2529_v50  ;;  %v2526_v63 = vunpack.c.l.b16 %v2510_v0  ;;  %vm15038_vm10 = vcmask 1043459   ;;  %v2535_v24 = vrot.slane %v2524_v9, 5  ;;  %v15072_v21 = vld [vmem:[#allocation31_spill] sm:$0xff]  ;;  %v15073_v37 = vld [vmem:[#allocation58_spill] sm:$0xff] }
 0x617   :  { %v2532_v32 = vsel %vm15038_vm10, %v2531_v22, %v2530_v12  ;;  %vm15039_vm13 = vcmask 1044484   ;;  %v2537_v13 = vrot.slane %v2525_v38, 4  ;;  %vm15040_vm2 = vcmask 1045509   ;;  %v15074_v2 = vld [vmem:[#allocation51_spill] sm:$0xff]  ;;  %v7197_v23 = vld [vmem:[%s14425_s4] sm:$0xff] }
 0x618   :  { %v2534_v20 = vsel %vm15039_vm13, %v2533_v27, %v2532_v32  ;;  %v2539_v39 = vrot.slane %v2526_v63, 3  ;;  %vm15041_vm14 = vcmask 1046534   ;;  %vm15042_vm4 = vcmask 1047559   ;;  %v7198_v61 = vld [vmem:[%s14426_s3] sm:$0xff] }
 0x619   :  { %v2536_v52 = vsel %vm15040_vm2, %v2535_v24, %v2534_v20  ;;  %v15075_v20 = vld [vmem:[#allocation32_spill] sm:$0xff] }
 0x61a   :  { %v2538_v5 = vsel %vm15041_vm14, %v2537_v13, %v2536_v52  ;;  %v15076_v13 = vld [vmem:[#allocation33_spill] sm:$0xff]  ;;  %v15077_v52 = vld [vmem:[#allocation3_spill] sm:$0xff] }
 0x61b   :  { %v2540_v7 = vsel %vm15042_vm4, %v2539_v39, %v2538_v5  ;;  %v15078_v39 = vld [vmem:[#allocation34_spill] sm:$0xff]  ;;  %v15079_v5 = vld [vmem:[#allocation35_spill] sm:$0xff] }
 0x61c   :  { %v2541_v8 = vpack.c.b16 %v2540_v7, %v2540_v7  ;;  %v15080_v7 = vld [vmem:[#allocation4_spill] sm:$0xff] }
 0x61e   :  { %2551 = vmatmul.bf16.vlgmr.msrb.gmra.mxu1 %v2541_v8  ;;  %2564 = vmatmul.bf16.vlgmr.msrb.gmra.mxu2 %v2541_v8 }
 0x61f   :  { %2577 = vmatmul.bf16.vlgmr.msrb.gmra.mxu3 %v2541_v8  ;;  %2590 = vmatmul.bf16.vlgmr.msra.gmra.mxu0 %v2541_v8  ;;  %v15081_v8 = vld [vmem:[#allocation36_spill] sm:$0xff] }
 0x620   :  { %3272 = vmatpush.bf16.msrb.mxu1 %v15043_v35  ;;  %3285 = vmatpush.bf16.msrb.mxu2 %v15044_v41 }
 0x621   :  { %3298 = vmatpush.bf16.msrb.mxu3 %v15045_v17  ;;  %3324 = vmatpush.bf16.msra.mxu0 %v15046_v47 }
 0x624   :  { %3273 = vmatpush.bf16.msrb.mxu1 %v15047_v31  ;;  %3286 = vmatpush.bf16.msrb.mxu2 %v15048_v45 }
 0x625   :  { %3299 = vmatpush.bf16.msrb.mxu3 %v15049_v44  ;;  %3325 = vmatpush.bf16.msra.mxu0 %v15050_v26 }
 0x628   :  { %3274 = vmatpush.bf16.msrb.mxu1 %v15051_v57  ;;  %3287 = vmatpush.bf16.msrb.mxu2 %v15052_v10 }
 0x629   :  { %3300 = vmatpush.bf16.msrb.mxu3 %v15053_v33  ;;  %3326 = vmatpush.bf16.msra.mxu0 %v15054_v46 }
 0x62c   :  { %3275 = vmatpush.bf16.msrb.mxu1 %v15055_v3  ;;  %3288 = vmatpush.bf16.msrb.mxu2 %v15056_v49 }
 0x62d   :  { %3301 = vmatpush.bf16.msrb.mxu3 %v15057_v29  ;;  %3327 = vmatpush.bf16.msra.mxu0 %v15058_v54 }
 0x630   :  { %3276 = vmatpush.bf16.msrb.mxu1 %v15059_v34  ;;  %3289 = vmatpush.bf16.msrb.mxu2 %v15060_v1 }
 0x631   :  { %3302 = vmatpush.bf16.msrb.mxu3 %v15061_v62  ;;  %3328 = vmatpush.bf16.msra.mxu0 %v15062_v14 }
 0x634   :  { %3277 = vmatpush.bf16.msrb.mxu1 %v15063_v55  ;;  %3290 = vmatpush.bf16.msrb.mxu2 %v15064_v4 }
 0x635   :  { %3303 = vmatpush.bf16.msrb.mxu3 %v15065_v59  ;;  %3329 = vmatpush.bf16.msra.mxu0 %v15066_v40 }
 0x638   :  { %3278 = vmatpush.bf16.msrb.mxu1 %v15067_v36  ;;  %3291 = vmatpush.bf16.msrb.mxu2 %v15068_v15 }
 0x639   :  { %3304 = vmatpush.bf16.msrb.mxu3 %v15069_v56  ;;  %3330 = vmatpush.bf16.msra.mxu0 %v15070_v25 }
 0x63c   :  { %3279 = vmatpush.bf16.msrb.mxu1 %v15071_v30  ;;  %3292 = vmatpush.bf16.msrb.mxu2 %v15072_v21 }
 0x63d   :  { %3305 = vmatpush.bf16.msrb.mxu3 %v15073_v37  ;;  %3331 = vmatpush.bf16.msra.mxu0 %v15074_v2 }
 0x69b   :  { %v2552_v60 = vpop.f32.mrf.mxu1 }
 0x69c   :  { %v2595_v6 = vmul.f32 %v7197_v23, %v2552_v60  ;;  %v2591_v28 = vpop.f32.mrf.mxu0  ;;  %v15082_v60 = vld [vmem:[#allocation37_spill] sm:$0xff] }
 0x69d   :  { %v15083_v23 = vld [vmem:[#allocation5_spill] sm:$0xff] }
 0x69e   :  { %v2596_v48 = vadd.f32 %v7198_v61, %v2595_v6  ;;  %v15084_v6 = vld [vmem:[#allocation38_spill] sm:$0xff]  ;;  %v15085_v61 = vld [vmem:[#allocation39_spill] sm:$0xff] }
 0x6a0   :  { %2600 = vmax.xlane.f32.xlu0 %v2596_v48 }
 0x6a1   :  { %v2565_v58 = vpop.f32.mrf.mxu2 }
 0x6a2   :  { %v2578_v0 = vpop.f32.mrf.mxu3 }
 0x6a3   :  { %v2554_v9 = vpop.f32.mrf.mxu1 }
 0x6a4   :  { %v2593_v50 = vpop.f32.mrf.mxu0  ;;  %v15087_v9 = vld [vmem:[#allocation40_spill] sm:$0xff] }
 0x6a5   :  { %v15088_v50 = vld [vmem:[#allocation41_spill] sm:$0xff] }
 0x6a9   :  { %v2567_v22 = vpop.f32.mrf.mxu2 }
 0x6aa   :  { %v2580_v38 = vpop.f32.mrf.mxu3  ;;  %v15089_v22 = vld [vmem:[#allocation7_spill] sm:$0xff] }
 0x6ab   :  { %v15090_v38 = vld [vmem:[#allocation44_spill] sm:$0xff] }
 0x713   :  { %v2601_v12 = vpop.xlane.xlu0 %2600 }
 0x714   :  { %v2602_v27 = vsub.f32 %v2596_v48, %v2601_v12  ;;  %v15086_v48 = vld [vmem:[#allocation6_spill] sm:$0xff]  ;;  %v15091_v12 = vld [vmem:[#allocation45_spill] sm:$0xff] }
 0x716   :  { %v2603_v63 = vmul.f32 1.442695, %v2602_v27  ;;  %v15092_v27 = vld [vmem:[#allocation8_spill] sm:$0xff] }
 0x718   :  { %6772 = vpow2.f32 %v2603_v63  ;;  %v15093_v63 = vld [vmem:[#allocation48_spill] sm:$0xff] }
 0x71e   :  { %v6773_v32 = vpop.eup %6772 }
 0x71f   :  { %2605 = vadd.xlane.f32.xlu1 %v6773_v32  ;;  %v2607_v24 = vpack.c.bf16 %v6773_v32, %v6773_v32  ;;  %v15094_v32 = vld [vmem:[#allocation49_spill] sm:$0xff] }
 0x721   :  { %2616 = vmatmul.bf16.vlgmr.msra.gmra.mxu1 %v2607_v24  ;;  %2629 = vmatmul.bf16.vlgmr.msra.gmra.mxu2 %v2607_v24 }
 0x722   :  { %2642 = vmatmul.bf16.vlgmr.msra.gmra.mxu3 %v2607_v24  ;;  %3337 = vmatpush.bf16.msra.mxu1 %v15075_v20  ;;  %v15095_v24 = vld [vmem:[#allocation9_spill] sm:$0xff]  ;;  %v10498_v20 = vld [vmem:[%s14428_s0 + $0x20] sm:$0x2] }
 0x723   :  { %3350 = vmatpush.bf16.msra.mxu2 %v15076_v13  ;;  %3975 = vmatpush.bf16.msra.mxu3 %v15077_v52  ;;  %v10488_v52 = vld [vmem:[%s14428_s0 + $0x8] sm:$0x2]  ;;  %v10493_v13 = vld [vmem:[%s14428_s0 + $0x14] sm:$0x2] }
 0x726   :  { %3338 = vmatpush.bf16.msra.mxu1 %v15078_v39 }
 0x727   :  { %3351 = vmatpush.bf16.msra.mxu2 %v15079_v5  ;;  %3976 = vmatpush.bf16.msra.mxu3 %v15080_v7  ;;  %v10479_v5 = vld [vmem:[%s14428_s0 + $0x2c] sm:$0x2] }
 0x72a   :  { %3339 = vmatpush.bf16.msra.mxu1 %v15081_v8 }
 0x72b   :  { %3352 = vmatpush.bf16.msra.mxu2 %v15082_v60  ;;  %3977 = vmatpush.bf16.msra.mxu3 %v15083_v23 }
 0x72e   :  { %3340 = vmatpush.bf16.msra.mxu1 %v15084_v6 }
 0x72f   :  { %3353 = vmatpush.bf16.msra.mxu2 %v15085_v61  ;;  %3978 = vmatpush.bf16.msra.mxu3 %v15086_v48  ;;  %v15096_v61 = vld [vmem:[#allocation52_spill] sm:$0xff]  ;;  %v15097_v48 = vld [vmem:[#allocation53_spill] sm:$0xff] }
 0x732   :  { %3341 = vmatpush.bf16.msra.mxu1 %v15087_v9  ;;  %v15098_v9 = vld [vmem:[#allocation10_spill] sm:$0xff] }
 0x733   :  { %3354 = vmatpush.bf16.msra.mxu2 %v15088_v50  ;;  %3979 = vmatpush.bf16.msra.mxu3 %v15089_v22  ;;  %v15099_v50 = vld [vmem:[#allocation61_spill] sm:$0xff] }
 0x734   :  { %v10394_v22 = vadd.f32 %v2591_v28, %v15099_v50 }
 0x736   :  { %3342 = vmatpush.bf16.msra.mxu1 %v15090_v38  ;;  %v15100_v38 = vld [vmem:[#allocation59_spill] sm:$0xff] }
 0x737   :  { %3355 = vmatpush.bf16.msra.mxu2 %v15091_v12  ;;  %3980 = vmatpush.bf16.msra.mxu3 %v15092_v27  ;;  %v10397_v6 = vadd.f32 %v2565_v58, %v15100_v38  ;;  %v15101_v12 = vld [vmem:[#allocation60_spill] sm:$0xff]  ;;  %v10431_v58 = vld [vmem:[%s14428_s0] sm:$0x22] }
 0x738   :  { %v2663_v28 = vunpack.c.l.bf16 %v10431_v58  ;;  %v2664_v38 = vunpack.c.h.bf16 %v10431_v58 }
 0x739   :  { %v15103_v46 = vrot.slane %v10397_v6, 6  ;;  %v15104_v10 = vrot.slane %v10397_v6, 7 }
 0x73a   :  { %3343 = vmatpush.bf16.msra.mxu1 %v15093_v63  ;;  %v10436_v63 = vld [vmem:[%s14428_s0 + $0xc] sm:$0x22] }
 0x73b   :  { %3356 = vmatpush.bf16.msra.mxu2 %v15094_v32  ;;  %3981 = vmatpush.bf16.msra.mxu3 %v15095_v24  ;;  %v10441_v24 = vld [vmem:[%s14428_s0 + $0x18] sm:$0x22]  ;;  %v2666_v23 = vunpack.c.l.bf16 %v10436_v63  ;;  %v2667_v21 = vunpack.c.h.bf16 %v10436_v63  ;;  %v15102_v63 = vrot.slane %v10397_v6, 5 }
 0x73c   :  { %v10466_v32 = vld [vmem:[%s14428_s0 + $0x54] sm:$0x22]  ;;  %v2669_v60 = vunpack.c.l.bf16 %v10441_v24  ;;  %v2670_v30 = vunpack.c.h.bf16 %v10441_v24 }
 0x73d   :  { %v2684_v39 = vunpack.c.l.bf16 %v10466_v32 }
 0x73e   :  { %3344 = vmatpush.bf16.msra.mxu1 %v15096_v61  ;;  %v10461_v61 = vld [vmem:[%s14428_s0 + $0x48] sm:$0x22] }
 0x73f   :  { %3357 = vmatpush.bf16.msra.mxu2 %v15097_v48  ;;  %3982 = vmatpush.bf16.msra.mxu3 %v15098_v9  ;;  %v10405_v48 = vadd.f32 %v2578_v0, %v15101_v12  ;;  %v10446_v9 = vld [vmem:[%s14428_s0 + $0x24] sm:$0x22]  ;;  %v10456_v0 = vld [vmem:[%s14428_s0 + $0x3c] sm:$0x22]  ;;  %v2681_v50 = vunpack.c.l.bf16 %v10461_v61 }
 0x740   :  { %v2672_v8 = vunpack.c.l.bf16 %v10446_v9  ;;  %v2678_v27 = vunpack.c.l.bf16 %v10456_v0 }
 0x792   :  { %v2606_v12 = vpop.xlane.xlu1 %2605 }
 0x793   :  { %6774 = vrcp.f32 %v2606_v12  ;;  %v10451_v12 = vld [vmem:[%s14428_s0 + $0x30] sm:$0x22] }
 0x794   :  { %v2675_v7 = vunpack.c.l.bf16 %v10451_v12 }
 0x799   :  { %v10500_v2 = vpop.eup %6774 }
 0x79e   :  { %v2617_v37 = vpop.f32.mrf.mxu1 }
 0x79f   :  { %v2688_v56 = vmul.f32 %v10500_v2, %v2617_v37 }
 0x7a1   :  { %v2694_v55 = vrot.slane %v2688_v56, 5  ;;  %v2697_v24 = vrot.slane %v2688_v56, 6  ;;  %v2700_v14 = vrot.slane %v2688_v56, 7  ;;  %v2703_v25 = vrot.slane %v2688_v56, 1 }
 0x7a2   :  { %v2706_v62 = vrot.slane %v2688_v56, 2  ;;  %v2709_v37 = vrot.slane %v2688_v56, 3  ;;  %v2712_v1 = vrot.slane %v2688_v56, 4  ;;  %v2748_v15 = vadd.f32 %v2688_v56, %v2672_v8 }
 0x7a3   :  { %v2739_v34 = vadd.f32 %v2694_v55, %v2663_v28  ;;  %v2742_v36 = vadd.f32 %v2697_v24, %v2666_v23  ;;  %v2745_v54 = vadd.f32 %v2700_v14, %v2669_v60  ;;  %v2751_v40 = vadd.f32 %v2703_v25, %v2675_v7 }
 0x7a4   :  { %v2754_v29 = vadd.f32 %v2706_v62, %v2678_v27  ;;  %v2757_v59 = vadd.f32 %v2709_v37, %v2681_v50  ;;  %v2760_v49 = vadd.f32 %v2712_v1, %v2684_v39  ;;  %v2782_v4 = vadd.f32 %v2748_v15, %v10397_v6  ;;  %v2630_v58 = vpop.f32.mrf.mxu2 }
 0x7a5   :  { %v2779_v3 = vadd.f32 %v15102_v63, %v2739_v34  ;;  %v2780_v33 = vadd.f32 %v15103_v46, %v2742_v36  ;;  %v2781_v57 = vadd.f32 %v15104_v10, %v2745_v54  ;;  %v15105_v55 = vrot.slane %v10397_v6, 1  ;;  %v10523_v14 = vpop.f32.mrf.mxu3 }
 0x7a6   :  { %v15106_v62 = vrot.slane %v10397_v6, 2  ;;  %v15107_v15 = vrot.slane %v10397_v6, 3  ;;  %v15108_v39 = vrot.slane %v10397_v6, 4  ;;  %v6387_v7 = vmul.f32 -1.442695, %v2782_v4  ;;  %v2619_v8 = vpop.f32.mrf.mxu1 }
 0x7a7   :  { %v2783_v56 = vadd.f32 %v15105_v55, %v2751_v40  ;;  %v6384_v46 = vmul.f32 -1.442695, %v2779_v3  ;;  %v6385_v36 = vmul.f32 -1.442695, %v2780_v33  ;;  %v6386_v60 = vmul.f32 -1.442695, %v2781_v57 }
 0x7a8   :  { %v2784_v1 = vadd.f32 %v15106_v62, %v2754_v29  ;;  %v2785_v25 = vadd.f32 %v15107_v15, %v2757_v59  ;;  %v2786_v34 = vadd.f32 %v15108_v39, %v2760_v49  ;;  %v2689_v10 = vmul.f32 %v10500_v2, %v2630_v58  ;;  %v10535_v59 = vld [vmem:[%s14428_s0 + $0x38] sm:$0x2]  ;;  %v10540_v57 = vld [vmem:[%s14428_s0 + $0x44] sm:$0x2]  ;;  %v10545_v58 = vld [vmem:[%s14428_s0 + $0x50] sm:$0x2] }
 0x7a9   :  { %6776 = vpow2.f32 %v6387_v7  ;;  %v6388_v54 = vmul.f32 -1.442695, %v2783_v56  ;;  %v2677_v37 = vunpack.c.l.bf16 %v10535_v59  ;;  %v15109_v56 = vunpack.c.h.bf16 %v10446_v9 }
 0x7aa   :  { %v6389_v40 = vmul.f32 -1.442695, %v2784_v1  ;;  %v6390_v23 = vmul.f32 -1.442695, %v2785_v25  ;;  %6778 = vpow2.f32 %v6384_v46  ;;  %v6391_v50 = vmul.f32 -1.442695, %v2786_v34 }
 0x7ab   :  { %v2695_v29 = vrot.slane %v2689_v10, 5  ;;  %v2698_v27 = vrot.slane %v2689_v10, 6  ;;  %6780 = vpow2.f32 %v6385_v36  ;;  %v2701_v49 = vrot.slane %v2689_v10, 7 }
 0x7ac   :  { %v2704_v3 = vrot.slane %v2689_v10, 1  ;;  %v2707_v33 = vrot.slane %v2689_v10, 2  ;;  %6782 = vpow2.f32 %v6386_v60  ;;  %v2710_v4 = vrot.slane %v2689_v10, 3  ;;  %v2632_v55 = vpop.f32.mrf.mxu2 }
 0x7ad   :  { %v2713_v6 = vrot.slane %v2689_v10, 4  ;;  %v2740_v28 = vadd.f32 %v2695_v29, %v2664_v38  ;;  %6784 = vpow2.f32 %v6388_v54  ;;  %v2743_v63 = vadd.f32 %v2698_v27, %v2667_v21  ;;  %v2645_v25 = vpop.f32.mrf.mxu3  ;;  %v10555_v38 = vld [vmem:[%s14428_s0 + $0x5c] sm:$0x2] }
 0x7ae   :  { %v2746_v24 = vadd.f32 %v2701_v49, %v2670_v30  ;;  %6786 = vpow2.f32 %v6389_v40  ;;  %v2749_v62 = vadd.f32 %v2689_v10, %v15109_v56  ;;  %v15110_v1 = vunpack.c.h.bf16 %v10451_v12 }
 0x7af   :  { %v2680_v39 = vunpack.c.l.bf16 %v10540_v57  ;;  %v6777_v21 = vpop.eup %6776  ;;  %6788 = vpow2.f32 %v6390_v23  ;;  %v15111_v30 = vunpack.c.h.bf16 %v10456_v0  ;;  %v15112_v7 = vunpack.c.h.bf16 %v10461_v61 }
 0x7b0   :  { %v2752_v15 = vadd.f32 %v2704_v3, %v15110_v1  ;;  %v6779_v12 = vpop.eup %6778  ;;  %6790 = vpow2.f32 %v6391_v50  ;;  %v10563_v46 = vadd.f32 1.0, %v6777_v21  ;;  %v15113_v36 = vunpack.c.h.bf16 %v10466_v32 }
 0x7b1   :  { %v2755_v34 = vadd.f32 %v2707_v33, %v15111_v30  ;;  %v2758_v9 = vadd.f32 %v2710_v4, %v15112_v7  ;;  %v15114_v10 = vrot.slane %v10405_v48, 5  ;;  %v6781_v40 = vpop.eup %6780  ;;  %v10569_v23 = vadd.f32 1.0, %v6779_v12 }
 0x7b2   :  { %v2761_v60 = vadd.f32 %v2713_v6, %v15113_v36  ;;  %v15115_v0 = vrot.slane %v10405_v48, 6  ;;  %v15116_v61 = vrot.slane %v10405_v48, 7  ;;  %v6783_v50 = vpop.eup %6782  ;;  %v10576_v3 = vadd.f32 1.0, %v6781_v40 }
 0x7b3   :  { %v2955_v54 = vadd.f32 %v15114_v10, %v2740_v28  ;;  %6792 = vrcp.f32 %v10563_v46  ;;  %v2958_v32 = vadd.f32 %v2749_v62, %v10405_v48  ;;  %v15117_v33 = vrot.slane %v10405_v48, 1  ;;  %v6785_v6 = vpop.eup %6784 }
 0x7b4   :  { %v2956_v29 = vadd.f32 %v15115_v0, %v2743_v63  ;;  %v2957_v27 = vadd.f32 %v15116_v61, %v2746_v24  ;;  %v10582_v28 = vadd.f32 1.0, %v6783_v50  ;;  %6794 = vrcp.f32 %v10569_v23  ;;  %v6787_v1 = vpop.eup %6786 }
 0x7b5   :  { %v2959_v4 = vadd.f32 %v15117_v33, %v2752_v15  ;;  %v15118_v63 = vrot.slane %v10405_v48, 2  ;;  %v15119_v55 = vrot.slane %v10405_v48, 3  ;;  %v10589_v25 = vadd.f32 1.0, %v6785_v6  ;;  %v6789_v30 = vpop.eup %6788 }
 0x7b6   :  { %6796 = vrcp.f32 %v10576_v3  ;;  %v15120_v62 = vrot.slane %v10405_v48, 4  ;;  %v6392_v15 = vmul.f32 -1.442695, %v2955_v54  ;;  %v10594_v7 = vadd.f32 1.0, %v6787_v1 }
 0x7b7   :  { %v2960_v24 = vadd.f32 %v15118_v63, %v2755_v34  ;;  %v2961_v56 = vadd.f32 %v15119_v55, %v2758_v9  ;;  %6798 = vrcp.f32 %v10582_v28  ;;  %v6393_v12 = vmul.f32 -1.442695, %v2956_v29  ;;  %v6791_v34 = vpop.eup %6790 }
 0x7b8   :  { %v2962_v21 = vadd.f32 %v15120_v62, %v2761_v60  ;;  %v6394_v36 = vmul.f32 -1.442695, %v2957_v27  ;;  %v10597_v10 = vadd.f32 1.0, %v6789_v30  ;;  %6800 = vrcp.f32 %v10589_v25 }
 0x7b9   :  { %v6395_v9 = vmul.f32 -1.442695, %v2958_v32  ;;  %v10602_v40 = vmul.f32 %v10500_v2, %v10523_v14  ;;  %v10604_v48 = vadd.f32 1.0, %v6791_v34  ;;  %6802 = vrcp.f32 %v10594_v7  ;;  %v10607_v0 = vpop.eup %6792 }
 0x7ba   :  { %v6396_v60 = vmul.f32 -1.442695, %v2959_v4  ;;  %v6397_v54 = vmul.f32 -1.442695, %v2960_v24  ;;  %6804 = vrcp.f32 %v10597_v10  ;;  %v10613_v50 = vpop.eup %6794  ;;  %v6398_v2 = vmul.f32 -1.442695, %v2961_v56 }
 0x7bb   :  { %v2696_v29 = vrot.slane %v10602_v40, 5  ;;  %v2699_v61 = vrot.slane %v10602_v40, 6  ;;  %v2702_v27 = vrot.slane %v10602_v40, 7  ;;  %6806 = vrcp.f32 %v10604_v48 }
 0x7bc   :  { %v6399_v14 = vmul.f32 -1.442695, %v2962_v21  ;;  %vm2824_vm6 = vweird.f32 %v10569_v23  ;;  %v10617_v32 = vpop.eup %6796  ;;  %6808 = vpow2.f32 %v6392_v15  ;;  %v2705_v33 = vrot.slane %v10602_v40, 1 }
 0x7bd   :  { %v2828_v6 = vand.u32 2147483647, %v10569_v23  ;;  %v10622_v63 = vpop.eup %6798  ;;  %6810 = vpow2.f32 %v6393_v12  ;;  %v15121_v55 = vunpack.c.l.bf16 %v10488_v52  ;;  %v2820_v1 = vmul.f32 %v10613_v50, %v10569_v23 }
 0x7be   :  { %v10631_v62 = vpop.eup %6800  ;;  %6812 = vpow2.f32 %v6394_v36  ;;  %v15122_v21 = vunpack.c.l.bf16 %v10493_v13  ;;  %v15123_v30 = vunpack.c.l.bf16 %v10498_v20  ;;  %v2830_v12 = vand.u32 2147483648, %v10569_v23 }
 0x7bf   :  { %v10627_v56 = vadd.f32 %v2696_v29, %v15121_v55  ;;  %v10642_v49 = vpop.eup %6802  ;;  %6814 = vpow2.f32 %v6395_v9  ;;  %v2821_v52 = vsub.f32 1.0, %v2820_v1  ;;  %vm2825_vm7 = vweird.f32 %v10613_v50 }
 0x7c0   :  { %v10635_v15 = vadd.f32 %v2699_v61, %v15122_v21  ;;  %v10639_v34 = vadd.f32 %v2702_v27, %v15123_v30  ;;  %v2835_v29 = vmul.f32 %v10617_v32, %v10576_v3  ;;  %v10647_v36 = vpop.eup %6804  ;;  %6816 = vpow2.f32 %v6396_v60  ;;  %vm10676_vm3 = vmor %vm2824_vm6, %vm2825_vm7 }
 0x7c1   :  { %vm10649_vm8 = vcmp.eq.f32.partialorder %v2828_v6, 8.507059e+37  ;;  %vm2839_vm9 = vweird.f32 %v10576_v3  ;;  %v2843_v20 = vand.u32 2147483647, %v10576_v3  ;;  %v10655_v61 = vpop.eup %6806  ;;  %6818 = vpow2.f32 %v6397_v54 }
 0x7c2   :  { %v2822_v9 = vmul.f32 %v10613_v50, %v2821_v52  ;;  %v2836_v27 = vsub.f32 1.0, %v2835_v29  ;;  %v2845_v55 = vand.u32 2147483648, %v10576_v3  ;;  %v6809_v1 = vpop.eup %6808  ;;  %6820 = vpow2.f32 %v6398_v2 }
 0x7c3   :  { %v2831_v21 = vor.u32 1.1754944e-38, %v2830_v12  ;;  %vm2840_vm15 = vweird.f32 %v10617_v32  ;;  %v2850_v60 = vmul.f32 %v10622_v63, %v10582_v28  ;;  %v6811_v6 = vpop.eup %6810  ;;  %v10662_v30 = vadd.f32 1.0, %v6809_v1 }
 0x7c4   :  { %v2823_v24 = vadd.f32 %v10613_v50, %v2822_v9  ;;  %v2837_v54 = vmul.f32 %v10617_v32, %v2836_v27  ;;  %vm10666_vm5 = vcmp.eq.f32.partialorder %v2843_v20, 8.507059e+37  ;;  %v6813_v29 = vpop.eup %6812  ;;  %6822 = vpow2.f32 %v6399_v14  ;;  %vm2841_vm11 = vmor %vm2839_vm9, %vm2840_vm15 }
 0x7c5   :  { %v10670_v2 = vadd.f32 1.0, %v6811_v6  ;;  %v2851_v1 = vsub.f32 1.0, %v2850_v60  ;;  %vm2854_vm12 = vweird.f32 %v10582_v28  ;;  %v6815_v9 = vpop.eup %6814  ;;  %v10681_v20 = vadd.f32 1.0, %v6813_v29 }
 0x7c6   :  { %v2827_v14 = vsel %vm10676_vm3, %v10613_v50, %v2823_v24  ;;  %v2838_v27 = vadd.f32 %v10617_v32, %v2837_v54  ;;  %v2846_v6 = vor.u32 1.1754944e-38, %v2845_v55  ;;  %v6817_v8 = vpop.eup %6816  ;;  %v10687_v4 = vadd.f32 1.0, %v6815_v9 }
 0x7c7   :  { %6824 = vrcp.f32 %v10662_v30  ;;  %v2852_v23 = vmul.f32 %v10622_v63, %v2851_v1  ;;  %vm2855_vm1 = vweird.f32 %v10622_v63  ;;  %v6819_v60 = vpop.eup %6818  ;;  %v10696_v29 = vadd.f32 1.0, %v6817_v8 }
 0x7c8   :  { %6826 = vrcp.f32 %v10670_v2  ;;  %v2842_v50 = vsel %vm2841_vm11, %v10617_v32, %v2838_v27  ;;  %v2858_v24 = vand.u32 2147483647, %v10582_v28  ;;  %v10701_v55 = vpop.eup %6820  ;;  %v10703_v54 = vadd.f32 1.0, %v6819_v60  ;;  %vm10714_vm0 = vmor %vm2854_vm12, %vm2855_vm1 }
 0x7c9   :  { %6828 = vrcp.f32 %v10681_v20  ;;  %v2832_v3 = vsel %vm10649_vm8, %v2831_v21, %v2827_v14  ;;  %v2853_v12 = vadd.f32 %v10622_v63, %v2852_v23  ;;  %v2847_v8 = vsel %vm10666_vm5, %v2846_v6, %v2842_v50 }
 0x7ca   :  { %6830 = vrcp.f32 %v10687_v4  ;;  %v2860_v1 = vand.u32 2147483648, %v10582_v28  ;;  %v2865_v9 = vmul.f32 %v10607_v0, %v10563_v46  ;;  %v10721_v13 = vpop.eup %6822  ;;  %v15132_v21 = vunpack.c.l.bf16 %v10479_v5 }
 0x7cb   :  { %6832 = vrcp.f32 %v10696_v29  ;;  %v10731_v14 = vadd.f32 %v2705_v33, %v2677_v37  ;;  %v2857_v28 = vsel %vm10714_vm0, %v10622_v63, %v2853_v12  ;;  %vm2859_vm10 = vcmp.eq.f32.partialorder %v2858_v24, 8.507059e+37 }
 0x7cc   :  { %v2750_v52 = vadd.f32 %v10602_v40, %v15132_v21  ;;  %v2861_v27 = vor.u32 1.1754944e-38, %v2860_v1  ;;  %v2866_v6 = vsub.f32 1.0, %v2865_v9  ;;  %v2873_v23 = vand.u32 2147483647, %v10563_v46 }
 0x7cd   :  { %v10737_v60 = vpop.eup %6824  ;;  %6834 = vrcp.f32 %v10703_v54  ;;  %v2875_v5 = vand.u32 2147483648, %v10563_v46  ;;  %v15133_v59 = vrot.slane %v10394_v22, 5  ;;  %v15134_v37 = vrot.slane %v10394_v22, 6 }
 0x7ce   :  { %v10745_v21 = vpop.eup %6826  ;;  %v2862_v63 = vsel %vm2859_vm10, %v2861_v27, %v2857_v28  ;;  %v2867_v24 = vmul.f32 %v10607_v0, %v2866_v6  ;;  %vm2870_vm13 = vweird.f32 %v10607_v0  ;;  %v2714_v12 = vrot.slane %v10602_v40, 4 }
 0x7cf   :  { %v3131_v50 = vmul.f32 %v15133_v59, %v2832_v3  ;;  %v3132_v33 = vmul.f32 %v15134_v37, %v2847_v8  ;;  %v10750_v32 = vpop.eup %6828  ;;  %vm2869_vm2 = vweird.f32 %v10563_v46  ;;  %v15135_v1 = vrot.slane %v10394_v22, 7 }
 0x7d0   :  { %v10757_v59 = vpop.eup %6830  ;;  %v2868_v28 = vadd.f32 %v10607_v0, %v2867_v24  ;;  %vm2874_vm14 = vcmp.eq.f32.partialorder %v2873_v23, 8.507059e+37  ;;  %v15136_v27 = vrot.slane %v10602_v40, 2  ;;  %v2880_v46 = vmul.f32 %v10631_v62, %v10589_v25  ;;  %vm2871_vm4 = vmor %vm2869_vm2, %vm2870_vm13 }
 0x7d1   :  { %v3133_v9 = vmul.f32 %v15135_v1, %v2862_v63  ;;  %v3139_v3 = vadd.f32 %v3131_v50, %v10627_v56  ;;  %v3140_v8 = vadd.f32 %v3132_v33, %v10635_v15  ;;  %v10768_v37 = vpop.eup %6832  ;;  %v2876_v56 = vor.u32 1.1754944e-38, %v2875_v5 }
 0x7d2   :  { %v10764_v6 = vadd.f32 %v15136_v27, %v2680_v39  ;;  %v15137_v50 = vunpack.c.l.bf16 %v10545_v58  ;;  %v15138_v33 = vrot.slane %v10602_v40, 3  ;;  %v2888_v57 = vand.u32 2147483647, %v10589_v25 }
 0x7d3   :  { %v3141_v15 = vadd.f32 %v3133_v9, %v10639_v34  ;;  %v2872_v39 = vsel %vm2871_vm4, %v10607_v0, %v2868_v28  ;;  %v15139_v63 = vunpack.c.l.bf16 %v10555_v38  ;;  %v2881_v1 = vsub.f32 1.0, %v2880_v46  ;;  %v10784_v5 = vpop.eup %6834 }
 0x7d4   :  { %v10775_v23 = vadd.f32 %v15138_v33, %v15137_v50  ;;  %vm2884_vm6 = vweird.f32 %v10589_v25  ;;  %v2877_v34 = vsel %vm2874_vm14, %v2876_v56, %v2872_v39  ;;  %6836 = vtanh.f32 %v3139_v3 }
 0x7d5   :  { %v10781_v24 = vadd.f32 %v2714_v12, %v15139_v63  ;;  %v2890_v58 = vand.u32 2147483648, %v10589_v25  ;;  %v2895_v40 = vmul.f32 %v10642_v49, %v10594_v7  ;;  %v3134_v9 = vmul.f32 %v2877_v34, %v10394_v22 }
 0x7d6   :  { %6838 = vtanh.f32 %v3140_v8  ;;  %v2882_v0 = vmul.f32 %v10631_v62, %v2881_v1  ;;  %vm2885_vm7 = vweird.f32 %v10631_v62  ;;  %vm10792_vm8 = vcmp.eq.f32.partialorder %v2888_v57, 8.507059e+37 }
 0x7d7   :  { %6840 = vtanh.f32 %v3141_v15  ;;  %v2896_v12 = vsub.f32 1.0, %v2895_v40  ;;  %v2903_v3 = vand.u32 2147483647, %v10594_v7  ;;  %v3142_v28 = vadd.f32 %v3134_v9, %v2750_v52  ;;  %vm10803_vm9 = vmor %vm2884_vm6, %vm2885_vm7 }
 0x7d8   :  { %v2883_v27 = vadd.f32 %v10631_v62, %v2882_v0  ;;  %v2905_v46 = vand.u32 2147483648, %v10594_v7  ;;  %v2910_v8 = vmul.f32 %v10647_v36, %v10597_v10  ;;  %v2891_v15 = vor.u32 1.1754944e-38, %v2890_v58 }
 0x7d9   :  { %v2897_v50 = vmul.f32 %v10642_v49, %v2896_v12  ;;  %vm2899_vm15 = vweird.f32 %v10594_v7  ;;  %vm2900_vm5 = vweird.f32 %v10642_v49  ;;  %vm2914_vm3 = vweird.f32 %v10597_v10 }
 0x7da   :  { %v2887_v52 = vsel %vm10803_vm9, %v10631_v62, %v2883_v27  ;;  %v2911_v33 = vsub.f32 1.0, %v2910_v8  ;;  %v2918_v25 = vand.u32 2147483647, %v10597_v10  ;;  %v10815_v57 = vpop.eup %6836  ;;  %vm10818_vm12 = vcmp.eq.f32.partialorder %v2903_v3, 8.507059e+37  ;;  %vm10827_vm11 = vmor %vm2899_vm15, %vm2900_vm5 }
 0x7db   :  { %v2898_v39 = vadd.f32 %v10642_v49, %v2897_v50  ;;  %v2920_v7 = vand.u32 2147483648, %v10597_v10  ;;  %v2925_v1 = vmul.f32 %v10655_v61, %v10604_v48  ;;  %6842 = vtanh.f32 %v3142_v28 }
 0x7dc   :  { %v10825_v34 = vpop.eup %6838  ;;  %v2906_v58 = vor.u32 1.1754944e-38, %v2905_v46  ;;  %v2912_v40 = vmul.f32 %v10647_v36, %v2911_v33  ;;  %vm2915_vm1 = vweird.f32 %v10647_v36  ;;  %v10837_v0 = vsel %vm10792_vm8, %v2891_v15, %v2887_v52 }
 0x7dd   :  { %v10833_v9 = vpop.eup %6840  ;;  %v2902_v12 = vsel %vm10827_vm11, %v10642_v49, %v2898_v39  ;;  %v2926_v3 = vsub.f32 1.0, %v2925_v1  ;;  %v2933_v28 = vand.u32 2147483647, %v10604_v48  ;;  %vm10844_vm0 = vcmp.eq.f32.partialorder %v2918_v25, 8.507059e+37  ;;  %vm10862_vm2 = vmor %vm2914_vm3, %vm2915_vm1 }
 0x7de   :  { %v2913_v27 = vadd.f32 %v10647_v36, %v2912_v40  ;;  %vm2929_vm10 = vweird.f32 %v10604_v48  ;;  %v2935_v8 = vand.u32 2147483648, %v10604_v48  ;;  %v2921_v38 = vor.u32 1.1754944e-38, %v2920_v7 }
 0x7df   :  { %v2927_v56 = vmul.f32 %v10655_v61, %v2926_v3  ;;  %vm2930_vm13 = vweird.f32 %v10655_v61  ;;  %v2996_v49 = vmul.f32 %v10737_v60, %v10662_v30  ;;  %v10856_v15 = vsel %vm10818_vm12, %v2906_v58, %v2902_v12 }
 0x7e0   :  { %vm10866_vm14 = vcmp.eq.f32.partialorder %v2933_v28, 8.507059e+37  ;;  %v10871_v33 = vadd.f32 1.0, %v10701_v55  ;;  %v10874_v25 = vadd.f32 1.0, %v10721_v13  ;;  %v2917_v39 = vsel %vm10862_vm2, %v10647_v36, %v2913_v27  ;;  %vm10885_vm4 = vmor %vm2929_vm10, %vm2930_vm13 }
 0x7e1   :  { %v2928_v10 = vadd.f32 %v10655_v61, %v2927_v56  ;;  %v2997_v63 = vsub.f32 1.0, %v2996_v49  ;;  %v3004_v7 = vand.u32 2147483647, %v10662_v30  ;;  %v10881_v1 = vpop.eup %6842  ;;  %v2936_v55 = vor.u32 1.1754944e-38, %v2935_v8 }
 0x7e2   :  { %vm3000_vm6 = vweird.f32 %v10662_v30  ;;  %v3006_v13 = vand.u32 2147483648, %v10662_v30  ;;  %v3011_v36 = vmul.f32 %v10745_v21, %v10670_v2  ;;  %vm3001_vm7 = vweird.f32 %v10737_v60 }
 0x7e3   :  { %v2932_v58 = vsel %vm10885_vm4, %v10655_v61, %v2928_v10  ;;  %v2998_v40 = vmul.f32 %v10737_v60, %v2997_v63  ;;  %v3019_v48 = vand.u32 2147483647, %v10670_v2  ;;  %v10901_v12 = vsel %vm10844_vm0, %v2921_v38, %v2917_v39  ;;  %vm3002_vm5 = vmor %vm3000_vm6, %vm3001_vm7 }
 0x7e4   :  { %v3012_v3 = vsub.f32 1.0, %v3011_v36  ;;  %vm3015_vm8 = vweird.f32 %v10670_v2  ;;  %v3021_v28 = vand.u32 2147483648, %v10670_v2  ;;  %vm10906_vm9 = vcmp.eq.f32.partialorder %v3004_v7, 8.507059e+37 }
 0x7e5   :  { %v2999_v27 = vadd.f32 %v10737_v60, %v2998_v40  ;;  %vm3016_vm15 = vweird.f32 %v10745_v21  ;;  %v3026_v61 = vmul.f32 %v10750_v32, %v10681_v20  ;;  %v10915_v46 = vsel %vm10866_vm14, %v2936_v55, %v2932_v58 }
 0x7e6   :  { %v3007_v38 = vor.u32 1.1754944e-38, %v3006_v13  ;;  %v3013_v56 = vmul.f32 %v10745_v21, %v3012_v3  ;;  %v3034_v49 = vand.u32 2147483647, %v10681_v20  ;;  %vm10922_vm3 = vcmp.eq.f32.partialorder %v3019_v48, 8.507059e+37  ;;  %vm3017_vm11 = vmor %vm3015_vm8, %vm3016_vm15 }
 0x7e7   :  { %v3003_v50 = vsel %vm3002_vm5, %v10737_v60, %v2999_v27  ;;  %v3027_v10 = vsub.f32 1.0, %v3026_v61  ;;  %v3041_v52 = vmul.f32 %v10757_v59, %v10687_v4  ;;  %v3022_v7 = vor.u32 1.1754944e-38, %v3021_v28 }
 0x7e8   :  { %v3014_v63 = vadd.f32 %v10745_v21, %v3013_v56  ;;  %vm3030_vm12 = vweird.f32 %v10681_v20  ;;  %v3036_v30 = vand.u32 2147483648, %v10681_v20  ;;  %v10933_v62 = vsel %vm10906_vm9, %v3007_v38, %v3003_v50 }
 0x7e9   :  { %v3028_v60 = vmul.f32 %v10750_v32, %v3027_v10  ;;  %vm3031_vm1 = vweird.f32 %v10750_v32  ;;  %v3042_v55 = vsub.f32 1.0, %v3041_v52  ;;  %vm10942_vm0 = vcmp.eq.f32.partialorder %v3034_v49, 8.507059e+37 }
 0x7ea   :  { %v3018_v13 = vsel %vm3017_vm11, %v10745_v21, %v3014_v63  ;;  %vm3045_vm10 = vweird.f32 %v10687_v4  ;;  %v3056_v58 = vmul.f32 %v10768_v37, %v10696_v29  ;;  %v3049_v48 = vand.u32 2147483647, %v10687_v4  ;;  %vm3032_vm13 = vmor %vm3030_vm12, %vm3031_vm1 }
 0x7eb   :  { %v3029_v40 = vadd.f32 %v10750_v32, %v3028_v60  ;;  %v3043_v2 = vmul.f32 %v10757_v59, %v3042_v55  ;;  %v3051_v3 = vand.u32 2147483648, %v10687_v4  ;;  %v10955_v21 = vsel %vm10922_vm3, %v3022_v7, %v3018_v13 }
 0x7ec   :  { %v3037_v28 = vor.u32 1.1754944e-38, %v3036_v30  ;;  %vm3046_vm2 = vweird.f32 %v10757_v59  ;;  %v3057_v27 = vsub.f32 1.0, %v3056_v58  ;;  %v3064_v38 = vand.u32 2147483647, %v10696_v29 }
 0x7ed   :  { %v3033_v8 = vsel %vm3032_vm13, %v10750_v32, %v3029_v40  ;;  %v3044_v61 = vadd.f32 %v10757_v59, %v3043_v2  ;;  %v3066_v56 = vand.u32 2147483648, %v10696_v29  ;;  %vm3060_vm14 = vweird.f32 %v10696_v29  ;;  %vm10975_vm6 = vmor %vm3045_vm10, %vm3046_vm2 }
 0x7ee   :  { %v3058_v49 = vmul.f32 %v10768_v37, %v3057_v27  ;;  %vm3061_vm4 = vweird.f32 %v10768_v37  ;;  %v3071_v20 = vmul.f32 %v10784_v5, %v10703_v54  ;;  %v10971_v50 = vsel %vm10942_vm0, %v3037_v28, %v3033_v8 }
 0x7ef   :  { %vm10979_vm7 = vcmp.eq.f32.partialorder %v3049_v48, 8.507059e+37  ;;  %v3052_v29 = vor.u32 1.1754944e-38, %v3051_v3  ;;  %vm3075_vm8 = vweird.f32 %v10703_v54  ;;  %v3048_v10 = vsel %vm10975_vm6, %v10757_v59, %v3044_v61  ;;  %vm3062_vm9 = vmor %vm3060_vm14, %vm3061_vm4 }
 0x7f0   :  { %v3059_v52 = vadd.f32 %v10768_v37, %v3058_v49  ;;  %v3072_v63 = vsub.f32 1.0, %v3071_v20  ;;  %v3079_v4 = vand.u32 2147483647, %v10703_v54  ;;  %vm3065_vm15 = vcmp.eq.f32.partialorder %v3064_v38, 8.507059e+37 }
 0x7f1   :  { %v3067_v7 = vor.u32 1.1754944e-38, %v3066_v56  ;;  %v3081_v30 = vand.u32 2147483648, %v10703_v54  ;;  %6844 = vrcp.f32 %v10871_v33  ;;  %vm3076_vm5 = vweird.f32 %v10784_v5 }
 0x7f2   :  { %v3063_v60 = vsel %vm3062_vm9, %v10768_v37, %v3059_v52  ;;  %v3073_v55 = vmul.f32 %v10784_v5, %v3072_v63  ;;  %v3096_v59 = vand.u32 2147483648, %v10871_v33  ;;  %v3053_v13 = vsel %vm10979_vm7, %v3052_v29, %v3048_v10  ;;  %vm3077_vm12 = vmor %vm3075_vm8, %vm3076_vm5 }
 0x7f3   :  { %vm10997_vm3 = vcmp.eq.f32.partialorder %v3079_v4, 8.507059e+37  ;;  %v3094_v58 = vand.u32 2147483647, %v10871_v33  ;;  %6846 = vrcp.f32 %v10874_v25  ;;  %v3068_v40 = vsel %vm3065_vm15, %v3067_v7, %v3063_v60 }
 0x7f4   :  { %v3074_v37 = vadd.f32 %v10784_v5, %v3073_v55  ;;  %v3082_v2 = vor.u32 1.1754944e-38, %v3081_v30  ;;  %v3097_v48 = vor.u32 1.1754944e-38, %v3096_v59  ;;  %v3111_v3 = vand.u32 2147483648, %v10874_v25 }
 0x7f5   :  { %v15168_v28 = vrot.slane %v10394_v22, 1  ;;  %v15169_v8 = vrot.slane %v10394_v22, 2  ;;  %v15170_v38 = vrot.slane %v10394_v22, 3  ;;  %vm3090_vm11 = vweird.f32 %v10871_v33 }
 0x7f6   :  { %v3078_v49 = vsel %vm3077_vm12, %v10784_v5, %v3074_v37  ;;  %v3109_v54 = vand.u32 2147483647, %v10874_v25  ;;  %v15171_v20 = vrot.slane %v10394_v22, 4  ;;  %v3112_v29 = vor.u32 1.1754944e-38, %v3111_v3 }
 0x7f7   :  { %v3135_v27 = vmul.f32 %v15168_v28, %v10837_v0  ;;  %v3136_v61 = vmul.f32 %v15169_v8, %v10856_v15  ;;  %v3137_v56 = vmul.f32 %v15170_v38, %v10901_v12  ;;  %v3155_v0 = vsub.f32 1.0, %v10933_v62  ;;  %v6845_v39 = vpop.eup %6844 }
 0x7f8   :  { %v3138_v32 = vmul.f32 %v15171_v20, %v10915_v46  ;;  %v3083_v15 = vsel %vm10997_vm3, %v3082_v2, %v3078_v49  ;;  %v3086_v5 = vmul.f32 %v6845_v39, %v10871_v33  ;;  %vm3091_vm1 = vweird.f32 %v6845_v39 }
 0x7f9   :  { %v3143_v10 = vadd.f32 %v3135_v27, %v10731_v14  ;;  %v3144_v12 = vadd.f32 %v3136_v61, %v10764_v6  ;;  %vm11028_vm0 = vcmp.eq.f32.partialorder %v3094_v58, 8.507059e+37  ;;  %vm3105_vm10 = vweird.f32 %v10874_v25  ;;  %v6847_v63 = vpop.eup %6846  ;;  %vm3092_vm14 = vmor %vm3090_vm11, %vm3091_vm1 }
 0x7fa   :  { %v3145_v22 = vadd.f32 %v3137_v56, %v10775_v23  ;;  %v3146_v46 = vadd.f32 %v3138_v32, %v10781_v24  ;;  %v3156_v4 = vsub.f32 1.0, %v10955_v21  ;;  %v3157_v14 = vsub.f32 1.0, %v10971_v50 }
 0x7fb   :  { %6848 = vtanh.f32 %v3143_v10  ;;  %v3158_v6 = vsub.f32 1.0, %v3053_v13  ;;  %v3087_v7 = vsub.f32 1.0, %v3086_v5  ;;  %v3101_v30 = vmul.f32 %v6847_v63, %v10874_v25 }
 0x7fc   :  { %vm3106_vm13 = vweird.f32 %v6847_v63  ;;  %vm11038_vm2 = vcmp.eq.f32.partialorder %v3109_v54, 8.507059e+37  ;;  %6850 = vtanh.f32 %v3144_v12  ;;  %v3159_v23 = vsub.f32 1.0, %v3068_v40 }
 0x7fd   :  { %6852 = vtanh.f32 %v3145_v22  ;;  %v3160_v55 = vsub.f32 1.0, %v3083_v15  ;;  %v3163_v24 = vmul.f32 %v10815_v57, %v3155_v0  ;;  %v3088_v59 = vmul.f32 %v6845_v39, %v3087_v7  ;;  %vm3107_vm4 = vmor %vm3105_vm10, %vm3106_vm13 }
 0x7fe   :  { %v3102_v36 = vsub.f32 1.0, %v3101_v30  ;;  %6854 = vtanh.f32 %v3146_v46  ;;  %v3164_v58 = vmul.f32 %v10825_v34, %v3156_v4  ;;  %v3165_v37 = vmul.f32 %v10833_v9, %v3157_v14 }
 0x7ff   :  { %v3166_v2 = vmul.f32 %v10881_v1, %v3158_v6  ;;  %v15176_v3 = vrot.slane %v10260_v19, 7  ;;  %v15177_v27 = vrot.slane %v10262_v51, 7  ;;  %v3089_v61 = vadd.f32 %v6845_v39, %v3088_v59 }
 0x800   :  { %v3103_v38 = vmul.f32 %v6847_v63, %v3102_v36  ;;  %v15178_v57 = vrot.slane %v10264_v18, 7  ;;  %v15179_v34 = vrot.slane %v10272_v16, 7  ;;  %v15180_v19 = vrot.slane %v10280_v43, 7 }
 0x801   :  { %v3195_v28 = vmul.f32 %v15176_v3, %v10933_v62  ;;  %v3196_v8 = vmul.f32 %v15177_v27, %v10955_v21  ;;  %v6849_v9 = vpop.eup %6848  ;;  %v15181_v51 = vrot.slane %v10288_v42, 7  ;;  %vm15184_vm6 = vcmask 1041409  }
 0x802   :  { %v3197_v56 = vmul.f32 %v15178_v57, %v10971_v50  ;;  %v3198_v49 = vmul.f32 %v15179_v34, %v3053_v13  ;;  %v3199_v1 = vmul.f32 %v15180_v19, %v3068_v40  ;;  %v6851_v18 = vpop.eup %6850  ;;  %v3093_v50 = vsel %vm3092_vm14, %v6845_v39, %v3089_v61 }
 0x803   :  { %v3200_v62 = vmul.f32 %v15181_v51, %v3083_v15  ;;  %v11064_v21 = vadd.f32 %v3195_v28, %v3163_v24  ;;  %v11066_v54 = vadd.f32 %v3196_v8, %v3164_v58  ;;  %v3104_v20 = vadd.f32 %v6847_v63, %v3103_v38  ;;  %v6853_v32 = vpop.eup %6852 }
 0x804   :  { %v3167_v16 = vmul.f32 %v6849_v9, %v3159_v23  ;;  %v11068_v13 = vadd.f32 %v3197_v56, %v3165_v37  ;;  %v3098_v33 = vsel %vm11028_vm0, %v3097_v48, %v3093_v50  ;;  %v3168_v43 = vmul.f32 %v6851_v18, %v3160_v55  ;;  %v6855_v0 = vpop.eup %6854  ;;  %v15191_v50 = vld [vmem:[#allocation15_spill] sm:$0xff] }
 0x805   :  { %v11075_v42 = vadd.f32 %v3198_v49, %v3166_v2  ;;  %3211 = vst [vmem:[%s14429_s7] sm:$0x8] %v11064_v21  ;;  %v3219_v40 = vpack.c.bf16 %v11064_v21, %v11064_v21  ;;  %v3108_v39 = vsel %vm3107_vm4, %v6847_v63, %v3104_v20  ;;  %v3161_v15 = vsub.f32 1.0, %v3098_v33  ;;  %v15192_v20 = vld [vmem:[#allocation16_spill] sm:$0xff] }
 0x806   :  { %v15182_v48 = vrot.slane %v10296_v53, 7  ;;  %v11085_v12 = vadd.f32 %v3199_v1, %v3167_v16  ;;  %3212 = vst [vmem:[%s14429_s7 + $0x8] sm:$0x8] %v11066_v54  ;;  %v3113_v25 = vsel %vm11038_vm2, %v3112_v29, %v3108_v39  ;;  %v11093_v5 = vadd.f32 %v3200_v62, %v3168_v43  ;;  %v15193_v16 = vld [vmem:[#allocation50_spill] sm:$0xff]  ;;  %v15199_v39 = vld [vmem:[#allocation21_spill] sm:$0xff] }
 0x807   :  { %3213 = vst [vmem:[%s14429_s7 + $0x10] sm:$0x8] %v11068_v13  ;;  %v3220_v53 = vpack.c.bf16 %v11066_v54, %v11066_v54  ;;  %v3221_v52 = vpack.c.bf16 %v11068_v13, %v11068_v13  ;;  %v3162_v22 = vsub.f32 1.0, %v3113_v25  ;;  %v3169_v46 = vmul.f32 %v6853_v32, %v3161_v15  ;;  %v15194_v32 = vld [vmem:[#allocation23_spill] sm:$0xff]  ;;  %v15196_v43 = vld [vmem:[#allocation18_spill] sm:$0xff] }
 0x808   :  { %v3201_v10 = vmul.f32 %v15182_v48, %v3098_v33  ;;  %v15183_v63 = vrot.slane %v10304_v11, 7  ;;  %3214 = vst [vmem:[%s14429_s7 + $0x18] sm:$0x8] %v11075_v42  ;;  %v3222_v29 = vpack.c.bf16 %v11075_v42, %v11075_v42  ;;  %v3223_v14 = vpack.c.bf16 %v11085_v12, %v11085_v12  ;;  %v15195_v33 = vld [vmem:[#allocation17_spill] sm:$0xff]  ;;  %v15200_v15 = vld [vmem:[#allocation22_spill] sm:$0xff]  ;;  %v15201_v48 = vld [vmem:[#allocation55_spill] sm:$0xff] }
 0x809   :  { %3215 = vst [vmem:[%s14429_s7 + $0x20] sm:$0x8] %v11085_v12  ;;  %v3224_v11 = vpack.c.bf16 %v11093_v5, %v11093_v5  ;;  %v3235_v6 = vunpack.c.l.b16 %v3219_v40  ;;  %v3236_v7 = vunpack.c.l.b16 %v3220_v53  ;;  %v3170_v30 = vmul.f32 %v6855_v0, %v3162_v22  ;;  %v15197_v40 = vld [vmem:[#allocation54_spill] sm:$0xff]  ;;  %v15204_v53 = vld [vmem:[#allocation25_spill] sm:$0xff]  ;;  %v15206_v22 = vld [vmem:[#allocation43_spill] sm:$0xff] }
 0x80a   :  { %v3202_v4 = vmul.f32 %v15183_v63, %v3113_v25  ;;  %v11119_v60 = vadd.f32 %v3201_v10, %v3169_v46  ;;  %3216 = vst [vmem:[%s14429_s7 + $0x28] sm:$0x8] %v11093_v5  ;;  %v3237_v23 = vunpack.c.l.b16 %v3221_v52  ;;  %v3239_v55 = vunpack.c.l.b16 %v3223_v14  ;;  %v15198_v0 = vld [vmem:[#allocation26_spill] sm:$0xff]  ;;  %v15202_v10 = vld [vmem:[#allocation29_spill] sm:$0xff]  ;;  %v15203_v25 = vld [vmem:[#allocation24_spill] sm:$0xff] }
 0x80b   :  { %v3240_v24 = vunpack.c.l.b16 %v3224_v11  ;;  %v3243_v59 = vrot.slane %v3235_v6, 3  ;;  %v3244_v36 = vrot.slane %v3236_v7, 2  ;;  %v3238_v3 = vunpack.c.l.b16 %v3222_v29  ;;  %v15205_v52 = vld [vmem:[#allocation56_spill] sm:$0xff]  ;;  %v15207_v46 = vld [vmem:[#allocation27_spill] sm:$0xff]  ;;  %v15211_v14 = vld [vmem:[#allocation30_spill] sm:$0xff] }
 0x80c   :  { %v11125_v58 = vadd.f32 %v3202_v4, %v3170_v30  ;;  %3217 = vst [vmem:[%s14429_s7 + $0x30] sm:$0x8] %v11119_v60  ;;  %v3225_v37 = vpack.c.bf16 %v11119_v60, %v11119_v60  ;;  %v3246_v2 = vrot.slane %v3237_v23, 1  ;;  %vm15185_vm7 = vcmask 1042434   ;;  %v15208_v63 = vld [vmem:[#allocation28_spill] sm:$0xff]  ;;  %v15209_v4 = vld [vmem:[#allocation57_spill] sm:$0xff] }
 0x80d   :  { %v3245_v28 = vsel %vm15184_vm6, %v3244_v36, %v3243_v59  ;;  %v3249_v38 = vrot.slane %v3239_v55, 7  ;;  %vm15186_vm8 = vcmask 1043459   ;;  %v3251_v56 = vrot.slane %v3240_v24, 6  ;;  %v15210_v29 = vld [vmem:[#allocation47_spill] sm:$0xff]  ;;  %v15213_v6 = vld [vmem:[#allocation58_spill] sm:$0xff] }
 0x80e   :  { %3218 = vst [vmem:[%s14429_s7 + $0x38] sm:$0x8] %v11125_v58  ;;  %v3226_v27 = vpack.c.bf16 %v11125_v58, %v11125_v58  ;;  %v3241_v8 = vunpack.c.l.b16 %v3225_v37  ;;  %v3247_v61 = vsel %vm15185_vm7, %v3246_v2, %v3245_v28  ;;  %vm15187_vm9 = vcmask 1044484   ;;  %v15212_v11 = vld [vmem:[#allocation31_spill] sm:$0xff]  ;;  %v7199_v55 = vld [vmem:[%s14425_s4] sm:$0xff] }
 0x80f   :  { %v3248_v57 = vsel %vm15186_vm8, %v3238_v3, %v3247_v61  ;;  %vm15188_vm15 = vcmask 1045509   ;;  %vm15189_vm5 = vcmask 1046534   ;;  %vm15190_vm3 = vcmask 1047559   ;;  %v15214_v7 = vld [vmem:[#allocation51_spill] sm:$0xff]  ;;  %v7200_v59 = vld [vmem:[%s14426_s3] sm:$0xff] }
 0x810   :  { %v3242_v34 = vunpack.c.l.b16 %v3226_v27  ;;  %v3250_v49 = vsel %vm15187_vm9, %v3249_v38, %v3248_v57  ;;  %v3253_v9 = vrot.slane %v3241_v8, 5 }
 0x811   :  { %v3252_v19 = vsel %vm15188_vm15, %v3251_v56, %v3250_v49  ;;  %v15215_v49 = vld [vmem:[#allocation32_spill] sm:$0xff] }
 0x812   :  { %v3254_v1 = vsel %vm15189_vm5, %v3253_v9, %v3252_v19  ;;  %v3255_v51 = vrot.slane %v3242_v34, 4  ;;  %v15216_v9 = vld [vmem:[#allocation33_spill] sm:$0xff]  ;;  %v15217_v19 = vld [vmem:[#allocation3_spill] sm:$0xff] }
 0x814   :  { %v3256_v62 = vsel %vm15190_vm3, %v3255_v51, %v3254_v1  ;;  %v15218_v1 = vld [vmem:[#allocation34_spill] sm:$0xff]  ;;  %v15219_v51 = vld [vmem:[#allocation35_spill] sm:$0xff] }
 0x815   :  { %v3257_v18 = vpack.c.b16 %v3256_v62, %v3256_v62  ;;  %v15220_v62 = vld [vmem:[#allocation4_spill] sm:$0xff] }
 0x817   :  { %3267 = vmatmul.bf16.vlgmr.msrb.gmra.mxu0 %v3257_v18  ;;  %3280 = vmatmul.bf16.vlgmr.msrb.gmra.mxu1 %v3257_v18 }
 0x818   :  { %3293 = vmatmul.bf16.vlgmr.msrb.gmra.mxu2 %v3257_v18  ;;  %3306 = vmatmul.bf16.vlgmr.msrb.gmra.mxu3 %v3257_v18  ;;  %v15221_v18 = vld [vmem:[#allocation36_spill] sm:$0xff] }
 0x819   :  { %3988 = vmatpush.bf16.msrb.mxu0 %v15043_v35  ;;  %4001 = vmatpush.bf16.msrb.mxu1 %v15044_v41 }
 0x81a   :  { %4014 = vmatpush.bf16.msrb.mxu2 %v15045_v17  ;;  %4040 = vmatpush.bf16.msrb.mxu3 %v15046_v47 }
 0x81d   :  { %3989 = vmatpush.bf16.msrb.mxu0 %v15047_v31  ;;  %4002 = vmatpush.bf16.msrb.mxu1 %v15048_v45 }
 0x81e   :  { %4015 = vmatpush.bf16.msrb.mxu2 %v15049_v44  ;;  %4041 = vmatpush.bf16.msrb.mxu3 %v15050_v26 }
 0x821   :  { %3990 = vmatpush.bf16.msrb.mxu0 %v15191_v50  ;;  %4003 = vmatpush.bf16.msrb.mxu1 %v15192_v20 }
 0x822   :  { %4016 = vmatpush.bf16.msrb.mxu2 %v15193_v16  ;;  %4042 = vmatpush.bf16.msrb.mxu3 %v15194_v32 }
 0x825   :  { %3991 = vmatpush.bf16.msrb.mxu0 %v15195_v33  ;;  %4004 = vmatpush.bf16.msrb.mxu1 %v15196_v43 }
 0x826   :  { %4017 = vmatpush.bf16.msrb.mxu2 %v15197_v40  ;;  %4043 = vmatpush.bf16.msrb.mxu3 %v15198_v0 }
 0x829   :  { %3992 = vmatpush.bf16.msrb.mxu0 %v15199_v39  ;;  %4005 = vmatpush.bf16.msrb.mxu1 %v15200_v15 }
 0x82a   :  { %4018 = vmatpush.bf16.msrb.mxu2 %v15201_v48  ;;  %4044 = vmatpush.bf16.msrb.mxu3 %v15202_v10 }
 0x82d   :  { %3993 = vmatpush.bf16.msrb.mxu0 %v15203_v25  ;;  %4006 = vmatpush.bf16.msrb.mxu1 %v15204_v53 }
 0x82e   :  { %4019 = vmatpush.bf16.msrb.mxu2 %v15205_v52  ;;  %4045 = vmatpush.bf16.msrb.mxu3 %v15206_v22 }
 0x831   :  { %3994 = vmatpush.bf16.msrb.mxu0 %v15207_v46  ;;  %4007 = vmatpush.bf16.msrb.mxu1 %v15208_v63 }
 0x832   :  { %4020 = vmatpush.bf16.msrb.mxu2 %v15209_v4  ;;  %4046 = vmatpush.bf16.msrb.mxu3 %v15210_v29 }
 0x835   :  { %3995 = vmatpush.bf16.msrb.mxu0 %v15211_v14  ;;  %4008 = vmatpush.bf16.msrb.mxu1 %v15212_v11  ;;  %v11336_v14 = vld [vmem:[%s14428_s0 + $0x2c] sm:$0x4] }
 0x836   :  { %4021 = vmatpush.bf16.msrb.mxu2 %v15213_v6  ;;  %4047 = vmatpush.bf16.msrb.mxu3 %v15214_v7  ;;  %v11314_v7 = vld [vmem:[%s14428_s0 + $0x20] sm:$0x4] }
 0x894   :  { %v3268_v30 = vpop.f32.mrf.mxu0  ;;  %v3281_v23 = vpop.f32.mrf.mxu1 }
 0x895   :  { %v3311_v24 = vmul.f32 %v7199_v55, %v3268_v30  ;;  %v15222_v30 = vld [vmem:[#allocation37_spill] sm:$0xff] }
 0x896   :  { %v15223_v55 = vld [vmem:[#allocation5_spill] sm:$0xff] }
 0x897   :  { %v3312_v36 = vadd.f32 %v7200_v59, %v3311_v24  ;;  %v15224_v24 = vld [vmem:[#allocation38_spill] sm:$0xff]  ;;  %v15225_v59 = vld [vmem:[#allocation39_spill] sm:$0xff] }
 0x899   :  { %3316 = vmax.xlane.f32.xlu2 %v3312_v36 }
 0x89b   :  { %v3294_v37 = vpop.f32.mrf.mxu2  ;;  %v3307_v2 = vpop.f32.mrf.mxu3 }
 0x89c   :  { %v3270_v3 = vpop.f32.mrf.mxu0  ;;  %v3283_v28 = vpop.f32.mrf.mxu1 }
 0x89d   :  { %v15227_v3 = vld [vmem:[#allocation40_spill] sm:$0xff]  ;;  %v15228_v28 = vld [vmem:[#allocation41_spill] sm:$0xff] }
 0x8a3   :  { %v3296_v27 = vpop.f32.mrf.mxu2  ;;  %v3309_v8 = vpop.f32.mrf.mxu3 }
 0x8a4   :  { %v15229_v27 = vld [vmem:[#allocation7_spill] sm:$0xff]  ;;  %v15230_v8 = vld [vmem:[#allocation44_spill] sm:$0xff] }
 0x90c   :  { %v3317_v61 = vpop.xlane.xlu2 %3316 }
 0x90d   :  { %v3318_v38 = vsub.f32 %v3312_v36, %v3317_v61  ;;  %v15226_v36 = vld [vmem:[#allocation6_spill] sm:$0xff]  ;;  %v15231_v61 = vld [vmem:[#allocation45_spill] sm:$0xff] }
 0x90f   :  { %v3319_v57 = vmul.f32 1.442695, %v3318_v38  ;;  %v15232_v38 = vld [vmem:[#allocation8_spill] sm:$0xff] }
 0x911   :  { %6856 = vpow2.f32 %v3319_v57  ;;  %v15233_v57 = vld [vmem:[#allocation48_spill] sm:$0xff] }
 0x917   :  { %v6857_v56 = vpop.eup %6856 }
 0x918   :  { %3321 = vadd.xlane.f32.xlu0 %v6857_v56  ;;  %v3323_v34 = vpack.c.bf16 %v6857_v56, %v6857_v56  ;;  %v15234_v56 = vld [vmem:[#allocation49_spill] sm:$0xff] }
 0x91a   :  { %3332 = vmatmul.bf16.vlgmr.msra.gmra.mxu0 %v3323_v34  ;;  %3345 = vmatmul.bf16.vlgmr.msra.gmra.mxu1 %v3323_v34 }
 0x91b   :  { %3358 = vmatmul.bf16.vlgmr.msra.gmra.mxu2 %v3323_v34  ;;  %4053 = vmatpush.bf16.msra.mxu0 %v15215_v49  ;;  %v15235_v34 = vld [vmem:[#allocation9_spill] sm:$0xff]  ;;  %v11309_v49 = vld [vmem:[%s14428_s0 + $0x14] sm:$0x4] }
 0x91c   :  { %4066 = vmatpush.bf16.msra.mxu1 %v15216_v9  ;;  %4691 = vmatpush.bf16.msra.mxu2 %v15217_v19  ;;  %v11304_v9 = vld [vmem:[%s14428_s0 + $0x8] sm:$0x4] }
 0x91f   :  { %4054 = vmatpush.bf16.msra.mxu0 %v15218_v1 }
 0x920   :  { %4067 = vmatpush.bf16.msra.mxu1 %v15219_v51  ;;  %4692 = vmatpush.bf16.msra.mxu2 %v15220_v62  ;;  %v11295_v51 = vld [vmem:[%s14428_s0 + $0x38] sm:$0x4] }
 0x923   :  { %4055 = vmatpush.bf16.msra.mxu0 %v15221_v18 }
 0x924   :  { %4068 = vmatpush.bf16.msra.mxu1 %v15222_v30  ;;  %4693 = vmatpush.bf16.msra.mxu2 %v15223_v55 }
 0x927   :  { %4056 = vmatpush.bf16.msra.mxu0 %v15224_v24 }
 0x928   :  { %4069 = vmatpush.bf16.msra.mxu1 %v15225_v59  ;;  %4694 = vmatpush.bf16.msra.mxu2 %v15226_v36  ;;  %v15236_v59 = vld [vmem:[#allocation52_spill] sm:$0xff]  ;;  %v15237_v36 = vld [vmem:[#allocation53_spill] sm:$0xff] }
 0x92b   :  { %4057 = vmatpush.bf16.msra.mxu0 %v15227_v3  ;;  %v15238_v3 = vld [vmem:[#allocation10_spill] sm:$0xff] }
 0x92c   :  { %4070 = vmatpush.bf16.msra.mxu1 %v15228_v28  ;;  %4695 = vmatpush.bf16.msra.mxu2 %v15229_v27  ;;  %v15239_v28 = vld [vmem:[#allocation59_spill] sm:$0xff] }
 0x92d   :  { %v11209_v27 = vadd.f32 %v3281_v23, %v15239_v28 }
 0x92f   :  { %4058 = vmatpush.bf16.msra.mxu0 %v15230_v8  ;;  %v15240_v8 = vld [vmem:[#allocation60_spill] sm:$0xff]  ;;  %v15243_v16 = vrot.slane %v11209_v27, 5 }
 0x930   :  { %4071 = vmatpush.bf16.msra.mxu1 %v15231_v61  ;;  %4696 = vmatpush.bf16.msra.mxu2 %v15232_v38  ;;  %v11212_v24 = vadd.f32 %v3294_v37, %v15240_v8  ;;  %v15241_v61 = vld [vmem:[#allocation61_spill] sm:$0xff]  ;;  %v11250_v38 = vld [vmem:[%s14428_s0 + $0xc] sm:$0x44] }
 0x931   :  { %v11222_v23 = vadd.f32 %v3307_v2, %v15241_v61  ;;  %v11245_v2 = vld [vmem:[%s14428_s0] sm:$0x44]  ;;  %v11277_v8 = vld [vmem:[%s14428_s0 + $0x48] sm:$0x44]  ;;  %v11282_v37 = vld [vmem:[%s14428_s0 + $0x54] sm:$0x44]  ;;  %v3382_v55 = vunpack.c.l.bf16 %v11250_v38 }
 0x932   :  { %v3379_v28 = vunpack.c.l.bf16 %v11245_v2  ;;  %v3400_v1 = vunpack.c.l.bf16 %v11282_v37 }
 0x933   :  { %4059 = vmatpush.bf16.msra.mxu0 %v15233_v57 }
 0x934   :  { %4072 = vmatpush.bf16.msra.mxu1 %v15234_v56  ;;  %4697 = vmatpush.bf16.msra.mxu2 %v15235_v34  ;;  %v11255_v56 = vld [vmem:[%s14428_s0 + $0x18] sm:$0x44]  ;;  %v15242_v34 = vrot.slane %v11209_v27, 4 }
 0x935   :  { %v3385_v57 = vunpack.c.l.bf16 %v11255_v56 }
 0x937   :  { %4060 = vmatpush.bf16.msra.mxu0 %v15236_v59  ;;  %v11270_v59 = vld [vmem:[%s14428_s0 + $0x3c] sm:$0x44] }
 0x938   :  { %4073 = vmatpush.bf16.msra.mxu1 %v15237_v36  ;;  %4698 = vmatpush.bf16.msra.mxu2 %v15238_v3  ;;  %v11260_v36 = vld [vmem:[%s14428_s0 + $0x24] sm:$0x44]  ;;  %v3394_v62 = vunpack.c.l.bf16 %v11270_v59  ;;  %v3397_v3 = vunpack.c.l.bf16 %v11277_v8 }
 0x939   :  { %v3388_v30 = vunpack.c.l.bf16 %v11260_v36 }
 0x98b   :  { %v3322_v61 = vpop.xlane.xlu0 %3321 }
 0x98c   :  { %6858 = vrcp.f32 %v3322_v61  ;;  %v11265_v61 = vld [vmem:[%s14428_s0 + $0x30] sm:$0x44] }
 0x98d   :  { %v3391_v18 = vunpack.c.l.bf16 %v11265_v61 }
 0x992   :  { %v11316_v6 = vpop.eup %6858 }
 0x997   :  { %v3333_v19 = vpop.f32.mrf.mxu0  ;;  %v3346_v11 = vpop.f32.mrf.mxu1 }
 0x998   :  { %v3404_v63 = vmul.f32 %v11316_v6, %v3333_v19  ;;  %v11327_v53 = vmul.f32 %v11316_v6, %v3346_v11 }
 0x99a   :  { %v3410_v29 = vrot.slane %v3404_v63, 4  ;;  %v3413_v10 = vrot.slane %v3404_v63, 5  ;;  %v3416_v4 = vrot.slane %v3404_v63, 6  ;;  %v3419_v48 = vrot.slane %v3404_v63, 7 }
 0x99b   :  { %v3422_v19 = vrot.slane %v3404_v63, 1  ;;  %v3425_v15 = vrot.slane %v3404_v63, 2  ;;  %v3428_v46 = vrot.slane %v3404_v63, 3  ;;  %v3467_v39 = vadd.f32 %v3404_v63, %v3391_v18 }
 0x99c   :  { %v3455_v22 = vadd.f32 %v3410_v29, %v3379_v28  ;;  %v3458_v0 = vadd.f32 %v3413_v10, %v3382_v55  ;;  %v3461_v52 = vadd.f32 %v3416_v4, %v3385_v57  ;;  %v3464_v40 = vadd.f32 %v3419_v48, %v3388_v30 }
 0x99d   :  { %v3470_v11 = vadd.f32 %v3422_v19, %v3394_v62  ;;  %v3473_v43 = vadd.f32 %v3425_v15, %v3397_v3  ;;  %v3476_v33 = vadd.f32 %v3428_v46, %v3400_v1  ;;  %v3499_v25 = vadd.f32 %v3467_v39, %v11209_v27 }
 0x99e   :  { %v3495_v32 = vadd.f32 %v15242_v34, %v3455_v22  ;;  %v3496_v63 = vadd.f32 %v15243_v16, %v3458_v0  ;;  %v15244_v10 = vrot.slane %v11209_v27, 6  ;;  %v15245_v48 = vrot.slane %v11209_v27, 7  ;;  %v11346_v46 = vpop.f32.mrf.mxu2 }
 0x99f   :  { %v15246_v39 = vrot.slane %v11209_v27, 1  ;;  %v15247_v1 = vrot.slane %v11209_v27, 2  ;;  %v15248_v18 = vrot.slane %v11209_v27, 3  ;;  %v6404_v30 = vmul.f32 -1.442695, %v3499_v25  ;;  %v3335_v55 = vpop.f32.mrf.mxu0  ;;  %v3348_v16 = vpop.f32.mrf.mxu1 }
 0x9a0   :  { %v3497_v4 = vadd.f32 %v15244_v10, %v3461_v52  ;;  %v3498_v15 = vadd.f32 %v15245_v48, %v3464_v40  ;;  %v6400_v0 = vmul.f32 -1.442695, %v3495_v32  ;;  %v6401_v3 = vmul.f32 -1.442695, %v3496_v63  ;;  %v11363_v27 = vld [vmem:[%s14428_s0 + $0x44] sm:$0x4] }
 0x9a1   :  { %v3500_v29 = vadd.f32 %v15246_v39, %v3470_v11  ;;  %v3501_v62 = vadd.f32 %v15247_v1, %v3473_v43  ;;  %v3502_v22 = vadd.f32 %v15248_v18, %v3476_v33  ;;  %v3390_v28 = vunpack.c.l.bf16 %v11336_v14 }
 0x9a2   :  { %v6402_v52 = vmul.f32 -1.442695, %v3497_v4  ;;  %v6403_v40 = vmul.f32 -1.442695, %v3498_v15  ;;  %6860 = vpow2.f32 %v6404_v30  ;;  %v3411_v11 = vrot.slane %v11327_v53, 4 }
 0x9a3   :  { %v6405_v57 = vmul.f32 -1.442695, %v3500_v29  ;;  %v6406_v34 = vmul.f32 -1.442695, %v3501_v62  ;;  %6862 = vpow2.f32 %v6400_v0  ;;  %v6407_v19 = vmul.f32 -1.442695, %v3502_v22 }
 0x9a4   :  { %v3414_v43 = vrot.slane %v11327_v53, 5  ;;  %6864 = vpow2.f32 %v6401_v3  ;;  %v3417_v33 = vrot.slane %v11327_v53, 6  ;;  %v3420_v25 = vrot.slane %v11327_v53, 7  ;;  %v11372_v15 = vld [vmem:[%s14428_s0 + $0x50] sm:$0x4] }
 0x9a5   :  { %v3423_v32 = vrot.slane %v11327_v53, 1  ;;  %6866 = vpow2.f32 %v6402_v52  ;;  %v3426_v63 = vrot.slane %v11327_v53, 2  ;;  %v3429_v10 = vrot.slane %v11327_v53, 3 }
 0x9a6   :  { %v15249_v4 = vunpack.c.h.bf16 %v11245_v2  ;;  %6868 = vpow2.f32 %v6403_v40  ;;  %v15250_v39 = vunpack.c.h.bf16 %v11250_v38  ;;  %v15251_v1 = vunpack.c.h.bf16 %v11255_v56  ;;  %v3361_v0 = vpop.f32.mrf.mxu2  ;;  %v11388_v38 = vld [vmem:[%s14428_s0 + $0x5c] sm:$0x4] }
 0x9a7   :  { %v15252_v18 = vunpack.c.h.bf16 %v11260_v36  ;;  %6870 = vpow2.f32 %v6405_v57  ;;  %v15253_v30 = vunpack.c.h.bf16 %v11265_v61  ;;  %v15254_v55 = vunpack.c.h.bf16 %v11270_v59 }
 0x9a8   :  { %v3456_v48 = vadd.f32 %v3411_v11, %v15249_v4  ;;  %v3459_v29 = vadd.f32 %v3414_v43, %v15250_v39  ;;  %v3462_v62 = vadd.f32 %v3417_v33, %v15251_v1  ;;  %v6861_v3 = vpop.eup %6860  ;;  %6872 = vpow2.f32 %v6406_v34 }
 0x9a9   :  { %v3465_v22 = vadd.f32 %v3420_v25, %v15252_v18  ;;  %v3468_v2 = vadd.f32 %v11327_v53, %v15253_v30  ;;  %v3471_v16 = vadd.f32 %v3423_v32, %v15254_v55  ;;  %v15255_v36 = vunpack.c.h.bf16 %v11277_v8  ;;  %v6863_v59 = vpop.eup %6862 }
 0x9aa   :  { %v15256_v61 = vunpack.c.h.bf16 %v11282_v37  ;;  %6874 = vpow2.f32 %v6407_v19  ;;  %v11396_v57 = vadd.f32 1.0, %v6861_v3  ;;  %v15257_v11 = vrot.slane %v11212_v24, 4  ;;  %v6865_v32 = vpop.eup %6864 }
 0x9ab   :  { %v3474_v52 = vadd.f32 %v3426_v63, %v15255_v36  ;;  %v15258_v33 = vrot.slane %v11212_v24, 5  ;;  %v11402_v34 = vadd.f32 1.0, %v6863_v59  ;;  %v15259_v8 = vrot.slane %v11212_v24, 6  ;;  %v6867_v19 = vpop.eup %6866 }
 0x9ac   :  { %v3477_v40 = vadd.f32 %v3429_v10, %v15256_v61  ;;  %v3671_v43 = vadd.f32 %v15257_v11, %v3456_v48  ;;  %v15260_v37 = vrot.slane %v11212_v24, 7  ;;  %v11409_v39 = vadd.f32 1.0, %v6865_v32  ;;  %v6869_v18 = vpop.eup %6868 }
 0x9ad   :  { %v3672_v25 = vadd.f32 %v15258_v33, %v3459_v29  ;;  %v3673_v63 = vadd.f32 %v15259_v8, %v3462_v62  ;;  %6876 = vrcp.f32 %v11396_v57  ;;  %v3675_v48 = vadd.f32 %v3468_v2, %v11212_v24  ;;  %v6871_v3 = vpop.eup %6870 }
 0x9ae   :  { %v3674_v10 = vadd.f32 %v15260_v37, %v3465_v22  ;;  %v15261_v29 = vrot.slane %v11212_v24, 1  ;;  %v11415_v30 = vadd.f32 1.0, %v6867_v19  ;;  %6878 = vrcp.f32 %v11402_v34  ;;  %v6873_v59 = vpop.eup %6872 }
 0x9af   :  { %v15262_v62 = vrot.slane %v11212_v24, 2  ;;  %v15263_v55 = vrot.slane %v11212_v24, 3  ;;  %v11422_v36 = vadd.f32 1.0, %v6869_v18  ;;  %6880 = vrcp.f32 %v11409_v39 }
 0x9b0   :  { %v3676_v1 = vadd.f32 %v15261_v29, %v3471_v16  ;;  %v6408_v2 = vmul.f32 -1.442695, %v3671_v43  ;;  %v6409_v61 = vmul.f32 -1.442695, %v3672_v25  ;;  %v11425_v16 = vadd.f32 1.0, %v6871_v3  ;;  %v6875_v32 = vpop.eup %6874 }
 0x9b1   :  { %v3677_v22 = vadd.f32 %v15262_v62, %v3474_v52  ;;  %v3678_v0 = vadd.f32 %v15263_v55, %v3477_v40  ;;  %6882 = vrcp.f32 %v11415_v30  ;;  %v6410_v11 = vmul.f32 -1.442695, %v3673_v63 }
 0x9b2   :  { %v6411_v33 = vmul.f32 -1.442695, %v3674_v10  ;;  %v11428_v8 = vadd.f32 1.0, %v6873_v59  ;;  %6884 = vrcp.f32 %v11422_v36  ;;  %v6412_v24 = vmul.f32 -1.442695, %v3675_v48 }
 0x9b3   :  { %v11433_v52 = vmul.f32 %v11316_v6, %v11346_v46  ;;  %v11435_v40 = vadd.f32 1.0, %v6875_v32  ;;  %6886 = vrcp.f32 %v11425_v16  ;;  %v6413_v43 = vmul.f32 -1.442695, %v3676_v1  ;;  %v11438_v37 = vpop.eup %6876 }
 0x9b4   :  { %v6414_v25 = vmul.f32 -1.442695, %v3677_v22  ;;  %6888 = vrcp.f32 %v11428_v8  ;;  %v6879_v48 = vpop.eup %6878  ;;  %v6415_v6 = vmul.f32 -1.442695, %v3678_v0  ;;  %vm3540_vm12 = vweird.f32 %v11402_v34 }
 0x9b5   :  { %v3412_v63 = vrot.slane %v11433_v52, 4  ;;  %v3415_v10 = vrot.slane %v11433_v52, 5  ;;  %v3418_v19 = vrot.slane %v11433_v52, 6  ;;  %6890 = vrcp.f32 %v11435_v40  ;;  %v11447_v29 = vpop.eup %6880 }
 0x9b6   :  { %v3544_v46 = vand.u32 2147483647, %v11402_v34  ;;  %6892 = vpow2.f32 %v6408_v2  ;;  %v3546_v62 = vand.u32 2147483648, %v11402_v34  ;;  %v15264_v0 = vunpack.c.l.bf16 %v11304_v9 }
 0x9b7   :  { %v11452_v22 = vpop.eup %6882  ;;  %6894 = vpow2.f32 %v6409_v61  ;;  %v3536_v59 = vmul.f32 %v6879_v48, %v11402_v34  ;;  %v15265_v2 = vunpack.c.l.bf16 %v11309_v49  ;;  %v15266_v53 = vunpack.c.l.bf16 %v11314_v7 }
 0x9b8   :  { %v11457_v3 = vadd.f32 %v3412_v63, %v15264_v0  ;;  %v11460_v32 = vpop.eup %6884  ;;  %6896 = vpow2.f32 %v6410_v11  ;;  %vm3541_vm11 = vweird.f32 %v6879_v48  ;;  %vm11472_vm1 = vcmp.eq.f32.partialorder %v3544_v46, 8.507059e+37 }
 0x9b9   :  { %v11464_v4 = vadd.f32 %v3415_v10, %v15265_v2  ;;  %v11468_v18 = vadd.f32 %v3418_v19, %v15266_v53  ;;  %v11470_v61 = vpop.eup %6886  ;;  %6898 = vpow2.f32 %v6411_v33  ;;  %v3537_v9 = vsub.f32 1.0, %v3536_v59  ;;  %vm3542_vm2 = vmor %vm3540_vm12, %vm3541_vm11 }
 0x9ba   :  { %v3551_v11 = vmul.f32 %v11447_v29, %v11409_v39  ;;  %v11478_v0 = vpop.eup %6888  ;;  %6900 = vpow2.f32 %v6412_v24  ;;  %v3547_v49 = vor.u32 1.1754944e-38, %v3546_v62  ;;  %v3559_v7 = vand.u32 2147483647, %v11409_v39 }
 0x9bb   :  { %v3561_v53 = vand.u32 2147483648, %v11409_v39  ;;  %v11482_v10 = vpop.eup %6890  ;;  %6902 = vpow2.f32 %v6413_v43  ;;  %v3538_v33 = vmul.f32 %v6879_v48, %v3537_v9  ;;  %v3566_v46 = vmul.f32 %v11452_v22, %v11415_v30 }
 0x9bc   :  { %v3552_v19 = vsub.f32 1.0, %v3551_v11  ;;  %v6893_v59 = vpop.eup %6892  ;;  %6904 = vpow2.f32 %v6414_v25  ;;  %vm3555_vm0 = vweird.f32 %v11409_v39  ;;  %vm3556_vm10 = vweird.f32 %v11447_v29 }
 0x9bd   :  { %vm11488_vm13 = vcmp.eq.f32.partialorder %v3559_v7, 8.507059e+37  ;;  %v6895_v62 = vpop.eup %6894  ;;  %v11492_v2 = vadd.f32 1.0, %v6893_v59  ;;  %v3539_v55 = vadd.f32 %v6879_v48, %v3538_v33  ;;  %v3562_v9 = vor.u32 1.1754944e-38, %v3561_v53  ;;  %vm3557_vm6 = vmor %vm3555_vm0, %vm3556_vm10 }
 0x9be   :  { %v3553_v43 = vmul.f32 %v11447_v29, %v3552_v19  ;;  %v6897_v11 = vpop.eup %6896  ;;  %6906 = vpow2.f32 %v6415_v6  ;;  %v11495_v56 = vadd.f32 1.0, %v6895_v62  ;;  %v3567_v25 = vsub.f32 1.0, %v3566_v46 }
 0x9bf   :  { %vm3570_vm14 = vweird.f32 %v11415_v30  ;;  %v6899_v7 = vpop.eup %6898  ;;  %v11501_v1 = vadd.f32 1.0, %v6897_v11  ;;  %v3543_v59 = vsel %vm3542_vm2, %v6879_v48, %v3539_v55  ;;  %vm3571_vm4 = vweird.f32 %v11452_v22 }
 0x9c0   :  { %v3554_v33 = vadd.f32 %v11447_v29, %v3553_v43  ;;  %v6901_v53 = vpop.eup %6900  ;;  %v11505_v19 = vadd.f32 1.0, %v6899_v7  ;;  %6908 = vrcp.f32 %v11492_v2  ;;  %v3548_v34 = vsel %vm11472_vm1, %v3547_v49, %v3543_v59  ;;  %vm11533_vm7 = vmor %vm3570_vm14, %vm3571_vm4 }
 0x9c1   :  { %v3568_v6 = vmul.f32 %v11452_v22, %v3567_v25  ;;  %v6903_v48 = vpop.eup %6902  ;;  %v11515_v55 = vadd.f32 1.0, %v6901_v53  ;;  %6910 = vrcp.f32 %v11495_v56  ;;  %v3574_v62 = vand.u32 2147483647, %v11415_v30 }
 0x9c2   :  { %v3558_v46 = vsel %vm3557_vm6, %v11447_v29, %v3554_v33  ;;  %v11520_v43 = vpop.eup %6904  ;;  %v11522_v63 = vadd.f32 1.0, %v6903_v48  ;;  %6912 = vrcp.f32 %v11501_v1  ;;  %v3576_v11 = vand.u32 2147483648, %v11415_v30 }
 0x9c3   :  { %v3563_v39 = vsel %vm11488_vm13, %v3562_v9, %v3558_v46  ;;  %v3569_v49 = vadd.f32 %v11452_v22, %v3568_v6  ;;  %6914 = vrcp.f32 %v11505_v19  ;;  %v15273_v25 = vrot.slane %v11222_v23, 4 }
 0x9c4   :  { %v15274_v24 = vrot.slane %v11222_v23, 5  ;;  %v11542_v59 = vpop.eup %6906  ;;  %6916 = vrcp.f32 %v11515_v55  ;;  %v15275_v33 = vrot.slane %v11433_v52, 7  ;;  %v15276_v6 = vunpack.c.l.bf16 %v11295_v51 }
 0x9c5   :  { %v3847_v7 = vmul.f32 %v15273_v25, %v3548_v34  ;;  %v3573_v34 = vsel %vm11533_vm7, %v11452_v22, %v3569_v49  ;;  %v3577_v48 = vor.u32 1.1754944e-38, %v3576_v11  ;;  %v3430_v14 = vrot.slane %v11433_v52, 3 }
 0x9c6   :  { %v3848_v9 = vmul.f32 %v15274_v24, %v3563_v39  ;;  %v11549_v53 = vadd.f32 %v15275_v33, %v3390_v28  ;;  %v11554_v30 = vadd.f32 %v11433_v52, %v15276_v6  ;;  %v11562_v25 = vpop.eup %6908  ;;  %6918 = vrcp.f32 %v11522_v63 }
 0x9c7   :  { %v3855_v46 = vadd.f32 %v3847_v7, %v11457_v3  ;;  %vm3575_vm8 = vcmp.eq.f32.partialorder %v3574_v62, 8.507059e+37  ;;  %v15277_v51 = vunpack.c.l.bf16 %v11363_v27  ;;  %v15278_v28 = vrot.slane %v11433_v52, 1  ;;  %v11573_v49 = vpop.eup %6910 }
 0x9c8   :  { %v3856_v39 = vadd.f32 %v3848_v9, %v11464_v4  ;;  %v3581_v22 = vmul.f32 %v11460_v32, %v11422_v36  ;;  %v3578_v3 = vsel %vm3575_vm8, %v3577_v48, %v3573_v34  ;;  %v15279_v4 = vunpack.c.l.bf16 %v11372_v15  ;;  %v11583_v7 = vpop.eup %6912 }
 0x9c9   :  { %v11569_v24 = vadd.f32 %v15278_v28, %v15277_v51  ;;  %v15280_v29 = vrot.slane %v11433_v52, 2  ;;  %v3589_v62 = vand.u32 2147483647, %v11422_v36  ;;  %v3591_v27 = vand.u32 2147483648, %v11422_v36  ;;  %v11589_v48 = vpop.eup %6914 }
 0x9ca   :  { %v15281_v9 = vrot.slane %v11222_v23, 6  ;;  %6920 = vtanh.f32 %v3855_v46  ;;  %v3582_v6 = vsub.f32 1.0, %v3581_v22  ;;  %v3596_v34 = vmul.f32 %v11438_v37, %v11396_v57  ;;  %v11597_v51 = vpop.eup %6916 }
 0x9cb   :  { %v11579_v11 = vadd.f32 %v15280_v29, %v15279_v4  ;;  %6922 = vtanh.f32 %v3856_v39  ;;  %v15282_v15 = vunpack.c.l.bf16 %v11388_v38  ;;  %vm3585_vm9 = vweird.f32 %v11422_v36 }
 0x9cc   :  { %v3849_v33 = vmul.f32 %v15281_v9, %v3578_v3  ;;  %vm3586_vm15 = vweird.f32 %v11460_v32  ;;  %v3583_v46 = vmul.f32 %v11460_v32, %v3582_v6  ;;  %vm11601_vm5 = vcmp.eq.f32.partialorder %v3589_v62, 8.507059e+37  ;;  %v11609_v29 = vpop.eup %6918 }
 0x9cd   :  { %v11593_v52 = vadd.f32 %v3430_v14, %v15282_v15  ;;  %v3597_v3 = vsub.f32 1.0, %v3596_v34  ;;  %v3592_v39 = vor.u32 1.1754944e-38, %v3591_v27  ;;  %v3604_v38 = vand.u32 2147483647, %v11396_v57  ;;  %vm11619_vm11 = vmor %vm3585_vm9, %vm3586_vm15 }
 0x9ce   :  { %v3857_v28 = vadd.f32 %v3849_v33, %v11468_v18  ;;  %v3606_v14 = vand.u32 2147483648, %v11396_v57  ;;  %v3611_v4 = vmul.f32 %v11470_v61, %v11425_v16  ;;  %v3584_v9 = vadd.f32 %v11460_v32, %v3583_v46 }
 0x9cf   :  { %v3598_v18 = vmul.f32 %v11438_v37, %v3597_v3  ;;  %vm3600_vm3 = vweird.f32 %v11396_v57  ;;  %vm3601_vm12 = vweird.f32 %v11438_v37  ;;  %vm3615_vm1 = vweird.f32 %v11425_v16 }
 0x9d0   :  { %v3612_v27 = vsub.f32 1.0, %v3611_v4  ;;  %vm3616_vm0 = vweird.f32 %v11470_v61  ;;  %v3619_v33 = vand.u32 2147483647, %v11425_v16  ;;  %v11626_v6 = vpop.eup %6920  ;;  %v3588_v57 = vsel %vm11619_vm11, %v11460_v32, %v3584_v9  ;;  %vm11637_vm10 = vmor %vm3600_vm3, %vm3601_vm12 }
 0x9d1   :  { %v3599_v34 = vadd.f32 %v11438_v37, %v3598_v18  ;;  %v3621_v36 = vand.u32 2147483648, %v11425_v16  ;;  %v3626_v15 = vmul.f32 %v11478_v0, %v11428_v8  ;;  %v11635_v46 = vpop.eup %6922  ;;  %6924 = vtanh.f32 %v3857_v28  ;;  %vm11663_vm14 = vmor %vm3615_vm1, %vm3616_vm0 }
 0x9d2   :  { %vm11641_vm13 = vcmp.eq.f32.partialorder %v3604_v38, 8.507059e+37  ;;  %v3607_v62 = vor.u32 1.1754944e-38, %v3606_v14  ;;  %v3613_v32 = vmul.f32 %v11470_v61, %v3612_v27  ;;  %vm3630_vm2 = vweird.f32 %v11428_v8 }
 0x9d3   :  { %v3603_v9 = vsel %vm11637_vm10, %v11438_v37, %v3599_v34  ;;  %v3627_v18 = vsub.f32 1.0, %v3626_v15  ;;  %v3634_v28 = vand.u32 2147483647, %v11428_v8  ;;  %v11653_v20 = vsel %vm11601_vm5, %v3592_v39, %v3588_v57 }
 0x9d4   :  { %v3614_v38 = vadd.f32 %v11470_v61, %v3613_v32  ;;  %v3636_v50 = vand.u32 2147483648, %v11428_v8  ;;  %v3641_v14 = vmul.f32 %v11482_v10, %v11435_v40  ;;  %vm11667_vm4 = vcmp.eq.f32.partialorder %v3619_v33, 8.507059e+37 }
 0x9d5   :  { %v3622_v22 = vor.u32 1.1754944e-38, %v3621_v36  ;;  %v3628_v39 = vmul.f32 %v11478_v0, %v3627_v18  ;;  %vm3631_vm6 = vweird.f32 %v11478_v0  ;;  %v11675_v57 = vsel %vm11641_vm13, %v3607_v62, %v3603_v9 }
 0x9d6   :  { %v3618_v16 = vsel %vm11663_vm14, %v11470_v61, %v3614_v38  ;;  %v3642_v34 = vsub.f32 1.0, %v3641_v14  ;;  %v3649_v15 = vand.u32 2147483647, %v11435_v40  ;;  %vm11682_vm7 = vcmp.eq.f32.partialorder %v3634_v28, 8.507059e+37  ;;  %vm11702_vm15 = vmor %vm3630_vm2, %vm3631_vm6 }
 0x9d7   :  { %v3629_v33 = vadd.f32 %v11478_v0, %v3628_v39  ;;  %vm3645_vm8 = vweird.f32 %v11435_v40  ;;  %v3651_v36 = vand.u32 2147483648, %v11435_v40  ;;  %v11688_v4 = vpop.eup %6924  ;;  %v3637_v62 = vor.u32 1.1754944e-38, %v3636_v50 }
 0x9d8   :  { %v3643_v32 = vmul.f32 %v11482_v10, %v3642_v34  ;;  %vm3646_vm9 = vweird.f32 %v11482_v10  ;;  %v3712_v61 = vmul.f32 %v11562_v25, %v11492_v2  ;;  %v11696_v9 = vsel %vm11667_vm4, %v3622_v22, %v3618_v16 }
 0x9d9   :  { %vm11706_vm5 = vcmp.eq.f32.partialorder %v3649_v15, 8.507059e+37  ;;  %v11711_v28 = vadd.f32 1.0, %v11520_v43  ;;  %v11714_v38 = vadd.f32 1.0, %v11542_v59  ;;  %v3633_v14 = vsel %vm11702_vm15, %v11478_v0, %v3629_v33  ;;  %vm11723_vm3 = vmor %vm3645_vm8, %vm3646_vm9 }
 0x9da   :  { %v3644_v8 = vadd.f32 %v11482_v10, %v3643_v32  ;;  %v3713_v37 = vsub.f32 1.0, %v3712_v61  ;;  %v3720_v27 = vand.u32 2147483647, %v11492_v2  ;;  %v3652_v43 = vor.u32 1.1754944e-38, %v3651_v36 }
 0x9db   :  { %vm3716_vm12 = vweird.f32 %v11492_v2  ;;  %v3722_v59 = vand.u32 2147483648, %v11492_v2  ;;  %v3727_v39 = vmul.f32 %v11573_v49, %v11495_v56  ;;  %vm3717_vm11 = vweird.f32 %v11562_v25 }
 0x9dc   :  { %v3648_v0 = vsel %vm11723_vm3, %v11482_v10, %v3644_v8  ;;  %v3714_v16 = vmul.f32 %v11562_v25, %v3713_v37  ;;  %v3735_v40 = vand.u32 2147483647, %v11495_v56  ;;  %v11739_v34 = vsel %vm11682_vm7, %v3637_v62, %v3633_v14  ;;  %vm3718_vm13 = vmor %vm3716_vm12, %vm3717_vm11 }
 0x9dd   :  { %v3728_v15 = vsub.f32 1.0, %v3727_v39  ;;  %vm3731_vm1 = vweird.f32 %v11495_v56  ;;  %v3737_v33 = vand.u32 2147483648, %v11495_v56  ;;  %vm11744_vm0 = vcmp.eq.f32.partialorder %v3720_v27, 8.507059e+37 }
 0x9de   :  { %v3715_v36 = vadd.f32 %v11562_v25, %v3714_v16  ;;  %vm3732_vm10 = vweird.f32 %v11573_v49  ;;  %v3742_v10 = vmul.f32 %v11583_v7, %v11501_v1  ;;  %v11753_v3 = vsel %vm11706_vm5, %v3652_v43, %v3648_v0 }
 0x9df   :  { %v3723_v62 = vor.u32 1.1754944e-38, %v3722_v59  ;;  %v3729_v61 = vmul.f32 %v11573_v49, %v3728_v15  ;;  %v3750_v18 = vand.u32 2147483647, %v11501_v1  ;;  %vm11760_vm2 = vcmp.eq.f32.partialorder %v3735_v40, 8.507059e+37  ;;  %vm3733_vm4 = vmor %vm3731_vm1, %vm3732_vm10 }
 0x9e0   :  { %v3719_v14 = vsel %vm3718_vm13, %v11562_v25, %v3715_v36  ;;  %v3743_v37 = vsub.f32 1.0, %v3742_v10  ;;  %v3757_v50 = vmul.f32 %v11589_v48, %v11505_v19  ;;  %v3738_v22 = vor.u32 1.1754944e-38, %v3737_v33 }
 0x9e1   :  { %v3730_v27 = vadd.f32 %v11573_v49, %v3729_v61  ;;  %vm3746_vm14 = vweird.f32 %v11501_v1  ;;  %v3752_v2 = vand.u32 2147483648, %v11501_v1  ;;  %v11771_v43 = vsel %vm11744_vm0, %v3723_v62, %v3719_v14 }
 0x9e2   :  { %v3744_v25 = vmul.f32 %v11583_v7, %v3743_v37  ;;  %vm3747_vm6 = vweird.f32 %v11583_v7  ;;  %v3758_v59 = vsub.f32 1.0, %v3757_v50  ;;  %vm11780_vm7 = vcmp.eq.f32.partialorder %v3750_v18, 8.507059e+37 }
 0x9e3   :  { %v3734_v39 = vsel %vm3733_vm4, %v11573_v49, %v3730_v27  ;;  %vm3761_vm8 = vweird.f32 %v11505_v19  ;;  %v3772_v16 = vmul.f32 %v11597_v51, %v11515_v55  ;;  %v3765_v15 = vand.u32 2147483647, %v11505_v19  ;;  %vm3748_vm9 = vmor %vm3746_vm14, %vm3747_vm6 }
 0x9e4   :  { %v3745_v40 = vadd.f32 %v11583_v7, %v3744_v25  ;;  %v3759_v56 = vmul.f32 %v11589_v48, %v3758_v59  ;;  %v3767_v33 = vand.u32 2147483648, %v11505_v19  ;;  %v11793_v49 = vsel %vm11760_vm2, %v3738_v22, %v3734_v39 }
 0x9e5   :  { %v3753_v36 = vor.u32 1.1754944e-38, %v3752_v2  ;;  %vm3762_vm15 = vweird.f32 %v11589_v48  ;;  %v3773_v32 = vsub.f32 1.0, %v3772_v16  ;;  %v3780_v61 = vand.u32 2147483647, %v11515_v55 }
 0x9e6   :  { %v3749_v10 = vsel %vm3748_vm9, %v11583_v7, %v3745_v40  ;;  %v3760_v62 = vadd.f32 %v11589_v48, %v3759_v56  ;;  %v3782_v18 = vand.u32 2147483648, %v11515_v55  ;;  %vm3776_vm5 = vweird.f32 %v11515_v55  ;;  %vm11813_vm12 = vmor %vm3761_vm8, %vm3762_vm15 }
 0x9e7   :  { %v3774_v14 = vmul.f32 %v11597_v51, %v3773_v32  ;;  %vm3777_vm3 = vweird.f32 %v11597_v51  ;;  %v3787_v1 = vmul.f32 %v11609_v29, %v11522_v63  ;;  %v11809_v8 = vsel %vm11780_vm7, %v3753_v36, %v3749_v10 }
 0x9e8   :  { %vm11817_vm11 = vcmp.eq.f32.partialorder %v3765_v15, 8.507059e+37  ;;  %v3768_v55 = vor.u32 1.1754944e-38, %v3767_v33  ;;  %vm3791_vm1 = vweird.f32 %v11522_v63  ;;  %v3764_v50 = vsel %vm11813_vm12, %v11589_v48, %v3760_v62  ;;  %vm3778_vm0 = vmor %vm3776_vm5, %vm3777_vm3 }
 0x9e9   :  { %v3775_v27 = vadd.f32 %v11597_v51, %v3774_v14  ;;  %v3788_v22 = vsub.f32 1.0, %v3787_v1  ;;  %v3795_v19 = vand.u32 2147483647, %v11522_v63  ;;  %vm3781_vm10 = vcmp.eq.f32.partialorder %v3780_v61, 8.507059e+37 }
 0x9ea   :  { %v3783_v2 = vor.u32 1.1754944e-38, %v3782_v18  ;;  %v3797_v25 = vand.u32 2147483648, %v11522_v63  ;;  %6926 = vrcp.f32 %v11711_v28  ;;  %vm3792_vm13 = vweird.f32 %v11609_v29 }
 0x9eb   :  { %v3779_v59 = vsel %vm3778_vm0, %v11597_v51, %v3775_v27  ;;  %v3789_v39 = vmul.f32 %v11609_v29, %v3788_v22  ;;  %v3812_v48 = vand.u32 2147483648, %v11711_v28  ;;  %v11835_v0 = vsel %vm11817_vm11, %v3768_v55, %v3764_v50  ;;  %vm3793_vm14 = vmor %vm3791_vm1, %vm3792_vm13 }
 0x9ec   :  { %vm11837_vm2 = vcmp.eq.f32.partialorder %v3795_v19, 8.507059e+37  ;;  %v3810_v40 = vand.u32 2147483647, %v11711_v28  ;;  %6928 = vrcp.f32 %v11714_v38  ;;  %v11843_v56 = vsel %vm3781_vm10, %v3783_v2, %v3779_v59 }
 0x9ed   :  { %v3790_v51 = vadd.f32 %v11609_v29, %v3789_v39  ;;  %v3798_v15 = vor.u32 1.1754944e-38, %v3797_v25  ;;  %v3813_v33 = vor.u32 1.1754944e-38, %v3812_v48  ;;  %v3827_v36 = vand.u32 2147483648, %v11714_v38 }
 0x9ee   :  { %v15315_v32 = vrot.slane %v11222_v23, 7  ;;  %v3851_v62 = vmul.f32 %v11675_v57, %v11222_v23  ;;  %v15316_v61 = vrot.slane %v11222_v23, 1  ;;  %vm3806_vm4 = vweird.f32 %v11711_v28 }
 0x9ef   :  { %v3794_v14 = vsel %vm3793_vm14, %v11609_v29, %v3790_v51  ;;  %v3825_v63 = vand.u32 2147483647, %v11714_v38  ;;  %v15317_v1 = vrot.slane %v11222_v23, 2  ;;  %v3828_v50 = vor.u32 1.1754944e-38, %v3827_v36 }
 0x9f0   :  { %v3850_v10 = vmul.f32 %v15315_v32, %v11653_v20  ;;  %v3852_v18 = vmul.f32 %v15316_v61, %v11696_v9  ;;  %v15318_v20 = vrot.slane %v11222_v23, 3  ;;  %v6927_v55 = vpop.eup %6926  ;;  %v3799_v57 = vsel %vm11837_vm2, %v3798_v15, %v3794_v14 }
 0x9f1   :  { %v3853_v7 = vmul.f32 %v15317_v1, %v11739_v34  ;;  %v3859_v29 = vadd.f32 %v3851_v62, %v11554_v30  ;;  %v3802_v27 = vmul.f32 %v6927_v55, %v11711_v28  ;;  %vm3807_vm6 = vweird.f32 %v6927_v55 }
 0x9f2   :  { %v3854_v37 = vmul.f32 %v15318_v20, %v11753_v3  ;;  %v3858_v9 = vadd.f32 %v3850_v10, %v11549_v53  ;;  %vm11871_vm7 = vcmp.eq.f32.partialorder %v3810_v40, 8.507059e+37  ;;  %vm3821_vm8 = vweird.f32 %v11714_v38  ;;  %v6929_v3 = vpop.eup %6928  ;;  %vm3808_vm5 = vmor %vm3806_vm4, %vm3807_vm6 }
 0x9f3   :  { %v3860_v23 = vadd.f32 %v3852_v18, %v11569_v24  ;;  %v3861_v34 = vadd.f32 %v3853_v7, %v11579_v11  ;;  %v3871_v53 = vsub.f32 1.0, %v11771_v43  ;;  %v3872_v30 = vsub.f32 1.0, %v11793_v49 }
 0x9f4   :  { %v3862_v19 = vadd.f32 %v3854_v37, %v11593_v52  ;;  %6930 = vtanh.f32 %v3858_v9  ;;  %v3803_v2 = vsub.f32 1.0, %v3802_v27  ;;  %v3817_v25 = vmul.f32 %v6929_v3, %v11714_v38 }
 0x9f5   :  { %vm3822_vm9 = vweird.f32 %v6929_v3  ;;  %vm11882_vm15 = vcmp.eq.f32.partialorder %v3825_v63, 8.507059e+37  ;;  %6932 = vtanh.f32 %v3859_v29  ;;  %v3873_v24 = vsub.f32 1.0, %v11809_v8 }
 0x9f6   :  { %6934 = vtanh.f32 %v3860_v23  ;;  %v3874_v11 = vsub.f32 1.0, %v11835_v0  ;;  %v3875_v52 = vsub.f32 1.0, %v11843_v56  ;;  %v3804_v39 = vmul.f32 %v6927_v55, %v3803_v2  ;;  %vm3823_vm3 = vmor %vm3821_vm8, %vm3822_vm9 }
 0x9f7   :  { %v3818_v48 = vsub.f32 1.0, %v3817_v25  ;;  %6936 = vtanh.f32 %v3861_v34  ;;  %v3876_v16 = vsub.f32 1.0, %v3799_v57  ;;  %v3879_v40 = vmul.f32 %v11626_v6, %v3871_v53 }
 0x9f8   :  { %6938 = vtanh.f32 %v3862_v19  ;;  %v3880_v51 = vmul.f32 %v11635_v46, %v3872_v30  ;;  %v3881_v15 = vmul.f32 %v11688_v4, %v3873_v24  ;;  %v3805_v36 = vadd.f32 %v6927_v55, %v3804_v39 }
 0x9f9   :  { %v3819_v32 = vmul.f32 %v6929_v3, %v3818_v48  ;;  %v15323_v10 = vrot.slane %v11064_v21, 7  ;;  %v15324_v61 = vrot.slane %v11066_v54, 7  ;;  %v15325_v6 = vrot.slane %v11068_v13, 7 }
 0x9fa   :  { %v6931_v14 = vpop.eup %6930  ;;  %v15326_v4 = vrot.slane %v11075_v42, 7  ;;  %v15327_v21 = vrot.slane %v11085_v12, 7  ;;  %v15328_v54 = vrot.slane %v11093_v5, 7  ;;  %v3809_v7 = vsel %vm3808_vm5, %v6927_v55, %v3805_v36 }
 0x9fb   :  { %v3911_v62 = vmul.f32 %v15323_v10, %v11771_v43  ;;  %v3912_v18 = vmul.f32 %v15324_v61, %v11793_v49  ;;  %v3913_v46 = vmul.f32 %v15325_v6, %v11809_v8  ;;  %v6933_v1 = vpop.eup %6932  ;;  %v3820_v20 = vadd.f32 %v6929_v3, %v3819_v32 }
 0x9fc   :  { %v3914_v63 = vmul.f32 %v15326_v4, %v11835_v0  ;;  %v3915_v43 = vmul.f32 %v15327_v21, %v11843_v56  ;;  %v3916_v49 = vmul.f32 %v15328_v54, %v3799_v57  ;;  %v3882_v28 = vmul.f32 %v6931_v14, %v3874_v11  ;;  %v6935_v9 = vpop.eup %6934 }
 0x9fd   :  { %v11912_v37 = vadd.f32 %v3911_v62, %v3879_v40  ;;  %v3814_v13 = vsel %vm11871_vm7, %v3813_v33, %v3809_v7  ;;  %v3883_v42 = vmul.f32 %v6933_v1, %v3875_v52  ;;  %v11919_v12 = vadd.f32 %v3912_v18, %v3880_v51  ;;  %v6937_v5 = vpop.eup %6936 }
 0x9fe   :  { %v11921_v8 = vadd.f32 %v3913_v46, %v3881_v15  ;;  %v3824_v0 = vsel %vm3823_vm3, %v6929_v3, %v3820_v20  ;;  %v3877_v56 = vsub.f32 1.0, %v3814_v13  ;;  %v3884_v55 = vmul.f32 %v6935_v9, %v3876_v16  ;;  %v6939_v33 = vpop.eup %6938  ;;  %v15347_v9 = vld [vmem:[#allocation16_spill] sm:$0xff] }
 0x9ff   :  { %15329 = vst [vmem:[#allocation62_spill] sm:$0xff] %v11912_v37  ;;  %v15332_v57 = vrot.slane %v11119_v60, 7  ;;  %v3829_v38 = vsel %vm11882_vm15, %v3828_v50, %v3824_v0  ;;  %v11931_v27 = vadd.f32 %v3914_v63, %v3882_v28  ;;  %v11933_v22 = vadd.f32 %v3915_v43, %v3883_v42  ;;  %v15346_v28 = vld [vmem:[#allocation15_spill] sm:$0xff]  ;;  %v15351_v0 = vld [vmem:[#allocation18_spill] sm:$0xff] }
 0xa00   :  { %15330 = vst [vmem:[#allocation63_spill] sm:$0xff] %v11919_v12  ;;  %v3935_v60 = vpack.c.bf16 %v11912_v37, %v11912_v37  ;;  %v3878_v23 = vsub.f32 1.0, %v3829_v38  ;;  %v3885_v34 = vmul.f32 %v6937_v5, %v3877_v56  ;;  %v15335_v3 = vrot.slane %v11125_v58, 7  ;;  %v15349_v42 = vld [vmem:[#allocation23_spill] sm:$0xff]  ;;  %v15350_v5 = vld [vmem:[#allocation17_spill] sm:$0xff]  ;;  %v15352_v56 = vld [vmem:[#allocation54_spill] sm:$0xff] }
 0xa01   :  { %15331 = vst [vmem:[#allocation64_spill] sm:$0xff] %v11921_v8  ;;  %v3917_v29 = vmul.f32 %v15332_v57, %v3814_v13  ;;  %v11943_v53 = vadd.f32 %v3916_v49, %v3884_v55  ;;  %v3936_v50 = vpack.c.bf16 %v11919_v12, %v11919_v12  ;;  %v3937_v30 = vpack.c.bf16 %v11921_v8, %v11921_v8  ;;  %v15348_v13 = vld [vmem:[#allocation50_spill] sm:$0xff]  ;;  %v15354_v57 = vld [vmem:[#allocation21_spill] sm:$0xff] }
 0xa02   :  { %3927 = vst [vmem:[%s14429_s7] sm:$0x10] %v11912_v37  ;;  %v3918_v19 = vmul.f32 %v15335_v3, %v3829_v38  ;;  %v3938_v58 = vpack.c.bf16 %v11931_v27, %v11931_v27  ;;  %v3886_v2 = vmul.f32 %v6939_v33, %v3878_v23  ;;  %v3951_v24 = vunpack.c.l.b16 %v3935_v60  ;;  %v15353_v55 = vld [vmem:[#allocation26_spill] sm:$0xff]  ;;  %v15356_v33 = vld [vmem:[#allocation55_spill] sm:$0xff]  ;;  %v15357_v38 = vld [vmem:[#allocation29_spill] sm:$0xff] }
 0xa03   :  { %15333 = vst [vmem:[#allocation65_spill] sm:$0xff] %v11931_v27  ;;  %v11959_v25 = vadd.f32 %v3917_v29, %v3885_v34  ;;  %v3940_v59 = vpack.c.bf16 %v11943_v53, %v11943_v53  ;;  %v3952_v11 = vunpack.c.l.b16 %v3936_v50  ;;  %v3953_v52 = vunpack.c.l.b16 %v3937_v30  ;;  %v15355_v29 = vld [vmem:[#allocation22_spill] sm:$0xff]  ;;  %v15358_v60 = vld [vmem:[#allocation24_spill] sm:$0xff]  ;;  %v15359_v23 = vld [vmem:[#allocation25_spill] sm:$0xff] }
 0xa04   :  { %15334 = vst [vmem:[#allocation66_spill] sm:$0xff] %v11933_v22  ;;  %v3954_v39 = vunpack.c.l.b16 %v3938_v58  ;;  %v11971_v48 = vadd.f32 %v3918_v19, %v3886_v2  ;;  %v3939_v16 = vpack.c.bf16 %v11933_v22, %v11933_v22  ;;  %v3959_v51 = vrot.slane %v3951_v24, 4  ;;  %v15360_v34 = vld [vmem:[#allocation56_spill] sm:$0xff]  ;;  %v15361_v3 = vld [vmem:[#allocation43_spill] sm:$0xff]  ;;  %v15364_v30 = vld [vmem:[#allocation57_spill] sm:$0xff] }
 0xa05   :  { %3928 = vst [vmem:[%s14429_s7 + $0x8] sm:$0x10] %v11919_v12  ;;  %v3941_v40 = vpack.c.bf16 %v11959_v25, %v11959_v25  ;;  %v3956_v15 = vunpack.c.l.b16 %v3940_v59  ;;  %v3960_v36 = vrot.slane %v3952_v11, 3  ;;  %v3962_v32 = vrot.slane %v3953_v52, 2  ;;  %v15362_v19 = vld [vmem:[#allocation27_spill] sm:$0xff]  ;;  %v15363_v50 = vld [vmem:[#allocation28_spill] sm:$0xff] }
 0xa06   :  { %15336 = vst [vmem:[#allocation67_spill] sm:$0xff] %v11943_v53  ;;  %v3942_v10 = vpack.c.bf16 %v11971_v48, %v11971_v48  ;;  %vm15339_vm12 = vcmask 1041409   ;;  %v3964_v18 = vrot.slane %v3954_v39, 1  ;;  %v3955_v14 = vunpack.c.l.b16 %v3939_v16  ;;  %v15365_v58 = vld [vmem:[#allocation47_spill] sm:$0xff]  ;;  %v15366_v2 = vld [vmem:[#allocation30_spill] sm:$0xff] }
 0xa07   :  { %3929 = vst [vmem:[%s14429_s7 + $0x10] sm:$0x10] %v11921_v8  ;;  %v3957_v62 = vunpack.c.l.b16 %v3941_v40  ;;  %v3961_v61 = vsel %vm15339_vm12, %v3960_v36, %v3959_v51  ;;  %vm15340_vm11 = vcmask 1042434   ;;  %vm15341_vm1 = vcmask 1043459   ;;  %v15367_v59 = vld [vmem:[#allocation31_spill] sm:$0xff]  ;;  %v15368_v24 = vld [vmem:[#allocation58_spill] sm:$0xff] }
 0xa08   :  { %3930 = vst [vmem:[%s14429_s7 + $0x18] sm:$0x10] %v11931_v27  ;;  %v3958_v6 = vunpack.c.l.b16 %v3942_v10  ;;  %v3963_v46 = vsel %vm15340_vm11, %v3962_v32, %v3961_v61  ;;  %v3967_v63 = vrot.slane %v3956_v15, 7  ;;  %vm15342_vm0 = vcmask 1044484   ;;  %v15369_v11 = vld [vmem:[#allocation51_spill] sm:$0xff]  ;;  %v7201_v40 = vld [vmem:[%s14425_s4] sm:$0xff] }
 0xa09   :  { %15337 = vst [vmem:[#allocation68_spill] sm:$0xff] %v11959_v25  ;;  %v3965_v4 = vsel %vm15341_vm1, %v3964_v18, %v3963_v46  ;;  %v3969_v43 = vrot.slane %v3957_v62, 6  ;;  %vm15343_vm10 = vcmask 1045509   ;;  %vm15344_vm13 = vcmask 1046534   ;;  %v7202_v10 = vld [vmem:[%s14426_s3] sm:$0xff] }
 0xa0a   :  { %3931 = vst [vmem:[%s14429_s7 + $0x20] sm:$0x10] %v11933_v22  ;;  %v3966_v21 = vsel %vm15342_vm0, %v3955_v14, %v3965_v4  ;;  %v3971_v49 = vrot.slane %v3958_v6, 5  ;;  %vm15345_vm2 = vcmask 1047559  }
 0xa0b   :  { %3932 = vst [vmem:[%s14429_s7 + $0x28] sm:$0x10] %v11943_v53  ;;  %v3968_v54 = vsel %vm15343_vm10, %v3967_v63, %v3966_v21  ;;  %v15370_v21 = vld [vmem:[#allocation32_spill] sm:$0xff] }
 0xa0c   :  { %15338 = vst [vmem:[#allocation69_spill] sm:$0xff] %v11971_v48  ;;  %v3970_v1 = vsel %vm15344_vm13, %v3969_v43, %v3968_v54  ;;  %v15371_v43 = vld [vmem:[#allocation33_spill] sm:$0xff]  ;;  %v15372_v54 = vld [vmem:[#allocation3_spill] sm:$0xff] }
 0xa0d   :  { %3933 = vst [vmem:[%s14429_s7 + $0x30] sm:$0x10] %v11959_v25  ;;  %v3972_v7 = vsel %vm15345_vm2, %v3971_v49, %v3970_v1  ;;  %v15373_v49 = vld [vmem:[#allocation34_spill] sm:$0xff]  ;;  %v15374_v1 = vld [vmem:[#allocation35_spill] sm:$0xff] }
 0xa0e   :  { %3934 = vst [vmem:[%s14429_s7 + $0x38] sm:$0x10] %v11971_v48  ;;  %v3973_v20 = vpack.c.b16 %v3972_v7, %v3972_v7  ;;  %v15375_v7 = vld [vmem:[#allocation4_spill] sm:$0xff] }
 0xa10   :  { %3983 = vmatmul.bf16.vlgmr.msra.gmra.mxu3 %v3973_v20  ;;  %3996 = vmatmul.bf16.vlgmr.msrb.gmra.mxu0 %v3973_v20 }
 0xa11   :  { %4009 = vmatmul.bf16.vlgmr.msrb.gmra.mxu1 %v3973_v20  ;;  %4022 = vmatmul.bf16.vlgmr.msrb.gmra.mxu2 %v3973_v20  ;;  %v15376_v20 = vld [vmem:[#allocation36_spill] sm:$0xff] }
 0xa12   :  { %4704 = vmatpush.bf16.msra.mxu3 %v15043_v35  ;;  %4717 = vmatpush.bf16.msrb.mxu0 %v15044_v41 }
 0xa13   :  { %4730 = vmatpush.bf16.msrb.mxu1 %v15045_v17  ;;  %4756 = vmatpush.bf16.msrb.mxu2 %v15046_v47 }
 0xa16   :  { %4705 = vmatpush.bf16.msra.mxu3 %v15047_v31  ;;  %4718 = vmatpush.bf16.msrb.mxu0 %v15048_v45 }
 0xa17   :  { %4731 = vmatpush.bf16.msrb.mxu1 %v15049_v44  ;;  %4757 = vmatpush.bf16.msrb.mxu2 %v15050_v26  ;;  %v12150_v44 = vld [vmem:[%s14428_s0 + $0x8] sm:$0x4] }
 0xa1a   :  { %4706 = vmatpush.bf16.msra.mxu3 %v15346_v28  ;;  %4719 = vmatpush.bf16.msrb.mxu0 %v15347_v9 }
 0xa1b   :  { %4732 = vmatpush.bf16.msrb.mxu1 %v15348_v13  ;;  %4758 = vmatpush.bf16.msrb.mxu2 %v15349_v42 }
 0xa1e   :  { %4707 = vmatpush.bf16.msra.mxu3 %v15350_v5  ;;  %4720 = vmatpush.bf16.msrb.mxu0 %v15351_v0 }
 0xa1f   :  { %4733 = vmatpush.bf16.msrb.mxu1 %v15352_v56  ;;  %4759 = vmatpush.bf16.msrb.mxu2 %v15353_v55 }
 0xa22   :  { %4708 = vmatpush.bf16.msra.mxu3 %v15354_v57  ;;  %4721 = vmatpush.bf16.msrb.mxu0 %v15355_v29 }
 0xa23   :  { %4734 = vmatpush.bf16.msrb.mxu1 %v15356_v33  ;;  %4760 = vmatpush.bf16.msrb.mxu2 %v15357_v38 }
 0xa26   :  { %4709 = vmatpush.bf16.msra.mxu3 %v15358_v60  ;;  %4722 = vmatpush.bf16.msrb.mxu0 %v15359_v23 }
 0xa27   :  { %4735 = vmatpush.bf16.msrb.mxu1 %v15360_v34  ;;  %4761 = vmatpush.bf16.msrb.mxu2 %v15361_v3 }
 0xa2a   :  { %4710 = vmatpush.bf16.msra.mxu3 %v15362_v19  ;;  %4723 = vmatpush.bf16.msrb.mxu0 %v15363_v50 }
 0xa2b   :  { %4736 = vmatpush.bf16.msrb.mxu1 %v15364_v30  ;;  %4762 = vmatpush.bf16.msrb.mxu2 %v15365_v58 }
 0xa2e   :  { %4711 = vmatpush.bf16.msra.mxu3 %v15366_v2  ;;  %4724 = vmatpush.bf16.msrb.mxu0 %v15367_v59 }
 0xa2f   :  { %4737 = vmatpush.bf16.msrb.mxu1 %v15368_v24  ;;  %4763 = vmatpush.bf16.msrb.mxu2 %v15369_v11 }
 0xa8d   :  { %v3997_v52 = vpop.f32.mrf.mxu0 }
 0xa8e   :  { %v4010_v39 = vpop.f32.mrf.mxu1 }
 0xa93   :  { %v3984_v16 = vpop.f32.mrf.mxu3 }
 0xa94   :  { %v4027_v51 = vmul.f32 %v7201_v40, %v3984_v16  ;;  %v4023_v15 = vpop.f32.mrf.mxu2  ;;  %v15377_v16 = vld [vmem:[#allocation37_spill] sm:$0xff] }
 0xa95   :  { %v3999_v36 = vpop.f32.mrf.mxu0  ;;  %v15378_v40 = vld [vmem:[#allocation5_spill] sm:$0xff] }
 0xa96   :  { %v4012_v32 = vpop.f32.mrf.mxu1  ;;  %v4028_v62 = vadd.f32 %v7202_v10, %v4027_v51  ;;  %v15379_v51 = vld [vmem:[#allocation38_spill] sm:$0xff]  ;;  %v15380_v36 = vld [vmem:[#allocation39_spill] sm:$0xff]  ;;  %v15382_v10 = vld [vmem:[#allocation40_spill] sm:$0xff] }
 0xa97   :  { %v15381_v32 = vld [vmem:[#allocation6_spill] sm:$0xff] }
 0xa98   :  { %4032 = vmax.xlane.f32.xlu1 %v4028_v62 }
 0xa9b   :  { %v3986_v61 = vpop.f32.mrf.mxu3 }
 0xa9c   :  { %v4025_v18 = vpop.f32.mrf.mxu2  ;;  %v15384_v61 = vld [vmem:[#allocation7_spill] sm:$0xff] }
 0xa9d   :  { %v15385_v18 = vld [vmem:[#allocation44_spill] sm:$0xff] }
 0xb0b   :  { %v4033_v14 = vpop.xlane.xlu1 %4032 }
 0xb0c   :  { %v4034_v6 = vsub.f32 %v4028_v62, %v4033_v14  ;;  %v15383_v62 = vld [vmem:[#allocation41_spill] sm:$0xff] }
 0xb0d   :  { %v15386_v14 = vld [vmem:[#allocation45_spill] sm:$0xff] }
 0xb0e   :  { %v4035_v46 = vmul.f32 1.442695, %v4034_v6  ;;  %v15387_v6 = vld [vmem:[#allocation8_spill] sm:$0xff] }
 0xb10   :  { %6940 = vpow2.f32 %v4035_v46  ;;  %v15388_v46 = vld [vmem:[#allocation48_spill] sm:$0xff] }
 0xb16   :  { %v6941_v4 = vpop.eup %6940 }
 0xb17   :  { %4037 = vadd.xlane.f32.xlu2 %v6941_v4  ;;  %v4039_v63 = vpack.c.bf16 %v6941_v4, %v6941_v4  ;;  %v15389_v4 = vld [vmem:[#allocation49_spill] sm:$0xff] }
 0xb19   :  { %4048 = vmatmul.bf16.vlgmr.msrb.gmra.mxu3 %v4039_v63  ;;  %4061 = vmatmul.bf16.vlgmr.msra.gmra.mxu0 %v4039_v63 }
 0xb1a   :  { %4074 = vmatmul.bf16.vlgmr.msra.gmra.mxu1 %v4039_v63  ;;  %4769 = vmatpush.bf16.msrb.mxu3 %v15370_v21  ;;  %v15390_v63 = vld [vmem:[#allocation9_spill] sm:$0xff] }
 0xb1b   :  { %4782 = vmatpush.bf16.msra.mxu0 %v15371_v43  ;;  %5407 = vmatpush.bf16.msra.mxu1 %v15372_v54  ;;  %v15391_v54 = vld [vmem:[#allocation52_spill] sm:$0xff] }
 0xb1e   :  { %4770 = vmatpush.bf16.msrb.mxu3 %v15373_v49 }
 0xb1f   :  { %4783 = vmatpush.bf16.msra.mxu0 %v15374_v1  ;;  %5408 = vmatpush.bf16.msra.mxu1 %v15375_v7  ;;  %v15392_v7 = vld [vmem:[#allocation53_spill] sm:$0xff] }
 0xb22   :  { %4771 = vmatpush.bf16.msrb.mxu3 %v15376_v20 }
 0xb23   :  { %4784 = vmatpush.bf16.msra.mxu0 %v15377_v16  ;;  %5409 = vmatpush.bf16.msra.mxu1 %v15378_v40  ;;  %v15393_v40 = vld [vmem:[#allocation10_spill] sm:$0xff] }
 0xb26   :  { %4772 = vmatpush.bf16.msrb.mxu3 %v15379_v51 }
 0xb27   :  { %4785 = vmatpush.bf16.msra.mxu0 %v15380_v36  ;;  %5410 = vmatpush.bf16.msra.mxu1 %v15381_v32  ;;  %v15394_v32 = vld [vmem:[#allocation59_spill] sm:$0xff]  ;;  %v12128_v36 = vld [vmem:[%s14428_s0 + $0x54] sm:$0x44] }
 0xb28   :  { %v4117_v30 = vunpack.c.h.bf16 %v12128_v36 }
 0xb2a   :  { %4773 = vmatpush.bf16.msrb.mxu3 %v15382_v10 }
 0xb2b   :  { %4786 = vmatpush.bf16.msra.mxu0 %v15383_v62  ;;  %5411 = vmatpush.bf16.msra.mxu1 %v15384_v61  ;;  %v12057_v61 = vadd.f32 %v3997_v52, %v15394_v32 }
 0xb2e   :  { %4774 = vmatpush.bf16.msrb.mxu3 %v15385_v18 }
 0xb2f   :  { %4787 = vmatpush.bf16.msra.mxu0 %v15386_v14  ;;  %5412 = vmatpush.bf16.msra.mxu1 %v15387_v6  ;;  %v15395_v6 = vld [vmem:[#allocation60_spill] sm:$0xff] }
 0xb30   :  { %v12062_v62 = vadd.f32 %v4010_v39, %v15395_v6  ;;  %v12123_v6 = vld [vmem:[%s14428_s0 + $0x48] sm:$0x44] }
 0xb31   :  { %v4114_v20 = vunpack.c.h.bf16 %v12123_v6 }
 0xb32   :  { %4775 = vmatpush.bf16.msrb.mxu3 %v15388_v46  ;;  %v4372_v52 = vrot.slane %v12062_v62, 3  ;;  %v4374_v18 = vrot.slane %v12062_v62, 5  ;;  %v4375_v14 = vrot.slane %v12062_v62, 6  ;;  %v4376_v39 = vrot.slane %v12062_v62, 7 }
 0xb33   :  { %4788 = vmatpush.bf16.msra.mxu0 %v15389_v4  ;;  %5413 = vmatpush.bf16.msra.mxu1 %v15390_v63  ;;  %v4377_v32 = vrot.slane %v12062_v62, 1  ;;  %v12103_v4 = vld [vmem:[%s14428_s0 + $0xc] sm:$0x44] }
 0xb34   :  { %v12118_v63 = vld [vmem:[%s14428_s0 + $0x30] sm:$0x44]  ;;  %v4099_v21 = vunpack.c.h.bf16 %v12103_v4 }
 0xb35   :  { %v4108_v16 = vunpack.c.h.bf16 %v12118_v63 }
 0xb36   :  { %4776 = vmatpush.bf16.msrb.mxu3 %v15391_v54  ;;  %v12108_v54 = vld [vmem:[%s14428_s0 + $0x18] sm:$0x44] }
 0xb37   :  { %4789 = vmatpush.bf16.msra.mxu0 %v15392_v7  ;;  %5414 = vmatpush.bf16.msra.mxu1 %v15393_v40  ;;  %v15396_v7 = vld [vmem:[#allocation61_spill] sm:$0xff]  ;;  %v4373_v40 = vrot.slane %v12062_v62, 4  ;;  %v4102_v11 = vunpack.c.h.bf16 %v12108_v54 }
 0xb38   :  { %v12068_v10 = vadd.f32 %v4023_v15, %v15396_v7  ;;  %v12093_v15 = vld [vmem:[%s14428_s0] sm:$0x44] }
 0xb39   :  { %v12098_v7 = vld [vmem:[%s14428_s0 + $0x3c] sm:$0x44]  ;;  %v4096_v49 = vunpack.c.h.bf16 %v12093_v15 }
 0xb3a   :  { %v4111_v43 = vunpack.c.h.bf16 %v12098_v7 }
 0xb8a   :  { %v4038_v46 = vpop.xlane.xlu2 %4037 }
 0xb8b   :  { %6942 = vrcp.f32 %v4038_v46  ;;  %v12113_v46 = vld [vmem:[%s14428_s0 + $0x24] sm:$0x44] }
 0xb8c   :  { %v4105_v24 = vunpack.c.h.bf16 %v12113_v46 }
 0xb91   :  { %v12130_v51 = vpop.eup %6942 }
 0xb96   :  { %v4062_v1 = vpop.f32.mrf.mxu0 }
 0xb97   :  { %v4121_v59 = vmul.f32 %v12130_v51, %v4062_v1  ;;  %v12140_v2 = vpop.f32.mrf.mxu1 }
 0xb99   :  { %v4127_v50 = vrot.slane %v4121_v59, 3  ;;  %v4130_v19 = vrot.slane %v4121_v59, 4  ;;  %v4133_v3 = vrot.slane %v4121_v59, 5  ;;  %v4136_v34 = vrot.slane %v4121_v59, 6 }
 0xb9a   :  { %v4139_v23 = vrot.slane %v4121_v59, 7  ;;  %v4142_v60 = vrot.slane %v4121_v59, 1  ;;  %v4145_v38 = vrot.slane %v4121_v59, 2  ;;  %v4187_v33 = vadd.f32 %v4121_v59, %v4111_v43 }
 0xb9b   :  { %v4172_v29 = vadd.f32 %v4127_v50, %v4096_v49  ;;  %v4175_v1 = vadd.f32 %v4130_v19, %v4099_v21  ;;  %v4178_v57 = vadd.f32 %v4133_v3, %v4102_v11  ;;  %v4181_v55 = vadd.f32 %v4136_v34, %v4105_v24  ;;  %v12155_v3 = vld [vmem:[%s14428_s0 + $0x14] sm:$0x4]  ;;  %v12181_v24 = vld [vmem:[%s14428_s0 + $0x50] sm:$0x4] }
 0xb9c   :  { %v4184_v56 = vadd.f32 %v4139_v23, %v4108_v16  ;;  %v4190_v58 = vadd.f32 %v4142_v60, %v4114_v20  ;;  %v4193_v0 = vadd.f32 %v4145_v38, %v4117_v30  ;;  %v4392_v5 = vadd.f32 %v4187_v33, %v12062_v62  ;;  %v4049_v42 = vpop.f32.mrf.mxu3  ;;  %v12160_v38 = vld [vmem:[%s14428_s0 + $0x44] sm:$0x4] }
 0xb9d   :  { %v4387_v13 = vadd.f32 %v4372_v52, %v4172_v29  ;;  %v4388_v9 = vadd.f32 %v4373_v40, %v4175_v1  ;;  %v4389_v28 = vadd.f32 %v4374_v18, %v4178_v57  ;;  %v4390_v26 = vadd.f32 %v4375_v14, %v4181_v55  ;;  %v12165_v55 = vld [vmem:[%s14428_s0 + $0x20] sm:$0x4]  ;;  %v12170_v57 = vld [vmem:[%s14428_s0 + $0x2c] sm:$0x4] }
 0xb9e   :  { %v4391_v33 = vadd.f32 %v4376_v39, %v4184_v56  ;;  %v6429_v29 = vmul.f32 -1.442695, %v4392_v5  ;;  %v4064_v60 = vpop.f32.mrf.mxu0  ;;  %v4393_v23 = vadd.f32 %v4377_v32, %v4190_v58  ;;  %v12175_v5 = vld [vmem:[%s14428_s0 + $0x38] sm:$0x4]  ;;  %v4112_v56 = vunpack.c.l.bf16 %v12160_v38 }
 0xb9f   :  { %v6424_v34 = vmul.f32 -1.442695, %v4387_v13  ;;  %v6425_v19 = vmul.f32 -1.442695, %v4388_v9  ;;  %v6426_v50 = vmul.f32 -1.442695, %v4389_v28  ;;  %v4077_v30 = vpop.f32.mrf.mxu1  ;;  %v4100_v9 = vunpack.c.l.bf16 %v12155_v3 }
 0xba0   :  { %v6427_v59 = vmul.f32 -1.442695, %v4390_v26  ;;  %6944 = vpow2.f32 %v6429_v29  ;;  %v15397_v58 = vrot.slane %v12062_v62, 2  ;;  %v6428_v28 = vmul.f32 -1.442695, %v4391_v33 }
 0xba1   :  { %6946 = vpow2.f32 %v6424_v34  ;;  %v4097_v26 = vunpack.c.l.bf16 %v12150_v44  ;;  %v4103_v11 = vunpack.c.l.bf16 %v12165_v55  ;;  %v4106_v21 = vunpack.c.l.bf16 %v12170_v57 }
 0xba2   :  { %v4394_v13 = vadd.f32 %v15397_v58, %v4193_v0  ;;  %6948 = vpow2.f32 %v6425_v19  ;;  %v6430_v43 = vmul.f32 -1.442695, %v4393_v23  ;;  %v4095_v0 = vunpack.c.l.bf16 %v12093_v15 }
 0xba3   :  { %6950 = vpow2.f32 %v6426_v50  ;;  %v4098_v16 = vunpack.c.l.bf16 %v12103_v4  ;;  %v4110_v62 = vunpack.c.l.bf16 %v12098_v7  ;;  %v4101_v32 = vunpack.c.l.bf16 %v12108_v54 }
 0xba4   :  { %6952 = vpow2.f32 %v6427_v59  ;;  %v4051_v18 = vpop.f32.mrf.mxu3  ;;  %v6431_v14 = vmul.f32 -1.442695, %v4394_v13  ;;  %v4120_v52 = vmul.f32 %v12130_v51, %v4049_v42  ;;  %v4104_v39 = vunpack.c.l.bf16 %v12113_v46 }
 0xba5   :  { %6954 = vpow2.f32 %v6428_v28  ;;  %v4107_v1 = vunpack.c.l.bf16 %v12118_v63  ;;  %v4113_v33 = vunpack.c.l.bf16 %v12123_v6  ;;  %v4116_v15 = vunpack.c.l.bf16 %v12128_v36 }
 0xba6   :  { %v6945_v40 = vpop.eup %6944  ;;  %6956 = vpow2.f32 %v6430_v43  ;;  %v4126_v7 = vrot.slane %v4120_v52, 3  ;;  %v4129_v60 = vrot.slane %v4120_v52, 4  ;;  %v4132_v54 = vrot.slane %v4120_v52, 5 }
 0xba7   :  { %v6947_v29 = vpop.eup %6946  ;;  %v12200_v4 = vadd.f32 1.0, %v6945_v40  ;;  %v4135_v42 = vrot.slane %v4120_v52, 6  ;;  %v4138_v19 = vrot.slane %v4120_v52, 7  ;;  %6958 = vpow2.f32 %v6431_v14 }
 0xba8   :  { %v6949_v23 = vpop.eup %6948  ;;  %v12202_v34 = vadd.f32 1.0, %v6947_v29  ;;  %v4141_v63 = vrot.slane %v4120_v52, 1  ;;  %v4144_v6 = vrot.slane %v4120_v52, 2  ;;  %v4171_v59 = vadd.f32 %v4126_v7, %v4095_v0 }
 0xba9   :  { %v6951_v50 = vpop.eup %6950  ;;  %v12204_v46 = vadd.f32 1.0, %v6949_v23  ;;  %6960 = vrcp.f32 %v12200_v4  ;;  %v4174_v58 = vadd.f32 %v4129_v60, %v4098_v16  ;;  %v4177_v43 = vadd.f32 %v4132_v54, %v4101_v32  ;;  %v4094_v23 = vld [vmem:[%s14428_s0 + $0x5c] sm:$0x4] }
 0xbaa   :  { %v6953_v30 = vpop.eup %6952  ;;  %v12206_v36 = vadd.f32 1.0, %v6951_v50  ;;  %6962 = vrcp.f32 %v12202_v34  ;;  %v4180_v18 = vadd.f32 %v4135_v42, %v4104_v39  ;;  %v4122_v14 = vmul.f32 %v12130_v51, %v12140_v2 }
 0xbab   :  { %v6955_v13 = vpop.eup %6954  ;;  %v12209_v28 = vadd.f32 1.0, %v6953_v30  ;;  %6964 = vrcp.f32 %v12204_v46  ;;  %v4183_v40 = vadd.f32 %v4138_v19, %v4107_v1  ;;  %v4186_v29 = vadd.f32 %v4120_v52, %v4110_v62 }
 0xbac   :  { %v12218_v0 = vpop.eup %6956  ;;  %v12220_v16 = vadd.f32 1.0, %v6955_v13  ;;  %v4189_v7 = vadd.f32 %v4141_v63, %v4113_v33  ;;  %v4192_v60 = vadd.f32 %v4144_v6, %v4116_v15  ;;  %v15398_v32 = vrot.slane %v12057_v61, 3 }
 0xbad   :  { %6966 = vrcp.f32 %v12206_v36  ;;  %v15399_v54 = vrot.slane %v12057_v61, 4  ;;  %v15400_v51 = vrot.slane %v12057_v61, 5  ;;  %v15401_v52 = vrot.slane %v12057_v61, 6  ;;  %v6959_v42 = vpop.eup %6958 }
 0xbae   :  { %v4211_v39 = vadd.f32 %v15398_v32, %v4171_v59  ;;  %6968 = vrcp.f32 %v12209_v28  ;;  %v15402_v33 = vrot.slane %v12057_v61, 7  ;;  %v4216_v19 = vadd.f32 %v4186_v29, %v12057_v61 }
 0xbaf   :  { %v4212_v2 = vadd.f32 %v15399_v54, %v4174_v58  ;;  %v4213_v62 = vadd.f32 %v15400_v51, %v4177_v43  ;;  %v4214_v1 = vadd.f32 %v15401_v52, %v4180_v18  ;;  %v4118_v50 = vunpack.c.l.bf16 %v4094_v23  ;;  %v12235_v63 = vpop.eup %6960 }
 0xbb0   :  { %v4215_v15 = vadd.f32 %v15402_v33, %v4183_v40  ;;  %v15403_v6 = vrot.slane %v12057_v61, 1  ;;  %v6416_v59 = vmul.f32 -1.442695, %v4211_v39  ;;  %v12239_v43 = vpop.eup %6962  ;;  %6970 = vrcp.f32 %v12220_v16 }
 0xbb1   :  { %v6417_v58 = vmul.f32 -1.442695, %v4212_v2  ;;  %v6418_v13 = vmul.f32 -1.442695, %v4213_v62  ;;  %v4128_v18 = vrot.slane %v4122_v14, 3  ;;  %v15404_v32 = vrot.slane %v12057_v61, 2  ;;  %v12244_v51 = vpop.eup %6964 }
 0xbb2   :  { %v4217_v30 = vadd.f32 %v15403_v6, %v4189_v7  ;;  %v6419_v40 = vmul.f32 -1.442695, %v4214_v1  ;;  %v4131_v29 = vrot.slane %v4122_v14, 4  ;;  %v4134_v23 = vrot.slane %v4122_v14, 5 }
 0xbb3   :  { %v4218_v54 = vadd.f32 %v15404_v32, %v4192_v60  ;;  %6972 = vpow2.f32 %v6416_v59  ;;  %v6420_v52 = vmul.f32 -1.442695, %v4215_v15  ;;  %v4137_v33 = vrot.slane %v4122_v14, 6  ;;  %v12246_v2 = vpop.eup %6966 }
 0xbb4   :  { %v4140_v7 = vrot.slane %v4122_v14, 7  ;;  %6974 = vpow2.f32 %v6417_v58  ;;  %v6421_v39 = vmul.f32 -1.442695, %v4216_v19  ;;  %v4143_v62 = vrot.slane %v4122_v14, 1  ;;  %v12248_v49 = vpop.eup %6968 }
 0xbb5   :  { %6976 = vpow2.f32 %v6418_v13  ;;  %v6422_v6 = vmul.f32 -1.442695, %v4217_v30  ;;  %v4146_v20 = vrot.slane %v4122_v14, 2  ;;  %v12252_v61 = vadd.f32 %v4122_v14, %v4112_v56 }
 0xbb6   :  { %6978 = vpow2.f32 %v6419_v40  ;;  %v6423_v60 = vmul.f32 -1.442695, %v4218_v54  ;;  %v12257_v15 = vadd.f32 %v4128_v18, %v4097_v26  ;;  %v12261_v19 = vadd.f32 %v4131_v29, %v4100_v9  ;;  %v12267_v38 = vpop.eup %6970 }
 0xbb7   :  { %v12265_v30 = vadd.f32 %v4134_v23, %v4103_v11  ;;  %6980 = vpow2.f32 %v6420_v52  ;;  %v12271_v56 = vadd.f32 %v4137_v33, %v4106_v21  ;;  %v4428_v44 = vmul.f32 %v12239_v43, %v12202_v34 }
 0xbb8   :  { %6982 = vpow2.f32 %v6421_v39  ;;  %v4443_v3 = vmul.f32 %v12244_v51, %v12204_v46  ;;  %v15405_v9 = vunpack.c.l.bf16 %v12175_v5  ;;  %v15406_v11 = vunpack.c.l.bf16 %v12181_v24 }
 0xbb9   :  { %v6973_v26 = vpop.eup %6972  ;;  %6984 = vpow2.f32 %v6422_v6  ;;  %v12285_v57 = vadd.f32 %v4146_v20, %v4118_v50  ;;  %v4438_v58 = vand.u32 2147483648, %v12202_v34  ;;  %v4453_v13 = vand.u32 2147483648, %v12204_v46 }
 0xbba   :  { %v12279_v55 = vadd.f32 %v4140_v7, %v15405_v9  ;;  %v12283_v14 = vadd.f32 %v4143_v62, %v15406_v11  ;;  %v6975_v21 = vpop.eup %6974  ;;  %6986 = vpow2.f32 %v6423_v60  ;;  %v12287_v59 = vadd.f32 1.0, %v6973_v26 }
 0xbbb   :  { %15408 = vst [vmem:[#allocation3_spill] sm:$0xff] %v12285_v57  ;;  %v6977_v18 = vpop.eup %6976  ;;  %v12291_v32 = vadd.f32 1.0, %v6975_v21  ;;  %v12294_v5 = vadd.f32 1.0, %v12218_v0  ;;  %v12296_v54 = vadd.f32 1.0, %v6959_v42  ;;  %v4429_v40 = vsub.f32 1.0, %v4428_v44 }
 0xbbc   :  { %15407 = vst [vmem:[#allocation70_spill] sm:$0xff] %v12283_v14  ;;  %v6979_v20 = vpop.eup %6978  ;;  %v12299_v50 = vadd.f32 1.0, %v6977_v18  ;;  %6988 = vrcp.f32 %v12287_v59  ;;  %v4444_v29 = vsub.f32 1.0, %v4443_v3  ;;  %v12308_v0 = vmul.f32 %v12246_v2, %v12206_v36 }
 0xbbd   :  { %v6981_v23 = vpop.eup %6980  ;;  %v12302_v52 = vadd.f32 1.0, %v6979_v20  ;;  %6990 = vrcp.f32 %v12291_v32  ;;  %v12313_v39 = vor.u32 1.1754944e-38, %v4438_v58  ;;  %v12315_v62 = vor.u32 1.1754944e-38, %v4453_v13 }
 0xbbe   :  { %v6983_v42 = vpop.eup %6982  ;;  %v12310_v7 = vadd.f32 1.0, %v6981_v23  ;;  %6992 = vrcp.f32 %v12299_v50  ;;  %v4262_v44 = vand.u32 2147483648, %v12287_v59  ;;  %v4277_v3 = vand.u32 2147483648, %v12291_v32 }
 0xbbf   :  { %v6985_v6 = vpop.eup %6984  ;;  %v12317_v60 = vadd.f32 1.0, %v6983_v42  ;;  %6994 = vrcp.f32 %v12302_v52  ;;  %v12326_v11 = vmul.f32 %v12239_v43, %v4429_v40  ;;  %v12329_v21 = vmul.f32 %v12244_v51, %v4444_v29 }
 0xbc0   :  { %v6987_v26 = vpop.eup %6986  ;;  %v12322_v9 = vadd.f32 1.0, %v6985_v6  ;;  %6996 = vrcp.f32 %v12310_v7  ;;  %vm4256_vm14 = vweird.f32 %v12287_v59  ;;  %v4260_v23 = vand.u32 2147483647, %v12287_v59 }
 0xbc1   :  { %6998 = vrcp.f32 %v12317_v60  ;;  %v12337_v20 = vadd.f32 1.0, %v6987_v26  ;;  %vm4271_vm4 = vweird.f32 %v12291_v32  ;;  %v4275_v40 = vand.u32 2147483647, %v12291_v32 }
 0xbc2   :  { %v12335_v18 = vpop.eup %6988  ;;  %v12346_v6 = vor.u32 1.1754944e-38, %v4262_v44  ;;  %v12348_v1 = vor.u32 1.1754944e-38, %v4277_v3  ;;  %vm4286_vm6 = vweird.f32 %v12299_v50  ;;  %7000 = vrcp.f32 %v12322_v9 }
 0xbc3   :  { %v12342_v29 = vpop.eup %6990  ;;  %v4252_v42 = vmul.f32 %v12335_v18, %v12287_v59  ;;  %v4290_v58 = vand.u32 2147483647, %v12299_v50  ;;  %v4292_v33 = vand.u32 2147483648, %v12299_v50  ;;  %vm4301_vm7 = vweird.f32 %v12302_v52 }
 0xbc4   :  { %v12351_v13 = vpop.eup %6992  ;;  %v4267_v26 = vmul.f32 %v12342_v29, %v12291_v32  ;;  %v4305_v3 = vand.u32 2147483647, %v12302_v52  ;;  %7002 = vrcp.f32 %v12337_v20  ;;  %vm4257_vm8 = vweird.f32 %v12335_v18 }
 0xbc5   :  { %v12358_v24 = vpop.eup %6994  ;;  %v4253_v45 = vsub.f32 1.0, %v4252_v42  ;;  %v4282_v44 = vmul.f32 %v12351_v13, %v12299_v50  ;;  %vm12373_vm9 = vcmp.eq.f32.partialorder %v4260_v23, 8.507059e+37  ;;  %vm4272_vm15 = vweird.f32 %v12342_v29  ;;  %vm12400_vm1 = vmor %vm4256_vm14, %vm4257_vm8 }
 0xbc6   :  { %v12364_v31 = vpop.eup %6996  ;;  %v4268_v47 = vsub.f32 1.0, %v4267_v26  ;;  %v4297_v17 = vmul.f32 %v12358_v24, %v12302_v52  ;;  %vm12381_vm5 = vcmp.eq.f32.partialorder %v4275_v40, 8.507059e+37  ;;  %vm4287_vm3 = vweird.f32 %v12351_v13  ;;  %vm12413_vm10 = vmor %vm4271_vm4, %vm4272_vm15 }
 0xbc7   :  { %v12370_v41 = vpop.eup %6998  ;;  %v4254_v42 = vmul.f32 %v12335_v18, %v4253_v45  ;;  %v4283_v48 = vsub.f32 1.0, %v4282_v44  ;;  %v4312_v26 = vmul.f32 %v12364_v31, %v12310_v7  ;;  %vm12386_vm12 = vcmp.eq.f32.partialorder %v4290_v58, 8.507059e+37  ;;  %vm12428_vm2 = vmor %vm4286_vm6, %vm4287_vm3 }
 0xbc8   :  { %v4269_v25 = vmul.f32 %v12342_v29, %v4268_v47  ;;  %v4298_v23 = vsub.f32 1.0, %v4297_v17  ;;  %v4307_v22 = vand.u32 2147483648, %v12302_v52  ;;  %vm4302_vm11 = vweird.f32 %v12358_v24  ;;  %v12394_v40 = vpop.eup %7000 }
 0xbc9   :  { %v4255_v44 = vadd.f32 %v12335_v18, %v4254_v42  ;;  %v4284_v27 = vmul.f32 %v12351_v13, %v4283_v48  ;;  %v4313_v47 = vsub.f32 1.0, %v4312_v26  ;;  %vm4317_vm0 = vweird.f32 %v12364_v31  ;;  %vm12445_vm6 = vmor %vm4301_vm7, %vm4302_vm11 }
 0xbca   :  { %v4270_v17 = vadd.f32 %v12342_v29, %v4269_v25  ;;  %v4299_v8 = vmul.f32 %v12358_v24, %v4298_v23  ;;  %v4327_v48 = vmul.f32 %v12370_v41, %v12317_v60  ;;  %v4320_v25 = vand.u32 2147483647, %v12310_v7  ;;  %v12422_v12 = vpop.eup %7002 }
 0xbcb   :  { %v4285_v59 = vadd.f32 %v12351_v13, %v4284_v27  ;;  %v4314_v26 = vmul.f32 %v12364_v31, %v4313_v47  ;;  %v4322_v23 = vand.u32 2147483648, %v12310_v7  ;;  %vm4433_vm13 = vweird.f32 %v12239_v43 }
 0xbcc   :  { %v4293_v37 = vor.u32 1.1754944e-38, %v4292_v33  ;;  %v4300_v27 = vadd.f32 %v12358_v24, %v4299_v8  ;;  %vm12433_vm14 = vcmp.eq.f32.partialorder %v4305_v3, 8.507059e+37  ;;  %v4328_v57 = vsub.f32 1.0, %v4327_v48 }
 0xbcd   :  { %vm4448_vm4 = vweird.f32 %v12244_v51  ;;  %v4259_v14 = vsel %vm12400_vm1, %v12335_v18, %v4255_v44  ;;  %v4308_v8 = vor.u32 1.1754944e-38, %v4307_v22  ;;  %v4315_v33 = vadd.f32 %v12364_v31, %v4314_v26 }
 0xbce   :  { %vm4316_vm8 = vweird.f32 %v12310_v7  ;;  %vm4432_vm15 = vweird.f32 %v12202_v34  ;;  %v4274_v3 = vsel %vm12413_vm10, %v12342_v29, %v4270_v17  ;;  %v4289_v18 = vsel %vm12428_vm2, %v12351_v13, %v4285_v59 }
 0xbcf   :  { %v4304_v52 = vsel %vm12445_vm6, %v12358_v24, %v4300_v27  ;;  %vm12463_vm7 = vmor %vm4316_vm8, %vm4317_vm0  ;;  %v4329_v7 = vmul.f32 %v12370_v41, %v4328_v57  ;;  %vm4447_vm3 = vweird.f32 %v12204_v46  ;;  %vm4321_vm11 = vcmp.eq.f32.partialorder %v4320_v25, 8.507059e+37 }
 0xbd0   :  { %v4319_v29 = vsel %vm12463_vm7, %v12364_v31, %v4315_v33  ;;  %v4323_v13 = vor.u32 1.1754944e-38, %v4322_v23  ;;  %v4337_v44 = vand.u32 2147483648, %v12317_v60  ;;  %v12476_v24 = vsel %vm12373_vm9, %v12346_v6, %v4259_v14 }
 0xbd1   :  { %v4330_v58 = vadd.f32 %v12370_v41, %v4329_v7  ;;  %vm4332_vm1 = vweird.f32 %v12370_v41  ;;  %v4342_v57 = vmul.f32 %v12394_v40, %v12322_v9  ;;  %vm4463_vm0 = vweird.f32 %v12246_v2 }
 0xbd2   :  { %v12486_v31 = vsel %vm12381_vm5, %v12348_v1, %v4274_v3  ;;  %v12490_v17 = vsel %vm12386_vm12, %v4293_v37, %v4289_v18  ;;  %v12494_v35 = vsel %vm12433_vm14, %v4308_v8, %v4304_v52  ;;  %vm4331_vm9 = vweird.f32 %v12317_v60 }
 0xbd3   :  { %v12497_v14 = vsel %vm4321_vm11, %v4323_v13, %v4319_v29  ;;  %v4335_v6 = vand.u32 2147483647, %v12317_v60  ;;  %v4343_v48 = vsub.f32 1.0, %v4342_v57  ;;  %v4357_v53 = vmul.f32 %v12422_v12, %v12337_v20  ;;  %vm12515_vm2 = vmor %vm4331_vm9, %vm4332_vm1 }
 0xbd4   :  { %v15427_v1 = vand.u32 2147483647, %v12202_v34  ;;  %v15430_v37 = vand.u32 2147483647, %v12204_v46  ;;  %vm4462_vm10 = vweird.f32 %v12206_v36  ;;  %v4338_v59 = vor.u32 1.1754944e-38, %v4337_v44  ;;  %vm12542_vm11 = vmor %vm4432_vm15, %vm4433_vm13 }
 0xbd5   :  { %vm4346_vm14 = vweird.f32 %v12322_v9  ;;  %vm4347_vm6 = vweird.f32 %v12394_v40  ;;  %v4350_v26 = vand.u32 2147483647, %v12322_v9  ;;  %v4334_v25 = vsel %vm12515_vm2, %v12370_v41, %v4330_v58  ;;  %vm12558_vm2 = vmor %vm4447_vm3, %vm4448_vm4 }
 0xbd6   :  { %vm12504_vm5 = vcmp.eq.f32.partialorder %v15427_v1, 8.507059e+37  ;;  %vm12510_vm12 = vcmp.eq.f32.partialorder %v15430_v37, 8.507059e+37  ;;  %v4344_v23 = vmul.f32 %v12394_v40, %v4343_v48  ;;  %v4352_v32 = vand.u32 2147483648, %v12322_v9  ;;  %vm12566_vm13 = vmor %vm4346_vm14, %vm4347_vm6 }
 0xbd7   :  { %v4358_v27 = vsub.f32 1.0, %v4357_v53  ;;  %v4365_v47 = vand.u32 2147483647, %v12337_v20  ;;  %v4431_v50 = vadd.f32 %v12239_v43, %v12326_v11  ;;  %v4446_v8 = vadd.f32 %v12244_v51, %v12329_v21  ;;  %vm12612_vm14 = vmor %vm4462_vm10, %vm4463_vm0 }
 0xbd8   :  { %v15435_v33 = vsub.f32 1.0, %v12308_v0  ;;  %vm4336_vm8 = vcmp.eq.f32.partialorder %v4335_v6, 8.507059e+37  ;;  %v4345_v41 = vadd.f32 %v12394_v40, %v4344_v23  ;;  %vm4362_vm7 = vweird.f32 %v12422_v12 }
 0xbd9   :  { %v4359_v18 = vmul.f32 %v12422_v12, %v4358_v27  ;;  %v12546_v21 = vsel %vm4336_vm8, %v4338_v59, %v4334_v25  ;;  %vm12548_vm1 = vcmp.eq.f32.partialorder %v4350_v26, 8.507059e+37  ;;  %vm4361_vm9 = vweird.f32 %v12337_v20 }
 0xbda   :  { %v4460_v3 = vmul.f32 %v12246_v2, %v15435_v33  ;;  %v4367_v52 = vand.u32 2147483648, %v12337_v20  ;;  %v4435_v20 = vsel %vm12542_vm11, %v12239_v43, %v4431_v50  ;;  %v4450_v46 = vsel %vm12558_vm2, %v12244_v51, %v4446_v8  ;;  %vm12581_vm4 = vmor %vm4361_vm9, %vm4362_vm7 }
 0xbdb   :  { %v4360_v7 = vadd.f32 %v12422_v12, %v4359_v18  ;;  %v4349_v9 = vsel %vm12566_vm13, %v12394_v40, %v4345_v41  ;;  %v4353_v13 = vor.u32 1.1754944e-38, %v4352_v32  ;;  %vm4366_vm15 = vcmp.eq.f32.partialorder %v4365_v47, 8.507059e+37 }
 0xbdc   :  { %v4461_v29 = vadd.f32 %v12246_v2, %v4460_v3  ;;  %v4473_v58 = vmul.f32 %v12248_v49, %v12209_v28  ;;  %v15446_v51 = vand.u32 2147483647, %v12206_v36  ;;  %v4468_v40 = vand.u32 2147483648, %v12206_v36 }
 0xbdd   :  { %v4364_v43 = vsel %vm12581_vm4, %v12422_v12, %v4360_v7  ;;  %v4481_v6 = vand.u32 2147483647, %v12209_v28  ;;  %v4368_v48 = vor.u32 1.1754944e-38, %v4367_v52  ;;  %v12601_v53 = vsel %vm12504_vm5, %v12313_v39, %v4435_v20 }
 0xbde   :  { %vm12592_vm3 = vcmp.eq.f32.partialorder %v15446_v51, 8.507059e+37  ;;  %v12606_v12 = vsel %vm12510_vm12, %v12315_v62, %v4450_v46  ;;  %v4474_v37 = vsub.f32 1.0, %v4473_v58  ;;  %v4354_v60 = vsel %vm12548_vm1, %v4353_v13, %v4349_v9 }
 0xbdf   :  { %v4465_v39 = vsel %vm12612_vm14, %v12246_v2, %v4461_v29  ;;  %vm4477_vm5 = vweird.f32 %v12209_v28  ;;  %v4488_v62 = vmul.f32 %v12267_v38, %v12220_v16  ;;  %v4369_v45 = vsel %vm4366_vm15, %v4368_v48, %v4364_v43 }
 0xbe0   :  { %v4475_v36 = vmul.f32 %v12248_v49, %v4474_v37  ;;  %vm4478_vm0 = vweird.f32 %v12248_v49  ;;  %v4483_v42 = vand.u32 2147483648, %v12209_v28  ;;  %v4469_v59 = vor.u32 1.1754944e-38, %v4468_v40 }
 0xbe1   :  { %vm12627_vm12 = vcmp.eq.f32.partialorder %v4481_v6, 8.507059e+37  ;;  %v4489_v25 = vsub.f32 1.0, %v4488_v62  ;;  %v4503_v2 = vmul.f32 %v12235_v63, %v12200_v4  ;;  %vm4492_vm10 = vweird.f32 %v12220_v16  ;;  %vm12645_vm8 = vmor %vm4477_vm5, %vm4478_vm0  ;;  %v15486_v62 = vld [vmem:[#allocation69_spill] sm:$0xff] }
 0xbe2   :  { %v4476_v23 = vadd.f32 %v12248_v49, %v4475_v36  ;;  %vm4493_vm6 = vweird.f32 %v12267_v38  ;;  %v4496_v32 = vand.u32 2147483647, %v12220_v16  ;;  %v12639_v27 = vsel %vm12592_vm3, %v4469_v59, %v4465_v39 }
 0xbe3   :  { %v4490_v47 = vmul.f32 %v12267_v38, %v4489_v25  ;;  %v4498_v50 = vand.u32 2147483648, %v12220_v16  ;;  %v4504_v8 = vsub.f32 1.0, %v4503_v2  ;;  %v4484_v3 = vor.u32 1.1754944e-38, %v4483_v42  ;;  %vm4494_vm11 = vmor %vm4492_vm10, %vm4493_vm6 }
 0xbe4   :  { %v4511_v41 = vand.u32 2147483647, %v12200_v4  ;;  %v4513_v18 = vand.u32 2147483648, %v12200_v4  ;;  %7004 = vrcp.f32 %v12294_v5  ;;  %v4480_v11 = vsel %vm12645_vm8, %v12248_v49, %v4476_v23 }
 0xbe5   :  { %v4491_v0 = vadd.f32 %v12267_v38, %v4490_v47  ;;  %v4505_v52 = vmul.f32 %v12235_v63, %v4504_v8  ;;  %vm4507_vm7 = vweird.f32 %v12200_v4  ;;  %vm4497_vm1 = vcmp.eq.f32.partialorder %v4496_v32, 8.507059e+37 }
 0xbe6   :  { %vm4508_vm9 = vweird.f32 %v12235_v63  ;;  %v4528_v28 = vand.u32 2147483648, %v12294_v5  ;;  %7006 = vrcp.f32 %v12296_v54  ;;  %v4499_v34 = vor.u32 1.1754944e-38, %v4498_v50 }
 0xbe7   :  { %v4495_v49 = vsel %vm4494_vm11, %v12267_v38, %v4491_v0  ;;  %v4506_v22 = vadd.f32 %v12235_v63, %v4505_v52  ;;  %v4526_v7 = vand.u32 2147483647, %v12294_v5  ;;  %v12670_v20 = vsel %vm12627_vm12, %v4484_v3, %v4480_v11  ;;  %vm12691_vm4 = vmor %vm4507_vm7, %vm4508_vm9  ;;  %v15474_v0 = vld [vmem:[#allocation63_spill] sm:$0xff] }
 0xbe8   :  { %vm12672_vm2 = vcmp.eq.f32.partialorder %v4511_v41, 8.507059e+37  ;;  %v4514_v46 = vor.u32 1.1754944e-38, %v4513_v18  ;;  %v15457_v29 = vrot.slane %v12068_v10, 3  ;;  %v12679_v13 = vsel %vm4497_vm1, %v4499_v34, %v4495_v49  ;;  %v15472_v41 = vld [vmem:[#allocation62_spill] sm:$0xff] }
 0xbe9   :  { %vm4522_vm13 = vweird.f32 %v12294_v5  ;;  %v4541_v38 = vand.u32 2147483647, %v12296_v54  ;;  %v4543_v44 = vand.u32 2147483648, %v12296_v54  ;;  %v15458_v58 = vrot.slane %v12068_v10, 4 }
 0xbea   :  { %v4563_v9 = vmul.f32 %v15457_v29, %v12476_v24  ;;  %v7005_v51 = vpop.eup %7004  ;;  %v4529_v24 = vor.u32 1.1754944e-38, %v4528_v28  ;;  %v15461_v40 = vrot.slane %v12068_v10, 5  ;;  %v15462_v48 = vrot.slane %v12068_v10, 6 }
 0xbeb   :  { %v4564_v43 = vmul.f32 %v15458_v58, %v12486_v31  ;;  %v15463_v31 = vrot.slane %v12068_v10, 7  ;;  %v4510_v4 = vsel %vm12691_vm4, %v12235_v63, %v4506_v22  ;;  %v4518_v39 = vmul.f32 %v7005_v51, %v12294_v5  ;;  %v15476_v22 = vld [vmem:[#allocation64_spill] sm:$0xff] }
 0xbec   :  { %v4565_v6 = vmul.f32 %v15461_v40, %v12490_v17  ;;  %v4566_v1 = vmul.f32 %v15462_v48, %v12494_v35  ;;  %vm12708_vm15 = vcmp.eq.f32.partialorder %v4526_v7, 8.507059e+37  ;;  %vm4537_vm3 = vweird.f32 %v12296_v54  ;;  %v7007_v42 = vpop.eup %7006  ;;  %v15484_v48 = vld [vmem:[#allocation68_spill] sm:$0xff] }
 0xbed   :  { %v4567_v37 = vmul.f32 %v15463_v31, %v12497_v14  ;;  %v4568_v17 = vmul.f32 %v12546_v21, %v12068_v10  ;;  %v15466_v35 = vrot.slane %v12068_v10, 1  ;;  %v15467_v14 = vrot.slane %v12068_v10, 2 }
 0xbee   :  { %v4571_v63 = vadd.f32 %v4563_v9, %v12257_v15  ;;  %v4572_v26 = vadd.f32 %v4564_v43, %v12261_v19  ;;  %v4573_v25 = vadd.f32 %v4565_v6, %v12265_v30  ;;  %v4519_v2 = vsub.f32 1.0, %v4518_v39  ;;  %v15471_v15 = vld [vmem:[#allocation3_spill] sm:$0xff] }
 0xbef   :  { %v4569_v36 = vmul.f32 %v15466_v35, %v4354_v60  ;;  %v4570_v59 = vmul.f32 %v15467_v14, %v4369_v45  ;;  %v4533_v23 = vmul.f32 %v7007_v42, %v12296_v54  ;;  %vm12723_vm14 = vcmp.eq.f32.partialorder %v4541_v38, 8.507059e+37  ;;  %v15470_v45 = vld [vmem:[#allocation70_spill] sm:$0xff] }
 0xbf0   :  { %v4574_v21 = vadd.f32 %v4566_v1, %v12271_v56  ;;  %v4575_v60 = vadd.f32 %v4567_v37, %v12279_v55  ;;  %v4576_v10 = vadd.f32 %v4568_v17, %v12252_v61  ;;  %v4520_v19 = vmul.f32 %v7005_v51, %v4519_v2 }
 0xbf1   :  { %v4577_v47 = vadd.f32 %v4569_v36, %v15470_v45  ;;  %v4578_v50 = vadd.f32 %v4570_v59, %v15471_v15  ;;  %vm4523_vm5 = vweird.f32 %v7005_v51  ;;  %v4534_v30 = vsub.f32 1.0, %v4533_v23 }
 0xbf2   :  { %7008 = vtanh.f32 %v4571_v63  ;;  %v4515_v8 = vsel %vm12672_vm2, %v4514_v46, %v4510_v4  ;;  %vm4538_vm0 = vweird.f32 %v7007_v42  ;;  %v4544_v33 = vor.u32 1.1754944e-38, %v4543_v44  ;;  %vm4524_vm12 = vmor %vm4522_vm13, %vm4523_vm5 }
 0xbf3   :  { %7010 = vtanh.f32 %v4572_v26  ;;  %v4521_v3 = vadd.f32 %v7005_v51, %v4520_v19  ;;  %v4535_v56 = vmul.f32 %v7007_v42, %v4534_v30  ;;  %v4587_v55 = vsub.f32 1.0, %v12601_v53  ;;  %vm4539_vm10 = vmor %vm4537_vm3, %vm4538_vm0 }
 0xbf4   :  { %7012 = vtanh.f32 %v4573_v25  ;;  %v4588_v61 = vsub.f32 1.0, %v12606_v12  ;;  %v15473_v18 = vrot.slane %v15472_v41, 7  ;;  %v15475_v52 = vrot.slane %v15474_v0, 7 }
 0xbf5   :  { %7014 = vtanh.f32 %v4574_v21  ;;  %v4525_v49 = vsel %vm4524_vm12, %v7005_v51, %v4521_v3  ;;  %v4536_v34 = vadd.f32 %v7007_v42, %v4535_v56  ;;  %v15477_v7 = vrot.slane %v15476_v22, 7  ;;  %v15482_v51 = vld [vmem:[#allocation67_spill] sm:$0xff] }
 0xbf6   :  { %v4627_v11 = vmul.f32 %v15473_v18, %v12601_v53  ;;  %v4628_v28 = vmul.f32 %v15475_v52, %v12606_v12  ;;  %7016 = vtanh.f32 %v4575_v60  ;;  %v4530_v5 = vsel %vm12708_vm15, %v4529_v24, %v4525_v49  ;;  %v15478_v53 = vld [vmem:[#allocation65_spill] sm:$0xff]  ;;  %v15480_v12 = vld [vmem:[#allocation66_spill] sm:$0xff] }
 0xbf7   :  { %v4629_v16 = vmul.f32 %v15477_v7, %v12639_v27  ;;  %7018 = vtanh.f32 %v4576_v10  ;;  %v15479_v46 = vrot.slane %v15478_v53, 7  ;;  %v15481_v9 = vrot.slane %v15480_v12, 7 }
 0xbf8   :  { %v7009_v44 = vpop.eup %7008  ;;  %v4540_v58 = vsel %vm4539_vm10, %v7007_v42, %v4536_v34  ;;  %7020 = vtanh.f32 %v4577_v47  ;;  %v4589_v43 = vsub.f32 1.0, %v12639_v27  ;;  %v15483_v57 = vrot.slane %v15482_v51, 7 }
 0xbf9   :  { %v4630_v29 = vmul.f32 %v15479_v46, %v12670_v20  ;;  %v4631_v38 = vmul.f32 %v15481_v9, %v12679_v13  ;;  %v7011_v40 = vpop.eup %7010  ;;  %v4545_v54 = vsel %vm12723_vm14, %v4544_v33, %v4540_v58  ;;  %7022 = vtanh.f32 %v4578_v50 }
 0xbfa   :  { %v4632_v24 = vmul.f32 %v15483_v57, %v4515_v8  ;;  %v4595_v6 = vmul.f32 %v7009_v44, %v4587_v55  ;;  %v15485_v1 = vrot.slane %v15484_v48, 7  ;;  %v7013_v37 = vpop.eup %7012  ;;  %v4590_v4 = vsub.f32 1.0, %v12670_v20  ;;  %v15497_v48 = vld [vmem:[#allocation12_spill] sm:$0xff] }
 0xbfb   :  { %v4596_v39 = vmul.f32 %v7011_v40, %v4588_v61  ;;  %v15487_v17 = vrot.slane %v15486_v62, 7  ;;  %v7015_v27 = vpop.eup %7014  ;;  %v4591_v36 = vsub.f32 1.0, %v12679_v13  ;;  %v4597_v42 = vmul.f32 %v7013_v37, %v4589_v43  ;;  %v15500_v37 = vld [vmem:[#allocation13_spill] sm:$0xff]  ;;  %v15503_v62 = vld [vmem:[#allocation20_spill] sm:$0xff] }
 0xbfc   :  { %v4633_v31 = vmul.f32 %v15485_v1, %v4530_v5  ;;  %v12769_v14 = vadd.f32 %v4627_v11, %v4595_v6  ;;  %v7017_v59 = vpop.eup %7016  ;;  %v4592_v63 = vsub.f32 1.0, %v4515_v8  ;;  %v4598_v26 = vmul.f32 %v7015_v27, %v4590_v4  ;;  %v15496_v6 = vld [vmem:[#allocation11_spill] sm:$0xff]  ;;  %v15498_v1 = vld [vmem:[#allocation42_spill] sm:$0xff] }
 0xbfd   :  { %v4634_v35 = vmul.f32 %v15487_v17, %v4545_v54  ;;  %v12771_v25 = vadd.f32 %v4628_v28, %v4596_v39  ;;  %v7019_v2 = vpop.eup %7018  ;;  %v4593_v23 = vsub.f32 1.0, %v4530_v5  ;;  %v4599_v32 = vmul.f32 %v7017_v59, %v4591_v36  ;;  %v15501_v4 = vld [vmem:[#allocation14_spill] sm:$0xff]  ;;  %v15504_v17 = vld [vmem:[#allocation15_spill] sm:$0xff] }
 0xbfe   :  { %v12773_v21 = vadd.f32 %v4629_v16, %v4597_v42  ;;  %4643 = vst [vmem:[%s14429_s7] sm:$0x20] %v12769_v14  ;;  %v4651_v20 = vpack.c.bf16 %v12769_v14, %v12769_v14  ;;  %v7021_v13 = vpop.eup %7020  ;;  %v4594_v60 = vsub.f32 1.0, %v4545_v54  ;;  %v4600_v10 = vmul.f32 %v7019_v2, %v4592_v63  ;;  %v15502_v39 = vld [vmem:[#allocation46_spill] sm:$0xff]  ;;  %v15507_v36 = vld [vmem:[#allocation23_spill] sm:$0xff]  ;;  %v15508_v42 = vld [vmem:[#allocation17_spill] sm:$0xff] }
 0xbff   :  { %v12781_v45 = vadd.f32 %v4630_v29, %v4598_v26  ;;  %4644 = vst [vmem:[%s14429_s7 + $0x8] sm:$0x20] %v12771_v25  ;;  %v4652_v47 = vpack.c.bf16 %v12771_v25, %v12771_v25  ;;  %v7023_v15 = vpop.eup %7022  ;;  %v4601_v50 = vmul.f32 %v7021_v13, %v4593_v23  ;;  %v12789_v19 = vadd.f32 %v4631_v38, %v4599_v32  ;;  %v15506_v27 = vld [vmem:[#allocation50_spill] sm:$0xff]  ;;  %v15512_v2 = vld [vmem:[#allocation21_spill] sm:$0xff]  ;;  %v15514_v32 = vld [vmem:[#allocation55_spill] sm:$0xff] }
 0xc00   :  { %4645 = vst [vmem:[%s14429_s7 + $0x10] sm:$0x20] %v12773_v21  ;;  %v4653_v30 = vpack.c.bf16 %v12773_v21, %v12773_v21  ;;  %v4667_v8 = vunpack.c.l.b16 %v4651_v20  ;;  %v4602_v33 = vmul.f32 %v7023_v15, %v4594_v60  ;;  %v12797_v3 = vadd.f32 %v4632_v24, %v4600_v10  ;;  %v15509_v59 = vld [vmem:[#allocation18_spill] sm:$0xff]  ;;  %v15515_v20 = vld [vmem:[#allocation29_spill] sm:$0xff]  ;;  %v15516_v13 = vld [vmem:[#allocation24_spill] sm:$0xff] }
 0xc01   :  { %4646 = vst [vmem:[%s14429_s7 + $0x18] sm:$0x20] %v12781_v45  ;;  %v4654_v56 = vpack.c.bf16 %v12781_v45, %v12781_v45  ;;  %v4668_v55 = vunpack.c.l.b16 %v4652_v47  ;;  %v12805_v61 = vadd.f32 %v4633_v31, %v4601_v50  ;;  %v4655_v41 = vpack.c.bf16 %v12789_v19, %v12789_v19  ;;  %v15499_v31 = vld [vmem:[#allocation19_spill] sm:$0xff]  ;;  %v15510_v63 = vld [vmem:[#allocation54_spill] sm:$0xff]  ;;  %v15517_v60 = vld [vmem:[#allocation25_spill] sm:$0xff] }
 0xc02   :  { %4647 = vst [vmem:[%s14429_s7 + $0x20] sm:$0x20] %v12789_v19  ;;  %v4669_v18 = vunpack.c.l.b16 %v4653_v30  ;;  %v4675_v11 = vrot.slane %v4667_v8, 5  ;;  %v12813_v0 = vadd.f32 %v4634_v35, %v4602_v33  ;;  %v4656_v52 = vpack.c.bf16 %v12797_v3, %v12797_v3  ;;  %v15505_v35 = vld [vmem:[#allocation16_spill] sm:$0xff]  ;;  %v15511_v26 = vld [vmem:[#allocation26_spill] sm:$0xff]  ;;  %v15519_v47 = vld [vmem:[#allocation43_spill] sm:$0xff] }
 0xc03   :  { %4648 = vst [vmem:[%s14429_s7 + $0x28] sm:$0x20] %v12797_v3  ;;  %v4670_v28 = vunpack.c.l.b16 %v4654_v56  ;;  %v4676_v49 = vrot.slane %v4668_v55, 4  ;;  %v4657_v34 = vpack.c.bf16 %v12805_v61, %v12805_v61  ;;  %v4671_v22 = vunpack.c.l.b16 %v4655_v41  ;;  %v15513_v23 = vld [vmem:[#allocation22_spill] sm:$0xff]  ;;  %v15518_v10 = vld [vmem:[#allocation56_spill] sm:$0xff]  ;;  %v15520_v15 = vld [vmem:[#allocation27_spill] sm:$0xff] }
 0xc04   :  { %15488 = vst [vmem:[#allocation4_spill] sm:$0xff] %v12813_v0  ;;  %v4678_v7 = vrot.slane %v4669_v18, 3  ;;  %v4658_v16 = vpack.c.bf16 %v12813_v0, %v12813_v0  ;;  %vm15489_vm6 = vcmask 1041409   ;;  %vm15490_vm8 = vcmask 1042434   ;;  %v15521_v50 = vld [vmem:[#allocation28_spill] sm:$0xff]  ;;  %v15522_v30 = vld [vmem:[#allocation57_spill] sm:$0xff] }
 0xc05   :  { %4649 = vst [vmem:[%s14429_s7 + $0x30] sm:$0x20] %v12805_v61  ;;  %v4677_v5 = vsel %vm15489_vm6, %v4676_v49, %v4675_v11  ;;  %v4680_v53 = vrot.slane %v4670_v28, 2  ;;  %v4673_v46 = vunpack.c.l.b16 %v4657_v34  ;;  %v4682_v12 = vrot.slane %v4671_v22, 1  ;;  %v15523_v8 = vld [vmem:[#allocation47_spill] sm:$0xff]  ;;  %v15524_v33 = vld [vmem:[#allocation30_spill] sm:$0xff] }
 0xc06   :  { %4650 = vst [vmem:[%s14429_s7 + $0x38] sm:$0x20] %v12813_v0  ;;  %v4679_v29 = vsel %vm15490_vm8, %v4678_v7, %v4677_v5  ;;  %v4672_v9 = vunpack.c.l.b16 %v4656_v52  ;;  %v4674_v38 = vunpack.c.l.b16 %v4658_v16  ;;  %vm15491_vm7 = vcmask 1043459   ;;  %v15525_v56 = vld [vmem:[#allocation31_spill] sm:$0xff]  ;;  %v15526_v55 = vld [vmem:[#allocation58_spill] sm:$0xff] }
 0xc07   :  { %v4681_v44 = vsel %vm15491_vm7, %v4680_v53, %v4679_v29  ;;  %vm15492_vm11 = vcmask 1044484   ;;  %v4685_v43 = vrot.slane %v4673_v46, 7  ;;  %vm15493_vm1 = vcmask 1045509   ;;  %v15527_v41 = vld [vmem:[#allocation51_spill] sm:$0xff]  ;;  %v7203_v49 = vld [vmem:[%s14425_s4] sm:$0xff] }
 0xc08   :  { %v4683_v58 = vsel %vm15492_vm11, %v4682_v12, %v4681_v44  ;;  %v4687_v57 = vrot.slane %v4674_v38, 6  ;;  %vm15494_vm9 = vcmask 1046534   ;;  %vm15495_vm2 = vcmask 1047559   ;;  %v7204_v16 = vld [vmem:[%s14426_s3] sm:$0xff] }
 0xc09   :  { %v4684_v51 = vsel %vm15493_vm1, %v4672_v9, %v4683_v58  ;;  %v15528_v58 = vld [vmem:[#allocation32_spill] sm:$0xff] }
 0xc0a   :  { %v4686_v24 = vsel %vm15494_vm9, %v4685_v43, %v4684_v51  ;;  %v15529_v43 = vld [vmem:[#allocation33_spill] sm:$0xff]  ;;  %v15530_v51 = vld [vmem:[#allocation34_spill] sm:$0xff] }
 0xc0b   :  { %v4688_v40 = vsel %vm15495_vm2, %v4687_v57, %v4686_v24  ;;  %v15531_v57 = vld [vmem:[#allocation35_spill] sm:$0xff]  ;;  %v15532_v24 = vld [vmem:[#allocation36_spill] sm:$0xff] }
 0xc0c   :  { %v4689_v54 = vpack.c.b16 %v4688_v40, %v4688_v40  ;;  %v15533_v40 = vld [vmem:[#allocation37_spill] sm:$0xff] }
 0xc0e   :  { %4699 = vmatmul.bf16.vlgmr.msra.gmra.mxu2 %v4689_v54  ;;  %4712 = vmatmul.bf16.vlgmr.msra.gmra.mxu3 %v4689_v54 }
 0xc0f   :  { %4725 = vmatmul.bf16.vlgmr.msrb.gmra.mxu0 %v4689_v54  ;;  %4738 = vmatmul.bf16.vlgmr.msrb.gmra.mxu1 %v4689_v54  ;;  %v15534_v54 = vld [vmem:[#allocation38_spill] sm:$0xff] }
 0xc10   :  { %5420 = vmatpush.bf16.msra.mxu2 %v15496_v6  ;;  %5433 = vmatpush.bf16.msra.mxu3 %v15497_v48  ;;  %v15535_v6 = vld [vmem:[#allocation39_spill] sm:$0xff]  ;;  %v15536_v48 = vld [vmem:[#allocation40_spill] sm:$0xff] }
 0xc11   :  { %5446 = vmatpush.bf16.msrb.mxu0 %v15498_v1  ;;  %5472 = vmatpush.bf16.msrb.mxu1 %v15499_v31  ;;  %v15537_v1 = vld [vmem:[#allocation41_spill] sm:$0xff]  ;;  %v15538_v31 = vld [vmem:[#allocation44_spill] sm:$0xff] }
 0xc14   :  { %5421 = vmatpush.bf16.msra.mxu2 %v15500_v37  ;;  %5434 = vmatpush.bf16.msra.mxu3 %v15501_v4  ;;  %v15539_v37 = vld [vmem:[#allocation45_spill] sm:$0xff]  ;;  %v15540_v4 = vld [vmem:[#allocation48_spill] sm:$0xff] }
 0xc15   :  { %5447 = vmatpush.bf16.msrb.mxu0 %v15502_v39  ;;  %5473 = vmatpush.bf16.msrb.mxu1 %v15503_v62  ;;  %v15541_v39 = vld [vmem:[#allocation49_spill] sm:$0xff]  ;;  %v15542_v62 = vld [vmem:[#allocation52_spill] sm:$0xff] }
 0xc18   :  { %5422 = vmatpush.bf16.msra.mxu2 %v15504_v17  ;;  %5435 = vmatpush.bf16.msra.mxu3 %v15505_v35  ;;  %v15543_v17 = vld [vmem:[#allocation53_spill] sm:$0xff]  ;;  %v15544_v35 = vld [vmem:[#allocation60_spill] sm:$0xff] }
 0xc19   :  { %5448 = vmatpush.bf16.msrb.mxu0 %v15506_v27  ;;  %5474 = vmatpush.bf16.msrb.mxu1 %v15507_v36 }
 0xc1c   :  { %5423 = vmatpush.bf16.msra.mxu2 %v15508_v42  ;;  %5436 = vmatpush.bf16.msra.mxu3 %v15509_v59 }
 0xc1d   :  { %5449 = vmatpush.bf16.msrb.mxu0 %v15510_v63  ;;  %5475 = vmatpush.bf16.msrb.mxu1 %v15511_v26  ;;  %v15545_v63 = vld [vmem:[#allocation61_spill] sm:$0xff] }
 0xc20   :  { %5424 = vmatpush.bf16.msra.mxu2 %v15512_v2  ;;  %5437 = vmatpush.bf16.msra.mxu3 %v15513_v23 }
 0xc21   :  { %5450 = vmatpush.bf16.msrb.mxu0 %v15514_v32  ;;  %5476 = vmatpush.bf16.msrb.mxu1 %v15515_v20 }
 0xc24   :  { %5425 = vmatpush.bf16.msra.mxu2 %v15516_v13  ;;  %5438 = vmatpush.bf16.msra.mxu3 %v15517_v60 }
 0xc25   :  { %5451 = vmatpush.bf16.msrb.mxu0 %v15518_v10  ;;  %5477 = vmatpush.bf16.msrb.mxu1 %v15519_v47  ;;  %v15546_v47 = vld [vmem:[#allocation59_spill] sm:$0xff] }
 0xc28   :  { %5426 = vmatpush.bf16.msra.mxu2 %v15520_v15  ;;  %5439 = vmatpush.bf16.msra.mxu3 %v15521_v50 }
 0xc29   :  { %5452 = vmatpush.bf16.msrb.mxu0 %v15522_v30  ;;  %5478 = vmatpush.bf16.msrb.mxu1 %v15523_v8 }
 0xc2c   :  { %5427 = vmatpush.bf16.msra.mxu2 %v15524_v33  ;;  %5440 = vmatpush.bf16.msra.mxu3 %v15525_v56 }
 0xc2d   :  { %5453 = vmatpush.bf16.msrb.mxu0 %v15526_v55  ;;  %5479 = vmatpush.bf16.msrb.mxu1 %v15527_v41 }
 0xc8c   :  { %v4726_v18 = vpop.f32.mrf.mxu0  ;;  %v4739_v11 = vpop.f32.mrf.mxu1 }
 0xc8d   :  { %v12895_v27 = vadd.f32 %v4726_v18, %v15544_v35  ;;  %v12901_v26 = vadd.f32 %v4739_v11, %v15545_v63 }
 0xc91   :  { %v4700_v52 = vpop.f32.mrf.mxu2  ;;  %v4713_v28 = vpop.f32.mrf.mxu3 }
 0xc92   :  { %v4743_v34 = vmul.f32 %v7203_v49, %v4700_v52  ;;  %v12911_v15 = vadd.f32 %v4713_v28, %v15546_v47 }
 0xc94   :  { %v4728_v22 = vpop.f32.mrf.mxu0  ;;  %v4741_v7 = vpop.f32.mrf.mxu1  ;;  %v4744_v5 = vadd.f32 %v7204_v16, %v4743_v34  ;;  %v15548_v47 = vrot.slane %v12911_v15, 3 }
 0xc96   :  { %4748 = vmax.xlane.f32.xlu0 %v4744_v5 }
 0xc99   :  { %v4702_v53 = vpop.f32.mrf.mxu2  ;;  %v4715_v46 = vpop.f32.mrf.mxu3 }
 0xd09   :  { %v4749_v29 = vpop.xlane.xlu0 %4748 }
 0xd0a   :  { %v4750_v12 = vsub.f32 %v4744_v5, %v4749_v29 }
 0xd0c   :  { %v4751_v9 = vmul.f32 1.442695, %v4750_v12  ;;  %v12935_v12 = vld [vmem:[%s14428_s0 + $0x8] sm:$0x8] }
 0xd0e   :  { %7024 = vpow2.f32 %v4751_v9  ;;  %v12940_v9 = vld [vmem:[%s14428_s0 + $0x14] sm:$0x8] }
 0xd14   :  { %v7025_v38 = vpop.eup %7024 }
 0xd15   :  { %4753 = vadd.xlane.f32.xlu1 %v7025_v38  ;;  %v4755_v44 = vpack.c.bf16 %v7025_v38, %v7025_v38  ;;  %v12945_v38 = vld [vmem:[%s14428_s0 + $0x20] sm:$0x8] }
 0xd17   :  { %4764 = vmatmul.bf16.vlgmr.msrb.gmra.mxu2 %v4755_v44  ;;  %4777 = vmatmul.bf16.vlgmr.msrb.gmra.mxu3 %v4755_v44 }
 0xd18   :  { %4790 = vmatmul.bf16.vlgmr.msra.gmra.mxu0 %v4755_v44  ;;  %5485 = vmatpush.bf16.msrb.mxu2 %v15528_v58  ;;  %v12950_v44 = vld [vmem:[%s14428_s0 + $0x2c] sm:$0x8]  ;;  %v12955_v58 = vld [vmem:[%s14428_s0 + $0x38] sm:$0x8] }
 0xd19   :  { %5498 = vmatpush.bf16.msrb.mxu3 %v15529_v43  ;;  %v12960_v43 = vld [vmem:[%s14428_s0 + $0x44] sm:$0x8] }
 0xd1c   :  { %5486 = vmatpush.bf16.msrb.mxu2 %v15530_v51  ;;  %v12965_v51 = vld [vmem:[%s14428_s0 + $0x50] sm:$0x8] }
 0xd1d   :  { %5499 = vmatpush.bf16.msrb.mxu3 %v15531_v57  ;;  %v12970_v57 = vld [vmem:[%s14428_s0] sm:$0x88]  ;;  %v4831_v32 = vunpack.c.l.bf16 %v12965_v51  ;;  %v13027_v51 = vld [vmem:[%s14428_s0 + $0x5c] sm:$0x8] }
 0xd1e   :  { %v4811_v23 = vunpack.c.l.bf16 %v12970_v57 }
 0xd20   :  { %5487 = vmatpush.bf16.msrb.mxu2 %v15532_v24  ;;  %v12975_v24 = vld [vmem:[%s14428_s0 + $0xc] sm:$0x88] }
 0xd21   :  { %5500 = vmatpush.bf16.msrb.mxu3 %v15533_v40  ;;  %v12980_v40 = vld [vmem:[%s14428_s0 + $0x18] sm:$0x88]  ;;  %v4814_v59 = vunpack.c.l.bf16 %v12975_v24 }
 0xd22   :  { %v4817_v42 = vunpack.c.l.bf16 %v12980_v40 }
 0xd24   :  { %5488 = vmatpush.bf16.msrb.mxu2 %v15534_v54  ;;  %v12985_v54 = vld [vmem:[%s14428_s0 + $0x24] sm:$0x88] }
 0xd25   :  { %5501 = vmatpush.bf16.msrb.mxu3 %v15535_v6  ;;  %v12990_v6 = vld [vmem:[%s14428_s0 + $0x30] sm:$0x88]  ;;  %v4820_v36 = vunpack.c.l.bf16 %v12985_v54 }
 0xd26   :  { %v4823_v34 = vunpack.c.l.bf16 %v12990_v6 }
 0xd28   :  { %5489 = vmatpush.bf16.msrb.mxu2 %v15536_v48 }
 0xd29   :  { %5502 = vmatpush.bf16.msrb.mxu3 %v15537_v1 }
 0xd2c   :  { %5490 = vmatpush.bf16.msrb.mxu2 %v15538_v31 }
 0xd2d   :  { %5503 = vmatpush.bf16.msrb.mxu3 %v15539_v37 }
 0xd30   :  { %5491 = vmatpush.bf16.msrb.mxu2 %v15540_v4 }
 0xd31   :  { %5504 = vmatpush.bf16.msrb.mxu3 %v15541_v39  ;;  %v12999_v39 = vld [vmem:[%s14428_s0 + $0x3c] sm:$0x88] }
 0xd32   :  { %v4826_v49 = vunpack.c.l.bf16 %v12999_v39 }
 0xd34   :  { %5492 = vmatpush.bf16.msrb.mxu2 %v15542_v62  ;;  %v13004_v62 = vld [vmem:[%s14428_s0 + $0x48] sm:$0x88] }
 0xd35   :  { %5505 = vmatpush.bf16.msrb.mxu3 %v15543_v17  ;;  %v13009_v17 = vld [vmem:[%s14428_s0 + $0x54] sm:$0x88]  ;;  %v4829_v28 = vunpack.c.l.bf16 %v13004_v62 }
 0xd36   :  { %v4832_v52 = vunpack.c.l.bf16 %v13009_v17 }
 0xd88   :  { %v4754_v11 = vpop.xlane.xlu1 %4753 }
 0xd89   :  { %7026 = vrcp.f32 %v4754_v11 }
 0xd8f   :  { %v7027_v11 = vpop.eup %7026 }
 0xd95   :  { %v4791_v48 = vpop.f32.mrf.mxu0 }
 0xd96   :  { %v13015_v2 = vmul.f32 %v7027_v11, %v4791_v48 }
 0xd98   :  { %v4844_v60 = vrot.slane %v13015_v2, 2  ;;  %v4847_v20 = vrot.slane %v13015_v2, 3  ;;  %v4850_v41 = vrot.slane %v13015_v2, 4  ;;  %v4853_v55 = vrot.slane %v13015_v2, 5 }
 0xd99   :  { %v4856_v48 = vrot.slane %v13015_v2, 6 }
 0xd9a   :  { %v4765_v56 = vpop.f32.mrf.mxu2  ;;  %v4778_v33 = vpop.f32.mrf.mxu3 }
 0xd9b   :  { %v4836_v13 = vmul.f32 %v7027_v11, %v4765_v56  ;;  %v13043_v8 = vmul.f32 %v7027_v11, %v4778_v33  ;;  %v15547_v33 = vrot.slane %v12911_v15, 2 }
 0xd9d   :  { %v4842_v30 = vrot.slane %v4836_v13, 2  ;;  %v4845_v4 = vrot.slane %v4836_v13, 3  ;;  %v4848_v50 = vrot.slane %v4836_v13, 4  ;;  %v4851_v37 = vrot.slane %v4836_v13, 5  ;;  %v4793_v10 = vpop.f32.mrf.mxu0 }
 0xd9e   :  { %v4854_v31 = vrot.slane %v4836_v13, 6  ;;  %v4857_v1 = vrot.slane %v4836_v13, 7  ;;  %v4860_v29 = vrot.slane %v4836_v13, 1  ;;  %v4905_v46 = vadd.f32 %v4836_v13, %v4829_v28 }
 0xd9f   :  { %v4887_v56 = vadd.f32 %v4842_v30, %v4811_v23  ;;  %v4890_v53 = vadd.f32 %v4845_v4, %v4814_v59  ;;  %v4893_v18 = vadd.f32 %v4848_v50, %v4817_v42  ;;  %v4896_v5 = vadd.f32 %v4851_v37, %v4820_v36 }
 0xda0   :  { %v4899_v16 = vadd.f32 %v4854_v31, %v4823_v34  ;;  %v4902_v7 = vadd.f32 %v4857_v1, %v4826_v49  ;;  %v4908_v22 = vadd.f32 %v4860_v29, %v4832_v52  ;;  %v4933_v35 = vadd.f32 %v4905_v46, %v12911_v15 }
 0xda1   :  { %v4927_v11 = vadd.f32 %v15547_v33, %v4887_v56  ;;  %v4928_v63 = vadd.f32 %v15548_v47, %v4890_v53  ;;  %v15549_v10 = vrot.slane %v12911_v15, 4  ;;  %v15550_v13 = vrot.slane %v12911_v15, 5 }
 0xda2   :  { %v4859_v42 = vrot.slane %v13015_v2, 7  ;;  %v15551_v36 = vrot.slane %v12911_v15, 6  ;;  %v15552_v50 = vrot.slane %v12911_v15, 7  ;;  %v6438_v52 = vmul.f32 -1.442695, %v4933_v35  ;;  %v4767_v28 = vpop.f32.mrf.mxu2  ;;  %v4780_v49 = vpop.f32.mrf.mxu3 }
 0xda3   :  { %v4929_v0 = vadd.f32 %v15549_v10, %v4893_v18  ;;  %v4930_v23 = vadd.f32 %v15550_v13, %v4896_v5  ;;  %v15553_v34 = vrot.slane %v12911_v15, 1  ;;  %v6432_v53 = vmul.f32 -1.442695, %v4927_v11 }
 0xda4   :  { %v4931_v59 = vadd.f32 %v15551_v36, %v4899_v16  ;;  %v4932_v30 = vadd.f32 %v15552_v50, %v4902_v7  ;;  %v6433_v46 = vmul.f32 -1.442695, %v4928_v63  ;;  %v4862_v29 = vrot.slane %v13015_v2, 1 }
 0xda5   :  { %v4934_v47 = vadd.f32 %v15553_v34, %v4908_v22  ;;  %v6434_v18 = vmul.f32 -1.442695, %v4929_v0  ;;  %v13063_v5 = vadd.f32 %v13015_v2, %v4831_v32  ;;  %v6435_v1 = vmul.f32 -1.442695, %v4930_v23 }
 0xda6   :  { %7028 = vpow2.f32 %v6438_v52  ;;  %v15554_v16 = vunpack.c.l.bf16 %v12935_v12  ;;  %v6436_v35 = vmul.f32 -1.442695, %v4931_v59  ;;  %v4843_v7 = vrot.slane %v13043_v8, 2 }
 0xda7   :  { %7030 = vpow2.f32 %v6432_v53  ;;  %v6437_v15 = vmul.f32 -1.442695, %v4932_v30  ;;  %v4846_v63 = vrot.slane %v13043_v8, 3  ;;  %v4849_v0 = vrot.slane %v13043_v8, 4 }
 0xda8   :  { %v13067_v31 = vadd.f32 %v4844_v60, %v15554_v16  ;;  %7032 = vpow2.f32 %v6433_v46  ;;  %v6439_v22 = vmul.f32 -1.442695, %v4934_v47  ;;  %v4852_v32 = vrot.slane %v13043_v8, 5 }
 0xda9   :  { %7034 = vpow2.f32 %v6434_v18  ;;  %v4855_v37 = vrot.slane %v13043_v8, 6  ;;  %v15555_v12 = vunpack.c.l.bf16 %v12940_v9  ;;  %v15556_v4 = vunpack.c.l.bf16 %v12945_v38 }
 0xdaa   :  { %7036 = vpow2.f32 %v6435_v1  ;;  %v4858_v33 = vrot.slane %v13043_v8, 7  ;;  %v15557_v11 = vunpack.c.l.bf16 %v12950_v44  ;;  %v4861_v13 = vrot.slane %v13043_v8, 1 }
 0xdab   :  { %v13076_v60 = vadd.f32 %v4847_v20, %v15555_v12  ;;  %v13080_v56 = vadd.f32 %v4850_v41, %v15556_v4  ;;  %7038 = vpow2.f32 %v6436_v35  ;;  %v15558_v23 = vunpack.c.h.bf16 %v12970_v57 }
 0xdac   :  { %v13085_v10 = vadd.f32 %v4853_v55, %v15557_v11  ;;  %v7029_v9 = vpop.eup %7028  ;;  %v15559_v20 = vunpack.c.l.bf16 %v12955_v58  ;;  %7040 = vpow2.f32 %v6437_v15  ;;  %v15560_v41 = vunpack.c.h.bf16 %v12975_v24 }
 0xdad   :  { %v4888_v36 = vadd.f32 %v4843_v7, %v15558_v23  ;;  %v15561_v50 = vunpack.c.h.bf16 %v12980_v40  ;;  %v7031_v55 = vpop.eup %7030  ;;  %7042 = vpow2.f32 %v6439_v22  ;;  %v13098_v30 = vadd.f32 1.0, %v7029_v9 }
 0xdae   :  { %v13092_v59 = vadd.f32 %v4856_v48, %v15559_v20  ;;  %v4891_v38 = vadd.f32 %v4846_v63, %v15560_v41  ;;  %v15562_v52 = vunpack.c.h.bf16 %v12985_v54  ;;  %v15563_v28 = vunpack.c.h.bf16 %v12990_v6  ;;  %v7033_v58 = vpop.eup %7032 }
 0xdaf   :  { %v4894_v44 = vadd.f32 %v4849_v0, %v15561_v50  ;;  %v15564_v48 = vunpack.c.l.bf16 %v12960_v43  ;;  %v13108_v24 = vadd.f32 1.0, %v7031_v55  ;;  %v15565_v40 = vunpack.c.h.bf16 %v12999_v39  ;;  %v7035_v18 = vpop.eup %7034 }
 0xdb0   :  { %v4897_v57 = vadd.f32 %v4852_v32, %v15562_v52  ;;  %v4900_v49 = vadd.f32 %v4855_v37, %v15563_v28  ;;  %v15566_v53 = vunpack.c.h.bf16 %v13004_v62  ;;  %v13115_v54 = vadd.f32 1.0, %v7033_v58  ;;  %v7037_v16 = vpop.eup %7036 }
 0xdb1   :  { %v13106_v34 = vadd.f32 %v4859_v42, %v15564_v48  ;;  %v4903_v47 = vadd.f32 %v4858_v33, %v15565_v40  ;;  %7044 = vrcp.f32 %v13098_v30  ;;  %v15567_v6 = vunpack.c.h.bf16 %v13009_v17  ;;  %v7039_v15 = vpop.eup %7038 }
 0xdb2   :  { %v4906_v46 = vadd.f32 %v13043_v8, %v15566_v53  ;;  %v15568_v43 = vrot.slane %v12895_v27, 2  ;;  %v13122_v35 = vadd.f32 1.0, %v7035_v18  ;;  %7046 = vrcp.f32 %v13108_v24  ;;  %v7041_v37 = vpop.eup %7040 }
 0xdb3   :  { %v4909_v1 = vadd.f32 %v4861_v13, %v15567_v6  ;;  %v15569_v39 = vrot.slane %v12895_v27, 3  ;;  %v15570_v8 = vrot.slane %v12895_v27, 4  ;;  %v13129_v63 = vadd.f32 1.0, %v7037_v16  ;;  %v7043_v13 = vpop.eup %7042 }
 0xdb4   :  { %v5103_v42 = vadd.f32 %v15568_v43, %v4888_v36  ;;  %7048 = vrcp.f32 %v13115_v54  ;;  %v15571_v17 = vrot.slane %v12895_v27, 5  ;;  %v15572_v22 = vrot.slane %v12895_v27, 6 }
 0xdb5   :  { %v5104_v62 = vadd.f32 %v15569_v39, %v4891_v38  ;;  %v5105_v7 = vadd.f32 %v15570_v8, %v4894_v44  ;;  %v13136_v12 = vadd.f32 1.0, %v7039_v15  ;;  %v4978_v4 = vand.u32 2147483648, %v13108_v24 }
 0xdb6   :  { %v5106_v0 = vadd.f32 %v15571_v17, %v4897_v57  ;;  %v5107_v32 = vadd.f32 %v15572_v22, %v4900_v49  ;;  %7050 = vrcp.f32 %v13122_v35  ;;  %v15573_v33 = vrot.slane %v12895_v27, 7 }
 0xdb7   :  { %v13142_v23 = vadd.f32 1.0, %v7041_v37  ;;  %v4993_v36 = vand.u32 2147483648, %v13115_v54  ;;  %7052 = vrcp.f32 %v13129_v63  ;;  %v6440_v9 = vmul.f32 -1.442695, %v5103_v42  ;;  %v13150_v50 = vpop.eup %7044 }
 0xdb8   :  { %v5108_v11 = vadd.f32 %v15573_v33, %v4903_v47  ;;  %v13146_v20 = vadd.f32 1.0, %v7043_v13  ;;  %7054 = vrcp.f32 %v13136_v12  ;;  %v5109_v41 = vadd.f32 %v4906_v46, %v12895_v27  ;;  %v13161_v49 = vpop.eup %7046 }
 0xdb9   :  { %v6441_v38 = vmul.f32 -1.442695, %v5104_v62  ;;  %7056 = vrcp.f32 %v13142_v23  ;;  %v15574_v44 = vrot.slane %v12895_v27, 1  ;;  %v6442_v52 = vmul.f32 -1.442695, %v5105_v7 }
 0xdba   :  { %v15575_v57 = vunpack.c.l.bf16 %v13027_v51  ;;  %vm4972_vm13 = vweird.f32 %v13108_v24  ;;  %v13164_v58 = vor.u32 1.1754944e-38, %v4978_v4  ;;  %7058 = vrcp.f32 %v13146_v20  ;;  %v13167_v40 = vpop.eup %7048 }
 0xdbb   :  { %v5110_v55 = vadd.f32 %v15574_v44, %v4909_v1  ;;  %v6443_v48 = vmul.f32 -1.442695, %v5106_v0  ;;  %v4968_v27 = vmul.f32 %v13161_v49, %v13108_v24  ;;  %v13171_v47 = vor.u32 1.1754944e-38, %v4993_v36 }
 0xdbc   :  { %v13159_v28 = vadd.f32 %v4862_v29, %v15575_v57  ;;  %7060 = vpow2.f32 %v6440_v9  ;;  %v6444_v2 = vmul.f32 -1.442695, %v5107_v32  ;;  %v13173_v51 = vpop.eup %7050  ;;  %v4983_v29 = vmul.f32 %v13167_v40, %v13115_v54 }
 0xdbd   :  { %vm4987_vm4 = vweird.f32 %v13115_v54  ;;  %7062 = vpow2.f32 %v6441_v38  ;;  %v6445_v53 = vmul.f32 -1.442695, %v5108_v11  ;;  %v6446_v46 = vmul.f32 -1.442695, %v5109_v41  ;;  %v13178_v18 = vpop.eup %7052 }
 0xdbe   :  { %v4969_v6 = vsub.f32 1.0, %v4968_v27  ;;  %v4998_v1 = vmul.f32 %v13173_v51, %v13122_v35  ;;  %7064 = vpow2.f32 %v6442_v52  ;;  %v6447_v43 = vmul.f32 -1.442695, %v5110_v55  ;;  %v13182_v42 = vpop.eup %7054 }
 0xdbf   :  { %v4984_v16 = vsub.f32 1.0, %v4983_v29  ;;  %v5013_v39 = vmul.f32 %v13178_v18, %v13129_v63  ;;  %7066 = vpow2.f32 %v6443_v48  ;;  %v4976_v62 = vand.u32 2147483647, %v13108_v24  ;;  %v13187_v8 = vpop.eup %7056 }
 0xdc0   :  { %v4970_v7 = vmul.f32 %v13161_v49, %v4969_v6  ;;  %v4999_v15 = vsub.f32 1.0, %v4998_v1  ;;  %7068 = vpow2.f32 %v6444_v2  ;;  %v4991_v17 = vand.u32 2147483647, %v13115_v54  ;;  %v13191_v0 = vpop.eup %7058 }
 0xdc1   :  { %v4985_v22 = vmul.f32 %v13167_v40, %v4984_v16  ;;  %v5014_v32 = vsub.f32 1.0, %v5013_v39  ;;  %7070 = vpow2.f32 %v6445_v53  ;;  %vm4973_vm15 = vweird.f32 %v13161_v49 }
 0xdc2   :  { %v7061_v37 = vpop.eup %7060  ;;  %v5000_v4 = vmul.f32 %v13173_v51, %v4999_v15  ;;  %7072 = vpow2.f32 %v6446_v46  ;;  %v4971_v33 = vadd.f32 %v13161_v49, %v4970_v7  ;;  %v5006_v11 = vand.u32 2147483647, %v13122_v35  ;;  %vm13206_vm14 = vmor %vm4972_vm13, %vm4973_vm15 }
 0xdc3   :  { %v7063_v13 = vpop.eup %7062  ;;  %7074 = vpow2.f32 %v6447_v43  ;;  %v13198_v36 = vadd.f32 1.0, %v7061_v37  ;;  %v4986_v9 = vadd.f32 %v13167_v40, %v4985_v22  ;;  %vm4988_vm3 = vweird.f32 %v13167_v40 }
 0xdc4   :  { %v7065_v41 = vpop.eup %7064  ;;  %v13202_v38 = vadd.f32 1.0, %v7063_v13  ;;  %vm5002_vm5 = vweird.f32 %v13122_v35  ;;  %vm5003_vm0 = vweird.f32 %v13173_v51  ;;  %v5008_v55 = vand.u32 2147483648, %v13122_v35  ;;  %vm13226_vm10 = vmor %vm4987_vm4, %vm4988_vm3 }
 0xdc5   :  { %v7067_v52 = vpop.eup %7066  ;;  %v5028_v57 = vmul.f32 %v13182_v42, %v13136_v12  ;;  %v4975_v48 = vsel %vm13206_vm14, %v13161_v49, %v4971_v33  ;;  %v5001_v24 = vadd.f32 %v13173_v51, %v5000_v4  ;;  %v5015_v27 = vmul.f32 %v13178_v18, %v5014_v32  ;;  %vm13255_vm11 = vmor %vm5002_vm5, %vm5003_vm0 }
 0xdc6   :  { %v7069_v2 = vpop.eup %7068  ;;  %v13220_v29 = vadd.f32 1.0, %v7065_v41  ;;  %vm4977_vm12 = vcmp.eq.f32.partialorder %v4976_v62, 8.507059e+37  ;;  %vm13230_vm6 = vcmp.eq.f32.partialorder %v4991_v17, 8.507059e+37  ;;  %vm13234_vm8 = vcmp.eq.f32.partialorder %v5006_v11, 8.507059e+37 }
 0xdc7   :  { %v7071_v6 = vpop.eup %7070  ;;  %v13238_v1 = vadd.f32 1.0, %v7067_v52  ;;  %7076 = vrcp.f32 %v13198_v36  ;;  %v4990_v54 = vsel %vm13226_vm10, %v13167_v40, %v4986_v9  ;;  %vm5017_vm7 = vweird.f32 %v13129_v63 }
 0xdc8   :  { %v7073_v43 = vpop.eup %7072  ;;  %v13245_v16 = vadd.f32 1.0, %v7069_v2  ;;  %7078 = vrcp.f32 %v13202_v38  ;;  %v13249_v39 = vsel %vm4977_vm12, %v13164_v58, %v4975_v48  ;;  %v5009_v7 = vor.u32 1.1754944e-38, %v5008_v55 }
 0xdc9   :  { %v7075_v40 = vpop.eup %7074  ;;  %v5005_v15 = vsel %vm13255_vm11, %v13173_v51, %v5001_v24  ;;  %v5016_v17 = vadd.f32 %v13178_v18, %v5015_v27  ;;  %vm5018_vm1 = vweird.f32 %v13178_v18  ;;  %v5029_v58 = vsub.f32 1.0, %v5028_v57 }
 0xdca   :  { %v13264_v22 = vadd.f32 1.0, %v7071_v6  ;;  %7080 = vrcp.f32 %v13220_v29  ;;  %v13270_v35 = vsel %vm13230_vm6, %v13171_v47, %v4990_v54  ;;  %v5023_v32 = vand.u32 2147483648, %v13129_v63  ;;  %vm13287_vm9 = vmor %vm5017_vm7, %vm5018_vm1 }
 0xdcb   :  { %v13273_v37 = vadd.f32 1.0, %v7073_v43  ;;  %7082 = vrcp.f32 %v13238_v1  ;;  %v5021_v51 = vand.u32 2147483647, %v13129_v63  ;;  %v5030_v4 = vmul.f32 %v13182_v42, %v5029_v58 }
 0xdcc   :  { %v13278_v33 = vadd.f32 1.0, %v7075_v40  ;;  %7084 = vrcp.f32 %v13245_v16  ;;  %v13283_v11 = vsel %vm13234_vm8, %v5009_v7, %v5005_v15  ;;  %vm5033_vm2 = vweird.f32 %v13182_v42 }
 0xdcd   :  { %v13292_v13 = vpop.eup %7076  ;;  %v5020_v9 = vsel %vm13287_vm9, %v13178_v18, %v5016_v17  ;;  %v5031_v41 = vadd.f32 %v13182_v42, %v5030_v4  ;;  %v5038_v44 = vand.u32 2147483648, %v13136_v12  ;;  %v5043_v55 = vmul.f32 %v13187_v8, %v13142_v23 }
 0xdce   :  { %v13301_v63 = vpop.eup %7078  ;;  %7086 = vrcp.f32 %v13264_v22  ;;  %v5024_v52 = vor.u32 1.1754944e-38, %v5023_v32  ;;  %vm5032_vm13 = vweird.f32 %v13136_v12  ;;  %v5036_v57 = vand.u32 2147483647, %v13136_v12 }
 0xdcf   :  { %7088 = vrcp.f32 %v13273_v37  ;;  %vm5022_vm4 = vcmp.eq.f32.partialorder %v5021_v51, 8.507059e+37  ;;  %vm13307_vm15 = vmor %vm5032_vm13, %vm5033_vm2  ;;  %v5044_v48 = vsub.f32 1.0, %v5043_v55  ;;  %v5058_v24 = vmul.f32 %v13150_v50, %v13098_v30 }
 0xdd0   :  { %v13313_v27 = vpop.eup %7080  ;;  %7090 = vrcp.f32 %v13278_v33  ;;  %v13316_v2 = vsel %vm5022_vm4, %v5024_v52, %v5020_v9  ;;  %v5035_v12 = vsel %vm13307_vm15, %v13182_v42, %v5031_v41  ;;  %v5051_v53 = vand.u32 2147483647, %v13142_v23 }
 0xdd1   :  { %v13322_v46 = vpop.eup %7082  ;;  %v5039_v49 = vor.u32 1.1754944e-38, %v5038_v44  ;;  %v5045_v6 = vmul.f32 %v13187_v8, %v5044_v48  ;;  %vm5047_vm3 = vweird.f32 %v13142_v23  ;;  %v5059_v54 = vsub.f32 1.0, %v5058_v24 }
 0xdd2   :  { %v13326_v43 = vpop.eup %7084  ;;  %vm5037_vm14 = vcmp.eq.f32.partialorder %v5036_v57, 8.507059e+37  ;;  %vm5048_vm5 = vweird.f32 %v13187_v8  ;;  %v5053_v62 = vand.u32 2147483648, %v13142_v23  ;;  %v5073_v42 = vmul.f32 %v13191_v0, %v13146_v20 }
 0xdd3   :  { %v13332_v7 = vsel %vm5037_vm14, %v5039_v49, %v5035_v12  ;;  %v5046_v40 = vadd.f32 %v13187_v8, %v5045_v6  ;;  %v5060_v15 = vmul.f32 %v13150_v50, %v5059_v54  ;;  %v5066_v17 = vand.u32 2147483647, %v13098_v30  ;;  %vm13358_vm6 = vmor %vm5047_vm3, %vm5048_vm5 }
 0xdd4   :  { %v13337_v58 = vpop.eup %7086  ;;  %vm13339_vm0 = vcmp.eq.f32.partialorder %v5051_v53, 8.507059e+37  ;;  %vm5062_vm12 = vweird.f32 %v13098_v30  ;;  %v5074_v51 = vsub.f32 1.0, %v5073_v42  ;;  %v5144_v4 = vmul.f32 %v13292_v13, %v13198_v36 }
 0xdd5   :  { %v13346_v47 = vpop.eup %7088  ;;  %v5061_v9 = vadd.f32 %v13150_v50, %v5060_v15  ;;  %vm5063_vm10 = vweird.f32 %v13150_v50  ;;  %v5068_v41 = vand.u32 2147483648, %v13098_v30  ;;  %v5081_v44 = vand.u32 2147483647, %v13146_v20 }
 0xdd6   :  { %v13352_v55 = vpop.eup %7090  ;;  %v5054_v57 = vor.u32 1.1754944e-38, %v5053_v62  ;;  %v5075_v18 = vmul.f32 %v13191_v0, %v5074_v51  ;;  %v5083_v48 = vand.u32 2147483648, %v13146_v20  ;;  %v5145_v24 = vsub.f32 1.0, %v5144_v4  ;;  %vm13375_vm1 = vmor %vm5062_vm12, %vm5063_vm10 }
 0xdd7   :  { %v5050_v12 = vsel %vm13358_vm6, %v13187_v8, %v5046_v40  ;;  %vm13367_vm8 = vcmp.eq.f32.partialorder %v5066_v17, 8.507059e+37  ;;  %vm5077_vm7 = vweird.f32 %v13146_v20  ;;  %vm5078_vm11 = vweird.f32 %v13191_v0 }
 0xdd8   :  { %v5076_v49 = vadd.f32 %v13191_v0, %v5075_v18  ;;  %v5146_v6 = vmul.f32 %v13292_v13, %v5145_v24  ;;  %v5152_v8 = vand.u32 2147483647, %v13198_v36  ;;  %v5159_v54 = vmul.f32 %v13301_v63, %v13202_v38  ;;  %vm13396_vm2 = vmor %vm5077_vm7, %vm5078_vm11 }
 0xdd9   :  { %v5065_v20 = vsel %vm13375_vm1, %v13150_v50, %v5061_v9  ;;  %v5069_v62 = vor.u32 1.1754944e-38, %v5068_v41  ;;  %vm13387_vm9 = vcmp.eq.f32.partialorder %v5081_v44, 8.507059e+37  ;;  %v5154_v42 = vand.u32 2147483648, %v13198_v36 }
 0xdda   :  { %v13394_v40 = vsel %vm13339_vm0, %v5054_v57, %v5050_v12  ;;  %v5084_v17 = vor.u32 1.1754944e-38, %v5083_v48  ;;  %vm5148_vm13 = vweird.f32 %v13198_v36  ;;  %v5160_v51 = vsub.f32 1.0, %v5159_v54 }
 0xddb   :  { %v5080_v50 = vsel %vm13396_vm2, %v13191_v0, %v5076_v49  ;;  %v5147_v4 = vadd.f32 %v13292_v13, %v5146_v6  ;;  %vm5149_vm4 = vweird.f32 %v13292_v13  ;;  %v5174_v32 = vmul.f32 %v13313_v27, %v13220_v29 }
 0xddc   :  { %v13410_v9 = vsel %vm13367_vm8, %v5069_v62, %v5065_v20  ;;  %vm13412_vm15 = vcmp.eq.f32.partialorder %v5152_v8, 8.507059e+37  ;;  %v5161_v44 = vmul.f32 %v13301_v63, %v5160_v51  ;;  %v5167_v52 = vand.u32 2147483647, %v13202_v38  ;;  %vm13426_vm5 = vmor %vm5148_vm13, %vm5149_vm4 }
 0xddd   :  { %v5155_v0 = vor.u32 1.1754944e-38, %v5154_v42  ;;  %vm5163_vm3 = vweird.f32 %v13202_v38  ;;  %vm5164_vm14 = vweird.f32 %v13301_v63  ;;  %v5175_v57 = vsub.f32 1.0, %v5174_v32 }
 0xdde   :  { %v13422_v18 = vsel %vm13387_vm9, %v5084_v17, %v5080_v50  ;;  %v5162_v24 = vadd.f32 %v13301_v63, %v5161_v44  ;;  %v5169_v12 = vand.u32 2147483648, %v13202_v38  ;;  %v5189_v53 = vmul.f32 %v13322_v46, %v13238_v1  ;;  %vm13440_vm12 = vmor %vm5163_vm3, %vm5164_vm14 }
 0xddf   :  { %v5151_v23 = vsel %vm13426_vm5, %v13292_v13, %v5147_v4  ;;  %v5176_v49 = vmul.f32 %v13313_v27, %v5175_v57  ;;  %vm5178_vm0 = vweird.f32 %v13220_v29  ;;  %v5182_v36 = vand.u32 2147483647, %v13220_v29 }
 0xde0   :  { %vm13444_vm10 = vcmp.eq.f32.partialorder %v5167_v52, 8.507059e+37  ;;  %vm5179_vm6 = vweird.f32 %v13313_v27  ;;  %v5184_v38 = vand.u32 2147483648, %v13220_v29  ;;  %v5190_v54 = vsub.f32 1.0, %v5189_v53 }
 0xde1   :  { %v5166_v13 = vsel %vm13440_vm12, %v13301_v63, %v5162_v24  ;;  %v5177_v20 = vadd.f32 %v13313_v27, %v5176_v49  ;;  %v5197_v62 = vand.u32 2147483647, %v13238_v1  ;;  %v5204_v30 = vmul.f32 %v13326_v43, %v13245_v16  ;;  %vm13477_vm1 = vmor %vm5178_vm0, %vm5179_vm6 }
 0xde2   :  { %v13459_v42 = vsel %vm13412_vm15, %v5155_v0, %v5151_v23  ;;  %v5170_v15 = vor.u32 1.1754944e-38, %v5169_v12  ;;  %v5191_v17 = vmul.f32 %v13322_v46, %v5190_v54  ;;  %v5199_v51 = vand.u32 2147483648, %v13238_v1 }
 0xde3   :  { %vm13463_vm8 = vcmp.eq.f32.partialorder %v5182_v36, 8.507059e+37  ;;  %vm5193_vm7 = vweird.f32 %v13238_v1  ;;  %vm5194_vm11 = vweird.f32 %v13322_v46  ;;  %v5205_v63 = vsub.f32 1.0, %v5204_v30 }
 0xde4   :  { %v13471_v4 = vsel %vm13444_vm10, %v5170_v15, %v5166_v13  ;;  %v5185_v41 = vor.u32 1.1754944e-38, %v5184_v38  ;;  %v5192_v44 = vadd.f32 %v13322_v46, %v5191_v17  ;;  %v5219_v1 = vmul.f32 %v13337_v58, %v13264_v22  ;;  %vm13493_vm2 = vmor %vm5193_vm7, %vm5194_vm11 }
 0xde5   :  { %v5181_v52 = vsel %vm13477_vm1, %v13313_v27, %v5177_v20  ;;  %vm13487_vm9 = vcmp.eq.f32.partialorder %v5197_v62, 8.507059e+37  ;;  %v5206_v29 = vmul.f32 %v13326_v43, %v5205_v63  ;;  %v5214_v57 = vand.u32 2147483648, %v13245_v16 }
 0xde6   :  { %v5200_v24 = vor.u32 1.1754944e-38, %v5199_v51  ;;  %vm5209_vm13 = vweird.f32 %v13326_v43  ;;  %v5212_v12 = vand.u32 2147483647, %v13245_v16  ;;  %v5220_v53 = vsub.f32 1.0, %v5219_v1 }
 0xde7   :  { %v5196_v27 = vsel %vm13493_vm2, %v13322_v46, %v5192_v44  ;;  %v5207_v23 = vadd.f32 %v13326_v43, %v5206_v29  ;;  %v5229_v49 = vand.u32 2147483648, %v13264_v22  ;;  %v5234_v36 = vmul.f32 %v13346_v47, %v13273_v37 }
 0xde8   :  { %v13508_v6 = vsel %vm13463_vm8, %v5185_v41, %v5181_v52  ;;  %vm5208_vm4 = vweird.f32 %v13245_v16  ;;  %v5221_v8 = vmul.f32 %v13337_v58, %v5220_v53  ;;  %v5227_v38 = vand.u32 2147483647, %v13264_v22 }
 0xde9   :  { %v5215_v54 = vor.u32 1.1754944e-38, %v5214_v57  ;;  %vm5223_vm15 = vweird.f32 %v13264_v22  ;;  %vm5224_vm3 = vweird.f32 %v13337_v58  ;;  %v5235_v46 = vsub.f32 1.0, %v5234_v36  ;;  %vm13521_vm14 = vmor %vm5208_vm4, %vm5209_vm13 }
 0xdea   :  { %v13517_v13 = vsel %vm13487_vm9, %v5200_v24, %v5196_v27  ;;  %v5222_v16 = vadd.f32 %v13337_v58, %v5221_v8  ;;  %vm5238_vm5 = vweird.f32 %v13273_v37  ;;  %v5249_v62 = vmul.f32 %v13352_v55, %v13278_v33  ;;  %vm13549_vm8 = vmor %vm5223_vm15, %vm5224_vm3 }
 0xdeb   :  { %v5211_v30 = vsel %vm13521_vm14, %v13326_v43, %v5207_v23  ;;  %vm13532_vm0 = vcmp.eq.f32.partialorder %v5212_v12, 8.507059e+37  ;;  %v5230_v17 = vor.u32 1.1754944e-38, %v5229_v49  ;;  %v5236_v51 = vmul.f32 %v13346_v47, %v5235_v46 }
 0xdec   :  { %vm5239_vm12 = vweird.f32 %v13346_v47  ;;  %vm13538_vm10 = vcmp.eq.f32.partialorder %v5227_v38, 8.507059e+37  ;;  %v5242_v63 = vand.u32 2147483647, %v13273_v37  ;;  %v5244_v32 = vand.u32 2147483648, %v13273_v37 }
 0xded   :  { %v5250_v41 = vsub.f32 1.0, %v5249_v62  ;;  %vm5253_vm6 = vweird.f32 %v13278_v33  ;;  %v5237_v44 = vadd.f32 %v13346_v47, %v5236_v51  ;;  %vm5254_vm7 = vweird.f32 %v13352_v55  ;;  %vm13573_vm11 = vmor %vm5238_vm5, %vm5239_vm12 }
 0xdee   :  { %v15626_v1 = vrot.slane %v12901_v26, 2  ;;  %v15627_v0 = vrot.slane %v12901_v26, 3  ;;  %v5226_v22 = vsel %vm13549_vm8, %v13337_v58, %v5222_v16  ;;  %v5257_v48 = vand.u32 2147483647, %v13278_v33  ;;  %vm13600_vm1 = vmor %vm5253_vm6, %vm5254_vm7 }
 0xdef   :  { %v5251_v57 = vmul.f32 %v13352_v55, %v5250_v41  ;;  %v15628_v24 = vrot.slane %v12901_v26, 4  ;;  %v15631_v58 = vrot.slane %v12901_v26, 5  ;;  %v15632_v27 = vrot.slane %v12901_v26, 6  ;;  %v15644_v41 = vld [vmem:[#allocation4_spill] sm:$0xff] }
 0xdf0   :  { %v5279_v52 = vmul.f32 %v15626_v1, %v13249_v39  ;;  %v5280_v29 = vmul.f32 %v15627_v0, %v13270_v35  ;;  %v5259_v35 = vand.u32 2147483648, %v13278_v33  ;;  %v5241_v37 = vsel %vm13573_vm11, %v13346_v47, %v5237_v44 }
 0xdf1   :  { %v5281_v12 = vmul.f32 %v15628_v24, %v13283_v11  ;;  %v5282_v53 = vmul.f32 %v15631_v58, %v13316_v2  ;;  %v5283_v23 = vmul.f32 %v15632_v27, %v13332_v7  ;;  %v15633_v11 = vrot.slane %v12901_v26, 7 }
 0xdf2   :  { %v5252_v36 = vadd.f32 %v13352_v55, %v5251_v57  ;;  %v5285_v8 = vmul.f32 %v13410_v9, %v12901_v26  ;;  %v15634_v2 = vrot.slane %v12901_v26, 1  ;;  %v5288_v47 = vadd.f32 %v5280_v29, %v13076_v60 }
 0xdf3   :  { %v5284_v49 = vmul.f32 %v15633_v11, %v13394_v40  ;;  %v5287_v40 = vadd.f32 %v5279_v52, %v13067_v31  ;;  %v5289_v46 = vadd.f32 %v5281_v12, %v13080_v56  ;;  %v5290_v9 = vadd.f32 %v5282_v53, %v13085_v10 }
 0xdf4   :  { %v5286_v38 = vmul.f32 %v15634_v2, %v13422_v18  ;;  %v5256_v26 = vsel %vm13600_vm1, %v13352_v55, %v5252_v36  ;;  %v5291_v18 = vadd.f32 %v5283_v23, %v13092_v59  ;;  %v5293_v20 = vadd.f32 %v5285_v8, %v13063_v5 }
 0xdf5   :  { %v5292_v33 = vadd.f32 %v5284_v49, %v13106_v34  ;;  %v5245_v16 = vor.u32 1.1754944e-38, %v5244_v32  ;;  %v5260_v62 = vor.u32 1.1754944e-38, %v5259_v35  ;;  %7092 = vtanh.f32 %v5287_v40 }
 0xdf6   :  { %v5294_v31 = vadd.f32 %v5286_v38, %v13159_v28  ;;  %v5216_v60 = vsel %vm13532_vm0, %v5215_v54, %v5211_v30  ;;  %vm5243_vm9 = vcmp.eq.f32.partialorder %v5242_v63, 8.507059e+37  ;;  %vm5258_vm2 = vcmp.eq.f32.partialorder %v5257_v48, 8.507059e+37 }
 0xdf7   :  { %7094 = vtanh.f32 %v5288_v47  ;;  %v5231_v56 = vsel %vm13538_vm10, %v5230_v17, %v5226_v22  ;;  %v5246_v10 = vsel %vm5243_vm9, %v5245_v16, %v5241_v37  ;;  %v5261_v59 = vsel %vm5258_vm2, %v5260_v62, %v5256_v26 }
 0xdf8   :  { %7096 = vtanh.f32 %v5289_v46  ;;  %v5303_v5 = vsub.f32 1.0, %v13459_v42  ;;  %v15637_v34 = vrot.slane %v12769_v14, 7  ;;  %v15638_v55 = vrot.slane %v12771_v25, 7 }
 0xdf9   :  { %7098 = vtanh.f32 %v5290_v9  ;;  %v15639_v30 = vrot.slane %v12773_v21, 7  ;;  %v15640_v17 = vrot.slane %v12781_v45, 7  ;;  %v15641_v50 = vrot.slane %v12789_v19, 7 }
 0xdfa   :  { %v5343_v28 = vmul.f32 %v15637_v34, %v13459_v42  ;;  %v5344_v54 = vmul.f32 %v15638_v55, %v13471_v4  ;;  %7100 = vtanh.f32 %v5291_v18  ;;  %v15642_v14 = vrot.slane %v12797_v3, 7 }
 0xdfb   :  { %v5345_v15 = vmul.f32 %v15639_v30, %v13508_v6  ;;  %v5346_v51 = vmul.f32 %v15640_v17, %v13517_v13  ;;  %v5347_v63 = vmul.f32 %v15641_v50, %v5216_v60  ;;  %7102 = vtanh.f32 %v5292_v33  ;;  %v7093_v1 = vpop.eup %7092 }
 0xdfc   :  { %v5348_v42 = vmul.f32 %v15642_v14, %v5231_v56  ;;  %v15643_v32 = vrot.slane %v12805_v61, 7  ;;  %v15645_v43 = vrot.slane %v15644_v41, 7  ;;  %7104 = vtanh.f32 %v5293_v20 }
 0xdfd   :  { %v5304_v21 = vsub.f32 1.0, %v13471_v4  ;;  %v7095_v52 = vpop.eup %7094  ;;  %7106 = vtanh.f32 %v5294_v31  ;;  %v5305_v45 = vsub.f32 1.0, %v13508_v6  ;;  %v5311_v19 = vmul.f32 %v7093_v1, %v5303_v5 }
 0xdfe   :  { %v5349_v25 = vmul.f32 %v15643_v32, %v5246_v10  ;;  %v5350_v44 = vmul.f32 %v15645_v43, %v5261_v59  ;;  %v7097_v0 = vpop.eup %7096  ;;  %v5306_v29 = vsub.f32 1.0, %v13517_v13  ;;  %v5307_v57 = vsub.f32 1.0, %v5216_v60 }
 0xdff   :  { %v5312_v3 = vmul.f32 %v7095_v52, %v5304_v21  ;;  %v7099_v22 = vpop.eup %7098  ;;  %v5313_v61 = vmul.f32 %v7097_v0, %v5305_v45  ;;  %v13643_v48 = vadd.f32 %v5343_v28, %v5311_v19  ;;  %v5308_v12 = vsub.f32 1.0, %v5231_v56  ;;  %v7206_v52 = vld [vmem:[%s14426_s3] sm:$0xff] }
 0xe00   :  { %v7101_v24 = vpop.eup %7100  ;;  %v5314_v39 = vmul.f32 %v7099_v22, %v5306_v29  ;;  %v5309_v58 = vsub.f32 1.0, %v5246_v10  ;;  %v5310_v23 = vsub.f32 1.0, %v5261_v59  ;;  %vm15653_vm13 = vcmask 1041409  }
 0xe01   :  { %v13645_v35 = vadd.f32 %v5344_v54, %v5312_v3  ;;  %v7103_v4 = vpop.eup %7102  ;;  %v5315_v53 = vmul.f32 %v7101_v24, %v5307_v57  ;;  %v13647_v27 = vadd.f32 %v5345_v15, %v5313_v61  ;;  %5359 = vst [vmem:[%s14429_s7] sm:$0x40] %v13643_v48  ;;  %v5367_v6 = vpack.c.bf16 %v13643_v48, %v13643_v48 }
 0xe02   :  { %v7105_v13 = vpop.eup %7104  ;;  %v5316_v11 = vmul.f32 %v7103_v4, %v5308_v12  ;;  %v13655_v49 = vadd.f32 %v5346_v51, %v5314_v39  ;;  %vm15654_vm4 = vcmask 1042434   ;;  %vm15655_vm15 = vcmask 1043459  }
 0xe03   :  { %15646 = vst [vmem:[#allocation5_spill] sm:$0xff] %v13645_v35  ;;  %v5368_v37 = vpack.c.bf16 %v13645_v35, %v13645_v35  ;;  %v7107_v36 = vpop.eup %7106  ;;  %v5317_v8 = vmul.f32 %v7105_v13, %v5309_v58  ;;  %v13663_v2 = vadd.f32 %v5347_v63, %v5315_v53  ;;  %v5369_v38 = vpack.c.bf16 %v13647_v27, %v13647_v27  ;;  %v15660_v58 = vld [vmem:[#allocation61_spill] sm:$0xff] }
 0xe04   :  { %15647 = vst [vmem:[#allocation6_spill] sm:$0xff] %v13647_v27  ;;  %v5383_v7 = vunpack.c.l.b16 %v5367_v6  ;;  %v5318_v40 = vmul.f32 %v7107_v36, %v5310_v23  ;;  %v13671_v47 = vadd.f32 %v5348_v42, %v5316_v11  ;;  %v5370_v46 = vpack.c.bf16 %v13655_v49, %v13655_v49 }
 0xe05   :  { %15648 = vst [vmem:[#allocation7_spill] sm:$0xff] %v13655_v49  ;;  %v5384_v9 = vunpack.c.l.b16 %v5368_v37  ;;  %v13679_v26 = vadd.f32 %v5349_v25, %v5317_v8  ;;  %v5371_v18 = vpack.c.bf16 %v13663_v2, %v13663_v2  ;;  %v5385_v33 = vunpack.c.l.b16 %v5369_v38  ;;  %v15661_v37 = vld [vmem:[#allocation59_spill] sm:$0xff] }
 0xe06   :  { %5360 = vst [vmem:[%s14429_s7 + $0x8] sm:$0x40] %v13645_v35  ;;  %v5391_v20 = vrot.slane %v5383_v7, 6  ;;  %v13687_v16 = vadd.f32 %v5350_v44, %v5318_v40  ;;  %v5372_v62 = vpack.c.bf16 %v13671_v47, %v13671_v47  ;;  %v5386_v31 = vunpack.c.l.b16 %v5370_v46  ;;  %v7205_v44 = vld [vmem:[%s14425_s4] sm:$0xff] }
 0xe07   :  { %15649 = vst [vmem:[#allocation8_spill] sm:$0xff] %v13663_v2  ;;  %v5392_v60 = vrot.slane %v5384_v9, 5  ;;  %v5373_v56 = vpack.c.bf16 %v13679_v26, %v13679_v26  ;;  %v5387_v10 = vunpack.c.l.b16 %v5371_v18  ;;  %v5394_v59 = vrot.slane %v5385_v33, 4 }
 0xe08   :  { %5361 = vst [vmem:[%s14429_s7 + $0x10] sm:$0x40] %v13647_v27  ;;  %v5374_v5 = vpack.c.bf16 %v13687_v16, %v13687_v16  ;;  %v5388_v34 = vunpack.c.l.b16 %v5372_v62  ;;  %v5396_v55 = vrot.slane %v5386_v31, 3  ;;  %vm15656_vm3 = vcmask 1044484  }
 0xe09   :  { %15650 = vst [vmem:[#allocation9_spill] sm:$0xff] %v13671_v47  ;;  %v5393_v28 = vsel %vm15653_vm13, %v5392_v60, %v5391_v20  ;;  %v5398_v30 = vrot.slane %v5387_v10, 2  ;;  %v5389_v50 = vunpack.c.l.b16 %v5373_v56  ;;  %vm15657_vm14 = vcmask 1045509   ;;  %v15662_v20 = vld [vmem:[#allocation60_spill] sm:$0xff] }
 0xe0a   :  { %5362 = vst [vmem:[%s14429_s7 + $0x18] sm:$0x40] %v13655_v49  ;;  %v5395_v54 = vsel %vm15654_vm4, %v5394_v59, %v5393_v28  ;;  %v5390_v15 = vunpack.c.l.b16 %v5374_v5  ;;  %v5400_v51 = vrot.slane %v5388_v34, 1  ;;  %vm15658_vm5 = vcmask 1046534  }
 0xe0b   :  { %15651 = vst [vmem:[#allocation10_spill] sm:$0xff] %v13679_v26  ;;  %v5397_v17 = vsel %vm15655_vm15, %v5396_v55, %v5395_v54  ;;  %vm15659_vm0 = vcmask 1047559  }
 0xe0c   :  { %5363 = vst [vmem:[%s14429_s7 + $0x20] sm:$0x40] %v13663_v2  ;;  %v5399_v63 = vsel %vm15656_vm3, %v5398_v30, %v5397_v17  ;;  %v5403_v42 = vrot.slane %v5390_v15, 7 }
 0xe0d   :  { %15652 = vst [vmem:[#allocation70_spill] sm:$0xff] %v13687_v16  ;;  %v5401_v14 = vsel %vm15657_vm14, %v5400_v51, %v5399_v63  ;;  %v13756_v51 = vld [vmem:[%s14428_s0] sm:$0x88]  ;;  %v13766_v63 = vld [vmem:[%s14428_s0 + $0xc] sm:$0x88] }
 0xe0e   :  { %5364 = vst [vmem:[%s14429_s7 + $0x28] sm:$0x40] %v13671_v47  ;;  %v5402_v32 = vsel %vm15658_vm5, %v5389_v50, %v5401_v14  ;;  %v13761_v50 = vld [vmem:[%s14428_s0 + $0x54] sm:$0x88] }
 0xe0f   :  { %5365 = vst [vmem:[%s14429_s7 + $0x30] sm:$0x40] %v13679_v26  ;;  %v5404_v25 = vsel %vm15659_vm0, %v5403_v42, %v5402_v32  ;;  %v13771_v14 = vld [vmem:[%s14428_s0 + $0x18] sm:$0x88]  ;;  %v13776_v42 = vld [vmem:[%s14428_s0 + $0x24] sm:$0x88] }
 0xe10   :  { %5366 = vst [vmem:[%s14429_s7 + $0x38] sm:$0x40] %v13687_v16  ;;  %v5405_v41 = vpack.c.b16 %v5404_v25, %v5404_v25  ;;  %v13781_v32 = vld [vmem:[%s14428_s0 + $0x30] sm:$0x88]  ;;  %v13786_v25 = vld [vmem:[%s14428_s0 + $0x3c] sm:$0x88] }
 0xe12   :  { %5415 = vmatmul.bf16.vlgmr.msra.gmra.mxu1 %v5405_v41  ;;  %5428 = vmatmul.bf16.vlgmr.msra.gmra.mxu2 %v5405_v41 }
 0xe13   :  { %5441 = vmatmul.bf16.vlgmr.msra.gmra.mxu3 %v5405_v41  ;;  %5454 = vmatmul.bf16.vlgmr.msrb.gmra.mxu0 %v5405_v41  ;;  %v13791_v41 = vld [vmem:[%s14428_s0 + $0x48] sm:$0x88] }
 0xe8f   :  { %v5416_v43 = vpop.f32.mrf.mxu1 }
 0xe90   :  { %v5459_v1 = vmul.f32 %v7205_v44, %v5416_v43  ;;  %v5455_v21 = vpop.f32.mrf.mxu0 }
 0xe91   :  { %v13721_v53 = vadd.f32 %v5455_v21, %v15660_v58 }
 0xe92   :  { %v5460_v45 = vadd.f32 %v7206_v52, %v5459_v1  ;;  %v5527_v52 = vunpack.c.l.bf16 %v13756_v51 }
 0xe94   :  { %5464 = vmax.xlane.f32.xlu2 %v5460_v45 }
 0xe95   :  { %v5429_v19 = vpop.f32.mrf.mxu2 }
 0xe96   :  { %v5442_v0 = vpop.f32.mrf.mxu3  ;;  %v13728_v36 = vadd.f32 %v5429_v19, %v15661_v37  ;;  %v5530_v19 = vunpack.c.l.bf16 %v13766_v63 }
 0xe97   :  { %v5418_v29 = vpop.f32.mrf.mxu1  ;;  %v13738_v62 = vadd.f32 %v5442_v0, %v15662_v20  ;;  %v5533_v0 = vunpack.c.l.bf16 %v13771_v14 }
 0xe98   :  { %v5457_v3 = vpop.f32.mrf.mxu0  ;;  %v5628_v59 = vrot.slane %v13728_v36, 1  ;;  %v5629_v5 = vrot.slane %v13728_v36, 2  ;;  %v5630_v34 = vrot.slane %v13728_v36, 3  ;;  %v5631_v28 = vrot.slane %v13728_v36, 4 }
 0xe99   :  { %v5632_v55 = vrot.slane %v13728_v36, 5  ;;  %v5633_v54 = vrot.slane %v13728_v36, 6  ;;  %v5634_v30 = vrot.slane %v13728_v36, 7  ;;  %v5804_v15 = vrot.slane %v13738_v62, 1 }
 0xe9a   :  { %v5805_v17 = vrot.slane %v13738_v62, 2  ;;  %v5806_v44 = vrot.slane %v13738_v62, 3  ;;  %v5536_v29 = vunpack.c.l.bf16 %v13776_v42 }
 0xe9d   :  { %v5431_v22 = vpop.f32.mrf.mxu2 }
 0xe9e   :  { %v5444_v57 = vpop.f32.mrf.mxu3 }
 0xe9f   :  { %v5539_v57 = vunpack.c.l.bf16 %v13781_v32 }
 0xf07   :  { %v5465_v61 = vpop.xlane.xlu2 %5464 }
 0xf08   :  { %v5466_v24 = vsub.f32 %v5460_v45, %v5465_v61  ;;  %v5548_v45 = vunpack.c.l.bf16 %v13761_v50  ;;  %v5542_v61 = vunpack.c.l.bf16 %v13786_v25 }
 0xf0a   :  { %v5467_v12 = vmul.f32 1.442695, %v5466_v24  ;;  %v5545_v24 = vunpack.c.l.bf16 %v13791_v41 }
 0xf0c   :  { %7108 = vpow2.f32 %v5467_v12 }
 0xf12   :  { %v7109_v39 = vpop.eup %7108 }
 0xf13   :  { %v5471_v4 = vpack.c.bf16 %v7109_v39, %v7109_v39  ;;  %5469 = vadd.xlane.f32.xlu0 %v7109_v39 }
 0xf15   :  { %5480 = vmatmul.bf16.vlgmr.msrb.gmra.mxu1 %v5471_v4  ;;  %5493 = vmatmul.bf16.vlgmr.msrb.gmra.mxu2 %v5471_v4 }
 0xf16   :  { %5506 = vmatmul.bf16.vlgmr.msrb.gmra.mxu3 %v5471_v4 }
 0xf86   :  { %v5470_v8 = vpop.xlane.xlu0 %5469 }
 0xf87   :  { %7110 = vrcp.f32 %v5470_v8 }
 0xf8d   :  { %v13793_v43 = vpop.eup %7110 }
 0xf92   :  { %v5481_v21 = vpop.f32.mrf.mxu1 }
 0xf93   :  { %v5552_v3 = vmul.f32 %v13793_v43, %v5481_v21 }
 0xf95   :  { %v5558_v12 = vrot.slane %v5552_v3, 1  ;;  %v5561_v39 = vrot.slane %v5552_v3, 2  ;;  %v5564_v4 = vrot.slane %v5552_v3, 3  ;;  %v5567_v58 = vrot.slane %v5552_v3, 4 }
 0xf96   :  { %v5570_v37 = vrot.slane %v5552_v3, 5  ;;  %v5573_v8 = vrot.slane %v5552_v3, 6  ;;  %v5576_v20 = vrot.slane %v5552_v3, 7  ;;  %v5624_v46 = vadd.f32 %v5552_v3, %v5548_v45 }
 0xf97   :  { %v5603_v40 = vadd.f32 %v5558_v12, %v5527_v52  ;;  %v5606_v7 = vadd.f32 %v5561_v39, %v5530_v19  ;;  %v5609_v38 = vadd.f32 %v5564_v4, %v5533_v0  ;;  %v5612_v21 = vadd.f32 %v5567_v58, %v5536_v29 }
 0xf98   :  { %v5615_v11 = vadd.f32 %v5570_v37, %v5539_v57  ;;  %v5618_v23 = vadd.f32 %v5573_v8, %v5542_v61  ;;  %v5621_v13 = vadd.f32 %v5576_v20, %v5545_v24  ;;  %v5650_v6 = vadd.f32 %v5624_v46, %v13728_v36  ;;  %v5494_v10 = vpop.f32.mrf.mxu2 }
 0xf99   :  { %v5643_v56 = vadd.f32 %v5628_v59, %v5603_v40  ;;  %v5644_v60 = vadd.f32 %v5629_v5, %v5606_v7  ;;  %v5645_v31 = vadd.f32 %v5630_v34, %v5609_v38  ;;  %v5646_v33 = vadd.f32 %v5631_v28, %v5612_v21  ;;  %v13808_v18 = vpop.f32.mrf.mxu3  ;;  %v13822_v28 = vld [vmem:[%s14428_s0 + $0x5c] sm:$0x8] }
 0xf9a   :  { %v5647_v9 = vadd.f32 %v5632_v55, %v5615_v11  ;;  %v5648_v22 = vadd.f32 %v5633_v54, %v5618_v23  ;;  %v5649_v1 = vadd.f32 %v5634_v30, %v5621_v13  ;;  %v6455_v45 = vmul.f32 -1.442695, %v5650_v6  ;;  %v5483_v52 = vpop.f32.mrf.mxu1 }
 0xf9b   :  { %v6448_v19 = vmul.f32 -1.442695, %v5643_v56  ;;  %v6449_v0 = vmul.f32 -1.442695, %v5644_v60  ;;  %v6450_v29 = vmul.f32 -1.442695, %v5645_v31  ;;  %v5553_v3 = vmul.f32 %v13793_v43, %v5494_v10 }
 0xf9c   :  { %v5809_v57 = vrot.slane %v13738_v62, 6  ;;  %v5810_v36 = vrot.slane %v13738_v62, 7  ;;  %v6451_v40 = vmul.f32 -1.442695, %v5646_v33  ;;  %7112 = vpow2.f32 %v6455_v45 }
 0xf9d   :  { %7114 = vpow2.f32 %v6448_v19  ;;  %v6452_v38 = vmul.f32 -1.442695, %v5647_v9  ;;  %v5528_v7 = vunpack.c.h.bf16 %v13756_v51  ;;  %v5559_v11 = vrot.slane %v5553_v3, 1 }
 0xf9e   :  { %7116 = vpow2.f32 %v6449_v0  ;;  %v6453_v13 = vmul.f32 -1.442695, %v5648_v22  ;;  %v5531_v6 = vunpack.c.h.bf16 %v13766_v63  ;;  %v5562_v23 = vrot.slane %v5553_v3, 2 }
 0xf9f   :  { %7118 = vpow2.f32 %v6450_v29  ;;  %v6454_v46 = vmul.f32 -1.442695, %v5649_v1  ;;  %v5534_v31 = vunpack.c.h.bf16 %v13771_v14  ;;  %v5565_v60 = vrot.slane %v5553_v3, 3 }
 0xfa0   :  { %7120 = vpow2.f32 %v6451_v40  ;;  %v5537_v56 = vunpack.c.h.bf16 %v13776_v42  ;;  %v5540_v33 = vunpack.c.h.bf16 %v13781_v32  ;;  %v5568_v10 = vrot.slane %v5553_v3, 4  ;;  %v5496_v9 = vpop.f32.mrf.mxu2 }
 0xfa1   :  { %7122 = vpow2.f32 %v6452_v38  ;;  %v5543_v59 = vunpack.c.h.bf16 %v13786_v25  ;;  %v5571_v5 = vrot.slane %v5553_v3, 5  ;;  %v5604_v34 = vadd.f32 %v5559_v11, %v5528_v7  ;;  %v5509_v55 = vpop.f32.mrf.mxu3  ;;  %v5518_v9 = vld [vmem:[%s14428_s0 + $0x2c] sm:$0x8] }
 0xfa2   :  { %v7113_v54 = vpop.eup %7112  ;;  %7124 = vpow2.f32 %v6453_v13  ;;  %v5546_v30 = vunpack.c.h.bf16 %v13791_v41  ;;  %v5574_v51 = vrot.slane %v5553_v3, 6  ;;  %v5607_v63 = vadd.f32 %v5562_v23, %v5531_v6 }
 0xfa3   :  { %v7115_v14 = vpop.eup %7114  ;;  %7126 = vpow2.f32 %v6454_v46  ;;  %v13825_v42 = vadd.f32 1.0, %v7113_v54  ;;  %v5577_v32 = vrot.slane %v5553_v3, 7  ;;  %v5610_v25 = vadd.f32 %v5565_v60, %v5534_v31  ;;  %v5516_v60 = vld [vmem:[%s14428_s0 + $0x20] sm:$0x8] }
 0xfa4   :  { %v7117_v1 = vpop.eup %7116  ;;  %v13827_v22 = vadd.f32 1.0, %v7115_v14  ;;  %v5549_v61 = vunpack.c.h.bf16 %v13761_v50  ;;  %v5613_v24 = vadd.f32 %v5568_v10, %v5537_v56  ;;  %v5550_v12 = vunpack.c.l.bf16 %v13822_v28 }
 0xfa5   :  { %v7119_v39 = vpop.eup %7118  ;;  %v13831_v4 = vadd.f32 1.0, %v7117_v1  ;;  %7128 = vrcp.f32 %v13825_v42  ;;  %v5616_v41 = vadd.f32 %v5571_v5, %v5540_v33  ;;  %v5819_v58 = vadd.f32 %v5804_v15, %v5604_v34 }
 0xfa6   :  { %v7121_v37 = vpop.eup %7120  ;;  %v13836_v8 = vadd.f32 1.0, %v7119_v39  ;;  %7130 = vrcp.f32 %v13827_v22  ;;  %v5619_v20 = vadd.f32 %v5574_v51, %v5543_v59  ;;  %v5820_v50 = vadd.f32 %v5805_v17, %v5607_v63  ;;  %v5512_v17 = vld [vmem:[%s14428_s0 + $0x8] sm:$0x8] }
 0xfa7   :  { %v7123_v21 = vpop.eup %7122  ;;  %v13841_v45 = vadd.f32 1.0, %v7121_v37  ;;  %7132 = vrcp.f32 %v13831_v4  ;;  %v5622_v52 = vadd.f32 %v5577_v32, %v5546_v30  ;;  %v5821_v19 = vadd.f32 %v5806_v44, %v5610_v25 }
 0xfa8   :  { %v7125_v0 = vpop.eup %7124  ;;  %v13846_v15 = vadd.f32 1.0, %v7123_v21  ;;  %7134 = vrcp.f32 %v13836_v8  ;;  %v5625_v29 = vadd.f32 %v5553_v3, %v5549_v61  ;;  %v15663_v40 = vrot.slane %v13738_v62, 4  ;;  %v5514_v3 = vld [vmem:[%s14428_s0 + $0x14] sm:$0x8]  ;;  %v5524_v61 = vld [vmem:[%s14428_s0 + $0x50] sm:$0x8] }
 0xfa9   :  { %v7127_v7 = vpop.eup %7126  ;;  %v13854_v11 = vadd.f32 1.0, %v7125_v0  ;;  %7136 = vrcp.f32 %v13841_v45  ;;  %v15664_v44 = vrot.slane %v13738_v62, 5  ;;  %v6456_v6 = vmul.f32 -1.442695, %v5819_v58 }
 0xfaa   :  { %v5822_v38 = vadd.f32 %v15663_v40, %v5613_v24  ;;  %v13862_v23 = vadd.f32 1.0, %v7127_v7  ;;  %7138 = vrcp.f32 %v13846_v15  ;;  %v5824_v46 = vadd.f32 %v5809_v57, %v5619_v20  ;;  %v5520_v57 = vld [vmem:[%s14428_s0 + $0x38] sm:$0x8] }
 0xfab   :  { %v5823_v13 = vadd.f32 %v15664_v44, %v5616_v41  ;;  %v6457_v31 = vmul.f32 -1.442695, %v5820_v50  ;;  %v13870_v56 = vpop.eup %7128  ;;  %7140 = vrcp.f32 %v13854_v11  ;;  %v5825_v33 = vadd.f32 %v5810_v36, %v5622_v52  ;;  %v5522_v36 = vld [vmem:[%s14428_s0 + $0x44] sm:$0x8] }
 0xfac   :  { %v6458_v10 = vmul.f32 -1.442695, %v5821_v19  ;;  %v5554_v59 = vmul.f32 %v13793_v43, %v13808_v18  ;;  %v13883_v5 = vpop.eup %7130  ;;  %7142 = vrcp.f32 %v13862_v23  ;;  %v5826_v34 = vadd.f32 %v5625_v29, %v13738_v62 }
 0xfad   :  { %v6459_v55 = vmul.f32 -1.442695, %v5822_v38  ;;  %v5529_v54 = vunpack.c.l.bf16 %v5512_v17  ;;  %v13890_v30 = vpop.eup %7132  ;;  %7144 = vpow2.f32 %v6456_v6  ;;  %v6460_v51 = vmul.f32 -1.442695, %v5823_v13 }
 0xfae   :  { %v5532_v63 = vunpack.c.l.bf16 %v5514_v3  ;;  %v5535_v14 = vunpack.c.l.bf16 %v5516_v60  ;;  %v13892_v32 = vpop.eup %7134  ;;  %7146 = vpow2.f32 %v6457_v31  ;;  %v6461_v18 = vmul.f32 -1.442695, %v5824_v46 }
 0xfaf   :  { %v5538_v43 = vunpack.c.l.bf16 %v5518_v9  ;;  %v5541_v25 = vunpack.c.l.bf16 %v5520_v57  ;;  %v13894_v1 = vpop.eup %7136  ;;  %7148 = vpow2.f32 %v6458_v10  ;;  %v6462_v62 = vmul.f32 -1.442695, %v5825_v33 }
 0xfb0   :  { %v5544_v24 = vunpack.c.l.bf16 %v5522_v36  ;;  %v5560_v39 = vrot.slane %v5554_v59, 1  ;;  %v13899_v41 = vpop.eup %7138  ;;  %7150 = vpow2.f32 %v6459_v55  ;;  %v6463_v58 = vmul.f32 -1.442695, %v5826_v34 }
 0xfb1   :  { %v5563_v37 = vrot.slane %v5554_v59, 2  ;;  %v5566_v20 = vrot.slane %v5554_v59, 3  ;;  %v13901_v50 = vpop.eup %7140  ;;  %7152 = vpow2.f32 %v6460_v51  ;;  %v5569_v21 = vrot.slane %v5554_v59, 4 }
 0xfb2   :  { %v5572_v52 = vrot.slane %v5554_v59, 5  ;;  %v5684_v19 = vmul.f32 %v13883_v5, %v13827_v22  ;;  %v13905_v0 = vpop.eup %7142  ;;  %7154 = vpow2.f32 %v6461_v18  ;;  %v5547_v29 = vunpack.c.l.bf16 %v5524_v61 }
 0xfb3   :  { %v5575_v40 = vrot.slane %v5554_v59, 6  ;;  %v5699_v38 = vmul.f32 %v13890_v30, %v13831_v4  ;;  %v7145_v17 = vpop.eup %7144  ;;  %7156 = vpow2.f32 %v6462_v62  ;;  %v5578_v7 = vrot.slane %v5554_v59, 7 }
 0xfb4   :  { %v13909_v44 = vadd.f32 %v5560_v39, %v5529_v54  ;;  %v5692_v13 = vand.u32 2147483647, %v13827_v22  ;;  %v7147_v6 = vpop.eup %7146  ;;  %7158 = vpow2.f32 %v6463_v58  ;;  %v13912_v3 = vadd.f32 1.0, %v7145_v17 }
 0xfb5   :  { %v13914_v46 = vadd.f32 %v5563_v37, %v5532_v63  ;;  %v13916_v31 = vadd.f32 %v5566_v20, %v5535_v14  ;;  %v7149_v60 = vpop.eup %7148  ;;  %v13918_v33 = vadd.f32 1.0, %v7147_v6  ;;  %v13920_v10 = vadd.f32 %v5569_v21, %v5538_v43 }
 0xfb6   :  { %v13922_v9 = vadd.f32 %v5572_v52, %v5541_v25  ;;  %v5685_v57 = vsub.f32 1.0, %v5684_v19  ;;  %v7151_v34 = vpop.eup %7150  ;;  %v13924_v55 = vadd.f32 1.0, %v7149_v60  ;;  %7160 = vrcp.f32 %v13912_v3 }
 0xfb7   :  { %v13927_v36 = vadd.f32 %v5575_v40, %v5544_v24  ;;  %v5700_v54 = vsub.f32 1.0, %v5699_v38  ;;  %v7153_v51 = vpop.eup %7152  ;;  %v13929_v63 = vadd.f32 1.0, %v7151_v34  ;;  %7162 = vrcp.f32 %v13918_v33 }
 0xfb8   :  { %v13932_v14 = vadd.f32 %v5578_v7, %v5547_v29  ;;  %v13936_v18 = vadd.f32 %v5554_v59, %v5550_v12  ;;  %vm5688_vm12 = vweird.f32 %v13827_v22  ;;  %v7155_v43 = vpop.eup %7154  ;;  %v13939_v25 = vadd.f32 1.0, %v7153_v51 }
 0xfb9   :  { %7164 = vrcp.f32 %v13924_v55  ;;  %v5694_v62 = vand.u32 2147483648, %v13827_v22  ;;  %v5709_v61 = vand.u32 2147483648, %v13831_v4  ;;  %v7157_v24 = vpop.eup %7156  ;;  %v13944_v39 = vadd.f32 1.0, %v7155_v43 }
 0xfba   :  { %7166 = vrcp.f32 %v13929_v63  ;;  %v5686_v28 = vmul.f32 %v13883_v5, %v5685_v57  ;;  %v5707_v12 = vand.u32 2147483647, %v13831_v4  ;;  %v7159_v59 = vpop.eup %7158  ;;  %v13949_v58 = vadd.f32 1.0, %v7157_v24 }
 0xfbb   :  { %7168 = vrcp.f32 %v13939_v25  ;;  %v5701_v37 = vmul.f32 %v13890_v30, %v5700_v54  ;;  %v5714_v20 = vmul.f32 %v13892_v32, %v13836_v8  ;;  %v13955_v21 = vadd.f32 1.0, %v7159_v59 }
 0xfbc   :  { %7170 = vrcp.f32 %v13944_v39  ;;  %vm5689_vm10 = vweird.f32 %v13883_v5  ;;  %vm5703_vm6 = vweird.f32 %v13831_v4  ;;  %v13960_v52 = vpop.eup %7160  ;;  %vm13963_vm8 = vcmp.eq.f32.partialorder %v5692_v13, 8.507059e+37 }
 0xfbd   :  { %7172 = vrcp.f32 %v13949_v58  ;;  %v5695_v29 = vor.u32 1.1754944e-38, %v5694_v62  ;;  %vm5704_vm7 = vweird.f32 %v13890_v30  ;;  %v5710_v40 = vor.u32 1.1754944e-38, %v5709_v61  ;;  %v13968_v38 = vpop.eup %7162  ;;  %vm14002_vm1 = vmor %vm5688_vm12, %vm5689_vm10 }
 0xfbe   :  { %v5860_v17 = vmul.f32 %v13960_v52, %v13912_v3  ;;  %7174 = vrcp.f32 %v13955_v21  ;;  %v5687_v6 = vadd.f32 %v13883_v5, %v5686_v28  ;;  %vm13975_vm11 = vcmp.eq.f32.partialorder %v5707_v12, 8.507059e+37  ;;  %vm14019_vm9 = vmor %vm5703_vm6, %vm5704_vm7 }
 0xfbf   :  { %v13979_v60 = vpop.eup %7164  ;;  %v5875_v57 = vmul.f32 %v13968_v38, %v13918_v33  ;;  %v5702_v54 = vadd.f32 %v13890_v30, %v5701_v37  ;;  %v5715_v51 = vsub.f32 1.0, %v5714_v20  ;;  %vm5719_vm2 = vweird.f32 %v13892_v32 }
 0xfc0   :  { %v13985_v43 = vpop.eup %7166  ;;  %v5890_v62 = vmul.f32 %v13979_v60, %v13924_v55  ;;  %v5861_v61 = vsub.f32 1.0, %v5860_v17  ;;  %v5691_v37 = vsel %vm14002_vm1, %v13883_v5, %v5687_v6  ;;  %vm5718_vm13 = vweird.f32 %v13836_v8 }
 0xfc1   :  { %v13992_v12 = vpop.eup %7168  ;;  %v5905_v59 = vmul.f32 %v13985_v43, %v13929_v63  ;;  %v5716_v24 = vmul.f32 %v13892_v32, %v5715_v51  ;;  %v5876_v17 = vsub.f32 1.0, %v5875_v57  ;;  %v5706_v20 = vsel %vm14019_vm9, %v13890_v30, %v5702_v54  ;;  %vm5720_vm4 = vmor %vm5718_vm13, %vm5719_vm2 }
 0xfc2   :  { %v14007_v28 = vpop.eup %7170  ;;  %v5920_v7 = vmul.f32 %v13992_v12, %v13939_v25  ;;  %v5891_v16 = vsub.f32 1.0, %v5890_v62  ;;  %v5722_v62 = vand.u32 2147483647, %v13836_v8  ;;  %v14041_v30 = vsel %vm13963_vm8, %v5695_v29, %v5691_v37 }
 0xfc3   :  { %v14023_v51 = vpop.eup %7172  ;;  %v5935_v26 = vmul.f32 %v14007_v28, %v13944_v39  ;;  %v5906_v6 = vsub.f32 1.0, %v5905_v59  ;;  %v5717_v47 = vadd.f32 %v13892_v32, %v5716_v24  ;;  %v14046_v54 = vmul.f32 %v13960_v52, %v5861_v61 }
 0xfc4   :  { %v14030_v5 = vpop.eup %7174  ;;  %v5921_v34 = vsub.f32 1.0, %v5920_v7  ;;  %v5950_v4 = vmul.f32 %v14023_v51, %v13949_v58  ;;  %v5724_v7 = vand.u32 2147483648, %v13836_v8  ;;  %v14053_v24 = vsel %vm13975_vm11, %v5710_v40, %v5706_v20 }
 0xfc5   :  { %v5936_v2 = vsub.f32 1.0, %v5935_v26  ;;  %v5965_v57 = vmul.f32 %v14030_v5, %v13955_v21  ;;  %v14049_v26 = vmul.f32 %v13968_v38, %v5876_v17  ;;  %v5729_v59 = vmul.f32 %v13894_v1, %v13841_v45 }
 0xfc6   :  { %v5951_v49 = vsub.f32 1.0, %v5950_v4  ;;  %v14058_v19 = vmul.f32 %v13979_v60, %v5891_v16  ;;  %v14061_v29 = vmul.f32 %v13985_v43, %v5906_v6  ;;  %v14064_v8 = vmul.f32 %v13992_v12, %v5921_v34 }
 0xfc7   :  { %v5966_v61 = vsub.f32 1.0, %v5965_v57  ;;  %v14067_v37 = vmul.f32 %v14007_v28, %v5936_v2  ;;  %v5721_v40 = vsel %vm5720_vm4, %v13892_v32, %v5717_v47  ;;  %vm5723_vm15 = vcmp.eq.f32.partialorder %v5722_v62, 8.507059e+37 }
 0xfc8   :  { %v5730_v13 = vsub.f32 1.0, %v5729_v59  ;;  %v14071_v22 = vmul.f32 %v14023_v51, %v5951_v49  ;;  %v5725_v16 = vor.u32 1.1754944e-38, %v5724_v7  ;;  %vm5733_vm3 = vweird.f32 %v13841_v45 }
 0xfc9   :  { %v5744_v17 = vmul.f32 %v13899_v41, %v13846_v15  ;;  %vm5734_vm14 = vweird.f32 %v13894_v1  ;;  %v5737_v2 = vand.u32 2147483647, %v13841_v45  ;;  %v5739_v20 = vand.u32 2147483648, %v13841_v45 }
 0xfca   :  { %v5731_v34 = vmul.f32 %v13894_v1, %v5730_v13  ;;  %v14081_v47 = vmul.f32 %v14030_v5, %v5966_v61  ;;  %v14083_v32 = vsel %vm5723_vm15, %v5725_v16, %v5721_v40  ;;  %v5759_v6 = vmul.f32 %v13901_v50, %v13854_v11  ;;  %vm14099_vm10 = vmor %vm5733_vm3, %vm5734_vm14 }
 0xfcb   :  { %v5745_v49 = vsub.f32 1.0, %v5744_v17  ;;  %vm5748_vm5 = vweird.f32 %v13846_v15  ;;  %v5752_v57 = vand.u32 2147483647, %v13846_v15  ;;  %v5754_v62 = vand.u32 2147483648, %v13846_v15 }
 0xfcc   :  { %v5732_v4 = vadd.f32 %v13894_v1, %v5731_v34  ;;  %vm5749_vm0 = vweird.f32 %v13899_v41  ;;  %v5760_v59 = vsub.f32 1.0, %v5759_v6  ;;  %v5767_v61 = vand.u32 2147483647, %v13854_v11 }
 0xfcd   :  { %v5746_v7 = vmul.f32 %v13899_v41, %v5745_v49  ;;  %vm5864_vm12 = vweird.f32 %v13912_v3  ;;  %vm14103_vm6 = vcmp.eq.f32.partialorder %v5737_v2, 8.507059e+37  ;;  %v5740_v16 = vor.u32 1.1754944e-38, %v5739_v20  ;;  %vm14138_vm13 = vmor %vm5748_vm5, %vm5749_vm0 }
 0xfce   :  { %v5769_v17 = vand.u32 2147483648, %v13854_v11  ;;  %v5774_v34 = vmul.f32 %v13905_v0, %v13862_v23  ;;  %v5736_v49 = vsel %vm14099_vm10, %v13894_v1, %v5732_v4  ;;  %v5761_v6 = vmul.f32 %v13901_v50, %v5760_v59 }
 0xfcf   :  { %v5747_v45 = vadd.f32 %v13899_v41, %v5746_v7  ;;  %vm5763_vm8 = vweird.f32 %v13854_v11  ;;  %vm14116_vm7 = vcmp.eq.f32.partialorder %v5752_v57, 8.507059e+37  ;;  %v5755_v20 = vor.u32 1.1754944e-38, %v5754_v62 }
 0xfd0   :  { %vm5764_vm11 = vweird.f32 %v13901_v50  ;;  %v5775_v27 = vsub.f32 1.0, %v5774_v34  ;;  %vm5879_vm1 = vweird.f32 %v13918_v33  ;;  %v5762_v35 = vadd.f32 %v13901_v50, %v5761_v6 }
 0xfd1   :  { %vm14123_vm9 = vcmp.eq.f32.partialorder %v5767_v61, 8.507059e+37  ;;  %vm5778_vm2 = vweird.f32 %v13862_v23  ;;  %v5789_v4 = vmul.f32 %v13870_v56, %v13825_v42  ;;  %v14132_v57 = vsel %vm14103_vm6, %v5740_v16, %v5736_v49  ;;  %vm14155_vm14 = vmor %vm5763_vm8, %vm5764_vm11 }
 0xfd2   :  { %v5770_v7 = vor.u32 1.1754944e-38, %v5769_v17  ;;  %v5776_v59 = vmul.f32 %v13905_v0, %v5775_v27  ;;  %v5782_v61 = vand.u32 2147483647, %v13862_v23  ;;  %vm5894_vm4 = vweird.f32 %v13924_v55 }
 0xfd3   :  { %v5751_v40 = vsel %vm14138_vm13, %v13899_v41, %v5747_v45  ;;  %vm5779_vm15 = vweird.f32 %v13905_v0  ;;  %v5784_v13 = vand.u32 2147483648, %v13862_v23  ;;  %v5790_v15 = vsub.f32 1.0, %v5789_v4 }
 0xfd4   :  { %vm5909_vm3 = vweird.f32 %v13929_v63  ;;  %v5777_v16 = vadd.f32 %v13905_v0, %v5776_v59  ;;  %vm5793_vm5 = vweird.f32 %v13825_v42  ;;  %v5797_v41 = vand.u32 2147483647, %v13825_v42  ;;  %vm14179_vm8 = vmor %vm5778_vm2, %vm5779_vm15 }
 0xfd5   :  { %v5863_v17 = vadd.f32 %v13960_v52, %v14046_v54  ;;  %vm5924_vm0 = vweird.f32 %v13939_v25  ;;  %v5766_v34 = vsel %vm14155_vm14, %v13901_v50, %v5762_v35  ;;  %v5791_v11 = vmul.f32 %v13870_v56, %v5790_v15 }
 0xfd6   :  { %vm5794_vm10 = vweird.f32 %v13870_v56  ;;  %vm5865_vm6 = vweird.f32 %v13960_v52  ;;  %v14173_v49 = vsel %vm14116_vm7, %v5755_v20, %v5751_v40  ;;  %vm14183_vm11 = vcmp.eq.f32.partialorder %v5782_v61, 8.507059e+37 }
 0xfd7   :  { %v5799_v50 = vand.u32 2147483648, %v13825_v42  ;;  %v5868_v45 = vand.u32 2147483647, %v13912_v3  ;;  %v5781_v6 = vsel %vm14179_vm8, %v13905_v0, %v5777_v16  ;;  %v5785_v2 = vor.u32 1.1754944e-38, %v5784_v13  ;;  %vm14195_vm7 = vmor %vm5864_vm12, %vm5865_vm6 }
 0xfd8   :  { %v5792_v20 = vadd.f32 %v13870_v56, %v5791_v11  ;;  %v5878_v4 = vadd.f32 %v13968_v38, %v14049_v26  ;;  %v14203_v62 = vsel %vm14123_vm9, %v5770_v7, %v5766_v34  ;;  %vm14207_vm2 = vmor %vm5793_vm5, %vm5794_vm10  ;;  %vm14211_vm13 = vcmp.eq.f32.partialorder %v5797_v41, 8.507059e+37 }
 0xfd9   :  { %v5867_v61 = vsel %vm14195_vm7, %v13960_v52, %v5863_v17  ;;  %vm5880_vm12 = vweird.f32 %v13968_v38  ;;  %vm5939_vm15 = vweird.f32 %v13944_v39  ;;  %v15695_v26 = vand.u32 2147483648, %v13912_v3 }
 0xfda   :  { %v5796_v42 = vsel %vm14207_vm2, %v13870_v56, %v5792_v20  ;;  %v5883_v7 = vand.u32 2147483647, %v13918_v33  ;;  %vm5895_vm9 = vweird.f32 %v13979_v60  ;;  %vm5954_vm14 = vweird.f32 %v13949_v58  ;;  %vm14232_vm10 = vmor %vm5879_vm1, %vm5880_vm12 }
 0xfdb   :  { %v5871_v1 = vor.u32 1.1754944e-38, %v15695_v26  ;;  %v5786_v52 = vsel %vm14183_vm11, %v5785_v2, %v5781_v6  ;;  %v5800_v40 = vor.u32 1.1754944e-38, %v5799_v50  ;;  %vm5869_vm5 = vcmp.eq.f32.partialorder %v5868_v45, 8.507059e+37  ;;  %vm14252_vm1 = vmor %vm5894_vm4, %vm5895_vm9 }
 0xfdc   :  { %v5893_v56 = vadd.f32 %v13979_v60, %v14058_v19  ;;  %vm5969_vm6 = vweird.f32 %v13955_v21  ;;  %v5882_v15 = vsel %vm14232_vm10, %v13968_v38, %v5878_v4  ;;  %v15698_v27 = vand.u32 2147483648, %v13918_v33 }
 0xfdd   :  { %v14239_v3 = vsel %vm5869_vm5, %v5871_v1, %v5867_v61  ;;  %v5908_v41 = vadd.f32 %v13985_v43, %v14061_v29  ;;  %v5801_v17 = vsel %vm14211_vm13, %v5800_v40, %v5796_v42  ;;  %v5898_v34 = vand.u32 2147483647, %v13924_v55 }
 0xfde   :  { %v5886_v16 = vor.u32 1.1754944e-38, %v15698_v27  ;;  %vm5910_vm8 = vweird.f32 %v13985_v43  ;;  %v5913_v38 = vand.u32 2147483647, %v13929_v63  ;;  %vm5884_vm11 = vcmp.eq.f32.partialorder %v5883_v7, 8.507059e+37 }
 0xfdf   :  { %vm14261_vm7 = vmor %vm5909_vm3, %vm5910_vm8  ;;  %v5923_v29 = vadd.f32 %v13992_v12, %v14064_v8  ;;  %vm5925_vm4 = vweird.f32 %v13992_v12  ;;  %v5928_v11 = vand.u32 2147483647, %v13939_v25  ;;  %v5897_v35 = vsel %vm14252_vm1, %v13979_v60, %v5893_v56 }
 0xfe0   :  { %v14269_v54 = vsel %vm5884_vm11, %v5886_v16, %v5882_v15  ;;  %v15703_v50 = vand.u32 2147483648, %v13924_v55  ;;  %v5912_v6 = vsel %vm14261_vm7, %v13985_v43, %v5908_v41  ;;  %vm5926_vm3 = vmor %vm5924_vm0, %vm5925_vm4  ;;  %v15704_v8 = vand.u32 2147483648, %v13929_v63 }
 0xfe1   :  { %v5927_v20 = vsel %vm5926_vm3, %v13992_v12, %v5923_v29  ;;  %v5938_v23 = vadd.f32 %v14007_v28, %v14067_v37  ;;  %vm5940_vm2 = vweird.f32 %v14007_v28  ;;  %vm5899_vm13 = vcmp.eq.f32.partialorder %v5898_v34, 8.507059e+37  ;;  %v15733_v12 = vld [vmem:[#allocation10_spill] sm:$0xff] }
 0xfe2   :  { %v5901_v45 = vor.u32 1.1754944e-38, %v15703_v50  ;;  %v5916_v2 = vor.u32 1.1754944e-38, %v15704_v8  ;;  %vm5914_vm12 = vcmp.eq.f32.partialorder %v5913_v38, 8.507059e+37  ;;  %v15705_v55 = vand.u32 2147483648, %v13939_v25  ;;  %vm14300_vm5 = vmor %vm5939_vm15, %vm5940_vm2  ;;  %v15727_v8 = vld [vmem:[#allocation7_spill] sm:$0xff] }
 0xfe3   :  { %v5953_v43 = vadd.f32 %v14023_v51, %v14071_v22  ;;  %vm5929_vm0 = vcmp.eq.f32.partialorder %v5928_v11, 8.507059e+37  ;;  %vm5955_vm9 = vweird.f32 %v14023_v51  ;;  %v5943_v25 = vand.u32 2147483647, %v13944_v39 }
 0xfe4   :  { %v5931_v60 = vor.u32 1.1754944e-38, %v15705_v55  ;;  %v14291_v4 = vsel %vm5899_vm13, %v5901_v45, %v5897_v35  ;;  %v14293_v0 = vsel %vm5914_vm12, %v5916_v2, %v5912_v6  ;;  %v5968_v37 = vadd.f32 %v14030_v5, %v14081_v47  ;;  %vm14315_vm15 = vmor %vm5954_vm14, %vm5955_vm9 }
 0xfe5   :  { %vm5970_vm10 = vweird.f32 %v14030_v5  ;;  %v5942_v22 = vsel %vm14300_vm5, %v14007_v28, %v5938_v23  ;;  %v15708_v59 = vand.u32 2147483648, %v13944_v39  ;;  %v5958_v26 = vand.u32 2147483647, %v13949_v58  ;;  %v15729_v23 = vld [vmem:[#allocation8_spill] sm:$0xff] }
 0xfe6   :  { %v14296_v63 = vsel %vm5929_vm0, %v5931_v60, %v5927_v20  ;;  %v15711_v47 = vrot.slane %v13721_v53, 1  ;;  %v5957_v7 = vsel %vm14315_vm15, %v14023_v51, %v5953_v43  ;;  %v15712_v28 = vand.u32 2147483648, %v13949_v58  ;;  %vm14330_vm1 = vmor %vm5969_vm6, %vm5970_vm10 }
 0xfe7   :  { %v5946_v61 = vor.u32 1.1754944e-38, %v15708_v59  ;;  %v5973_v13 = vand.u32 2147483647, %v13955_v21  ;;  %v15715_v56 = vrot.slane %v13721_v53, 2  ;;  %v15716_v58 = vrot.slane %v13721_v53, 3 }
 0xfe8   :  { %v5995_v1 = vmul.f32 %v15711_v47, %v14041_v30  ;;  %v5961_v39 = vor.u32 1.1754944e-38, %v15712_v28  ;;  %v5972_v30 = vsel %vm14330_vm1, %v14030_v5, %v5968_v37  ;;  %v15717_v27 = vrot.slane %v13721_v53, 4 }
 0xfe9   :  { %v5996_v15 = vmul.f32 %v15715_v56, %v14053_v24  ;;  %v5997_v51 = vmul.f32 %v15716_v58, %v14083_v32  ;;  %v15718_v41 = vrot.slane %v13721_v53, 5  ;;  %v15719_v34 = vrot.slane %v13721_v53, 6 }
 0xfea   :  { %v5998_v16 = vmul.f32 %v15717_v27, %v14132_v57  ;;  %v15720_v38 = vrot.slane %v13721_v53, 7  ;;  %v6002_v5 = vmul.f32 %v5801_v17, %v13721_v53  ;;  %v6003_v29 = vadd.f32 %v5995_v1, %v13909_v44 }
 0xfeb   :  { %v5999_v19 = vmul.f32 %v15718_v41, %v14173_v49  ;;  %v6000_v24 = vmul.f32 %v15719_v34, %v14203_v62  ;;  %v6004_v32 = vadd.f32 %v5996_v15, %v13914_v46  ;;  %v6005_v11 = vadd.f32 %v5997_v51, %v13916_v31 }
 0xfec   :  { %v6001_v33 = vmul.f32 %v15720_v38, %v5786_v52  ;;  %v6006_v57 = vadd.f32 %v5998_v16, %v13920_v10  ;;  %v6010_v62 = vadd.f32 %v6002_v5, %v13936_v18  ;;  %7176 = vtanh.f32 %v6003_v29 }
 0xfed   :  { %v6007_v35 = vadd.f32 %v5999_v19, %v13922_v9  ;;  %v6008_v49 = vadd.f32 %v6000_v24, %v13927_v36  ;;  %vm5944_vm14 = vcmp.eq.f32.partialorder %v5943_v25, 8.507059e+37  ;;  %vm5959_vm6 = vcmp.eq.f32.partialorder %v5958_v26, 8.507059e+37 }
 0xfee   :  { %v6009_v50 = vadd.f32 %v6001_v33, %v13932_v14  ;;  %v15721_v53 = vand.u32 2147483648, %v13955_v21  ;;  %7178 = vtanh.f32 %v6004_v32  ;;  %v5947_v46 = vsel %vm5944_vm14, %v5946_v61, %v5942_v22  ;;  %v15723_v14 = vld [vmem:[#allocation5_spill] sm:$0xff]  ;;  %v15725_v21 = vld [vmem:[#allocation6_spill] sm:$0xff] }
 0xfef   :  { %v5962_v52 = vsel %vm5959_vm6, %v5961_v39, %v5957_v7  ;;  %vm5974_vm8 = vcmp.eq.f32.partialorder %v5973_v13, 8.507059e+37  ;;  %7180 = vtanh.f32 %v6005_v11  ;;  %v6019_v10 = vsub.f32 1.0, %v14239_v3  ;;  %v15735_v61 = vld [vmem:[#allocation70_spill] sm:$0xff] }
 0xff0   :  { %v5976_v44 = vor.u32 1.1754944e-38, %v15721_v53  ;;  %7182 = vtanh.f32 %v6006_v57  ;;  %v15722_v9 = vrot.slane %v13643_v48, 7  ;;  %v15724_v18 = vrot.slane %v15723_v14, 7  ;;  %v15731_v48 = vld [vmem:[#allocation9_spill] sm:$0xff] }
 0xff1   :  { %7184 = vtanh.f32 %v6007_v35  ;;  %v15726_v45 = vrot.slane %v15725_v21, 7  ;;  %v15728_v2 = vrot.slane %v15727_v8, 7  ;;  %v15730_v55 = vrot.slane %v15729_v23, 7 }
 0xff2   :  { %v5977_v31 = vsel %vm5974_vm8, %v5976_v44, %v5972_v30  ;;  %v6059_v36 = vmul.f32 %v15722_v9, %v14239_v3  ;;  %v6060_v17 = vmul.f32 %v15724_v18, %v14269_v54  ;;  %7186 = vtanh.f32 %v6008_v49  ;;  %v7177_v22 = vpop.eup %7176 }
 0xff3   :  { %v6061_v6 = vmul.f32 %v15726_v45, %v14291_v4  ;;  %v6062_v20 = vmul.f32 %v15728_v2, %v14293_v0  ;;  %v6063_v60 = vmul.f32 %v15730_v55, %v14296_v63  ;;  %v15732_v3 = vrot.slane %v15731_v48, 7 }
 0xff4   :  { %v15734_v25 = vrot.slane %v15733_v12, 7  ;;  %7188 = vtanh.f32 %v6009_v50  ;;  %v6020_v59 = vsub.f32 1.0, %v14269_v54  ;;  %v15736_v42 = vrot.slane %v15735_v61, 7  ;;  %v7179_v47 = vpop.eup %7178 }
 0xff5   :  { %v6064_v43 = vmul.f32 %v15732_v3, %v5947_v46  ;;  %7190 = vtanh.f32 %v6010_v62  ;;  %v6021_v1 = vsub.f32 1.0, %v14291_v4  ;;  %v6027_v7 = vmul.f32 %v7177_v22, %v6019_v10  ;;  %v7181_v28 = vpop.eup %7180 }
 0xff6   :  { %v6065_v37 = vmul.f32 %v15734_v25, %v5962_v52  ;;  %v6066_v26 = vmul.f32 %v15736_v42, %v5977_v31  ;;  %v6022_v39 = vsub.f32 1.0, %v14293_v0  ;;  %v6028_v40 = vmul.f32 %v7179_v47, %v6020_v59  ;;  %v7183_v13 = vpop.eup %7182 }
 0xff7   :  { %v6023_v56 = vsub.f32 1.0, %v14296_v63  ;;  %v6029_v15 = vmul.f32 %v7181_v28, %v6021_v1  ;;  %v6067_v30 = vadd.f32 %v6059_v36, %v6027_v7  ;;  %v7185_v58 = vpop.eup %7184  ;;  %v6024_v51 = vsub.f32 1.0, %v5947_v46 }
 0xff8   :  { %v6030_v54 = vmul.f32 %v7183_v13, %v6022_v39  ;;  %v6068_v27 = vadd.f32 %v6060_v17, %v6028_v40  ;;  %v7187_v16 = vpop.eup %7186  ;;  %v6025_v41 = vsub.f32 1.0, %v5962_v52  ;;  %v6026_v0 = vsub.f32 1.0, %v5977_v31 }
 0xff9   :  { %v6031_v19 = vmul.f32 %v7185_v58, %v6023_v56  ;;  %v6069_v34 = vadd.f32 %v6061_v6, %v6029_v15  ;;  %6075 = vst [vmem:[%s14429_s7] sm:$0x80] %v6067_v30  ;;  %v6032_v24 = vmul.f32 %v7187_v16, %v6024_v51  ;;  %vm15737_vm11 = vcmask 1041409  }
 0xffa   :  { %v7189_v4 = vpop.eup %7188  ;;  %v6070_v38 = vadd.f32 %v6062_v20, %v6030_v54  ;;  %6076 = vst [vmem:[%s14429_s7 + $0x8] sm:$0x80] %v6068_v27  ;;  %v6091_v63 = vrot.slane %v6068_v27, 7  ;;  %vm15738_vm7 = vcmask 1042434   ;;  %vm15739_vm4 = vcmask 1043459  }
 0xffb   :  { %v7191_v33 = vpop.eup %7190  ;;  %v6033_v5 = vmul.f32 %v7189_v4, %v6025_v41  ;;  %v6071_v29 = vadd.f32 %v6063_v60, %v6031_v19  ;;  %6077 = vst [vmem:[%s14429_s7 + $0x10] sm:$0x80] %v6069_v34  ;;  %v6092_v32 = vrot.slane %v6069_v34, 6  ;;  %v6072_v57 = vadd.f32 %v6064_v43, %v6032_v24 }
 0xffc   :  { %v6034_v11 = vmul.f32 %v7191_v33, %v6026_v0  ;;  %6078 = vst [vmem:[%s14429_s7 + $0x18] sm:$0x80] %v6070_v38  ;;  %v6094_v35 = vrot.slane %v6070_v38, 5  ;;  %vm15740_vm3 = vcmask 1044484   ;;  %vm15741_vm2 = vcmask 1045509  }
 0xffd   :  { %v6073_v49 = vadd.f32 %v6065_v37, %v6033_v5  ;;  %6079 = vst [vmem:[%s14429_s7 + $0x20] sm:$0x80] %v6071_v29  ;;  %v6093_v50 = vsel %vm15737_vm11, %v6092_v32, %v6091_v63  ;;  %v6096_v62 = vrot.slane %v6071_v29, 4  ;;  %v6098_v46 = vrot.slane %v6072_v57, 3 }
 0xffe   :  { %v6074_v53 = vadd.f32 %v6066_v26, %v6034_v11  ;;  %6080 = vst [vmem:[%s14429_s7 + $0x28] sm:$0x80] %v6072_v57  ;;  %v6095_v44 = vsel %vm15738_vm7, %v6094_v35, %v6093_v50  ;;  %vm15742_vm13 = vcmask 1046534  }
 0xfff   :  { %6081 = vst [vmem:[%s14429_s7 + $0x30] sm:$0x80] %v6073_v49  ;;  %v6097_v52 = vsel %vm15739_vm4, %v6096_v62, %v6095_v44  ;;  %v6100_v31 = vrot.slane %v6073_v49, 2 }
0x1000   :  { %6082 = vst [vmem:[%s14429_s7 + $0x38] sm:$0x80] %v6074_v53  ;;  %v6099_v10 = vsel %vm15740_vm3, %v6098_v46, %v6097_v52  ;;  %v6102_v9 = vrot.slane %v6074_v53, 1 }
0x1001   :  { %v6101_v36 = vsel %vm15741_vm2, %v6100_v31, %v6099_v10  ;;  %6106 = vst [vmem:[#allocation2 - $0x7] sm:$0x80] %v6067_v30 }
0x1002   :  { %v6103_v14 = vsel %vm15742_vm13, %v6102_v9, %v6101_v36 }
0x1003   :  { %6107 = vst [vmem:[#allocation2 + $0x1] sm:$0x7f] %v6103_v14 }

</bundles_post_ra>
